<compile_context>
chip_gen: v5e
topology: v5e:2x2
jax: 0.10.0
libtpu: 0.0.40
codegen_flags: <defaults>
</compile_context>

<pallas_src>
import functools

import jax
import jax.numpy as jnp
import numpy as np
from jax import lax
from jax.experimental import pallas as pl
from jax.experimental.pallas import tpu as pltpu

# ---------------------------------------------------------------------------
# Fixed network geometry (from the PyTorch module, 16x16 RGB input)
# ---------------------------------------------------------------------------
K = 4                     # kernel size of all three convs
C_IN, C1, C2, C3 = 3, 32, 64, 10
S_IN, S1, S2 = 16, 8, 4   # spatial: 16x16 -> conv1 -> 8x8 -> conv2 -> 4x4 -> fc -> 1x1
N3P = 128                 # fc output channels padded to one full lane group
TB = 8                    # batch tile per grid step (rows stay (8,128)-aligned)


def _round_up(v, m):
    return (v + m - 1) // m * m


# ---------------------------------------------------------------------------
# Pallas kernel: whole network fused (3 convs + BN folds + ReLUs)
# ---------------------------------------------------------------------------
def _fused_net_kernel(p1_ref, w1_ref, b1_ref, s2_ref, w2_ref, b2_ref,
                      s3_ref, w3_ref, b3_ref, o_ref):
    f32, bf16 = jnp.float32, jnp.bfloat16
    kk = s2_ref.shape[0]                       # number of window offsets (4*4 = 16)

    # ---- layer 1: conv1 (matmul on precomputed patches) + folded BN1 + ReLU ----
    y1 = jnp.dot(p1_ref[...], w1_ref[...], preferred_element_type=f32)   # [TB*64, 32]
    y1 = jnp.maximum(y1 + b1_ref[...], 0.0).astype(bf16)

    # ---- layer 2: in-kernel im2col via 0/1 selection matmuls + conv2 + BN2 + ReLU
    m2 = s2_ref.shape[1]                       # TB * 4 * 4
    y2 = jnp.zeros((m2, w2_ref.shape[2]), f32)
    for k in range(kk):
        g = jnp.dot(s2_ref[k], y1, preferred_element_type=f32)           # gather rows
        y2 = y2 + jnp.dot(g.astype(bf16), w2_ref[k], preferred_element_type=f32)
    y2 = jnp.maximum(y2 + b2_ref[...], 0.0).astype(bf16)                 # [TB*16, 64]

    # ---- layer 3: "fc" conv (4x4 window covers the whole 4x4 map) ----
    m3 = s3_ref.shape[1]                       # TB
    y3 = jnp.zeros((m3, w3_ref.shape[2]), f32)
    for k in range(kk):
        g = jnp.dot(s3_ref[k], y2, preferred_element_type=f32)
        y3 = y3 + jnp.dot(g.astype(bf16), w3_ref[k], preferred_element_type=f32)

    o_ref[...] = y3 + b3_ref[...]              # [TB, 128] (lanes 10..127 are padding)


# ---------------------------------------------------------------------------
# Boundary-only im2col of the raw input (patch columns ordered (c, kh, kw),
# matching PyTorch weight.reshape(OC, C*KH*KW))
# ---------------------------------------------------------------------------
def _im2col(x, kh, kw, stride, pad):
    if pad:
        x = jnp.pad(x, ((0, 0), (0, 0), (pad, pad), (pad, pad)))
    B, C, H, W = x.shape
    oh = (H - kh) // stride + 1
    ow = (W - kw) // stride + 1
    cols = [x[:, :, i:i + stride * oh:stride, j:j + stride * ow:stride]
            for i in range(kh) for j in range(kw)]
    patches = jnp.stack(cols, axis=2)                    # [B, C, kh*kw, oh, ow]
    patches = patches.reshape(B, C * kh * kw, oh * ow)
    return patches.transpose(0, 2, 1).reshape(B * oh * ow, C * kh * kw)


# ---------------------------------------------------------------------------
# One-time parameter preparation (BN fold, reorder, pad, bf16) -- NOT in the
# per-forward hot path.
# ---------------------------------------------------------------------------
def _bn_fold(gamma, beta, mean, var, bias, eps=1e-5):
    s = gamma / jnp.sqrt(var + eps)
    return s, (bias - mean) * s + beta


def _selection_matrices(tb):
    """0/1 gather matrices implementing in-kernel im2col (conv padding folded in)."""
    # layer-2 gather: output row (b, oh, ow) <- y1 row (b, 2*oh+i-1, 2*ow+j-1)
    s2 = np.zeros((K * K, tb * S2 * S2, tb * S1 * S1), np.float32)
    for b in range(tb):
        for oh in range(S2):
            for ow in range(S2):
                r = b * S2 * S2 + oh * S2 + ow
                for i in range(K):
                    for j in range(K):
                        h, w = 2 * oh + i - 1, 2 * ow + j - 1
                        if 0 <= h < S1 and 0 <= w < S1:
                            s2[i * K + j, r, b * S1 * S1 + h * S1 + w] = 1.0
    # layer-3 gather: output row b <- y2 row (b, i, j)  (k=4 window == whole 4x4 map)
    s3 = np.zeros((K * K, tb, tb * S2 * S2), np.float32)
    for b in range(tb):
        for i in range(K):
            for j in range(K):
                s3[i * K + j, b, b * S2 * S2 + i * S2 + j] = 1.0
    return s2, s3


def prepare_constants(p, tb=TB):
    """Fold BN into weights, reorder per window-offset, pad to lane width, cast bf16."""
    bf16 = jnp.bfloat16
    # layer 1
    sc1, sh1 = _bn_fold(p["bn1_gamma"], p["bn1_beta"], p["bn1_mean"], p["bn1_var"], p["b1"])
    w1 = (p["w1"].reshape(C1, C_IN * K * K).T * sc1[None, :]).astype(bf16)     # [48, 32]
    b1 = sh1.reshape(1, C1).astype(jnp.float32)
    # layer 2: per window-offset weight slices [16, 32, 64] with BN scale folded in
    sc2, sh2 = _bn_fold(p["bn2_gamma"], p["bn2_beta"], p["bn2_mean"], p["bn2_var"], p["b2"])
    w2 = jnp.transpose(p["w2"], (2, 3, 1, 0)).reshape(K * K, C1, C2)
    w2 = (w2 * sc2[None, None, :]).astype(bf16)
    b2 = sh2.reshape(1, C2).astype(jnp.float32)
    # layer 3 ("fc" conv): [16, 64, 10] -> pad out channels to 128 lanes
    w3 = jnp.transpose(p["wfc"], (2, 3, 1, 0)).reshape(K * K, C2, C3)
    w3 = jnp.pad(w3, ((0, 0), (0, 0), (0, N3P - C3))).astype(bf16)
    b3 = jnp.pad(p["bfc"], (0, N3P - C3)).reshape(1, N3P).astype(jnp.float32)
    # in-kernel im2col selection matrices
    s2, s3 = _selection_matrices(tb)
    return {"w1": w1, "b1": b1, "w2": w2, "b2": b2, "w3": w3, "b3": b3,
            "s2": jnp.asarray(s2, bf16), "s3": jnp.asarray(s3, bf16)}


# ---------------------------------------------------------------------------
# Forward pass (single fused pallas_call)
# ---------------------------------------------------------------------------
def better_conv_network(x, c):
    """Eval-mode forward pass of BetterConvNetwork. x: NCHW float32. Returns [B, 10]."""
    B = x.shape[0]
    b_pad = _round_up(max(B, TB), TB)
    if b_pad != B:
        x = jnp.pad(x, ((0, b_pad - B), (0, 0), (0, 0), (0, 0)))
    num_tiles = b_pad // TB

    # Only boundary layout op: im2col of the (tiny) raw input, cast to bf16.
    patches1 = _im2col(x, K, K, stride=2, pad=1).astype(jnp.bfloat16)    # [b_pad*64, 48]

    m1, m2 = TB * S1 * S1, TB * S2 * S2
    flops_tile = (2 * m1 * (C_IN * K * K) * C1
                  + K * K * (2 * m2 * m1 * C1 + 2 * m2 * C1 * C2)
                  + K * K * (2 * TB * m2 * C2 + 2 * TB * C2 * N3P))
    const_bytes = sum(int(np.prod(v.shape)) * v.dtype.itemsize for v in c.values())
    cost = pl.CostEstimate(
        flops=num_tiles * flops_tile, transcendentals=0,
        bytes_accessed=patches1.size * patches1.dtype.itemsize + const_bytes + b_pad * N3P * 4)

    out = pl.pallas_call(
        _fused_net_kernel,
        out_shape=jax.ShapeDtypeStruct((b_pad, N3P), jnp.float32),
        grid=(num_tiles,),
        in_specs=[
            pl.BlockSpec((TB * S1 * S1, C_IN * K * K), lambda i: (i, 0)),   # input patches tile
            pl.BlockSpec((C_IN * K * K, C1), lambda i: (0, 0)),             # w1 (BN folded)
            pl.BlockSpec((1, C1), lambda i: (0, 0)),                        # shift1
            pl.BlockSpec((K * K, m2, m1), lambda i: (0, 0, 0)),             # layer-2 gather
            pl.BlockSpec((K * K, C1, C2), lambda i: (0, 0, 0)),             # w2 (BN folded)
            pl.BlockSpec((1, C2), lambda i: (0, 0)),                        # shift2
            pl.BlockSpec((K * K, TB, m2), lambda i: (0, 0, 0)),             # layer-3 gather
            pl.BlockSpec((K * K, C2, N3P), lambda i: (0, 0, 0)),            # w3 (lane padded)
            pl.BlockSpec((1, N3P), lambda i: (0, 0)),                       # fc bias (padded)
        ],
        out_specs=pl.BlockSpec((TB, N3P), lambda i: (i, 0)),
        compiler_params=pltpu.CompilerParams(
            dimension_semantics=("parallel",),
            vmem_limit_bytes=32 * 1024 * 1024),
        cost_estimate=cost,
    )(patches1, c["w1"], c["b1"], c["s2"], c["w2"], c["b2"],
      c["s3"], c["w3"], c["b3"])

    return out[:B, :C3]          # drop batch padding and the padded output lanes


# ---------------------------------------------------------------------------
# Deterministic synthetic parameters (shapes from the PyTorch __init__)
# ---------------------------------------------------------------------------
def init_params(key):
    ks = jax.random.split(key, 14)
    p = {}
    p["w1"] = jax.random.normal(ks[0], (C1, C_IN, K, K), jnp.float32) * 0.1
    p["b1"] = jax.random.normal(ks[1], (C1,), jnp.float32) * 0.1
    p["bn1_gamma"] = 1.0 + 0.1 * jax.random.normal(ks[2], (C1,), jnp.float32)
    p["bn1_beta"] = 0.05 * jax.random.normal(ks[3], (C1,), jnp.float32)
    p["bn1_mean"] = 0.05 * jax.random.normal(ks[4], (C1,), jnp.float32)
    p["bn1_var"] = 1.0 + 0.1 * jax.nn.softplus(jax.random.normal(ks[5], (C1,), jnp.float32))
    p["w2"] = jax.random.normal(ks[6], (C2, C1, K, K), jnp.float32) * 0.05
    p["b2"] = jax.random.normal(ks[7], (C2,), jnp.float32) * 0.1
    p["bn2_gamma"] = 1.0 + 0.1 * jax.random.normal(ks[8], (C2,), jnp.float32)
    p["bn2_beta"] = 0.05 * jax.random.normal(ks[9], (C2,), jnp.float32)
    p["bn2_mean"] = 0.05 * jax.random.normal(ks[10], (C2,), jnp.float32)
    p["bn2_var"] = 1.0 + 0.1 * jax.nn.softplus(jax.random.normal(ks[11], (C2,), jnp.float32))
    p["wfc"] = jax.random.normal(ks[12], (C3, C2, K, K), jnp.float32) * 0.05
    p["bfc"] = jax.random.normal(ks[13], (C3,), jnp.float32) * 0.1
    return p


# ---------------------------------------------------------------------------
# Pure-JAX reference (XLA conv, f32) for correctness check
# ---------------------------------------------------------------------------
def _ref_forward(x, p, eps=1e-5):
    def conv(x, w, b, stride, pad):
        y = lax.conv_general_dilated(
            x, w, (stride, stride), [(pad, pad), (pad, pad)],
            dimension_numbers=("NCHW", "OIHW", "NCHW"))
        return y + b[None, :, None, None]

    def bn(y, g, b, m, v):
        return (y - m[None, :, None, None]) / jnp.sqrt(v[None, :, None, None] + eps) \
            * g[None, :, None, None] + b[None, :, None, None]

    y = jax.nn.relu(bn(conv(x, p["w1"], p["b1"], 2, 1),
                       p["bn1_gamma"], p["bn1_beta"], p["bn1_mean"], p["bn1_var"]))
    y = jax.nn.relu(bn(conv(y, p["w2"], p["b2"], 2, 1),
                       p["bn2_gamma"], p["bn2_beta"], p["bn2_mean"], p["bn2_var"]))
    y = conv(y, p["wfc"], p["bfc"], 1, 0)
    return y.reshape(y.shape[0], -1)


if __name__ == "__main__":
    key = jax.random.PRNGKey(0)
    pkey, xkey = jax.random.split(key)
    params = init_params(pkey)
    consts = prepare_constants(params)          # one-time weight prep, outside forward

    # Input: batch=2, RGB 16x16 -> conv1: 8x8 -> conv2: 4x4 -> fc(k=4): 1x1 -> (2, 10)
    x = jax.random.normal(xkey, (2, 3, 16, 16), jnp.float32)

    fwd = jax.jit(better_conv_network)
    out = jax.block_until_ready(fwd(x, consts))
    assert out.shape == (2, 10), out.shape

    ref = jax.block_until_ready(_ref_forward(x, params))
    np.testing.assert_allclose(np.asarray(out), np.asarray(ref), rtol=5e-2, atol=5e-2)

    print("KERNEL_OK")
</pallas_src>

<mosaic_0001>
module attributes {stable_mosaic.version = 11 : i64} {
  func.func @_fused_net_kernel(%arg0: i32, %arg1: memref<512x48xbf16, #tpu.memory_space<vmem>>, %arg2: memref<48x32xbf16, #tpu.memory_space<vmem>>, %arg3: memref<1x32xf32, #tpu.memory_space<vmem>>, %arg4: memref<16x128x512xbf16, #tpu.memory_space<vmem>>, %arg5: memref<16x32x64xbf16, #tpu.memory_space<vmem>>, %arg6: memref<1x64xf32, #tpu.memory_space<vmem>>, %arg7: memref<16x8x128xbf16, #tpu.memory_space<vmem>>, %arg8: memref<16x64x128xbf16, #tpu.memory_space<vmem>>, %arg9: memref<1x128xf32, #tpu.memory_space<vmem>>, %arg10: memref<8x128xf32, #tpu.memory_space<vmem>>) attributes {dimension_semantics = [#tpu.dimension_semantics<parallel>], iteration_bounds = array<i64: 1>, scalar_prefetch = 0 : i64, scratch_operands = 0 : i64, tpu.core_type = #tpu.core_type<tc>, window_params = [{transform_indices = @transform_0, window_bounds = array<i64: 512, 48>}, {pipeline_mode = #tpu.pipeline_mode<synchronous>, transform_indices = @transform_1, window_bounds = array<i64: 48, 32>}, {pipeline_mode = #tpu.pipeline_mode<synchronous>, transform_indices = @transform_2, window_bounds = array<i64: 1, 32>}, {pipeline_mode = #tpu.pipeline_mode<synchronous>, transform_indices = @transform_3, window_bounds = array<i64: 16, 128, 512>}, {pipeline_mode = #tpu.pipeline_mode<synchronous>, transform_indices = @transform_4, window_bounds = array<i64: 16, 32, 64>}, {pipeline_mode = #tpu.pipeline_mode<synchronous>, transform_indices = @transform_5, window_bounds = array<i64: 1, 64>}, {pipeline_mode = #tpu.pipeline_mode<synchronous>, transform_indices = @transform_6, window_bounds = array<i64: 16, 8, 128>}, {pipeline_mode = #tpu.pipeline_mode<synchronous>, transform_indices = @transform_7, window_bounds = array<i64: 16, 64, 128>}, {pipeline_mode = #tpu.pipeline_mode<synchronous>, transform_indices = @transform_8, window_bounds = array<i64: 1, 128>}, {transform_indices = @transform_9, window_bounds = array<i64: 8, 128>}]} {
    %c0 = arith.constant 0 : index
    %c0_0 = arith.constant 0 : index
    %0 = vector.load %arg1[%c0, %c0_0] : memref<512x48xbf16, #tpu.memory_space<vmem>>, vector<512x48xbf16>
    %c0_1 = arith.constant 0 : index
    %c0_2 = arith.constant 0 : index
    %1 = vector.load %arg2[%c0_1, %c0_2] : memref<48x32xbf16, #tpu.memory_space<vmem>>, vector<48x32xbf16>
    %cst = arith.constant dense<0.000000e+00> : vector<512x32xf32>
    %2 = tpu.matmul %0, %1, %cst {dimension_numbers = #tpu.dot_dimension_numbers<[1], [0], [0], [1], [0, 0, 1, 1], [], []>} : vector<512x48xbf16>, vector<48x32xbf16>, vector<512x32xf32> -> vector<512x32xf32>
    %c0_3 = arith.constant 0 : index
    %c0_4 = arith.constant 0 : index
    %3 = vector.load %arg3[%c0_3, %c0_4] : memref<1x32xf32, #tpu.memory_space<vmem>>, vector<1x32xf32>
    %4 = vector.broadcast %3 : vector<1x32xf32> to vector<512x32xf32>
    %5 = arith.addf %2, %4 : vector<512x32xf32>
    %cst_5 = arith.constant 0.000000e+00 : f32
    %6 = vector.broadcast %cst_5 : f32 to vector<512x32xf32>
    %7 = arith.maximumf %5, %6 : vector<512x32xf32>
    %8 = arith.truncf %7 : vector<512x32xf32> to vector<512x32xbf16>
    %cst_6 = arith.constant 0.000000e+00 : f32
    %9 = vector.broadcast %cst_6 : f32 to vector<128x64xf32>
    %c0_7 = arith.constant 0 : index
    %c0_8 = arith.constant 0 : index
    %c0_9 = arith.constant 0 : index
    %10 = vector.load %arg4[%c0_7, %c0_8, %c0_9] : memref<16x128x512xbf16, #tpu.memory_space<vmem>>, vector<1x128x512xbf16>
    %11 = vector.shape_cast %10 : vector<1x128x512xbf16> to vector<128x512xbf16>
    %cst_10 = arith.constant dense<0.000000e+00> : vector<128x32xf32>
    %12 = tpu.matmul %11, %8, %cst_10 {dimension_numbers = #tpu.dot_dimension_numbers<[1], [0], [0], [1], [0, 0, 1, 1], [], []>} : vector<128x512xbf16>, vector<512x32xbf16>, vector<128x32xf32> -> vector<128x32xf32>
    %13 = arith.truncf %12 : vector<128x32xf32> to vector<128x32xbf16>
    %c0_11 = arith.constant 0 : index
    %c0_12 = arith.constant 0 : index
    %c0_13 = arith.constant 0 : index
    %14 = vector.load %arg5[%c0_11, %c0_12, %c0_13] : memref<16x32x64xbf16, #tpu.memory_space<vmem>>, vector<1x32x64xbf16>
    %15 = vector.shape_cast %14 : vector<1x32x64xbf16> to vector<32x64xbf16>
    %cst_14 = arith.constant dense<0.000000e+00> : vector<128x64xf32>
    %16 = tpu.matmul %13, %15, %cst_14 {dimension_numbers = #tpu.dot_dimension_numbers<[1], [0], [0], [1], [0, 0, 1, 1], [], []>} : vector<128x32xbf16>, vector<32x64xbf16>, vector<128x64xf32> -> vector<128x64xf32>
    %17 = arith.addf %9, %16 : vector<128x64xf32>
    %c1 = arith.constant 1 : index
    %c0_15 = arith.constant 0 : index
    %c0_16 = arith.constant 0 : index
    %18 = vector.load %arg4[%c1, %c0_15, %c0_16] : memref<16x128x512xbf16, #tpu.memory_space<vmem>>, vector<1x128x512xbf16>
    %19 = vector.shape_cast %18 : vector<1x128x512xbf16> to vector<128x512xbf16>
    %cst_17 = arith.constant dense<0.000000e+00> : vector<128x32xf32>
    %20 = tpu.matmul %19, %8, %cst_17 {dimension_numbers = #tpu.dot_dimension_numbers<[1], [0], [0], [1], [0, 0, 1, 1], [], []>} : vector<128x512xbf16>, vector<512x32xbf16>, vector<128x32xf32> -> vector<128x32xf32>
    %21 = arith.truncf %20 : vector<128x32xf32> to vector<128x32xbf16>
    %c1_18 = arith.constant 1 : index
    %c0_19 = arith.constant 0 : index
    %c0_20 = arith.constant 0 : index
    %22 = vector.load %arg5[%c1_18, %c0_19, %c0_20] : memref<16x32x64xbf16, #tpu.memory_space<vmem>>, vector<1x32x64xbf16>
    %23 = vector.shape_cast %22 : vector<1x32x64xbf16> to vector<32x64xbf16>
    %cst_21 = arith.constant dense<0.000000e+00> : vector<128x64xf32>
    %24 = tpu.matmul %21, %23, %cst_21 {dimension_numbers = #tpu.dot_dimension_numbers<[1], [0], [0], [1], [0, 0, 1, 1], [], []>} : vector<128x32xbf16>, vector<32x64xbf16>, vector<128x64xf32> -> vector<128x64xf32>
    %25 = arith.addf %17, %24 : vector<128x64xf32>
    %c2 = arith.constant 2 : index
    %c0_22 = arith.constant 0 : index
    %c0_23 = arith.constant 0 : index
    %26 = vector.load %arg4[%c2, %c0_22, %c0_23] : memref<16x128x512xbf16, #tpu.memory_space<vmem>>, vector<1x128x512xbf16>
    %27 = vector.shape_cast %26 : vector<1x128x512xbf16> to vector<128x512xbf16>
    %cst_24 = arith.constant dense<0.000000e+00> : vector<128x32xf32>
    %28 = tpu.matmul %27, %8, %cst_24 {dimension_numbers = #tpu.dot_dimension_numbers<[1], [0], [0], [1], [0, 0, 1, 1], [], []>} : vector<128x512xbf16>, vector<512x32xbf16>, vector<128x32xf32> -> vector<128x32xf32>
    %29 = arith.truncf %28 : vector<128x32xf32> to vector<128x32xbf16>
    %c2_25 = arith.constant 2 : index
    %c0_26 = arith.constant 0 : index
    %c0_27 = arith.constant 0 : index
    %30 = vector.load %arg5[%c2_25, %c0_26, %c0_27] : memref<16x32x64xbf16, #tpu.memory_space<vmem>>, vector<1x32x64xbf16>
    %31 = vector.shape_cast %30 : vector<1x32x64xbf16> to vector<32x64xbf16>
    %cst_28 = arith.constant dense<0.000000e+00> : vector<128x64xf32>
    %32 = tpu.matmul %29, %31, %cst_28 {dimension_numbers = #tpu.dot_dimension_numbers<[1], [0], [0], [1], [0, 0, 1, 1], [], []>} : vector<128x32xbf16>, vector<32x64xbf16>, vector<128x64xf32> -> vector<128x64xf32>
    %33 = arith.addf %25, %32 : vector<128x64xf32>
    %c3 = arith.constant 3 : index
    %c0_29 = arith.constant 0 : index
    %c0_30 = arith.constant 0 : index
    %34 = vector.load %arg4[%c3, %c0_29, %c0_30] : memref<16x128x512xbf16, #tpu.memory_space<vmem>>, vector<1x128x512xbf16>
    %35 = vector.shape_cast %34 : vector<1x128x512xbf16> to vector<128x512xbf16>
    %cst_31 = arith.constant dense<0.000000e+00> : vector<128x32xf32>
    %36 = tpu.matmul %35, %8, %cst_31 {dimension_numbers = #tpu.dot_dimension_numbers<[1], [0], [0], [1], [0, 0, 1, 1], [], []>} : vector<128x512xbf16>, vector<512x32xbf16>, vector<128x32xf32> -> vector<128x32xf32>
    %37 = arith.truncf %36 : vector<128x32xf32> to vector<128x32xbf16>
    %c3_32 = arith.constant 3 : index
    %c0_33 = arith.constant 0 : index
    %c0_34 = arith.constant 0 : index
    %38 = vector.load %arg5[%c3_32, %c0_33, %c0_34] : memref<16x32x64xbf16, #tpu.memory_space<vmem>>, vector<1x32x64xbf16>
    %39 = vector.shape_cast %38 : vector<1x32x64xbf16> to vector<32x64xbf16>
    %cst_35 = arith.constant dense<0.000000e+00> : vector<128x64xf32>
    %40 = tpu.matmul %37, %39, %cst_35 {dimension_numbers = #tpu.dot_dimension_numbers<[1], [0], [0], [1], [0, 0, 1, 1], [], []>} : vector<128x32xbf16>, vector<32x64xbf16>, vector<128x64xf32> -> vector<128x64xf32>
    %41 = arith.addf %33, %40 : vector<128x64xf32>
    %c4 = arith.constant 4 : index
    %c0_36 = arith.constant 0 : index
    %c0_37 = arith.constant 0 : index
    %42 = vector.load %arg4[%c4, %c0_36, %c0_37] : memref<16x128x512xbf16, #tpu.memory_space<vmem>>, vector<1x128x512xbf16>
    %43 = vector.shape_cast %42 : vector<1x128x512xbf16> to vector<128x512xbf16>
    %cst_38 = arith.constant dense<0.000000e+00> : vector<128x32xf32>
    %44 = tpu.matmul %43, %8, %cst_38 {dimension_numbers = #tpu.dot_dimension_numbers<[1], [0], [0], [1], [0, 0, 1, 1], [], []>} : vector<128x512xbf16>, vector<512x32xbf16>, vector<128x32xf32> -> vector<128x32xf32>
    %45 = arith.truncf %44 : vector<128x32xf32> to vector<128x32xbf16>
    %c4_39 = arith.constant 4 : index
    %c0_40 = arith.constant 0 : index
    %c0_41 = arith.constant 0 : index
    %46 = vector.load %arg5[%c4_39, %c0_40, %c0_41] : memref<16x32x64xbf16, #tpu.memory_space<vmem>>, vector<1x32x64xbf16>
    %47 = vector.shape_cast %46 : vector<1x32x64xbf16> to vector<32x64xbf16>
    %cst_42 = arith.constant dense<0.000000e+00> : vector<128x64xf32>
    %48 = tpu.matmul %45, %47, %cst_42 {dimension_numbers = #tpu.dot_dimension_numbers<[1], [0], [0], [1], [0, 0, 1, 1], [], []>} : vector<128x32xbf16>, vector<32x64xbf16>, vector<128x64xf32> -> vector<128x64xf32>
    %49 = arith.addf %41, %48 : vector<128x64xf32>
    %c5 = arith.constant 5 : index
    %c0_43 = arith.constant 0 : index
    %c0_44 = arith.constant 0 : index
    %50 = vector.load %arg4[%c5, %c0_43, %c0_44] : memref<16x128x512xbf16, #tpu.memory_space<vmem>>, vector<1x128x512xbf16>
    %51 = vector.shape_cast %50 : vector<1x128x512xbf16> to vector<128x512xbf16>
    %cst_45 = arith.constant dense<0.000000e+00> : vector<128x32xf32>
    %52 = tpu.matmul %51, %8, %cst_45 {dimension_numbers = #tpu.dot_dimension_numbers<[1], [0], [0], [1], [0, 0, 1, 1], [], []>} : vector<128x512xbf16>, vector<512x32xbf16>, vector<128x32xf32> -> vector<128x32xf32>
    %53 = arith.truncf %52 : vector<128x32xf32> to vector<128x32xbf16>
    %c5_46 = arith.constant 5 : index
    %c0_47 = arith.constant 0 : index
    %c0_48 = arith.constant 0 : index
    %54 = vector.load %arg5[%c5_46, %c0_47, %c0_48] : memref<16x32x64xbf16, #tpu.memory_space<vmem>>, vector<1x32x64xbf16>
    %55 = vector.shape_cast %54 : vector<1x32x64xbf16> to vector<32x64xbf16>
    %cst_49 = arith.constant dense<0.000000e+00> : vector<128x64xf32>
    %56 = tpu.matmul %53, %55, %cst_49 {dimension_numbers = #tpu.dot_dimension_numbers<[1], [0], [0], [1], [0, 0, 1, 1], [], []>} : vector<128x32xbf16>, vector<32x64xbf16>, vector<128x64xf32> -> vector<128x64xf32>
    %57 = arith.addf %49, %56 : vector<128x64xf32>
    %c6 = arith.constant 6 : index
    %c0_50 = arith.constant 0 : index
    %c0_51 = arith.constant 0 : index
    %58 = vector.load %arg4[%c6, %c0_50, %c0_51] : memref<16x128x512xbf16, #tpu.memory_space<vmem>>, vector<1x128x512xbf16>
    %59 = vector.shape_cast %58 : vector<1x128x512xbf16> to vector<128x512xbf16>
    %cst_52 = arith.constant dense<0.000000e+00> : vector<128x32xf32>
    %60 = tpu.matmul %59, %8, %cst_52 {dimension_numbers = #tpu.dot_dimension_numbers<[1], [0], [0], [1], [0, 0, 1, 1], [], []>} : vector<128x512xbf16>, vector<512x32xbf16>, vector<128x32xf32> -> vector<128x32xf32>
    %61 = arith.truncf %60 : vector<128x32xf32> to vector<128x32xbf16>
    %c6_53 = arith.constant 6 : index
    %c0_54 = arith.constant 0 : index
    %c0_55 = arith.constant 0 : index
    %62 = vector.load %arg5[%c6_53, %c0_54, %c0_55] : memref<16x32x64xbf16, #tpu.memory_space<vmem>>, vector<1x32x64xbf16>
    %63 = vector.shape_cast %62 : vector<1x32x64xbf16> to vector<32x64xbf16>
    %cst_56 = arith.constant dense<0.000000e+00> : vector<128x64xf32>
    %64 = tpu.matmul %61, %63, %cst_56 {dimension_numbers = #tpu.dot_dimension_numbers<[1], [0], [0], [1], [0, 0, 1, 1], [], []>} : vector<128x32xbf16>, vector<32x64xbf16>, vector<128x64xf32> -> vector<128x64xf32>
    %65 = arith.addf %57, %64 : vector<128x64xf32>
    %c7 = arith.constant 7 : index
    %c0_57 = arith.constant 0 : index
    %c0_58 = arith.constant 0 : index
    %66 = vector.load %arg4[%c7, %c0_57, %c0_58] : memref<16x128x512xbf16, #tpu.memory_space<vmem>>, vector<1x128x512xbf16>
    %67 = vector.shape_cast %66 : vector<1x128x512xbf16> to vector<128x512xbf16>
    %cst_59 = arith.constant dense<0.000000e+00> : vector<128x32xf32>
    %68 = tpu.matmul %67, %8, %cst_59 {dimension_numbers = #tpu.dot_dimension_numbers<[1], [0], [0], [1], [0, 0, 1, 1], [], []>} : vector<128x512xbf16>, vector<512x32xbf16>, vector<128x32xf32> -> vector<128x32xf32>
    %69 = arith.truncf %68 : vector<128x32xf32> to vector<128x32xbf16>
    %c7_60 = arith.constant 7 : index
    %c0_61 = arith.constant 0 : index
    %c0_62 = arith.constant 0 : index
    %70 = vector.load %arg5[%c7_60, %c0_61, %c0_62] : memref<16x32x64xbf16, #tpu.memory_space<vmem>>, vector<1x32x64xbf16>
    %71 = vector.shape_cast %70 : vector<1x32x64xbf16> to vector<32x64xbf16>
    %cst_63 = arith.constant dense<0.000000e+00> : vector<128x64xf32>
    %72 = tpu.matmul %69, %71, %cst_63 {dimension_numbers = #tpu.dot_dimension_numbers<[1], [0], [0], [1], [0, 0, 1, 1], [], []>} : vector<128x32xbf16>, vector<32x64xbf16>, vector<128x64xf32> -> vector<128x64xf32>
    %73 = arith.addf %65, %72 : vector<128x64xf32>
    %c8 = arith.constant 8 : index
    %c0_64 = arith.constant 0 : index
    %c0_65 = arith.constant 0 : index
    %74 = vector.load %arg4[%c8, %c0_64, %c0_65] : memref<16x128x512xbf16, #tpu.memory_space<vmem>>, vector<1x128x512xbf16>
    %75 = vector.shape_cast %74 : vector<1x128x512xbf16> to vector<128x512xbf16>
    %cst_66 = arith.constant dense<0.000000e+00> : vector<128x32xf32>
    %76 = tpu.matmul %75, %8, %cst_66 {dimension_numbers = #tpu.dot_dimension_numbers<[1], [0], [0], [1], [0, 0, 1, 1], [], []>} : vector<128x512xbf16>, vector<512x32xbf16>, vector<128x32xf32> -> vector<128x32xf32>
    %77 = arith.truncf %76 : vector<128x32xf32> to vector<128x32xbf16>
    %c8_67 = arith.constant 8 : index
    %c0_68 = arith.constant 0 : index
    %c0_69 = arith.constant 0 : index
    %78 = vector.load %arg5[%c8_67, %c0_68, %c0_69] : memref<16x32x64xbf16, #tpu.memory_space<vmem>>, vector<1x32x64xbf16>
    %79 = vector.shape_cast %78 : vector<1x32x64xbf16> to vector<32x64xbf16>
    %cst_70 = arith.constant dense<0.000000e+00> : vector<128x64xf32>
    %80 = tpu.matmul %77, %79, %cst_70 {dimension_numbers = #tpu.dot_dimension_numbers<[1], [0], [0], [1], [0, 0, 1, 1], [], []>} : vector<128x32xbf16>, vector<32x64xbf16>, vector<128x64xf32> -> vector<128x64xf32>
    %81 = arith.addf %73, %80 : vector<128x64xf32>
    %c9 = arith.constant 9 : index
    %c0_71 = arith.constant 0 : index
    %c0_72 = arith.constant 0 : index
    %82 = vector.load %arg4[%c9, %c0_71, %c0_72] : memref<16x128x512xbf16, #tpu.memory_space<vmem>>, vector<1x128x512xbf16>
    %83 = vector.shape_cast %82 : vector<1x128x512xbf16> to vector<128x512xbf16>
    %cst_73 = arith.constant dense<0.000000e+00> : vector<128x32xf32>
    %84 = tpu.matmul %83, %8, %cst_73 {dimension_numbers = #tpu.dot_dimension_numbers<[1], [0], [0], [1], [0, 0, 1, 1], [], []>} : vector<128x512xbf16>, vector<512x32xbf16>, vector<128x32xf32> -> vector<128x32xf32>
    %85 = arith.truncf %84 : vector<128x32xf32> to vector<128x32xbf16>
    %c9_74 = arith.constant 9 : index
    %c0_75 = arith.constant 0 : index
    %c0_76 = arith.constant 0 : index
    %86 = vector.load %arg5[%c9_74, %c0_75, %c0_76] : memref<16x32x64xbf16, #tpu.memory_space<vmem>>, vector<1x32x64xbf16>
    %87 = vector.shape_cast %86 : vector<1x32x64xbf16> to vector<32x64xbf16>
    %cst_77 = arith.constant dense<0.000000e+00> : vector<128x64xf32>
    %88 = tpu.matmul %85, %87, %cst_77 {dimension_numbers = #tpu.dot_dimension_numbers<[1], [0], [0], [1], [0, 0, 1, 1], [], []>} : vector<128x32xbf16>, vector<32x64xbf16>, vector<128x64xf32> -> vector<128x64xf32>
    %89 = arith.addf %81, %88 : vector<128x64xf32>
    %c10 = arith.constant 10 : index
    %c0_78 = arith.constant 0 : index
    %c0_79 = arith.constant 0 : index
    %90 = vector.load %arg4[%c10, %c0_78, %c0_79] : memref<16x128x512xbf16, #tpu.memory_space<vmem>>, vector<1x128x512xbf16>
    %91 = vector.shape_cast %90 : vector<1x128x512xbf16> to vector<128x512xbf16>
    %cst_80 = arith.constant dense<0.000000e+00> : vector<128x32xf32>
    %92 = tpu.matmul %91, %8, %cst_80 {dimension_numbers = #tpu.dot_dimension_numbers<[1], [0], [0], [1], [0, 0, 1, 1], [], []>} : vector<128x512xbf16>, vector<512x32xbf16>, vector<128x32xf32> -> vector<128x32xf32>
    %93 = arith.truncf %92 : vector<128x32xf32> to vector<128x32xbf16>
    %c10_81 = arith.constant 10 : index
    %c0_82 = arith.constant 0 : index
    %c0_83 = arith.constant 0 : index
    %94 = vector.load %arg5[%c10_81, %c0_82, %c0_83] : memref<16x32x64xbf16, #tpu.memory_space<vmem>>, vector<1x32x64xbf16>
    %95 = vector.shape_cast %94 : vector<1x32x64xbf16> to vector<32x64xbf16>
    %cst_84 = arith.constant dense<0.000000e+00> : vector<128x64xf32>
    %96 = tpu.matmul %93, %95, %cst_84 {dimension_numbers = #tpu.dot_dimension_numbers<[1], [0], [0], [1], [0, 0, 1, 1], [], []>} : vector<128x32xbf16>, vector<32x64xbf16>, vector<128x64xf32> -> vector<128x64xf32>
    %97 = arith.addf %89, %96 : vector<128x64xf32>
    %c11 = arith.constant 11 : index
    %c0_85 = arith.constant 0 : index
    %c0_86 = arith.constant 0 : index
    %98 = vector.load %arg4[%c11, %c0_85, %c0_86] : memref<16x128x512xbf16, #tpu.memory_space<vmem>>, vector<1x128x512xbf16>
    %99 = vector.shape_cast %98 : vector<1x128x512xbf16> to vector<128x512xbf16>
    %cst_87 = arith.constant dense<0.000000e+00> : vector<128x32xf32>
    %100 = tpu.matmul %99, %8, %cst_87 {dimension_numbers = #tpu.dot_dimension_numbers<[1], [0], [0], [1], [0, 0, 1, 1], [], []>} : vector<128x512xbf16>, vector<512x32xbf16>, vector<128x32xf32> -> vector<128x32xf32>
    %101 = arith.truncf %100 : vector<128x32xf32> to vector<128x32xbf16>
    %c11_88 = arith.constant 11 : index
    %c0_89 = arith.constant 0 : index
    %c0_90 = arith.constant 0 : index
    %102 = vector.load %arg5[%c11_88, %c0_89, %c0_90] : memref<16x32x64xbf16, #tpu.memory_space<vmem>>, vector<1x32x64xbf16>
    %103 = vector.shape_cast %102 : vector<1x32x64xbf16> to vector<32x64xbf16>
    %cst_91 = arith.constant dense<0.000000e+00> : vector<128x64xf32>
    %104 = tpu.matmul %101, %103, %cst_91 {dimension_numbers = #tpu.dot_dimension_numbers<[1], [0], [0], [1], [0, 0, 1, 1], [], []>} : vector<128x32xbf16>, vector<32x64xbf16>, vector<128x64xf32> -> vector<128x64xf32>
    %105 = arith.addf %97, %104 : vector<128x64xf32>
    %c12 = arith.constant 12 : index
    %c0_92 = arith.constant 0 : index
    %c0_93 = arith.constant 0 : index
    %106 = vector.load %arg4[%c12, %c0_92, %c0_93] : memref<16x128x512xbf16, #tpu.memory_space<vmem>>, vector<1x128x512xbf16>
    %107 = vector.shape_cast %106 : vector<1x128x512xbf16> to vector<128x512xbf16>
    %cst_94 = arith.constant dense<0.000000e+00> : vector<128x32xf32>
    %108 = tpu.matmul %107, %8, %cst_94 {dimension_numbers = #tpu.dot_dimension_numbers<[1], [0], [0], [1], [0, 0, 1, 1], [], []>} : vector<128x512xbf16>, vector<512x32xbf16>, vector<128x32xf32> -> vector<128x32xf32>
    %109 = arith.truncf %108 : vector<128x32xf32> to vector<128x32xbf16>
    %c12_95 = arith.constant 12 : index
    %c0_96 = arith.constant 0 : index
    %c0_97 = arith.constant 0 : index
    %110 = vector.load %arg5[%c12_95, %c0_96, %c0_97] : memref<16x32x64xbf16, #tpu.memory_space<vmem>>, vector<1x32x64xbf16>
    %111 = vector.shape_cast %110 : vector<1x32x64xbf16> to vector<32x64xbf16>
    %cst_98 = arith.constant dense<0.000000e+00> : vector<128x64xf32>
    %112 = tpu.matmul %109, %111, %cst_98 {dimension_numbers = #tpu.dot_dimension_numbers<[1], [0], [0], [1], [0, 0, 1, 1], [], []>} : vector<128x32xbf16>, vector<32x64xbf16>, vector<128x64xf32> -> vector<128x64xf32>
    %113 = arith.addf %105, %112 : vector<128x64xf32>
    %c13 = arith.constant 13 : index
    %c0_99 = arith.constant 0 : index
    %c0_100 = arith.constant 0 : index
    %114 = vector.load %arg4[%c13, %c0_99, %c0_100] : memref<16x128x512xbf16, #tpu.memory_space<vmem>>, vector<1x128x512xbf16>
    %115 = vector.shape_cast %114 : vector<1x128x512xbf16> to vector<128x512xbf16>
    %cst_101 = arith.constant dense<0.000000e+00> : vector<128x32xf32>
    %116 = tpu.matmul %115, %8, %cst_101 {dimension_numbers = #tpu.dot_dimension_numbers<[1], [0], [0], [1], [0, 0, 1, 1], [], []>} : vector<128x512xbf16>, vector<512x32xbf16>, vector<128x32xf32> -> vector<128x32xf32>
    %117 = arith.truncf %116 : vector<128x32xf32> to vector<128x32xbf16>
    %c13_102 = arith.constant 13 : index
    %c0_103 = arith.constant 0 : index
    %c0_104 = arith.constant 0 : index
    %118 = vector.load %arg5[%c13_102, %c0_103, %c0_104] : memref<16x32x64xbf16, #tpu.memory_space<vmem>>, vector<1x32x64xbf16>
    %119 = vector.shape_cast %118 : vector<1x32x64xbf16> to vector<32x64xbf16>
    %cst_105 = arith.constant dense<0.000000e+00> : vector<128x64xf32>
    %120 = tpu.matmul %117, %119, %cst_105 {dimension_numbers = #tpu.dot_dimension_numbers<[1], [0], [0], [1], [0, 0, 1, 1], [], []>} : vector<128x32xbf16>, vector<32x64xbf16>, vector<128x64xf32> -> vector<128x64xf32>
    %121 = arith.addf %113, %120 : vector<128x64xf32>
    %c14 = arith.constant 14 : index
    %c0_106 = arith.constant 0 : index
    %c0_107 = arith.constant 0 : index
    %122 = vector.load %arg4[%c14, %c0_106, %c0_107] : memref<16x128x512xbf16, #tpu.memory_space<vmem>>, vector<1x128x512xbf16>
    %123 = vector.shape_cast %122 : vector<1x128x512xbf16> to vector<128x512xbf16>
    %cst_108 = arith.constant dense<0.000000e+00> : vector<128x32xf32>
    %124 = tpu.matmul %123, %8, %cst_108 {dimension_numbers = #tpu.dot_dimension_numbers<[1], [0], [0], [1], [0, 0, 1, 1], [], []>} : vector<128x512xbf16>, vector<512x32xbf16>, vector<128x32xf32> -> vector<128x32xf32>
    %125 = arith.truncf %124 : vector<128x32xf32> to vector<128x32xbf16>
    %c14_109 = arith.constant 14 : index
    %c0_110 = arith.constant 0 : index
    %c0_111 = arith.constant 0 : index
    %126 = vector.load %arg5[%c14_109, %c0_110, %c0_111] : memref<16x32x64xbf16, #tpu.memory_space<vmem>>, vector<1x32x64xbf16>
    %127 = vector.shape_cast %126 : vector<1x32x64xbf16> to vector<32x64xbf16>
    %cst_112 = arith.constant dense<0.000000e+00> : vector<128x64xf32>
    %128 = tpu.matmul %125, %127, %cst_112 {dimension_numbers = #tpu.dot_dimension_numbers<[1], [0], [0], [1], [0, 0, 1, 1], [], []>} : vector<128x32xbf16>, vector<32x64xbf16>, vector<128x64xf32> -> vector<128x64xf32>
    %129 = arith.addf %121, %128 : vector<128x64xf32>
    %c15 = arith.constant 15 : index
    %c0_113 = arith.constant 0 : index
    %c0_114 = arith.constant 0 : index
    %130 = vector.load %arg4[%c15, %c0_113, %c0_114] : memref<16x128x512xbf16, #tpu.memory_space<vmem>>, vector<1x128x512xbf16>
    %131 = vector.shape_cast %130 : vector<1x128x512xbf16> to vector<128x512xbf16>
    %cst_115 = arith.constant dense<0.000000e+00> : vector<128x32xf32>
    %132 = tpu.matmul %131, %8, %cst_115 {dimension_numbers = #tpu.dot_dimension_numbers<[1], [0], [0], [1], [0, 0, 1, 1], [], []>} : vector<128x512xbf16>, vector<512x32xbf16>, vector<128x32xf32> -> vector<128x32xf32>
    %133 = arith.truncf %132 : vector<128x32xf32> to vector<128x32xbf16>
    %c15_116 = arith.constant 15 : index
    %c0_117 = arith.constant 0 : index
    %c0_118 = arith.constant 0 : index
    %134 = vector.load %arg5[%c15_116, %c0_117, %c0_118] : memref<16x32x64xbf16, #tpu.memory_space<vmem>>, vector<1x32x64xbf16>
    %135 = vector.shape_cast %134 : vector<1x32x64xbf16> to vector<32x64xbf16>
    %cst_119 = arith.constant dense<0.000000e+00> : vector<128x64xf32>
    %136 = tpu.matmul %133, %135, %cst_119 {dimension_numbers = #tpu.dot_dimension_numbers<[1], [0], [0], [1], [0, 0, 1, 1], [], []>} : vector<128x32xbf16>, vector<32x64xbf16>, vector<128x64xf32> -> vector<128x64xf32>
    %137 = arith.addf %129, %136 : vector<128x64xf32>
    %c0_120 = arith.constant 0 : index
    %c0_121 = arith.constant 0 : index
    %138 = vector.load %arg6[%c0_120, %c0_121] : memref<1x64xf32, #tpu.memory_space<vmem>>, vector<1x64xf32>
    %139 = vector.broadcast %138 : vector<1x64xf32> to vector<128x64xf32>
    %140 = arith.addf %137, %139 : vector<128x64xf32>
    %cst_122 = arith.constant 0.000000e+00 : f32
    %141 = vector.broadcast %cst_122 : f32 to vector<128x64xf32>
    %142 = arith.maximumf %140, %141 : vector<128x64xf32>
    %143 = arith.truncf %142 : vector<128x64xf32> to vector<128x64xbf16>
    %cst_123 = arith.constant 0.000000e+00 : f32
    %144 = vector.broadcast %cst_123 : f32 to vector<8x128xf32>
    %c0_124 = arith.constant 0 : index
    %c0_125 = arith.constant 0 : index
    %c0_126 = arith.constant 0 : index
    %145 = vector.load %arg7[%c0_124, %c0_125, %c0_126] : memref<16x8x128xbf16, #tpu.memory_space<vmem>>, vector<1x8x128xbf16>
    %146 = vector.shape_cast %145 : vector<1x8x128xbf16> to vector<8x128xbf16>
    %cst_127 = arith.constant dense<0.000000e+00> : vector<8x64xf32>
    %147 = tpu.matmul %146, %143, %cst_127 {dimension_numbers = #tpu.dot_dimension_numbers<[1], [0], [0], [1], [0, 0, 1, 1], [], []>} : vector<8x128xbf16>, vector<128x64xbf16>, vector<8x64xf32> -> vector<8x64xf32>
    %148 = arith.truncf %147 : vector<8x64xf32> to vector<8x64xbf16>
    %c0_128 = arith.constant 0 : index
    %c0_129 = arith.constant 0 : index
    %c0_130 = arith.constant 0 : index
    %149 = vector.load %arg8[%c0_128, %c0_129, %c0_130] : memref<16x64x128xbf16, #tpu.memory_space<vmem>>, vector<1x64x128xbf16>
    %150 = vector.shape_cast %149 : vector<1x64x128xbf16> to vector<64x128xbf16>
    %cst_131 = arith.constant dense<0.000000e+00> : vector<8x128xf32>
    %151 = tpu.matmul %148, %150, %cst_131 {dimension_numbers = #tpu.dot_dimension_numbers<[1], [0], [0], [1], [0, 0, 1, 1], [], []>} : vector<8x64xbf16>, vector<64x128xbf16>, vector<8x128xf32> -> vector<8x128xf32>
    %152 = arith.addf %144, %151 : vector<8x128xf32>
    %c1_132 = arith.constant 1 : index
    %c0_133 = arith.constant 0 : index
    %c0_134 = arith.constant 0 : index
    %153 = vector.load %arg7[%c1_132, %c0_133, %c0_134] : memref<16x8x128xbf16, #tpu.memory_space<vmem>>, vector<1x8x128xbf16>
    %154 = vector.shape_cast %153 : vector<1x8x128xbf16> to vector<8x128xbf16>
    %cst_135 = arith.constant dense<0.000000e+00> : vector<8x64xf32>
    %155 = tpu.matmul %154, %143, %cst_135 {dimension_numbers = #tpu.dot_dimension_numbers<[1], [0], [0], [1], [0, 0, 1, 1], [], []>} : vector<8x128xbf16>, vector<128x64xbf16>, vector<8x64xf32> -> vector<8x64xf32>
    %156 = arith.truncf %155 : vector<8x64xf32> to vector<8x64xbf16>
    %c1_136 = arith.constant 1 : index
    %c0_137 = arith.constant 0 : index
    %c0_138 = arith.constant 0 : index
    %157 = vector.load %arg8[%c1_136, %c0_137, %c0_138] : memref<16x64x128xbf16, #tpu.memory_space<vmem>>, vector<1x64x128xbf16>
    %158 = vector.shape_cast %157 : vector<1x64x128xbf16> to vector<64x128xbf16>
    %cst_139 = arith.constant dense<0.000000e+00> : vector<8x128xf32>
    %159 = tpu.matmul %156, %158, %cst_139 {dimension_numbers = #tpu.dot_dimension_numbers<[1], [0], [0], [1], [0, 0, 1, 1], [], []>} : vector<8x64xbf16>, vector<64x128xbf16>, vector<8x128xf32> -> vector<8x128xf32>
    %160 = arith.addf %152, %159 : vector<8x128xf32>
    %c2_140 = arith.constant 2 : index
    %c0_141 = arith.constant 0 : index
    %c0_142 = arith.constant 0 : index
    %161 = vector.load %arg7[%c2_140, %c0_141, %c0_142] : memref<16x8x128xbf16, #tpu.memory_space<vmem>>, vector<1x8x128xbf16>
    %162 = vector.shape_cast %161 : vector<1x8x128xbf16> to vector<8x128xbf16>
    %cst_143 = arith.constant dense<0.000000e+00> : vector<8x64xf32>
    %163 = tpu.matmul %162, %143, %cst_143 {dimension_numbers = #tpu.dot_dimension_numbers<[1], [0], [0], [1], [0, 0, 1, 1], [], []>} : vector<8x128xbf16>, vector<128x64xbf16>, vector<8x64xf32> -> vector<8x64xf32>
    %164 = arith.truncf %163 : vector<8x64xf32> to vector<8x64xbf16>
    %c2_144 = arith.constant 2 : index
    %c0_145 = arith.constant 0 : index
    %c0_146 = arith.constant 0 : index
    %165 = vector.load %arg8[%c2_144, %c0_145, %c0_146] : memref<16x64x128xbf16, #tpu.memory_space<vmem>>, vector<1x64x128xbf16>
    %166 = vector.shape_cast %165 : vector<1x64x128xbf16> to vector<64x128xbf16>
    %cst_147 = arith.constant dense<0.000000e+00> : vector<8x128xf32>
    %167 = tpu.matmul %164, %166, %cst_147 {dimension_numbers = #tpu.dot_dimension_numbers<[1], [0], [0], [1], [0, 0, 1, 1], [], []>} : vector<8x64xbf16>, vector<64x128xbf16>, vector<8x128xf32> -> vector<8x128xf32>
    %168 = arith.addf %160, %167 : vector<8x128xf32>
    %c3_148 = arith.constant 3 : index
    %c0_149 = arith.constant 0 : index
    %c0_150 = arith.constant 0 : index
    %169 = vector.load %arg7[%c3_148, %c0_149, %c0_150] : memref<16x8x128xbf16, #tpu.memory_space<vmem>>, vector<1x8x128xbf16>
    %170 = vector.shape_cast %169 : vector<1x8x128xbf16> to vector<8x128xbf16>
    %cst_151 = arith.constant dense<0.000000e+00> : vector<8x64xf32>
    %171 = tpu.matmul %170, %143, %cst_151 {dimension_numbers = #tpu.dot_dimension_numbers<[1], [0], [0], [1], [0, 0, 1, 1], [], []>} : vector<8x128xbf16>, vector<128x64xbf16>, vector<8x64xf32> -> vector<8x64xf32>
    %172 = arith.truncf %171 : vector<8x64xf32> to vector<8x64xbf16>
    %c3_152 = arith.constant 3 : index
    %c0_153 = arith.constant 0 : index
    %c0_154 = arith.constant 0 : index
    %173 = vector.load %arg8[%c3_152, %c0_153, %c0_154] : memref<16x64x128xbf16, #tpu.memory_space<vmem>>, vector<1x64x128xbf16>
    %174 = vector.shape_cast %173 : vector<1x64x128xbf16> to vector<64x128xbf16>
    %cst_155 = arith.constant dense<0.000000e+00> : vector<8x128xf32>
    %175 = tpu.matmul %172, %174, %cst_155 {dimension_numbers = #tpu.dot_dimension_numbers<[1], [0], [0], [1], [0, 0, 1, 1], [], []>} : vector<8x64xbf16>, vector<64x128xbf16>, vector<8x128xf32> -> vector<8x128xf32>
    %176 = arith.addf %168, %175 : vector<8x128xf32>
    %c4_156 = arith.constant 4 : index
    %c0_157 = arith.constant 0 : index
    %c0_158 = arith.constant 0 : index
    %177 = vector.load %arg7[%c4_156, %c0_157, %c0_158] : memref<16x8x128xbf16, #tpu.memory_space<vmem>>, vector<1x8x128xbf16>
    %178 = vector.shape_cast %177 : vector<1x8x128xbf16> to vector<8x128xbf16>
    %cst_159 = arith.constant dense<0.000000e+00> : vector<8x64xf32>
    %179 = tpu.matmul %178, %143, %cst_159 {dimension_numbers = #tpu.dot_dimension_numbers<[1], [0], [0], [1], [0, 0, 1, 1], [], []>} : vector<8x128xbf16>, vector<128x64xbf16>, vector<8x64xf32> -> vector<8x64xf32>
    %180 = arith.truncf %179 : vector<8x64xf32> to vector<8x64xbf16>
    %c4_160 = arith.constant 4 : index
    %c0_161 = arith.constant 0 : index
    %c0_162 = arith.constant 0 : index
    %181 = vector.load %arg8[%c4_160, %c0_161, %c0_162] : memref<16x64x128xbf16, #tpu.memory_space<vmem>>, vector<1x64x128xbf16>
    %182 = vector.shape_cast %181 : vector<1x64x128xbf16> to vector<64x128xbf16>
    %cst_163 = arith.constant dense<0.000000e+00> : vector<8x128xf32>
    %183 = tpu.matmul %180, %182, %cst_163 {dimension_numbers = #tpu.dot_dimension_numbers<[1], [0], [0], [1], [0, 0, 1, 1], [], []>} : vector<8x64xbf16>, vector<64x128xbf16>, vector<8x128xf32> -> vector<8x128xf32>
    %184 = arith.addf %176, %183 : vector<8x128xf32>
    %c5_164 = arith.constant 5 : index
    %c0_165 = arith.constant 0 : index
    %c0_166 = arith.constant 0 : index
    %185 = vector.load %arg7[%c5_164, %c0_165, %c0_166] : memref<16x8x128xbf16, #tpu.memory_space<vmem>>, vector<1x8x128xbf16>
    %186 = vector.shape_cast %185 : vector<1x8x128xbf16> to vector<8x128xbf16>
    %cst_167 = arith.constant dense<0.000000e+00> : vector<8x64xf32>
    %187 = tpu.matmul %186, %143, %cst_167 {dimension_numbers = #tpu.dot_dimension_numbers<[1], [0], [0], [1], [0, 0, 1, 1], [], []>} : vector<8x128xbf16>, vector<128x64xbf16>, vector<8x64xf32> -> vector<8x64xf32>
    %188 = arith.truncf %187 : vector<8x64xf32> to vector<8x64xbf16>
    %c5_168 = arith.constant 5 : index
    %c0_169 = arith.constant 0 : index
    %c0_170 = arith.constant 0 : index
    %189 = vector.load %arg8[%c5_168, %c0_169, %c0_170] : memref<16x64x128xbf16, #tpu.memory_space<vmem>>, vector<1x64x128xbf16>
    %190 = vector.shape_cast %189 : vector<1x64x128xbf16> to vector<64x128xbf16>
    %cst_171 = arith.constant dense<0.000000e+00> : vector<8x128xf32>
    %191 = tpu.matmul %188, %190, %cst_171 {dimension_numbers = #tpu.dot_dimension_numbers<[1], [0], [0], [1], [0, 0, 1, 1], [], []>} : vector<8x64xbf16>, vector<64x128xbf16>, vector<8x128xf32> -> vector<8x128xf32>
    %192 = arith.addf %184, %191 : vector<8x128xf32>
    %c6_172 = arith.constant 6 : index
    %c0_173 = arith.constant 0 : index
    %c0_174 = arith.constant 0 : index
    %193 = vector.load %arg7[%c6_172, %c0_173, %c0_174] : memref<16x8x128xbf16, #tpu.memory_space<vmem>>, vector<1x8x128xbf16>
    %194 = vector.shape_cast %193 : vector<1x8x128xbf16> to vector<8x128xbf16>
    %cst_175 = arith.constant dense<0.000000e+00> : vector<8x64xf32>
    %195 = tpu.matmul %194, %143, %cst_175 {dimension_numbers = #tpu.dot_dimension_numbers<[1], [0], [0], [1], [0, 0, 1, 1], [], []>} : vector<8x128xbf16>, vector<128x64xbf16>, vector<8x64xf32> -> vector<8x64xf32>
    %196 = arith.truncf %195 : vector<8x64xf32> to vector<8x64xbf16>
    %c6_176 = arith.constant 6 : index
    %c0_177 = arith.constant 0 : index
    %c0_178 = arith.constant 0 : index
    %197 = vector.load %arg8[%c6_176, %c0_177, %c0_178] : memref<16x64x128xbf16, #tpu.memory_space<vmem>>, vector<1x64x128xbf16>
    %198 = vector.shape_cast %197 : vector<1x64x128xbf16> to vector<64x128xbf16>
    %cst_179 = arith.constant dense<0.000000e+00> : vector<8x128xf32>
    %199 = tpu.matmul %196, %198, %cst_179 {dimension_numbers = #tpu.dot_dimension_numbers<[1], [0], [0], [1], [0, 0, 1, 1], [], []>} : vector<8x64xbf16>, vector<64x128xbf16>, vector<8x128xf32> -> vector<8x128xf32>
    %200 = arith.addf %192, %199 : vector<8x128xf32>
    %c7_180 = arith.constant 7 : index
    %c0_181 = arith.constant 0 : index
    %c0_182 = arith.constant 0 : index
    %201 = vector.load %arg7[%c7_180, %c0_181, %c0_182] : memref<16x8x128xbf16, #tpu.memory_space<vmem>>, vector<1x8x128xbf16>
    %202 = vector.shape_cast %201 : vector<1x8x128xbf16> to vector<8x128xbf16>
    %cst_183 = arith.constant dense<0.000000e+00> : vector<8x64xf32>
    %203 = tpu.matmul %202, %143, %cst_183 {dimension_numbers = #tpu.dot_dimension_numbers<[1], [0], [0], [1], [0, 0, 1, 1], [], []>} : vector<8x128xbf16>, vector<128x64xbf16>, vector<8x64xf32> -> vector<8x64xf32>
    %204 = arith.truncf %203 : vector<8x64xf32> to vector<8x64xbf16>
    %c7_184 = arith.constant 7 : index
    %c0_185 = arith.constant 0 : index
    %c0_186 = arith.constant 0 : index
    %205 = vector.load %arg8[%c7_184, %c0_185, %c0_186] : memref<16x64x128xbf16, #tpu.memory_space<vmem>>, vector<1x64x128xbf16>
    %206 = vector.shape_cast %205 : vector<1x64x128xbf16> to vector<64x128xbf16>
    %cst_187 = arith.constant dense<0.000000e+00> : vector<8x128xf32>
    %207 = tpu.matmul %204, %206, %cst_187 {dimension_numbers = #tpu.dot_dimension_numbers<[1], [0], [0], [1], [0, 0, 1, 1], [], []>} : vector<8x64xbf16>, vector<64x128xbf16>, vector<8x128xf32> -> vector<8x128xf32>
    %208 = arith.addf %200, %207 : vector<8x128xf32>
    %c8_188 = arith.constant 8 : index
    %c0_189 = arith.constant 0 : index
    %c0_190 = arith.constant 0 : index
    %209 = vector.load %arg7[%c8_188, %c0_189, %c0_190] : memref<16x8x128xbf16, #tpu.memory_space<vmem>>, vector<1x8x128xbf16>
    %210 = vector.shape_cast %209 : vector<1x8x128xbf16> to vector<8x128xbf16>
    %cst_191 = arith.constant dense<0.000000e+00> : vector<8x64xf32>
    %211 = tpu.matmul %210, %143, %cst_191 {dimension_numbers = #tpu.dot_dimension_numbers<[1], [0], [0], [1], [0, 0, 1, 1], [], []>} : vector<8x128xbf16>, vector<128x64xbf16>, vector<8x64xf32> -> vector<8x64xf32>
    %212 = arith.truncf %211 : vector<8x64xf32> to vector<8x64xbf16>
    %c8_192 = arith.constant 8 : index
    %c0_193 = arith.constant 0 : index
    %c0_194 = arith.constant 0 : index
    %213 = vector.load %arg8[%c8_192, %c0_193, %c0_194] : memref<16x64x128xbf16, #tpu.memory_space<vmem>>, vector<1x64x128xbf16>
    %214 = vector.shape_cast %213 : vector<1x64x128xbf16> to vector<64x128xbf16>
    %cst_195 = arith.constant dense<0.000000e+00> : vector<8x128xf32>
    %215 = tpu.matmul %212, %214, %cst_195 {dimension_numbers = #tpu.dot_dimension_numbers<[1], [0], [0], [1], [0, 0, 1, 1], [], []>} : vector<8x64xbf16>, vector<64x128xbf16>, vector<8x128xf32> -> vector<8x128xf32>
    %216 = arith.addf %208, %215 : vector<8x128xf32>
    %c9_196 = arith.constant 9 : index
    %c0_197 = arith.constant 0 : index
    %c0_198 = arith.constant 0 : index
    %217 = vector.load %arg7[%c9_196, %c0_197, %c0_198] : memref<16x8x128xbf16, #tpu.memory_space<vmem>>, vector<1x8x128xbf16>
    %218 = vector.shape_cast %217 : vector<1x8x128xbf16> to vector<8x128xbf16>
    %cst_199 = arith.constant dense<0.000000e+00> : vector<8x64xf32>
    %219 = tpu.matmul %218, %143, %cst_199 {dimension_numbers = #tpu.dot_dimension_numbers<[1], [0], [0], [1], [0, 0, 1, 1], [], []>} : vector<8x128xbf16>, vector<128x64xbf16>, vector<8x64xf32> -> vector<8x64xf32>
    %220 = arith.truncf %219 : vector<8x64xf32> to vector<8x64xbf16>
    %c9_200 = arith.constant 9 : index
    %c0_201 = arith.constant 0 : index
    %c0_202 = arith.constant 0 : index
    %221 = vector.load %arg8[%c9_200, %c0_201, %c0_202] : memref<16x64x128xbf16, #tpu.memory_space<vmem>>, vector<1x64x128xbf16>
    %222 = vector.shape_cast %221 : vector<1x64x128xbf16> to vector<64x128xbf16>
    %cst_203 = arith.constant dense<0.000000e+00> : vector<8x128xf32>
    %223 = tpu.matmul %220, %222, %cst_203 {dimension_numbers = #tpu.dot_dimension_numbers<[1], [0], [0], [1], [0, 0, 1, 1], [], []>} : vector<8x64xbf16>, vector<64x128xbf16>, vector<8x128xf32> -> vector<8x128xf32>
    %224 = arith.addf %216, %223 : vector<8x128xf32>
    %c10_204 = arith.constant 10 : index
    %c0_205 = arith.constant 0 : index
    %c0_206 = arith.constant 0 : index
    %225 = vector.load %arg7[%c10_204, %c0_205, %c0_206] : memref<16x8x128xbf16, #tpu.memory_space<vmem>>, vector<1x8x128xbf16>
    %226 = vector.shape_cast %225 : vector<1x8x128xbf16> to vector<8x128xbf16>
    %cst_207 = arith.constant dense<0.000000e+00> : vector<8x64xf32>
    %227 = tpu.matmul %226, %143, %cst_207 {dimension_numbers = #tpu.dot_dimension_numbers<[1], [0], [0], [1], [0, 0, 1, 1], [], []>} : vector<8x128xbf16>, vector<128x64xbf16>, vector<8x64xf32> -> vector<8x64xf32>
    %228 = arith.truncf %227 : vector<8x64xf32> to vector<8x64xbf16>
    %c10_208 = arith.constant 10 : index
    %c0_209 = arith.constant 0 : index
    %c0_210 = arith.constant 0 : index
    %229 = vector.load %arg8[%c10_208, %c0_209, %c0_210] : memref<16x64x128xbf16, #tpu.memory_space<vmem>>, vector<1x64x128xbf16>
    %230 = vector.shape_cast %229 : vector<1x64x128xbf16> to vector<64x128xbf16>
    %cst_211 = arith.constant dense<0.000000e+00> : vector<8x128xf32>
    %231 = tpu.matmul %228, %230, %cst_211 {dimension_numbers = #tpu.dot_dimension_numbers<[1], [0], [0], [1], [0, 0, 1, 1], [], []>} : vector<8x64xbf16>, vector<64x128xbf16>, vector<8x128xf32> -> vector<8x128xf32>
    %232 = arith.addf %224, %231 : vector<8x128xf32>
    %c11_212 = arith.constant 11 : index
    %c0_213 = arith.constant 0 : index
    %c0_214 = arith.constant 0 : index
    %233 = vector.load %arg7[%c11_212, %c0_213, %c0_214] : memref<16x8x128xbf16, #tpu.memory_space<vmem>>, vector<1x8x128xbf16>
    %234 = vector.shape_cast %233 : vector<1x8x128xbf16> to vector<8x128xbf16>
    %cst_215 = arith.constant dense<0.000000e+00> : vector<8x64xf32>
    %235 = tpu.matmul %234, %143, %cst_215 {dimension_numbers = #tpu.dot_dimension_numbers<[1], [0], [0], [1], [0, 0, 1, 1], [], []>} : vector<8x128xbf16>, vector<128x64xbf16>, vector<8x64xf32> -> vector<8x64xf32>
    %236 = arith.truncf %235 : vector<8x64xf32> to vector<8x64xbf16>
    %c11_216 = arith.constant 11 : index
    %c0_217 = arith.constant 0 : index
    %c0_218 = arith.constant 0 : index
    %237 = vector.load %arg8[%c11_216, %c0_217, %c0_218] : memref<16x64x128xbf16, #tpu.memory_space<vmem>>, vector<1x64x128xbf16>
    %238 = vector.shape_cast %237 : vector<1x64x128xbf16> to vector<64x128xbf16>
    %cst_219 = arith.constant dense<0.000000e+00> : vector<8x128xf32>
    %239 = tpu.matmul %236, %238, %cst_219 {dimension_numbers = #tpu.dot_dimension_numbers<[1], [0], [0], [1], [0, 0, 1, 1], [], []>} : vector<8x64xbf16>, vector<64x128xbf16>, vector<8x128xf32> -> vector<8x128xf32>
    %240 = arith.addf %232, %239 : vector<8x128xf32>
    %c12_220 = arith.constant 12 : index
    %c0_221 = arith.constant 0 : index
    %c0_222 = arith.constant 0 : index
    %241 = vector.load %arg7[%c12_220, %c0_221, %c0_222] : memref<16x8x128xbf16, #tpu.memory_space<vmem>>, vector<1x8x128xbf16>
    %242 = vector.shape_cast %241 : vector<1x8x128xbf16> to vector<8x128xbf16>
    %cst_223 = arith.constant dense<0.000000e+00> : vector<8x64xf32>
    %243 = tpu.matmul %242, %143, %cst_223 {dimension_numbers = #tpu.dot_dimension_numbers<[1], [0], [0], [1], [0, 0, 1, 1], [], []>} : vector<8x128xbf16>, vector<128x64xbf16>, vector<8x64xf32> -> vector<8x64xf32>
    %244 = arith.truncf %243 : vector<8x64xf32> to vector<8x64xbf16>
    %c12_224 = arith.constant 12 : index
    %c0_225 = arith.constant 0 : index
    %c0_226 = arith.constant 0 : index
    %245 = vector.load %arg8[%c12_224, %c0_225, %c0_226] : memref<16x64x128xbf16, #tpu.memory_space<vmem>>, vector<1x64x128xbf16>
    %246 = vector.shape_cast %245 : vector<1x64x128xbf16> to vector<64x128xbf16>
    %cst_227 = arith.constant dense<0.000000e+00> : vector<8x128xf32>
    %247 = tpu.matmul %244, %246, %cst_227 {dimension_numbers = #tpu.dot_dimension_numbers<[1], [0], [0], [1], [0, 0, 1, 1], [], []>} : vector<8x64xbf16>, vector<64x128xbf16>, vector<8x128xf32> -> vector<8x128xf32>
    %248 = arith.addf %240, %247 : vector<8x128xf32>
    %c13_228 = arith.constant 13 : index
    %c0_229 = arith.constant 0 : index
    %c0_230 = arith.constant 0 : index
    %249 = vector.load %arg7[%c13_228, %c0_229, %c0_230] : memref<16x8x128xbf16, #tpu.memory_space<vmem>>, vector<1x8x128xbf16>
    %250 = vector.shape_cast %249 : vector<1x8x128xbf16> to vector<8x128xbf16>
    %cst_231 = arith.constant dense<0.000000e+00> : vector<8x64xf32>
    %251 = tpu.matmul %250, %143, %cst_231 {dimension_numbers = #tpu.dot_dimension_numbers<[1], [0], [0], [1], [0, 0, 1, 1], [], []>} : vector<8x128xbf16>, vector<128x64xbf16>, vector<8x64xf32> -> vector<8x64xf32>
    %252 = arith.truncf %251 : vector<8x64xf32> to vector<8x64xbf16>
    %c13_232 = arith.constant 13 : index
    %c0_233 = arith.constant 0 : index
    %c0_234 = arith.constant 0 : index
    %253 = vector.load %arg8[%c13_232, %c0_233, %c0_234] : memref<16x64x128xbf16, #tpu.memory_space<vmem>>, vector<1x64x128xbf16>
    %254 = vector.shape_cast %253 : vector<1x64x128xbf16> to vector<64x128xbf16>
    %cst_235 = arith.constant dense<0.000000e+00> : vector<8x128xf32>
    %255 = tpu.matmul %252, %254, %cst_235 {dimension_numbers = #tpu.dot_dimension_numbers<[1], [0], [0], [1], [0, 0, 1, 1], [], []>} : vector<8x64xbf16>, vector<64x128xbf16>, vector<8x128xf32> -> vector<8x128xf32>
    %256 = arith.addf %248, %255 : vector<8x128xf32>
    %c14_236 = arith.constant 14 : index
    %c0_237 = arith.constant 0 : index
    %c0_238 = arith.constant 0 : index
    %257 = vector.load %arg7[%c14_236, %c0_237, %c0_238] : memref<16x8x128xbf16, #tpu.memory_space<vmem>>, vector<1x8x128xbf16>
    %258 = vector.shape_cast %257 : vector<1x8x128xbf16> to vector<8x128xbf16>
    %cst_239 = arith.constant dense<0.000000e+00> : vector<8x64xf32>
    %259 = tpu.matmul %258, %143, %cst_239 {dimension_numbers = #tpu.dot_dimension_numbers<[1], [0], [0], [1], [0, 0, 1, 1], [], []>} : vector<8x128xbf16>, vector<128x64xbf16>, vector<8x64xf32> -> vector<8x64xf32>
    %260 = arith.truncf %259 : vector<8x64xf32> to vector<8x64xbf16>
    %c14_240 = arith.constant 14 : index
    %c0_241 = arith.constant 0 : index
    %c0_242 = arith.constant 0 : index
    %261 = vector.load %arg8[%c14_240, %c0_241, %c0_242] : memref<16x64x128xbf16, #tpu.memory_space<vmem>>, vector<1x64x128xbf16>
    %262 = vector.shape_cast %261 : vector<1x64x128xbf16> to vector<64x128xbf16>
    %cst_243 = arith.constant dense<0.000000e+00> : vector<8x128xf32>
    %263 = tpu.matmul %260, %262, %cst_243 {dimension_numbers = #tpu.dot_dimension_numbers<[1], [0], [0], [1], [0, 0, 1, 1], [], []>} : vector<8x64xbf16>, vector<64x128xbf16>, vector<8x128xf32> -> vector<8x128xf32>
    %264 = arith.addf %256, %263 : vector<8x128xf32>
    %c15_244 = arith.constant 15 : index
    %c0_245 = arith.constant 0 : index
    %c0_246 = arith.constant 0 : index
    %265 = vector.load %arg7[%c15_244, %c0_245, %c0_246] : memref<16x8x128xbf16, #tpu.memory_space<vmem>>, vector<1x8x128xbf16>
    %266 = vector.shape_cast %265 : vector<1x8x128xbf16> to vector<8x128xbf16>
    %cst_247 = arith.constant dense<0.000000e+00> : vector<8x64xf32>
    %267 = tpu.matmul %266, %143, %cst_247 {dimension_numbers = #tpu.dot_dimension_numbers<[1], [0], [0], [1], [0, 0, 1, 1], [], []>} : vector<8x128xbf16>, vector<128x64xbf16>, vector<8x64xf32> -> vector<8x64xf32>
    %268 = arith.truncf %267 : vector<8x64xf32> to vector<8x64xbf16>
    %c15_248 = arith.constant 15 : index
    %c0_249 = arith.constant 0 : index
    %c0_250 = arith.constant 0 : index
    %269 = vector.load %arg8[%c15_248, %c0_249, %c0_250] : memref<16x64x128xbf16, #tpu.memory_space<vmem>>, vector<1x64x128xbf16>
    %270 = vector.shape_cast %269 : vector<1x64x128xbf16> to vector<64x128xbf16>
    %cst_251 = arith.constant dense<0.000000e+00> : vector<8x128xf32>
    %271 = tpu.matmul %268, %270, %cst_251 {dimension_numbers = #tpu.dot_dimension_numbers<[1], [0], [0], [1], [0, 0, 1, 1], [], []>} : vector<8x64xbf16>, vector<64x128xbf16>, vector<8x128xf32> -> vector<8x128xf32>
    %272 = arith.addf %264, %271 : vector<8x128xf32>
    %c0_252 = arith.constant 0 : index
    %c0_253 = arith.constant 0 : index
    %273 = vector.load %arg9[%c0_252, %c0_253] : memref<1x128xf32, #tpu.memory_space<vmem>>, vector<1x128xf32>
    %274 = vector.broadcast %273 : vector<1x128xf32> to vector<8x128xf32>
    %275 = arith.addf %272, %274 : vector<8x128xf32>
    %c0_254 = arith.constant 0 : index
    %c0_255 = arith.constant 0 : index
    %276 = vector.load %arg10[%c0_254, %c0_255] : memref<8x128xf32, #tpu.memory_space<vmem>>, vector<8x128xf32>
    tpu.vector_store %arg10[%c0_254, %c0_255], %275 {strides = array<i32>} : memref<8x128xf32, #tpu.memory_space<vmem>>, vector<8x128xf32>,
    return
  }
  func.func @transform_0(%arg0: i32) -> (i32, i32) {
    %c0_i32 = arith.constant 0 : i32
    %c0_i32_0 = arith.constant 0 : i32
    return %arg0, %c0_i32 : i32, i32
  }
  func.func @transform_1(%arg0: i32) -> (i32, i32) {
    %c0_i32 = arith.constant 0 : i32
    %c0_i32_0 = arith.constant 0 : i32
    %c0_i32_1 = arith.constant 0 : i32
    return %c0_i32, %c0_i32_0 : i32, i32
  }
  func.func @transform_2(%arg0: i32) -> (i32, i32) {
    %c0_i32 = arith.constant 0 : i32
    %c0_i32_0 = arith.constant 0 : i32
    %c0_i32_1 = arith.constant 0 : i32
    return %c0_i32, %c0_i32_0 : i32, i32
  }
  func.func @transform_3(%arg0: i32) -> (i32, i32, i32) {
    %c0_i32 = arith.constant 0 : i32
    %c0_i32_0 = arith.constant 0 : i32
    %c0_i32_1 = arith.constant 0 : i32
    %c0_i32_2 = arith.constant 0 : i32
    return %c0_i32, %c0_i32_0, %c0_i32_1 : i32, i32, i32
  }
  func.func @transform_4(%arg0: i32) -> (i32, i32, i32) {
    %c0_i32 = arith.constant 0 : i32
    %c0_i32_0 = arith.constant 0 : i32
    %c0_i32_1 = arith.constant 0 : i32
    %c0_i32_2 = arith.constant 0 : i32
    return %c0_i32, %c0_i32_0, %c0_i32_1 : i32, i32, i32
  }
  func.func @transform_5(%arg0: i32) -> (i32, i32) {
    %c0_i32 = arith.constant 0 : i32
    %c0_i32_0 = arith.constant 0 : i32
    %c0_i32_1 = arith.constant 0 : i32
    return %c0_i32, %c0_i32_0 : i32, i32
  }
  func.func @transform_6(%arg0: i32) -> (i32, i32, i32) {
    %c0_i32 = arith.constant 0 : i32
    %c0_i32_0 = arith.constant 0 : i32
    %c0_i32_1 = arith.constant 0 : i32
    %c0_i32_2 = arith.constant 0 : i32
    return %c0_i32, %c0_i32_0, %c0_i32_1 : i32, i32, i32
  }
  func.func @transform_7(%arg0: i32) -> (i32, i32, i32) {
    %c0_i32 = arith.constant 0 : i32
    %c0_i32_0 = arith.constant 0 : i32
    %c0_i32_1 = arith.constant 0 : i32
    %c0_i32_2 = arith.constant 0 : i32
    return %c0_i32, %c0_i32_0, %c0_i32_1 : i32, i32, i32
  }
  func.func @transform_8(%arg0: i32) -> (i32, i32) {
    %c0_i32 = arith.constant 0 : i32
    %c0_i32_0 = arith.constant 0 : i32
    %c0_i32_1 = arith.constant 0 : i32
    return %c0_i32, %c0_i32_0 : i32, i32
  }
  func.func @transform_9(%arg0: i32) -> (i32, i32) {
    %c0_i32 = arith.constant 0 : i32
    %c0_i32_0 = arith.constant 0 : i32
    return %arg0, %c0_i32 : i32, i32
  }
}

</mosaic_0001>

<bundles_post_ra>
// kernel: better_conv_network.1
= control target key start
LH: loop header
LB: loop body
LE: loop exit
PB: predicated region body
PF: predicated region fallthrough
CT: control target
= control target key end

     0   :  { %vm285_vm0 = vcmask 392192   ;;  %vm1461_vm1 = vcmask 261120   ;;  %vm8778_vm2 = vcmask 523264   ;;  %s19702_s1 = inlined_call_operand.vmem [shape: bf16[48,32], index: 1, kind: input, shape index: {}]   ;;  %s19703_s2 = inlined_call_operand.vmem [shape: f32[1,32], index: 2, kind: input, shape index: {}]   ;;  %s19704_s0 = inlined_call_operand.vmem [shape: bf16[512,48], index: 0, kind: input, shape index: {}]   ;;  %s19705_s3 = inlined_call_operand.vmem [shape: bf16[16,128,512], index: 3, kind: input, shape index: {}]   ;;  %s19706_s4 = inlined_call_operand.vmem [shape: bf16[16,32,64], index: 4, kind: input, shape index: {}]   ;;  %s19707_s5 = inlined_call_operand.vmem [shape: f32[1,64], index: 5, kind: input, shape index: {}]   ;;  %s19708_s7 = inlined_call_operand.vmem [shape: bf16[16,64,128], index: 7, kind: input, shape index: {}]   ;;  %s19709_s6 = inlined_call_operand.vmem [shape: bf16[16,8,128], index: 6, kind: input, shape index: {}]   ;;  %s19710_s8 = inlined_call_operand.vmem [shape: f32[1,128], index: 8, kind: input, shape index: {}]   ;;  %s19711_s9 = inlined_call_operand.vmem [shape: f32[8,128], index: 9, kind: output, shape index: {}]  }
   0x1   :  { %v13226_v0 = vld [vmem:[%s19702_s1 + $0x10] sm:$0xff]  ;;  %v13225_v1 = vld [vmem:[%s19702_s1 + $0x8] sm:$0xff]  ;;  %v13224_v2 = vld [vmem:[%s19702_s1] sm:$0xff] }
   0x2   :  { %387 = vmatpush.bf16.msra.mxu0 %v13226_v0  ;;  %v13192_v3 = vld [vmem:[%s19704_s0] sm:$0xff]  ;;  %v13193_v4 = vld [vmem:[%s19704_s0 + $0x8] sm:$0xff]  ;;  %v13194_v5 = vld [vmem:[%s19704_s0 + $0x10] sm:$0xff] }
   0x3   :  { %v13195_v6 = vld [vmem:[%s19704_s0 + $0x18] sm:$0xff]  ;;  %v13196_v7 = vld [vmem:[%s19704_s0 + $0x20] sm:$0xff]  ;;  %v13197_v8 = vld [vmem:[%s19704_s0 + $0x28] sm:$0xff] }
   0x4   :  { %v13198_v9 = vld [vmem:[%s19704_s0 + $0x30] sm:$0xff]  ;;  %v13199_v10 = vld [vmem:[%s19704_s0 + $0x38] sm:$0xff]  ;;  %v13200_v11 = vld [vmem:[%s19704_s0 + $0x40] sm:$0xff] }
   0x5   :  { %v13936_v13 = vld [vmem:[%s19703_s2] ss:$0 sm:$0xff]  ;;  %v13201_v20 = vld [vmem:[%s19704_s0 + $0x48] sm:$0xff]  ;;  %v13202_v28 = vld [vmem:[%s19704_s0 + $0x50] sm:$0xff] }
   0x6   :  { %388 = vmatpush.bf16.msra.mxu0 %v13225_v1  ;;  %v13203_v36 = vld [vmem:[%s19704_s0 + $0x58] sm:$0xff]  ;;  %v13204_v44 = vld [vmem:[%s19704_s0 + $0x60] sm:$0xff]  ;;  %v13205_v47 = vld [vmem:[%s19704_s0 + $0x68] sm:$0xff] }
   0x7   :  { %v13206_v50 = vld [vmem:[%s19704_s0 + $0x70] sm:$0xff]  ;;  %v13207_v53 = vld [vmem:[%s19704_s0 + $0x78] sm:$0xff] }
   0xa   :  { %389 = vmatpush.bf16.msra.mxu0 %v13224_v2 }
   0xd   :  { %9909 = vmatmul.msk.bf16.vlgmr.msra.gmra.mxu0 %vm285_vm0, %v13192_v3  ;;  %v13208_v3 = vld [vmem:[%s19704_s0 + $0x80] sm:$0xff] }
  0x1d   :  { %9910 = vmatmul.msk.bf16.gmra.mxu0 %vm285_vm0, %v13193_v4 }
  0x2d   :  { %9911 = vmatmul.msk.bf16.gmra.mxu0 %vm285_vm0, %v13194_v5 }
  0x3d   :  { %9912 = vmatmul.msk.bf16.gmra.mxu0 %vm285_vm0, %v13195_v6 }
  0x4d   :  { %9913 = vmatmul.msk.bf16.gmra.mxu0 %vm285_vm0, %v13196_v7 }
  0x5d   :  { %9914 = vmatmul.msk.bf16.gmra.mxu0 %vm285_vm0, %v13197_v8 }
  0x6d   :  { %9915 = vmatmul.msk.bf16.gmra.mxu0 %vm285_vm0, %v13198_v9 }
  0x7d   :  { %9916 = vmatmul.msk.bf16.gmra.mxu0 %vm285_vm0, %v13199_v10 }
  0x8a   :  { %v391_v12 = vpop.f32.mrf.mxu0 }
  0x8b   :  { %v392_v14 = vadd.f32 %v13936_v13, %v391_v12 }
  0x8d   :  { %9917 = vmatmul.msk.bf16.gmra.mxu0 %vm285_vm0, %v13200_v11  ;;  %v551_v17 = vmax.f32 %v392_v14, 0.0 }
  0x92   :  { %v393_v15 = vpop.f32.mrf.mxu0 }
  0x93   :  { %v394_v16 = vadd.f32 %v13936_v13, %v393_v15 }
  0x95   :  { %v552_v18 = vmax.f32 %v394_v16, 0.0 }
  0x97   :  { %v13941_v19 = vpack.c.bf16 %v552_v18, %v551_v17 }
  0x99   :  { %19785 = vst [vmem:[#allocation2_spill] sm:$0xff] %v13941_v19 }
  0x9a   :  { %v396_v21 = vpop.f32.mrf.mxu0 }
  0x9b   :  { %v397_v22 = vadd.f32 %v13936_v13, %v396_v21 }
  0x9d   :  { %9918 = vmatmul.msk.bf16.gmra.mxu0 %vm285_vm0, %v13201_v20  ;;  %v553_v25 = vmax.f32 %v397_v22, 0.0  ;;  %v13209_v22 = vld [vmem:[%s19704_s0 + $0x88] sm:$0xff] }
  0xa2   :  { %v398_v23 = vpop.f32.mrf.mxu0 }
  0xa3   :  { %v399_v24 = vadd.f32 %v13936_v13, %v398_v23 }
  0xa5   :  { %v554_v26 = vmax.f32 %v399_v24, 0.0 }
  0xa7   :  { %v13949_v27 = vpack.c.bf16 %v554_v26, %v553_v25 }
  0xa9   :  { %19786 = vst [vmem:[#allocation3_spill] sm:$0xff] %v13949_v27 }
  0xaa   :  { %v401_v29 = vpop.f32.mrf.mxu0 }
  0xab   :  { %v402_v30 = vadd.f32 %v13936_v13, %v401_v29 }
  0xad   :  { %9919 = vmatmul.msk.bf16.gmra.mxu0 %vm285_vm0, %v13202_v28  ;;  %v555_v33 = vmax.f32 %v402_v30, 0.0 }
  0xb2   :  { %v403_v31 = vpop.f32.mrf.mxu0 }
  0xb3   :  { %v404_v32 = vadd.f32 %v13936_v13, %v403_v31  ;;  %v13210_v31 = vld [vmem:[%s19704_s0 + $0x90] sm:$0xff] }
  0xb5   :  { %v556_v34 = vmax.f32 %v404_v32, 0.0 }
  0xb7   :  { %v13957_v35 = vpack.c.bf16 %v556_v34, %v555_v33 }
  0xb9   :  { %19787 = vst [vmem:[#allocation4_spill] sm:$0xff] %v13957_v35 }
  0xba   :  { %v406_v37 = vpop.f32.mrf.mxu0 }
  0xbb   :  { %v407_v38 = vadd.f32 %v13936_v13, %v406_v37 }
  0xbd   :  { %9920 = vmatmul.msk.bf16.gmra.mxu0 %vm285_vm0, %v13203_v36  ;;  %v557_v41 = vmax.f32 %v407_v38, 0.0 }
  0xc2   :  { %v408_v39 = vpop.f32.mrf.mxu0 }
  0xc3   :  { %v409_v40 = vadd.f32 %v13936_v13, %v408_v39 }
  0xc5   :  { %v558_v42 = vmax.f32 %v409_v40, 0.0  ;;  %v13211_v40 = vld [vmem:[%s19704_s0 + $0x98] sm:$0xff] }
  0xc7   :  { %v13965_v43 = vpack.c.bf16 %v558_v42, %v557_v41 }
  0xc9   :  { %19788 = vst [vmem:[#allocation5_spill] sm:$0xff] %v13965_v43 }
  0xca   :  { %v411_v45 = vpop.f32.mrf.mxu0 }
  0xcb   :  { %v412_v8 = vadd.f32 %v13936_v13, %v411_v45 }
  0xcd   :  { %9921 = vmatmul.msk.bf16.gmra.mxu0 %vm285_vm0, %v13204_v44  ;;  %v559_v12 = vmax.f32 %v412_v8, 0.0 }
  0xd2   :  { %v413_v46 = vpop.f32.mrf.mxu0 }
  0xd3   :  { %v414_v5 = vadd.f32 %v13936_v13, %v413_v46 }
  0xd5   :  { %v560_v10 = vmax.f32 %v414_v5, 0.0 }
  0xd7   :  { %v14005_v16 = vpack.c.bf16 %v560_v10, %v559_v12  ;;  %v13216_v10 = vld [vmem:[%s19704_s0 + $0xc0] sm:$0xff] }
  0xd9   :  { %19792 = vst [vmem:[#allocation9_spill] sm:$0xff] %v14005_v16 }
  0xda   :  { %v416_v48 = vpop.f32.mrf.mxu0 }
  0xdb   :  { %v417_v1 = vadd.f32 %v13936_v13, %v416_v48 }
  0xdd   :  { %9922 = vmatmul.msk.bf16.gmra.mxu0 %vm285_vm0, %v13205_v47  ;;  %v561_v9 = vmax.f32 %v417_v1, 0.0 }
  0xe2   :  { %v418_v49 = vpop.f32.mrf.mxu0 }
  0xe3   :  { %v419_v62 = vadd.f32 %v13936_v13, %v418_v49  ;;  %v13212_v49 = vld [vmem:[%s19704_s0 + $0xa0] sm:$0xff] }
  0xe5   :  { %v562_v6 = vmax.f32 %v419_v62, 0.0 }
  0xe7   :  { %v14001_v11 = vpack.c.bf16 %v562_v6, %v561_v9 }
  0xe9   :  { %19791 = vst [vmem:[#allocation8_spill] sm:$0xff] %v14001_v11 }
  0xea   :  { %v421_v51 = vpop.f32.mrf.mxu0 }
  0xeb   :  { %v422_v59 = vadd.f32 %v13936_v13, %v421_v51 }
  0xed   :  { %9923 = vmatmul.msk.bf16.gmra.mxu0 %vm285_vm0, %v13206_v50  ;;  %v563_v2 = vmax.f32 %v422_v59, 0.0 }
  0xf2   :  { %v423_v52 = vpop.f32.mrf.mxu0 }
  0xf3   :  { %v424_v57 = vadd.f32 %v13936_v13, %v423_v52  ;;  %v13213_v52 = vld [vmem:[%s19704_s0 + $0xa8] sm:$0xff] }
  0xf5   :  { %v564_v63 = vmax.f32 %v424_v57, 0.0 }
  0xf7   :  { %v13996_v7 = vpack.c.bf16 %v564_v63, %v563_v2 }
  0xf9   :  { %19790 = vst [vmem:[#allocation7_spill] sm:$0xff] %v13996_v7 }
  0xfa   :  { %v426_v54 = vpop.f32.mrf.mxu0 }
  0xfb   :  { %v427_v55 = vadd.f32 %v13936_v13, %v426_v54 }
  0xfd   :  { %9924 = vmatmul.msk.bf16.gmra.mxu0 %vm285_vm0, %v13207_v53  ;;  %v565_v60 = vmax.f32 %v427_v55, 0.0  ;;  %v13214_v55 = vld [vmem:[%s19704_s0 + $0xb0] sm:$0xff] }
 0x102   :  { %v428_v56 = vpop.f32.mrf.mxu0 }
 0x103   :  { %v429_v58 = vadd.f32 %v13936_v13, %v428_v56 }
 0x105   :  { %v566_v61 = vmax.f32 %v429_v58, 0.0  ;;  %v13215_v58 = vld [vmem:[%s19704_s0 + $0xb8] sm:$0xff] }
 0x107   :  { %v13988_v0 = vpack.c.bf16 %v566_v61, %v565_v60 }
 0x109   :  { %19789 = vst [vmem:[#allocation6_spill] sm:$0xff] %v13988_v0  ;;  %839 = vmatpush.bf16.msra.mxu1 %v13988_v0 }
 0x10a   :  { %v431_v4 = vpop.f32.mrf.mxu0 }
 0x10b   :  { %v432_v14 = vadd.f32 %v13936_v13, %v431_v4 }
 0x10d   :  { %9925 = vmatmul.msk.bf16.gmra.mxu0 %vm285_vm0, %v13208_v3  ;;  %840 = vmatpush.bf16.msra.mxu1 %v13996_v7  ;;  %v567_v18 = vmax.f32 %v432_v14, 0.0 }
 0x111   :  { %841 = vmatpush.bf16.msra.mxu1 %v14001_v11 }
 0x112   :  { %v433_v15 = vpop.f32.mrf.mxu0 }
 0x113   :  { %v434_v17 = vadd.f32 %v13936_v13, %v433_v15 }
 0x115   :  { %v568_v20 = vmax.f32 %v434_v17, 0.0  ;;  %842 = vmatpush.bf16.msra.mxu1 %v14005_v16 }
 0x117   :  { %v14009_v21 = vpack.c.bf16 %v568_v20, %v567_v18 }
 0x119   :  { %19793 = vst [vmem:[#allocation10_spill] sm:$0xff] %v14009_v21  ;;  %843 = vmatpush.bf16.msra.mxu1 %v13965_v43 }
 0x11a   :  { %v436_v23 = vpop.f32.mrf.mxu0 }
 0x11b   :  { %v437_v24 = vadd.f32 %v13936_v13, %v436_v23 }
 0x11d   :  { %9926 = vmatmul.msk.bf16.gmra.mxu0 %vm285_vm0, %v13209_v22  ;;  %844 = vmatpush.bf16.msra.mxu1 %v13957_v35  ;;  %v569_v28 = vmax.f32 %v437_v24, 0.0 }
 0x121   :  { %845 = vmatpush.bf16.msra.mxu1 %v13949_v27 }
 0x122   :  { %v438_v25 = vpop.f32.mrf.mxu0 }
 0x123   :  { %v439_v26 = vadd.f32 %v13936_v13, %v438_v25 }
 0x125   :  { %v570_v29 = vmax.f32 %v439_v26, 0.0  ;;  %846 = vmatpush.bf16.msra.mxu1 %v13941_v19 }
 0x127   :  { %v14021_v30 = vpack.c.bf16 %v570_v29, %v569_v28 }
 0x129   :  { %19794 = vst [vmem:[#allocation11_spill] sm:$0xff] %v14021_v30 }
 0x12a   :  { %v441_v32 = vpop.f32.mrf.mxu0 }
 0x12b   :  { %v442_v33 = vadd.f32 %v13936_v13, %v441_v32 }
 0x12d   :  { %9927 = vmatmul.msk.bf16.gmra.mxu0 %vm285_vm0, %v13210_v31  ;;  %v571_v37 = vmax.f32 %v442_v33, 0.0 }
 0x132   :  { %v443_v34 = vpop.f32.mrf.mxu0 }
 0x133   :  { %v444_v36 = vadd.f32 %v13936_v13, %v443_v34  ;;  %v13217_v34 = vld [vmem:[%s19704_s0 + $0xc8] sm:$0xff] }
 0x135   :  { %v572_v38 = vmax.f32 %v444_v36, 0.0 }
 0x137   :  { %v14029_v39 = vpack.c.bf16 %v572_v38, %v571_v37  ;;  %v13227_v38 = vld [vmem:[%s19705_s3 + $0x4] sm:$0xf] }
 0x139   :  { %19795 = vst [vmem:[#allocation12_spill] sm:$0xff] %v14029_v39 }
 0x13a   :  { %v446_v41 = vpop.f32.mrf.mxu0 }
 0x13b   :  { %v447_v42 = vadd.f32 %v13936_v13, %v446_v41 }
 0x13d   :  { %9928 = vmatmul.msk.bf16.gmra.mxu0 %vm285_vm0, %v13211_v40  ;;  %v573_v46 = vmax.f32 %v447_v42, 0.0  ;;  %v9945_v40 = vld [vmem:[%s19705_s3 + $0x10] sm:$0xf0] }
 0x142   :  { %v448_v44 = vpop.f32.mrf.mxu0 }
 0x143   :  { %v449_v45 = vadd.f32 %v13936_v13, %v448_v44  ;;  %v9948_v44 = vor.u32 %v13227_v38, %v9945_v40 }
 0x145   :  { %v574_v47 = vmax.f32 %v449_v45, 0.0 }
 0x147   :  { %v14037_v48 = vpack.c.bf16 %v574_v47, %v573_v46 }
 0x149   :  { %19796 = vst [vmem:[#allocation13_spill] sm:$0xff] %v14037_v48 }
 0x14a   :  { %v451_v50 = vpop.f32.mrf.mxu0 }
 0x14b   :  { %v452_v18 = vadd.f32 %v13936_v13, %v451_v50 }
 0x14d   :  { %9929 = vmatmul.msk.bf16.gmra.mxu0 %vm285_vm0, %v13212_v49  ;;  %v575_v24 = vmax.f32 %v452_v18, 0.0  ;;  %v13218_v49 = vld [vmem:[%s19704_s0 + $0xd0] sm:$0xff] }
 0x152   :  { %v453_v51 = vpop.f32.mrf.mxu0 }
 0x153   :  { %v454_v14 = vadd.f32 %v13936_v13, %v453_v51 }
 0x155   :  { %v576_v22 = vmax.f32 %v454_v14, 0.0  ;;  %v13239_v14 = vld [vmem:[%s19705_s3 + $0x64] sm:$0xf] }
 0x157   :  { %v14077_v28 = vpack.c.bf16 %v576_v22, %v575_v24  ;;  %v13221_v22 = vld [vmem:[%s19704_s0 + $0xe8] sm:$0xff] }
 0x159   :  { %19800 = vst [vmem:[#allocation17_spill] sm:$0xff] %v14077_v28 }
 0x15a   :  { %v456_v53 = vpop.f32.mrf.mxu0 }
 0x15b   :  { %v457_v8 = vadd.f32 %v13936_v13, %v456_v53  ;;  %v9961_v53 = vld [vmem:[%s19705_s3 + $0x30] sm:$0xf0] }
 0x15d   :  { %9930 = vmatmul.msk.bf16.gmra.mxu0 %vm285_vm0, %v13213_v52  ;;  %v577_v20 = vmax.f32 %v457_v8, 0.0  ;;  %v13231_v52 = vld [vmem:[%s19705_s3 + $0x24] sm:$0xf] }
 0x162   :  { %v458_v54 = vpop.f32.mrf.mxu0 }
 0x163   :  { %v459_v4 = vadd.f32 %v13936_v13, %v458_v54 }
 0x165   :  { %v578_v15 = vmax.f32 %v459_v4, 0.0 }
 0x167   :  { %v14073_v23 = vpack.c.bf16 %v578_v15, %v577_v20  ;;  %v9993_v15 = vld [vmem:[%s19705_s3 + $0x70] sm:$0xf0] }
 0x168   :  { %v9996_v20 = vor.u32 %v13239_v14, %v9993_v15  ;;  %v9959_v14 = vld [vmem:[%s19705_s3 + $0x20] sm:$0xf]  ;;  %v13233_v15 = vld [vmem:[%s19705_s3 + $0x2c] sm:$0xf0] }
 0x169   :  { %19799 = vst [vmem:[#allocation16_spill] sm:$0xff] %v14073_v23 }
 0x16a   :  { %v461_v56 = vpop.f32.mrf.mxu0 }
 0x16b   :  { %v462_v1 = vadd.f32 %v13936_v13, %v461_v56  ;;  %v9964_v56 = vor.u32 %v13231_v52, %v9961_v53 }
 0x16d   :  { %9931 = vmatmul.msk.bf16.gmra.mxu0 %vm285_vm0, %v13214_v55  ;;  %v579_v9 = vmax.f32 %v462_v1, 0.0  ;;  %v9977_v1 = vld [vmem:[%s19705_s3 + $0x50] sm:$0xf0] }
 0x172   :  { %v463_v57 = vpop.f32.mrf.mxu0 }
 0x173   :  { %v464_v62 = vadd.f32 %v13936_v13, %v463_v57 }
 0x175   :  { %v580_v5 = vmax.f32 %v464_v62, 0.0 }
 0x177   :  { %v14068_v17 = vpack.c.bf16 %v580_v5, %v579_v9 }
 0x179   :  { %19798 = vst [vmem:[#allocation15_spill] sm:$0xff] %v14068_v17 }
 0x17a   :  { %v466_v59 = vpop.f32.mrf.mxu0 }
 0x17b   :  { %v467_v60 = vadd.f32 %v13936_v13, %v466_v59 }
 0x17d   :  { %9932 = vmatmul.msk.bf16.gmra.mxu0 %vm285_vm0, %v13215_v58  ;;  %v581_v2 = vmax.f32 %v467_v60, 0.0  ;;  %v13219_v60 = vld [vmem:[%s19704_s0 + $0xd8] sm:$0xff] }
 0x182   :  { %v468_v61 = vpop.f32.mrf.mxu0 }
 0x183   :  { %v469_v63 = vadd.f32 %v13936_v13, %v468_v61 }
 0x185   :  { %v582_v3 = vmax.f32 %v469_v63, 0.0  ;;  %v13235_v63 = vld [vmem:[%s19705_s3 + $0x44] sm:$0xf] }
 0x186   :  { %v9980_v4 = vor.u32 %v13235_v63, %v9977_v1 }
 0x187   :  { %v14060_v6 = vpack.c.bf16 %v582_v3, %v581_v2 }
 0x189   :  { %19797 = vst [vmem:[#allocation14_spill] sm:$0xff] %v14060_v6  ;;  %888 = vmatpush.bf16.msra.mxu2 %v14060_v6 }
 0x18a   :  { %v471_v12 = vpop.f32.mrf.mxu0 }
 0x18b   :  { %v472_v25 = vadd.f32 %v13936_v13, %v471_v12 }
 0x18d   :  { %9933 = vmatmul.msk.bf16.gmra.mxu0 %vm285_vm0, %v13216_v10  ;;  %889 = vmatpush.bf16.msra.mxu2 %v14068_v17  ;;  %v583_v31 = vmax.f32 %v472_v25, 0.0  ;;  %v13220_v10 = vld [vmem:[%s19704_s0 + $0xe0] sm:$0xff] }
 0x18e   :  { %v13243_v25 = vld [vmem:[%s19705_s3 + $0x84] sm:$0xf] }
 0x191   :  { %890 = vmatpush.bf16.msra.mxu2 %v14073_v23 }
 0x192   :  { %v473_v26 = vpop.f32.mrf.mxu0 }
 0x193   :  { %v474_v29 = vadd.f32 %v13936_v13, %v473_v26  ;;  %v10009_v26 = vld [vmem:[%s19705_s3 + $0x90] sm:$0xf0] }
 0x195   :  { %v584_v32 = vmax.f32 %v474_v29, 0.0  ;;  %891 = vmatpush.bf16.msra.mxu2 %v14077_v28 }
 0x197   :  { %v14081_v33 = vpack.c.bf16 %v584_v32, %v583_v31  ;;  %v10012_v31 = vor.u32 %v13243_v25, %v10009_v26  ;;  %v13222_v32 = vld [vmem:[%s19704_s0 + $0xf0] sm:$0xff] }
 0x198   :  { %v10057_v25 = vld [vmem:[%s19705_s3 + $0xf0] sm:$0xf0] }
 0x199   :  { %19801 = vst [vmem:[#allocation18_spill] sm:$0xff] %v14081_v33  ;;  %892 = vmatpush.bf16.msra.mxu2 %v14037_v48 }
 0x19a   :  { %v476_v36 = vpop.f32.mrf.mxu0 }
 0x19b   :  { %v477_v37 = vadd.f32 %v13936_v13, %v476_v36  ;;  %v13247_v36 = vld [vmem:[%s19705_s3 + $0xa4] sm:$0xf] }
 0x19d   :  { %9934 = vmatmul.msk.bf16.gmra.mxu0 %vm285_vm0, %v13217_v34  ;;  %893 = vmatpush.bf16.msra.mxu2 %v14029_v39  ;;  %v585_v45 = vmax.f32 %v477_v37, 0.0  ;;  %v10025_v37 = vld [vmem:[%s19705_s3 + $0xb0] sm:$0xf0] }
 0x19e   :  { %v10028_v40 = vor.u32 %v13247_v36, %v10025_v37  ;;  %v13237_v36 = vld [vmem:[%s19705_s3 + $0x4c] sm:$0xf0] }
 0x1a1   :  { %894 = vmatpush.bf16.msra.mxu2 %v14021_v30 }
 0x1a2   :  { %v478_v41 = vpop.f32.mrf.mxu0 }
 0x1a3   :  { %v479_v42 = vadd.f32 %v13936_v13, %v478_v41  ;;  %v13223_v41 = vld [vmem:[%s19704_s0 + $0xf8] sm:$0xff] }
 0x1a5   :  { %v586_v46 = vmax.f32 %v479_v42, 0.0  ;;  %895 = vmatpush.bf16.msra.mxu2 %v14009_v21 }
 0x1a7   :  { %v14100_v47 = vpack.c.bf16 %v586_v46, %v585_v45  ;;  %v13229_v45 = vld [vmem:[%s19705_s3 + $0xc] sm:$0xf0] }
 0x1a8   :  { %896 = vmatmul.bf16.vlgmr.msra.gmra.mxu2 %v9948_v44  ;;  %v9943_v44 = vld [vmem:[%s19705_s3] sm:$0xf] }
 0x1a9   :  { %1240 = vmatpush.bf16.msrb.mxu2 %v13988_v0  ;;  %19802 = vst [vmem:[#allocation19_spill] sm:$0xff] %v14100_v47  ;;  %v9944_v46 = vor.u32 %v13229_v45, %v9943_v44  ;;  %v10307_v45 = vld [vmem:[%s19705_s3 + $0x208] sm:$0xf] }
 0x1aa   :  { %v481_v50 = vpop.f32.mrf.mxu0 }
 0x1ab   :  { %v482_v51 = vadd.f32 %v13936_v13, %v481_v50  ;;  %847 = vmatmul.bf16.vlgmr.msra.gmra.mxu1 %v9944_v46  ;;  %v13251_v50 = vld [vmem:[%s19705_s3 + $0xc4] sm:$0xf]  ;;  %v13298_v46 = vld [vmem:[%s19705_s3 + $0x214] sm:$0xf0] }
 0x1ad   :  { %1241 = vmatpush.bf16.msrb.mxu2 %v13996_v7  ;;  %9935 = vmatmul.msk.bf16.gmra.mxu0 %vm285_vm0, %v13218_v49  ;;  %v587_v57 = vmax.f32 %v482_v51, 0.0  ;;  %v10041_v51 = vld [vmem:[%s19705_s3 + $0xd0] sm:$0xf0] }
 0x1b1   :  { %1242 = vmatpush.bf16.msrb.mxu2 %v14001_v11 }
 0x1b2   :  { %v483_v54 = vpop.f32.mrf.mxu0 }
 0x1b3   :  { %v484_v55 = vadd.f32 %v13936_v13, %v483_v54 }
 0x1b5   :  { %1243 = vmatpush.bf16.msrb.mxu2 %v14005_v16  ;;  %v588_v58 = vmax.f32 %v484_v55, 0.0  ;;  %v10044_v55 = vor.u32 %v13251_v50, %v10041_v51  ;;  %v10308_v51 = vor.u32 %v13298_v46, %v10307_v45  ;;  %v10023_v46 = vld [vmem:[%s19705_s3 + $0xa0] sm:$0xf] }
 0x1b7   :  { %v14118_v59 = vpack.c.bf16 %v588_v58, %v587_v57 }
 0x1b8   :  { %901 = vmatmul.bf16.gmra.mxu2 %v9964_v56 }
 0x1b9   :  { %1244 = vmatpush.bf16.msrb.mxu2 %v13965_v43  ;;  %19803 = vst [vmem:[#allocation20_spill] sm:$0xff] %v14118_v59 }
 0x1ba   :  { %v486_v61 = vpop.f32.mrf.mxu0 }
 0x1bb   :  { %v487_v62 = vadd.f32 %v13936_v13, %v486_v61 }
 0x1bd   :  { %1245 = vmatpush.bf16.msrb.mxu2 %v13957_v35  ;;  %9936 = vmatmul.msk.bf16.gmra.mxu0 %vm285_vm0, %v13219_v60  ;;  %v589_v5 = vmax.f32 %v487_v62, 0.0 }
 0x1c1   :  { %1246 = vmatpush.bf16.msrb.mxu2 %v13949_v27 }
 0x1c2   :  { %v488_v2 = vpop.f32.mrf.mxu0 }
 0x1c3   :  { %v489_v3 = vadd.f32 %v13936_v13, %v488_v2 }
 0x1c5   :  { %1247 = vmatpush.bf16.msrb.mxu2 %v13941_v19  ;;  %v590_v8 = vmax.f32 %v489_v3, 0.0 }
 0x1c7   :  { %v14135_v9 = vpack.c.bf16 %v590_v8, %v589_v5 }
 0x1c8   :  { %906 = vmatmul.bf16.gmra.mxu2 %v9980_v4 }
 0x1ca   :  { %v491_v12 = vpop.f32.mrf.mxu0 }
 0x1cb   :  { %v492_v8 = vadd.f32 %v13936_v13, %v491_v12  ;;  %v13255_v12 = vld [vmem:[%s19705_s3 + $0xe4] sm:$0xf] }
 0x1cd   :  { %9937 = vmatmul.msk.bf16.gmra.mxu0 %vm285_vm0, %v13220_v10 }
 0x1d2   :  { %v493_v18 = vpop.f32.mrf.mxu0 }
 0x1d3   :  { %v494_v3 = vadd.f32 %v13936_v13, %v493_v18 }
 0x1d8   :  { %911 = vmatmul.bf16.gmra.mxu2 %v9996_v20  ;;  %v592_v20 = vmax.f32 %v494_v3, 0.0 }
 0x1da   :  { %v496_v24 = vpop.f32.mrf.mxu0 }
 0x1db   :  { %v497_v63 = vadd.f32 %v13936_v13, %v496_v24  ;;  %v591_v24 = vmax.f32 %v492_v8, 0.0 }
 0x1dd   :  { %9938 = vmatmul.msk.bf16.gmra.mxu0 %vm285_vm0, %v13221_v22  ;;  %v593_v10 = vmax.f32 %v497_v63, 0.0  ;;  %v9960_v22 = vor.u32 %v13233_v15, %v9959_v14  ;;  %v10323_v63 = vld [vmem:[%s19705_s3 + $0x228] sm:$0xf]  ;;  %v10007_v14 = vld [vmem:[%s19705_s3 + $0x80] sm:$0xf] }
 0x1de   :  { %v13245_v15 = vld [vmem:[%s19705_s3 + $0x8c] sm:$0xf0] }
 0x1df   :  { %852 = vmatmul.bf16.gmra.mxu1 %v9960_v22 }
 0x1e2   :  { %v498_v29 = vpop.f32.mrf.mxu0 }
 0x1e3   :  { %v499_v60 = vadd.f32 %v13936_v13, %v498_v29  ;;  %v14219_v29 = vpack.c.bf16 %v592_v20, %v591_v24  ;;  %v10008_v20 = vor.u32 %v13245_v15, %v10007_v14  ;;  %v9983_v24 = vld [vmem:[%s19705_s3 + $0x48] sm:$0xf]  ;;  %v10039_v14 = vld [vmem:[%s19705_s3 + $0xc0] sm:$0xf]  ;;  %v13253_v15 = vld [vmem:[%s19705_s3 + $0xcc] sm:$0xf0] }
 0x1e5   :  { %v594_v4 = vmax.f32 %v499_v60, 0.0  ;;  %v13267_v60 = vld [vmem:[%s19705_s3 + $0x12c] sm:$0xf0] }
 0x1e7   :  { %v14207_v18 = vpack.c.bf16 %v594_v4, %v593_v10 }
 0x1e8   :  { %916 = vmatmul.bf16.gmra.mxu2 %v10012_v31  ;;  %v10060_v31 = vor.u32 %v13255_v12, %v10057_v25  ;;  %v13238_v12 = vld [vmem:[%s19705_s3 + $0x54] sm:$0xf0]  ;;  %v10135_v25 = vld [vmem:[%s19705_s3 + $0x140] sm:$0xf] }
 0x1e9   :  { %19805 = vst [vmem:[#allocation22_spill] sm:$0xff] %v14207_v18 }
 0x1ea   :  { %v501_v34 = vpop.f32.mrf.mxu0 }
 0x1eb   :  { %v502_v56 = vadd.f32 %v13936_v13, %v501_v34  ;;  %v9975_v34 = vld [vmem:[%s19705_s3 + $0x40] sm:$0xf] }
 0x1ec   :  { %v9976_v37 = vor.u32 %v13237_v36, %v9975_v34  ;;  %v10339_v36 = vld [vmem:[%s19705_s3 + $0x248] sm:$0xf] }
 0x1ed   :  { %9939 = vmatmul.msk.bf16.gmra.mxu0 %vm285_vm0, %v13222_v32  ;;  %v595_v1 = vmax.f32 %v502_v56, 0.0  ;;  %v9967_v56 = vld [vmem:[%s19705_s3 + $0x28] sm:$0xf] }
 0x1ef   :  { %857 = vmatmul.bf16.gmra.mxu1 %v9976_v37  ;;  %v13306_v37 = vld [vmem:[%s19705_s3 + $0x254] sm:$0xf0] }
 0x1f2   :  { %v503_v38 = vpop.f32.mrf.mxu0 }
 0x1f3   :  { %v504_v53 = vadd.f32 %v13936_v13, %v503_v38  ;;  %v9951_v38 = vld [vmem:[%s19705_s3 + $0x8] sm:$0xf] }
 0x1f5   :  { %v596_v61 = vmax.f32 %v504_v53, 0.0  ;;  %v9991_v53 = vld [vmem:[%s19705_s3 + $0x60] sm:$0xf] }
 0x1f7   :  { %v14196_v5 = vpack.c.bf16 %v596_v61, %v595_v1  ;;  %v13302_v1 = vld [vmem:[%s19705_s3 + $0x234] sm:$0xf0] }
 0x1f8   :  { %921 = vmatmul.bf16.gmra.mxu2 %v10028_v40  ;;  %v13230_v40 = vld [vmem:[%s19705_s3 + $0x14] sm:$0xf0]  ;;  %v10324_v8 = vor.u32 %v13302_v1, %v10323_v63 }
 0x1f9   :  { %19804 = vst [vmem:[#allocation21_spill] sm:$0xff] %v14196_v5 }
 0x1fa   :  { %v506_v42 = vpop.f32.mrf.mxu0 }
 0x1fb   :  { %v507_v49 = vadd.f32 %v13936_v13, %v506_v42  ;;  %v13263_v42 = vld [vmem:[%s19705_s3 + $0x10c] sm:$0xf0] }
 0x1fd   :  { %9940 = vmatmul.msk.bf16.gmra.mxu0 %vm285_vm0, %v13223_v41  ;;  %v597_v57 = vmax.f32 %v507_v49, 0.0  ;;  %v10103_v41 = vld [vmem:[%s19705_s3 + $0x100] sm:$0xf]  ;;  %v9952_v49 = vor.u32 %v13230_v40, %v9951_v38  ;;  %v9984_v38 = vor.u32 %v13238_v12, %v9983_v24  ;;  %v10015_v12 = vld [vmem:[%s19705_s3 + $0x88] sm:$0xf] }
 0x1fe   :  { %v10104_v50 = vor.u32 %v13263_v42, %v10103_v41  ;;  %v10340_v41 = vor.u32 %v13306_v37, %v10339_v36  ;;  %v13279_v36 = vld [vmem:[%s19705_s3 + $0x18c] sm:$0xf0] }
 0x202   :  { %v508_v52 = vpop.f32.mrf.mxu0 }
 0x203   :  { %v509_v54 = vadd.f32 %v13936_v13, %v508_v52 }
 0x205   :  { %v598_v58 = vmax.f32 %v509_v54, 0.0  ;;  %v13241_v54 = vld [vmem:[%s19705_s3 + $0x6c] sm:$0xf0] }
 0x207   :  { %v14188_v62 = vpack.c.bf16 %v598_v58, %v597_v57  ;;  %v13234_v57 = vld [vmem:[%s19705_s3 + $0x34] sm:$0xf0]  ;;  %v10119_v58 = vld [vmem:[%s19705_s3 + $0x120] sm:$0xf] }
 0x208   :  { %926 = vmatmul.bf16.gmra.mxu2 %v10044_v55  ;;  %v9992_v55 = vor.u32 %v13241_v54, %v9991_v53  ;;  %v9968_v3 = vor.u32 %v13234_v57, %v9967_v56  ;;  %v10120_v4 = vor.u32 %v13267_v60, %v10119_v58  ;;  %v9999_v53 = vld [vmem:[%s19705_s3 + $0x68] sm:$0xf]  ;;  %v13242_v54 = vld [vmem:[%s19705_s3 + $0x74] sm:$0xf0]  ;;  %v13275_v56 = vld [vmem:[%s19705_s3 + $0x16c] sm:$0xf0] }
 0x209   :  { %937 = vmatpush.bf16.msra.mxu3 %v14188_v62  ;;  %1911 = vmatpush.bf16.msrb.mxu0 %v14188_v62  ;;  %v10355_v58 = vld [vmem:[%s19705_s3 + $0x268] sm:$0xf]  ;;  %v13310_v60 = vld [vmem:[%s19705_s3 + $0x274] sm:$0xf0]  ;;  %v10000_v63 = vor.u32 %v13242_v54, %v9999_v53  ;;  %v10055_v54 = vld [vmem:[%s19705_s3 + $0xe0] sm:$0xf] }
 0x20a   :  { %v14193_v2 = vpop.f32.mrf.mxu0  ;;  %862 = vmatmul.bf16.gmra.mxu1 %v9992_v55  ;;  %v10151_v55 = vld [vmem:[%s19705_s3 + $0x160] sm:$0xf] }
 0x20b   :  { %v10152_v1 = vor.u32 %v13275_v56, %v10151_v55  ;;  %v13257_v55 = vld [vmem:[%s19705_s3 + $0xec] sm:$0xf0] }
 0x20c   :  { %v10056_v56 = vor.u32 %v13257_v55, %v10055_v54  ;;  %v13254_v55 = vld [vmem:[%s19705_s3 + $0xd4] sm:$0xf0] }
 0x20d   :  { %938 = vmatpush.bf16.msra.mxu3 %v14196_v5  ;;  %1912 = vmatpush.bf16.msrb.mxu0 %v14196_v5 }
 0x211   :  { %939 = vmatpush.bf16.msra.mxu3 %v14207_v18  ;;  %1913 = vmatpush.bf16.msrb.mxu0 %v14207_v18 }
 0x212   :  { %v14217_v26 = vpop.f32.mrf.mxu0 }
 0x215   :  { %940 = vmatpush.bf16.msra.mxu3 %v14219_v29  ;;  %1914 = vmatpush.bf16.msrb.mxu0 %v14219_v29 }
 0x218   :  { %931 = vmatmul.bf16.gmra.mxu2 %v10060_v31  ;;  %v13271_v31 = vld [vmem:[%s19705_s3 + $0x14c] sm:$0xf0] }
 0x219   :  { %941 = vmatpush.bf16.msra.mxu3 %v14135_v9  ;;  %1915 = vmatpush.bf16.msrb.mxu0 %v14135_v9  ;;  %v10136_v40 = vor.u32 %v13271_v31, %v10135_v25  ;;  %v13246_v25 = vld [vmem:[%s19705_s3 + $0x94] sm:$0xf0]  ;;  %v10167_v31 = vld [vmem:[%s19705_s3 + $0x180] sm:$0xf] }
 0x21a   :  { %v14225_v32 = vpop.f32.mrf.mxu0  ;;  %867 = vmatmul.bf16.gmra.mxu1 %v10008_v20  ;;  %v10040_v20 = vor.u32 %v13253_v15, %v10039_v14  ;;  %v10387_v15 = vld [vmem:[%s19705_s3 + $0x2a8] sm:$0xf] }
 0x21d   :  { %942 = vmatpush.bf16.msra.mxu3 %v14118_v59  ;;  %1916 = vmatpush.bf16.msrb.mxu0 %v14118_v59 }
 0x221   :  { %943 = vmatpush.bf16.msra.mxu3 %v14100_v47  ;;  %1917 = vmatpush.bf16.msrb.mxu0 %v14100_v47 }
 0x222   :  { %v14249_v44 = vpop.f32.mrf.mxu0 }
 0x225   :  { %944 = vmatpush.bf16.msra.mxu3 %v14081_v33  ;;  %1918 = vmatpush.bf16.msrb.mxu0 %v14081_v33 }
 0x228   :  { %945 = vmatmul.bf16.vlgmr.msra.gmra.mxu3 %v9952_v49  ;;  %1248 = vmatmul.bf16.vlgmr.msrb.gmra.mxu2 %v10104_v50  ;;  %v13249_v49 = vld [vmem:[%s19705_s3 + $0xac] sm:$0xf0] }
 0x229   :  { %1289 = vmatpush.bf16.msrb.mxu3 %v14060_v6  ;;  %2365 = vmatpush.bf16.msra.mxu0 %v14060_v6  ;;  %v10024_v50 = vor.u32 %v13249_v49, %v10023_v46  ;;  %v10168_v46 = vor.u32 %v13279_v36, %v10167_v31 }
 0x22a   :  { %1919 = vmatmul.bf16.vlgmr.msrb.gmra.mxu0 %v10308_v51  ;;  %v14261_v52 = vpop.f32.mrf.mxu0 }
 0x22b   :  { %v14309_v22 = vpop.f32.mrf.mxu2  ;;  %872 = vmatmul.bf16.gmra.mxu1 %v10024_v50 }
 0x22d   :  { %1290 = vmatpush.bf16.msrb.mxu3 %v14068_v17  ;;  %2366 = vmatpush.bf16.msra.mxu0 %v14068_v17 }
 0x231   :  { %1291 = vmatpush.bf16.msrb.mxu3 %v14073_v23  ;;  %2367 = vmatpush.bf16.msra.mxu0 %v14073_v23 }
 0x232   :  { %v14285_v61 = vpop.f32.mrf.mxu0 }
 0x233   :  { %v14335_v42 = vpop.f32.mrf.mxu2 }
 0x235   :  { %1292 = vmatpush.bf16.msrb.mxu3 %v14077_v28  ;;  %2368 = vmatpush.bf16.msra.mxu0 %v14077_v28 }
 0x238   :  { %950 = vmatmul.bf16.gmra.mxu3 %v9968_v3  ;;  %1253 = vmatmul.bf16.gmra.mxu2 %v10120_v4  ;;  %v10356_v3 = vor.u32 %v13310_v60, %v10355_v58  ;;  %v10031_v60 = vld [vmem:[%s19705_s3 + $0xa8] sm:$0xf] }
 0x239   :  { %1293 = vmatpush.bf16.msrb.mxu3 %v14037_v48  ;;  %2369 = vmatpush.bf16.msra.mxu0 %v14037_v48 }
 0x23a   :  { %1924 = vmatmul.bf16.gmra.mxu0 %v10324_v8  ;;  %v14297_v10 = vpop.f32.mrf.mxu0 }
 0x23b   :  { %v14347_v51 = vpop.f32.mrf.mxu2  ;;  %877 = vmatmul.bf16.gmra.mxu1 %v10040_v20  ;;  %v13318_v20 = vld [vmem:[%s19705_s3 + $0x2b4] sm:$0xf0] }
 0x23c   :  { %v10388_v31 = vor.u32 %v13318_v20, %v10387_v15 }
 0x23d   :  { %1294 = vmatpush.bf16.msrb.mxu3 %v14029_v39  ;;  %2370 = vmatpush.bf16.msra.mxu0 %v14029_v39 }
 0x241   :  { %1295 = vmatpush.bf16.msrb.mxu3 %v14021_v30  ;;  %2371 = vmatpush.bf16.msra.mxu0 %v14021_v30 }
 0x242   :  { %v14323_v34 = vpop.f32.mrf.mxu0 }
 0x243   :  { %v14371_v4 = vpop.f32.mrf.mxu2 }
 0x245   :  { %1296 = vmatpush.bf16.msrb.mxu3 %v14009_v21  ;;  %2372 = vmatpush.bf16.msra.mxu0 %v14009_v21  ;;  %v13293_v21 = vld [vmem:[%s19706_s4 + $0x10] sm:$0xff] }
 0x248   :  { %955 = vmatmul.bf16.gmra.mxu3 %v9984_v38  ;;  %1258 = vmatmul.bf16.gmra.mxu2 %v10136_v40  ;;  %v10371_v38 = vld [vmem:[%s19705_s3 + $0x288] sm:$0xf]  ;;  %v13314_v40 = vld [vmem:[%s19705_s3 + $0x294] sm:$0xf0] }
 0x249   :  { %2819 = vmatpush.bf16.msrb.mxu0 %v13988_v0  ;;  %v10372_v49 = vor.u32 %v13314_v40, %v10371_v38  ;;  %v848_v40 = vpop.f32.mrf.mxu1 }
 0x24a   :  { %1929 = vmatmul.bf16.gmra.mxu0 %v10340_v41  ;;  %v14337_v45 = vpop.f32.mrf.mxu0  ;;  %v10016_v41 = vor.u32 %v13246_v25, %v10015_v12 }
 0x24b   :  { %v14383_v24 = vpop.f32.mrf.mxu2  ;;  %882 = vmatmul.bf16.gmra.mxu1 %v10056_v56  ;;  %v10199_v56 = vld [vmem:[%s19705_s3 + $0x1c0] sm:$0xf] }
 0x24d   :  { %2820 = vmatpush.bf16.msrb.mxu0 %v13996_v7 }
 0x251   :  { %2821 = vmatpush.bf16.msrb.mxu0 %v14001_v11 }
 0x252   :  { %v14361_v57 = vpop.f32.mrf.mxu0 }
 0x253   :  { %v14403_v50 = vpop.f32.mrf.mxu2 }
 0x254   :  { %19806 = vst [vmem:[#allocation23_spill] sm:$0xff] %v14403_v50  ;;  %v14463_v50 = vpop.f32.mrf.mxu1 }
 0x255   :  { %2822 = vmatpush.bf16.msrb.mxu0 %v14005_v16 }
 0x258   :  { %960 = vmatmul.bf16.gmra.mxu3 %v10000_v63  ;;  %1263 = vmatmul.bf16.gmra.mxu2 %v10152_v1  ;;  %v13250_v63 = vld [vmem:[%s19705_s3 + $0xb4] sm:$0xf0]  ;;  %v10183_v1 = vld [vmem:[%s19705_s3 + $0x1a0] sm:$0xf] }
 0x259   :  { %2823 = vmatpush.bf16.msrb.mxu0 %v13965_v43  ;;  %v10032_v12 = vor.u32 %v13250_v63, %v10031_v60  ;;  %v10403_v63 = vld [vmem:[%s19705_s3 + $0x2c8] sm:$0xf] }
 0x25a   :  { %1934 = vmatmul.bf16.gmra.mxu0 %v10356_v3  ;;  %v14373_v8 = vpop.f32.mrf.mxu0  ;;  %v13283_v3 = vld [vmem:[%s19705_s3 + $0x1ac] sm:$0xf0] }
 0x25b   :  { %v14411_v58 = vpop.f32.mrf.mxu2  ;;  %v10184_v25 = vor.u32 %v13283_v3, %v10183_v1  ;;  %v13322_v1 = vld [vmem:[%s19705_s3 + $0x2d4] sm:$0xf0] }
 0x25c   :  { %v13294_v3 = vld [vmem:[%s19706_s4 + $0x18] sm:$0xff] }
 0x25d   :  { %2824 = vmatpush.bf16.msrb.mxu0 %v13957_v35  ;;  %1492 = vmatpush.bf16.msra.mxu3 %v13294_v3  ;;  %v13291_v3 = vld [vmem:[%s19705_s3 + $0x1ec] sm:$0xf0] }
 0x261   :  { %2825 = vmatpush.bf16.msrb.mxu0 %v13949_v27  ;;  %1493 = vmatpush.bf16.msra.mxu3 %v13293_v21  ;;  %v853_v21 = vpop.f32.mrf.mxu1 }
 0x262   :  { %v538_v37 = vpop.f32.mrf.mxu0 }
 0x263   :  { %v14431_v36 = vpop.f32.mrf.mxu2 }
 0x264   :  { %19807 = vst [vmem:[#allocation24_spill] sm:$0xff] %v14431_v36  ;;  %v10404_v36 = vor.u32 %v13322_v1, %v10403_v63 }
 0x265   :  { %2826 = vmatpush.bf16.msrb.mxu0 %v13941_v19  ;;  %v539_v19 = vadd.f32 %v13936_v13, %v538_v37  ;;  %v534_v37 = vadd.f32 %v13936_v13, %v14361_v57  ;;  %v10215_v57 = vld [vmem:[%s19705_s3 + $0x1e0] sm:$0xf] }
 0x268   :  { %965 = vmatmul.bf16.gmra.mxu3 %v10016_v41  ;;  %1268 = vmatmul.bf16.gmra.mxu2 %v10168_v46  ;;  %v14434_v41 = vadd.f32 %v14309_v22, %v848_v40  ;;  %v13287_v22 = vld [vmem:[%s19705_s3 + $0x1cc] sm:$0xf0] }
 0x26a   :  { %1939 = vmatmul.bf16.gmra.mxu0 %v10372_v49  ;;  %v541_v53 = vpop.f32.mrf.mxu0  ;;  %v10047_v49 = vld [vmem:[%s19705_s3 + $0xc8] sm:$0xf] }
 0x26b   :  { %v14436_v46 = vpop.f32.mrf.mxu2 }
 0x272   :  { %v543_v14 = vpop.f32.mrf.mxu0 }
 0x273   :  { %v544_v15 = vadd.f32 %v13936_v13, %v543_v14 }
 0x275   :  { %v612_v33 = vmax.f32 %v544_v15, 0.0 }
 0x278   :  { %970 = vmatmul.bf16.gmra.mxu3 %v10032_v12  ;;  %1273 = vmatmul.bf16.gmra.mxu2 %v10184_v25  ;;  %v10048_v12 = vor.u32 %v13254_v55, %v10047_v49  ;;  %v10200_v25 = vor.u32 %v13287_v22, %v10199_v56  ;;  %v532_v56 = vadd.f32 %v13936_v13, %v14337_v45 }
 0x279   :  { %v527_v45 = vadd.f32 %v13936_v13, %v14297_v10  ;;  %v10419_v10 = vld [vmem:[%s19705_s3 + $0x2e8] sm:$0xf] }
 0x27a   :  { %1944 = vmatmul.bf16.gmra.mxu0 %v10388_v31  ;;  %v546_v38 = vpop.f32.mrf.mxu0  ;;  %v542_v31 = vadd.f32 %v13936_v13, %v541_v53  ;;  %v537_v53 = vadd.f32 %v13936_v13, %v14373_v8  ;;  %v529_v8 = vadd.f32 %v13936_v13, %v14323_v34  ;;  %v607_v1 = vmax.f32 %v532_v56, 0.0  ;;  %v13258_v34 = vld [vmem:[%s19705_s3 + $0xf4] sm:$0xf0] }
 0x27b   :  { %v547_v54 = vadd.f32 %v13936_v13, %v546_v38 }
 0x27c   :  { %v611_v49 = vmax.f32 %v542_v31, 0.0  ;;  %v609_v22 = vmax.f32 %v537_v53, 0.0  ;;  %v605_v53 = vmax.f32 %v527_v45, 0.0 }
 0x27d   :  { %v613_v38 = vmax.f32 %v547_v54, 0.0  ;;  %v610_v54 = vmax.f32 %v539_v19, 0.0  ;;  %v10063_v19 = vld [vmem:[%s19705_s3 + $0xe8] sm:$0xf] }
 0x27e   :  { %v14479_v55 = vpack.c.bf16 %v612_v33, %v611_v49  ;;  %v14493_v33 = vadd.f32 %v14347_v51, %v853_v21  ;;  %v13326_v51 = vld [vmem:[%s19705_s3 + $0x2f4] sm:$0xf0]  ;;  %v10064_v31 = vor.u32 %v13258_v34, %v10063_v19 }
 0x27f   :  { %v14487_v63 = vpack.c.bf16 %v610_v54, %v609_v22  ;;  %v10420_v49 = vor.u32 %v13326_v51, %v10419_v10  ;;  %v13261_v10 = vld [vmem:[%s19705_s3 + $0x104] sm:$0xf]  ;;  %v10105_v51 = vld [vmem:[%s19705_s3 + $0x110] sm:$0xf0] }
 0x280   :  { %19809 = vst [vmem:[#allocation26_spill] sm:$0xff] %v14479_v55 }
 0x281   :  { %19810 = vst [vmem:[#allocation27_spill] sm:$0xff] %v14487_v63 }
 0x282   :  { %v548_v60 = vpop.f32.mrf.mxu0 }
 0x283   :  { %v549_v20 = vadd.f32 %v13936_v13, %v548_v60  ;;  %v14471_v60 = vpop.f32.mrf.mxu2 }
 0x285   :  { %v614_v40 = vmax.f32 %v549_v20, 0.0  ;;  %v524_v20 = vadd.f32 %v13936_v13, %v14285_v61  ;;  %v14528_v61 = vpop.f32.mrf.mxu1 }
 0x287   :  { %v14469_v14 = vpack.c.bf16 %v614_v40, %v613_v38  ;;  %v10216_v38 = vor.u32 %v13291_v3, %v10215_v57  ;;  %v522_v40 = vadd.f32 %v13936_v13, %v14261_v52  ;;  %v604_v54 = vmax.f32 %v524_v20, 0.0  ;;  %v13838_v52 = vld [vmem:[%s19703_s2] ss:$0 sm:$0xff]  ;;  %v10113_v20 = vld [vmem:[%s19705_s3 + $0x118] sm:$0xf0] }
 0x288   :  { %975 = vmatmul.bf16.gmra.mxu3 %v10048_v12  ;;  %1278 = vmatmul.bf16.gmra.mxu2 %v10200_v25  ;;  %v606_v12 = vmax.f32 %v529_v8, 0.0  ;;  %v517_v22 = vadd.f32 %v13838_v52, %v14225_v32 }
 0x289   :  { %19808 = vst [vmem:[#allocation25_spill] sm:$0xff] %v14469_v14  ;;  %986 = vmatpush.bf16.msrb.mxu1 %v14469_v14  ;;  %1387 = vmatpush.bf16.msra.mxu2 %v14469_v14  ;;  %v603_v8 = vmax.f32 %v522_v40, 0.0 }
 0x28a   :  { %1949 = vmatmul.bf16.gmra.mxu0 %v10404_v36  ;;  %v608_v36 = vmax.f32 %v534_v37, 0.0  ;;  %v519_v37 = vadd.f32 %v13936_v13, %v14249_v44  ;;  %v14526_v56 = vpack.c.bf16 %v606_v12, %v605_v53  ;;  %v514_v13 = vadd.f32 %v13838_v52, %v14217_v26  ;;  %v13228_v26 = vld [vmem:[%s19705_s3 + $0xc] sm:$0xf] }
 0x28b   :  { %v14507_v15 = vpop.f32.mrf.mxu2  ;;  %v601_v19 = vmax.f32 %v517_v22, 0.0  ;;  %v10108_v53 = vor.u32 %v13261_v10, %v10105_v51 }
 0x28c   :  { %v14518_v25 = vpack.c.bf16 %v608_v36, %v607_v1  ;;  %19812 = vst [vmem:[#allocation29_spill] sm:$0xff] %v14526_v56  ;;  %v602_v44 = vmax.f32 %v519_v37, 0.0  ;;  %v14537_v36 = vpack.c.bf16 %v604_v54, %v603_v8  ;;  %v512_v1 = vadd.f32 %v13838_v52, %v14193_v2  ;;  %v9953_v2 = vld [vmem:[%s19705_s3 + $0x18] sm:$0xf0] }
 0x28d   :  { %987 = vmatpush.bf16.msrb.mxu1 %v14479_v55  ;;  %1388 = vmatpush.bf16.msra.mxu2 %v14479_v55  ;;  %v600_v32 = vmax.f32 %v514_v13, 0.0  ;;  %v858_v34 = vpop.f32.mrf.mxu1  ;;  %v9956_v40 = vor.u32 %v13228_v26, %v9953_v2  ;;  %v13266_v26 = vld [vmem:[%s19705_s3 + $0x12c] sm:$0xf]  ;;  %v10129_v2 = vld [vmem:[%s19705_s3 + $0x138] sm:$0xf0] }
 0x28e   :  { %19811 = vst [vmem:[#allocation28_spill] sm:$0xff] %v14518_v25  ;;  %v14544_v45 = vpack.c.bf16 %v602_v44, %v601_v19  ;;  %v599_v57 = vmax.f32 %v512_v1, 0.0  ;;  %v14550_v3 = vadd.f32 %v14383_v24, %v858_v34  ;;  %v13262_v24 = vld [vmem:[%s19705_s3 + $0x10c] sm:$0xf]  ;;  %v13265_v19 = vld [vmem:[%s19705_s3 + $0x124] sm:$0xf] }
 0x28f   :  { %19813 = vst [vmem:[#allocation30_spill] sm:$0xff] %v14537_v36  ;;  %v13232_v44 = vld [vmem:[%s19705_s3 + $0x2c] sm:$0xf] }
 0x290   :  { %19814 = vst [vmem:[#allocation31_spill] sm:$0xff] %v14544_v45  ;;  %v14569_v12 = vpack.c.bf16 %v600_v32, %v599_v57  ;;  %v10121_v32 = vld [vmem:[%s19705_s3 + $0x130] sm:$0xf0]  ;;  %v900_v57 = vadd.f32 %v14335_v42, %v14463_v50 }
 0x291   :  { %988 = vmatpush.bf16.msrb.mxu1 %v14487_v63  ;;  %1389 = vmatpush.bf16.msra.mxu2 %v14487_v63  ;;  %v10497_v42 = vld [vmem:[%s19705_s3 + $0x330] sm:$0xf0] }
 0x292   :  { %19815 = vst [vmem:[#allocation32_spill] sm:$0xff] %v14569_v12 }
 0x293   :  { %v14539_v21 = vpop.f32.mrf.mxu2 }
 0x295   :  { %989 = vmatpush.bf16.msrb.mxu1 %v14518_v25  ;;  %1390 = vmatpush.bf16.msra.mxu2 %v14518_v25  ;;  %v14583_v52 = vpop.f32.mrf.mxu1 }
 0x298   :  { %980 = vmatmul.bf16.gmra.mxu3 %v10064_v31  ;;  %1283 = vmatmul.bf16.gmra.mxu2 %v10216_v38  ;;  %v13329_v31 = vld [vmem:[%s19705_s3 + $0x304] sm:$0xf]  ;;  %v10481_v38 = vld [vmem:[%s19705_s3 + $0x310] sm:$0xf0] }
 0x299   :  { %990 = vmatpush.bf16.msrb.mxu1 %v14526_v56  ;;  %1391 = vmatpush.bf16.msra.mxu2 %v14526_v56  ;;  %v10484_v54 = vor.u32 %v13329_v31, %v10481_v38 }
 0x29a   :  { %1954 = vmatmul.bf16.gmra.mxu0 %v10420_v49  ;;  %v10116_v49 = vor.u32 %v13262_v24, %v10113_v20  ;;  %v10124_v24 = vor.u32 %v13265_v19, %v10121_v32  ;;  %v10132_v20 = vor.u32 %v13266_v26, %v10129_v2  ;;  %v905_v19 = vadd.f32 %v14371_v4, %v14528_v61  ;;  %v19816_v32 = vld [vmem:[#allocation18_spill] sm:$0xff]  ;;  %v10145_v26 = vld [vmem:[%s19705_s3 + $0x158] sm:$0xf0]  ;;  %v10513_v4 = vld [vmem:[%s19705_s3 + $0x350] sm:$0xf0] }
 0x29b   :  { %v14578_v37 = vpop.f32.mrf.mxu2  ;;  %v19817_v2 = vld [vmem:[#allocation2_spill] sm:$0xff] }
 0x29d   :  { %991 = vmatpush.bf16.msrb.mxu1 %v14537_v36  ;;  %1392 = vmatpush.bf16.msra.mxu2 %v14537_v36  ;;  %v863_v1 = vpop.f32.mrf.mxu1 }
 0x29e   :  { %v14610_v34 = vadd.f32 %v14411_v58, %v863_v1  ;;  %v13333_v58 = vld [vmem:[%s19705_s3 + $0x324] sm:$0xf]  ;;  %v10137_v1 = vld [vmem:[%s19705_s3 + $0x150] sm:$0xf0] }
 0x29f   :  { %v10500_v31 = vor.u32 %v13333_v58, %v10497_v42 }
 0x2a1   :  { %992 = vmatpush.bf16.msrb.mxu1 %v14544_v45  ;;  %1393 = vmatpush.bf16.msra.mxu2 %v14544_v45 }
 0x2a3   :  { %v14594_v13 = vpop.f32.mrf.mxu2 }
 0x2a5   :  { %993 = vmatpush.bf16.msrb.mxu1 %v14569_v12  ;;  %1394 = vmatpush.bf16.msra.mxu2 %v14569_v12  ;;  %v14633_v38 = vpop.f32.mrf.mxu1 }
 0x2a8   :  { %994 = vmatmul.bf16.vlgmr.msrb.gmra.mxu1 %v9956_v40  ;;  %1297 = vmatmul.bf16.vlgmr.msrb.gmra.mxu3 %v10108_v53 }
 0x2a9   :  { %1338 = vmatpush.bf16.msra.mxu1 %v14188_v62  ;;  %1813 = vmatpush.bf16.msrb.mxu2 %v13988_v0 }
 0x2aa   :  { %1395 = vmatmul.bf16.vlgmr.msra.gmra.mxu2 %v10116_v49  ;;  %1862 = vmatpush.bf16.msrb.mxu3 %v14060_v6 }
 0x2ab   :  { %2373 = vmatmul.bf16.vlgmr.msra.gmra.mxu0 %v10484_v54  ;;  %v946_v22 = vpop.f32.mrf.mxu3  ;;  %v14636_v40 = vpop.f32.mrf.mxu2  ;;  %v13236_v54 = vld [vmem:[%s19705_s3 + $0x4c] sm:$0xf] }
 0x2ac   :  { %v14589_v8 = vadd.f32 %v946_v22, %v14434_v41  ;;  %v9969_v41 = vld [vmem:[%s19705_s3 + $0x38] sm:$0xf0] }
 0x2ad   :  { %1339 = vmatpush.bf16.msra.mxu1 %v14196_v5  ;;  %1814 = vmatpush.bf16.msrb.mxu2 %v13996_v7  ;;  %v9972_v51 = vor.u32 %v13232_v44, %v9969_v41  ;;  %v868_v22 = vpop.f32.mrf.mxu1  ;;  %v9985_v44 = vld [vmem:[%s19705_s3 + $0x58] sm:$0xf0] }
 0x2ae   :  { %1863 = vmatpush.bf16.msrb.mxu3 %v14068_v17  ;;  %v14660_v41 = vadd.f32 %v14436_v46, %v868_v22  ;;  %v13337_v46 = vld [vmem:[%s19705_s3 + $0x344] sm:$0xf]  ;;  %v9988_v42 = vor.u32 %v13236_v54, %v9985_v44  ;;  %v13240_v54 = vld [vmem:[%s19705_s3 + $0x6c] sm:$0xf] }
 0x2b1   :  { %1340 = vmatpush.bf16.msra.mxu1 %v14207_v18  ;;  %1815 = vmatpush.bf16.msrb.mxu2 %v14001_v11 }
 0x2b2   :  { %1864 = vmatpush.bf16.msrb.mxu3 %v14073_v23 }
 0x2b3   :  { %v948_v10 = vpop.f32.mrf.mxu3  ;;  %v14678_v61 = vpop.f32.mrf.mxu2 }
 0x2b4   :  { %v14628_v50 = vadd.f32 %v948_v10, %v900_v57  ;;  %v13270_v57 = vld [vmem:[%s19705_s3 + $0x14c] sm:$0xf] }
 0x2b5   :  { %1341 = vmatpush.bf16.msra.mxu1 %v14219_v29  ;;  %1816 = vmatpush.bf16.msrb.mxu2 %v14005_v16 }
 0x2b6   :  { %1865 = vmatpush.bf16.msrb.mxu3 %v14077_v28 }
 0x2b8   :  { %999 = vmatmul.bf16.gmra.mxu1 %v9972_v51  ;;  %1302 = vmatmul.bf16.gmra.mxu3 %v10124_v24  ;;  %v19818_v24 = vld [vmem:[#allocation10_spill] sm:$0xff] }
 0x2b9   :  { %1342 = vmatpush.bf16.msra.mxu1 %v14135_v9  ;;  %1817 = vmatpush.bf16.msrb.mxu2 %v13965_v43 }
 0x2ba   :  { %1400 = vmatmul.bf16.gmra.mxu2 %v10132_v20  ;;  %1866 = vmatpush.bf16.msrb.mxu3 %v14037_v48  ;;  %v10148_v20 = vor.u32 %v13270_v57, %v10145_v26  ;;  %v19820_v26 = vld [vmem:[#allocation23_spill] sm:$0xff] }
 0x2bb   :  { %2378 = vmatmul.bf16.gmra.mxu0 %v10500_v31  ;;  %v951_v53 = vpop.f32.mrf.mxu3  ;;  %v10516_v31 = vor.u32 %v13337_v46, %v10513_v4  ;;  %v13274_v46 = vld [vmem:[%s19705_s3 + $0x16c] sm:$0xf]  ;;  %v10161_v4 = vld [vmem:[%s19705_s3 + $0x178] sm:$0xf0] }
 0x2bc   :  { %v14641_v49 = vadd.f32 %v951_v53, %v14493_v33  ;;  %v13269_v33 = vld [vmem:[%s19705_s3 + $0x144] sm:$0xf]  ;;  %v14683_v53 = vpop.f32.mrf.mxu1 }
 0x2bd   :  { %1343 = vmatpush.bf16.msra.mxu1 %v14118_v59  ;;  %1818 = vmatpush.bf16.msrb.mxu2 %v13957_v35  ;;  %v10140_v51 = vor.u32 %v13269_v33, %v10137_v1  ;;  %v10001_v33 = vld [vmem:[%s19705_s3 + $0x78] sm:$0xf0]  ;;  %v13273_v1 = vld [vmem:[%s19705_s3 + $0x164] sm:$0xf] }
 0x2be   :  { %1867 = vmatpush.bf16.msrb.mxu3 %v14029_v39  ;;  %v14688_v39 = vpop.f32.mrf.mxu2  ;;  %v13395_v35 = vld [vmem:[%s19706_s4 + $0x40] sm:$0xff] }
 0x2c1   :  { %1344 = vmatpush.bf16.msra.mxu1 %v14100_v47  ;;  %1819 = vmatpush.bf16.msrb.mxu2 %v13949_v27 }
 0x2c2   :  { %1868 = vmatpush.bf16.msrb.mxu3 %v14021_v30 }
 0x2c3   :  { %v953_v10 = vpop.f32.mrf.mxu3 }
 0x2c4   :  { %v14680_v58 = vadd.f32 %v953_v10, %v905_v19  ;;  %v14690_v19 = vpop.f32.mrf.mxu0  ;;  %v873_v44 = vpop.f32.mrf.mxu1  ;;  %v910_v10 = vadd.f32 %v19820_v26, %v14583_v52  ;;  %v10004_v52 = vor.u32 %v13240_v54, %v10001_v33  ;;  %v13244_v54 = vld [vmem:[%s19705_s3 + $0x8c] sm:$0xf] }
 0x2c5   :  { %1345 = vmatpush.bf16.msra.mxu1 %v19816_v32  ;;  %1820 = vmatpush.bf16.msrb.mxu2 %v19817_v2  ;;  %19819 = vst [vmem:[#allocation33_spill] sm:$0xff] %v14690_v19  ;;  %v14705_v57 = vadd.f32 %v14507_v15, %v873_v44  ;;  %v10529_v15 = vld [vmem:[%s19705_s3 + $0x370] sm:$0xf0] }
 0x2c6   :  { %1869 = vmatpush.bf16.msrb.mxu3 %v19818_v24  ;;  %v14723_v26 = vpop.f32.mrf.mxu2 }
 0x2c8   :  { %1004 = vmatmul.bf16.gmra.mxu1 %v9988_v42  ;;  %1307 = vmatmul.bf16.gmra.mxu3 %v10140_v51  ;;  %v13341_v51 = vld [vmem:[%s19705_s3 + $0x364] sm:$0xf] }
 0x2c9   :  { %v10532_v44 = vor.u32 %v13341_v51, %v10529_v15  ;;  %v10177_v51 = vld [vmem:[%s19705_s3 + $0x198] sm:$0xf0] }
 0x2ca   :  { %1405 = vmatmul.bf16.gmra.mxu2 %v10148_v20 }
 0x2cb   :  { %2383 = vmatmul.bf16.gmra.mxu0 %v10516_v31  ;;  %v956_v22 = vpop.f32.mrf.mxu3 }
 0x2cc   :  { %v14686_v30 = vadd.f32 %v956_v22, %v14550_v3  ;;  %v10153_v3 = vld [vmem:[%s19705_s3 + $0x170] sm:$0xf0]  ;;  %v10164_v22 = vor.u32 %v13274_v46, %v10161_v4  ;;  %v14725_v19 = vpop.f32.mrf.mxu0  ;;  %v14727_v24 = vpop.f32.mrf.mxu1 }
 0x2cd   :  { %v10156_v31 = vor.u32 %v13273_v1, %v10153_v3  ;;  %19821 = vst [vmem:[#allocation23_spill] sm:$0xff] %v14725_v19  ;;  %v10017_v1 = vld [vmem:[%s19705_s3 + $0x98] sm:$0xf0]  ;;  %v13277_v3 = vld [vmem:[%s19705_s3 + $0x184] sm:$0xf] }
 0x2ce   :  { %v14744_v46 = vpop.f32.mrf.mxu2 }
 0x2d3   :  { %v958_v42 = vpop.f32.mrf.mxu3 }
 0x2d4   :  { %v14721_v20 = vadd.f32 %v958_v42, %v910_v10  ;;  %v878_v33 = vpop.f32.mrf.mxu1  ;;  %v10169_v10 = vld [vmem:[%s19705_s3 + $0x190] sm:$0xf0]  ;;  %v13278_v42 = vld [vmem:[%s19705_s3 + $0x18c] sm:$0xf]  ;;  %v14757_v15 = vpop.f32.mrf.mxu0 }
 0x2d6   :  { %v14769_v23 = vpop.f32.mrf.mxu2 }
 0x2d8   :  { %1009 = vmatmul.bf16.gmra.mxu1 %v10004_v52  ;;  %1312 = vmatmul.bf16.gmra.mxu3 %v10156_v31  ;;  %v13345_v31 = vld [vmem:[%s19705_s3 + $0x384] sm:$0xf] }
 0x2da   :  { %1410 = vmatmul.bf16.gmra.mxu2 %v10164_v22  ;;  %v10020_v22 = vor.u32 %v13244_v54, %v10017_v1  ;;  %v13248_v54 = vld [vmem:[%s19705_s3 + $0xac] sm:$0xf] }
 0x2db   :  { %2388 = vmatmul.bf16.gmra.mxu0 %v10532_v44  ;;  %v961_v48 = vpop.f32.mrf.mxu3  ;;  %v10172_v44 = vor.u32 %v13277_v3, %v10169_v10  ;;  %v10033_v3 = vld [vmem:[%s19705_s3 + $0xb8] sm:$0xf0]  ;;  %v13281_v10 = vld [vmem:[%s19705_s3 + $0x1a4] sm:$0xf] }
 0x2dc   :  { %v14730_v28 = vadd.f32 %v961_v48, %v14610_v34  ;;  %v14747_v48 = vadd.f32 %v14578_v37, %v878_v33  ;;  %v19822_v34 = vld [vmem:[#allocation24_spill] sm:$0xff]  ;;  %v10180_v33 = vor.u32 %v13278_v42, %v10177_v51  ;;  %v14767_v19 = vpop.f32.mrf.mxu1  ;;  %v14774_v6 = vpop.f32.mrf.mxu0  ;;  %v13282_v42 = vld [vmem:[%s19705_s3 + $0x1ac] sm:$0xf]  ;;  %v10193_v51 = vld [vmem:[%s19705_s3 + $0x1b8] sm:$0xf0] }
 0x2dd   :  { %v915_v4 = vadd.f32 %v19822_v34, %v14633_v38  ;;  %19823 = vst [vmem:[#allocation24_spill] sm:$0xff] %v14757_v15  ;;  %v10545_v37 = vld [vmem:[%s19705_s3 + $0x390] sm:$0xf0] }
 0x2de   :  { %v10548_v34 = vor.u32 %v13345_v31, %v10545_v37  ;;  %19824 = vst [vmem:[#allocation34_spill] sm:$0xff] %v14774_v6  ;;  %v10561_v31 = vld [vmem:[%s19705_s3 + $0x3b0] sm:$0xf0] }
 0x2e3   :  { %v963_v52 = vpop.f32.mrf.mxu3 }
 0x2e4   :  { %v14765_v38 = vadd.f32 %v963_v52, %v915_v4  ;;  %v883_v1 = vpop.f32.mrf.mxu1  ;;  %v13349_v52 = vld [vmem:[%s19705_s3 + $0x3a4] sm:$0xf] }
 0x2e5   :  { %v14789_v4 = vadd.f32 %v14636_v40, %v883_v1  ;;  %v10036_v40 = vor.u32 %v13248_v54, %v10033_v3  ;;  %v13252_v54 = vld [vmem:[%s19705_s3 + $0xcc] sm:$0xf]  ;;  %v10049_v3 = vld [vmem:[%s19705_s3 + $0xd8] sm:$0xf0] }
 0x2e8   :  { %1014 = vmatmul.bf16.gmra.mxu1 %v10020_v22  ;;  %1317 = vmatmul.bf16.gmra.mxu3 %v10172_v44  ;;  %v10196_v22 = vor.u32 %v13282_v42, %v10193_v51  ;;  %v14805_v44 = vpop.f32.mrf.mxu2  ;;  %v13286_v42 = vld [vmem:[%s19705_s3 + $0x1cc] sm:$0xf]  ;;  %v10209_v51 = vld [vmem:[%s19705_s3 + $0x1d8] sm:$0xf0] }
 0x2e9   :  { %19825 = vst [vmem:[#allocation35_spill] sm:$0xff] %v14805_v44  ;;  %v13327_v44 = vld [vmem:[%s19706_s4 + $0x20] sm:$0xff] }
 0x2ea   :  { %1415 = vmatmul.bf16.gmra.mxu2 %v10180_v33  ;;  %v10564_v33 = vor.u32 %v13349_v52, %v10561_v31  ;;  %v13353_v52 = vld [vmem:[%s19705_s3 + $0x3c4] sm:$0xf]  ;;  %v10577_v31 = vld [vmem:[%s19705_s3 + $0x3d0] sm:$0xf0] }
 0x2eb   :  { %2393 = vmatmul.bf16.gmra.mxu0 %v10548_v34  ;;  %v966_v15 = vpop.f32.mrf.mxu3  ;;  %v14807_v34 = vpop.f32.mrf.mxu0  ;;  %v10580_v27 = vor.u32 %v13353_v52, %v10577_v31  ;;  %v10593_v52 = vld [vmem:[%s19705_s3 + $0x3f0] sm:$0xf0] }
 0x2ec   :  { %v14772_v17 = vadd.f32 %v966_v15, %v14660_v41  ;;  %v10185_v41 = vld [vmem:[%s19705_s3 + $0x1b0] sm:$0xf0]  ;;  %19826 = vst [vmem:[#allocation36_spill] sm:$0xff] %v14807_v34  ;;  %v10212_v34 = vor.u32 %v13286_v42, %v10209_v51  ;;  %v13256_v42 = vld [vmem:[%s19705_s3 + $0xec] sm:$0xf] }
 0x2ed   :  { %v10188_v37 = vor.u32 %v13281_v10, %v10185_v41  ;;  %v13285_v41 = vld [vmem:[%s19705_s3 + $0x1c4] sm:$0xf] }
 0x2ee   :  { %v13357_v51 = vld [vmem:[%s19705_s3 + $0x3e4] sm:$0xf] }
 0x2f0   :  { %v14812_v2 = vpop.f32.mrf.mxu2 }
 0x2f1   :  { %19827 = vst [vmem:[#allocation37_spill] sm:$0xff] %v14812_v2  ;;  %v13259_v2 = vld [vmem:[%s19706_s4] sm:$0xff] }
 0x2f3   :  { %v14797_v15 = vpop.f32.mrf.mxu3  ;;  %v14820_v10 = vpop.f32.mrf.mxu0 }
 0x2f4   :  { %19828 = vst [vmem:[#allocation38_spill] sm:$0xff] %v14820_v10 }
 0x2f8   :  { %1019 = vmatmul.bf16.gmra.mxu1 %v10036_v40  ;;  %1322 = vmatmul.bf16.gmra.mxu3 %v10188_v37  ;;  %v13260_v37 = vld [vmem:[%s19706_s4 + $0x8] sm:$0xff] }
 0x2f9   :  { %1577 = vmatpush.bf16.msrb.mxu1 %v13260_v37 }
 0x2fa   :  { %1420 = vmatmul.bf16.gmra.mxu2 %v10196_v22  ;;  %v13328_v22 = vld [vmem:[%s19706_s4 + $0x28] sm:$0xff] }
 0x2fb   :  { %2398 = vmatmul.bf16.gmra.mxu0 %v10564_v33  ;;  %v971_v1 = vpop.f32.mrf.mxu3  ;;  %v13396_v33 = vld [vmem:[%s19706_s4 + $0x48] sm:$0xff]  ;;  %2064 = vmatpush.bf16.msra.mxu2 %v13328_v22 }
 0x2fc   :  { %v14810_v6 = vadd.f32 %v971_v1, %v14705_v57  ;;  %v10201_v57 = vld [vmem:[%s19705_s3 + $0x1d0] sm:$0xf0]  ;;  %v10052_v1 = vor.u32 %v13252_v54, %v10049_v3  ;;  %3070 = vmatpush.bf16.msra.mxu0 %v13396_v33  ;;  %v14860_v54 = vpop.f32.mrf.mxu2  ;;  %v14862_v3 = vpop.f32.mrf.mxu0 }
 0x2fd   :  { %v10204_v10 = vor.u32 %v13285_v41, %v10201_v57  ;;  %19829 = vst [vmem:[#allocation39_spill] sm:$0xff] %v14860_v54  ;;  %1578 = vmatpush.bf16.msrb.mxu1 %v13259_v2  ;;  %v10217_v2 = vld [vmem:[%s19705_s3 + $0x1f0] sm:$0xf0] }
 0x2fe   :  { %19830 = vst [vmem:[#allocation40_spill] sm:$0xff] %v14862_v3 }
 0x2ff   :  { %2065 = vmatpush.bf16.msra.mxu2 %v13327_v44 }
 0x300   :  { %3071 = vmatpush.bf16.msra.mxu0 %v13395_v35  ;;  %v13290_v35 = vld [vmem:[%s19705_s3 + $0x1ec] sm:$0xf] }
 0x303   :  { %v14840_v40 = vpop.f32.mrf.mxu3 }
 0x304   :  { %v14895_v22 = vpop.f32.mrf.mxu0 }
 0x305   :  { %19832 = vst [vmem:[#allocation42_spill] sm:$0xff] %v14895_v22 }
 0x308   :  { %1024 = vmatmul.bf16.gmra.mxu1 %v10052_v1  ;;  %1327 = vmatmul.bf16.gmra.mxu3 %v10204_v10  ;;  %v14887_v10 = vpop.f32.mrf.mxu2  ;;  %v10596_v1 = vor.u32 %v13357_v51, %v10593_v52 }
 0x309   :  { %19831 = vst [vmem:[#allocation41_spill] sm:$0xff] %v14887_v10  ;;  %v14900_v10 = vpop.f32.mrf.mxu1 }
 0x30a   :  { %1425 = vmatmul.bf16.gmra.mxu2 %v10212_v34  ;;  %v10065_v34 = vld [vmem:[%s19705_s3 + $0xf8] sm:$0xf0] }
 0x30b   :  { %2403 = vmatmul.bf16.gmra.mxu0 %v10580_v27  ;;  %v976_v41 = vpop.f32.mrf.mxu3  ;;  %v13289_v27 = vld [vmem:[%s19705_s3 + $0x1e4] sm:$0xf]  ;;  %v10068_v31 = vor.u32 %v13256_v42, %v10065_v34  ;;  %v10111_v42 = vld [vmem:[%s19705_s3 + $0x108] sm:$0xf]  ;;  %v13264_v34 = vld [vmem:[%s19705_s3 + $0x114] sm:$0xf0] }
 0x30c   :  { %v14865_v57 = vadd.f32 %v976_v41, %v14747_v48  ;;  %v10225_v48 = vld [vmem:[%s19705_s3 + $0x1f8] sm:$0xf0]  ;;  %v10220_v37 = vor.u32 %v13289_v27, %v10217_v2  ;;  %v14904_v32 = vpop.f32.mrf.mxu0  ;;  %v10299_v27 = vld [vmem:[%s19705_s3 + $0x200] sm:$0xf] }
 0x30d   :  { %v10228_v33 = vor.u32 %v13290_v35, %v10225_v48  ;;  %19833 = vst [vmem:[#allocation43_spill] sm:$0xff] %v14904_v32  ;;  %v10659_v2 = vld [vmem:[%s19705_s3 + $0x400] sm:$0xf]  ;;  %v13365_v35 = vld [vmem:[%s19705_s3 + $0x40c] sm:$0xf0]  ;;  %v10112_v48 = vor.u32 %v13264_v34, %v10111_v42 }
 0x30e   :  { %v10127_v34 = vld [vmem:[%s19705_s3 + $0x128] sm:$0xf] }
 0x310   :  { %v14902_v54 = vpop.f32.mrf.mxu2 }
 0x313   :  { %v14885_v44 = vpop.f32.mrf.mxu3 }
 0x318   :  { %1029 = vmatmul.bf16.gmra.mxu1 %v10068_v31  ;;  %1332 = vmatmul.bf16.gmra.mxu3 %v10220_v37  ;;  %v10660_v37 = vor.u32 %v13365_v35, %v10659_v2 }
 0x31a   :  { %1430 = vmatmul.bf16.gmra.mxu2 %v10228_v33  ;;  %v14927_v33 = vpop.f32.mrf.mxu2 }
 0x31b   :  { %2408 = vmatmul.bf16.gmra.mxu0 %v10596_v1  ;;  %v981_v41 = vpop.f32.mrf.mxu3  ;;  %v14929_v1 = vpop.f32.mrf.mxu0 }
 0x31c   :  { %v14898_v3 = vadd.f32 %v981_v41, %v14789_v4  ;;  %v13297_v4 = vld [vmem:[%s19705_s3 + $0x20c] sm:$0xf0]  ;;  %19834 = vst [vmem:[#allocation44_spill] sm:$0xff] %v14929_v1 }
 0x31d   :  { %v10300_v52 = vor.u32 %v13297_v4, %v10299_v27  ;;  %v13268_v27 = vld [vmem:[%s19705_s3 + $0x134] sm:$0xf0] }
 0x325   :  { %v995_v51 = vpop.f32.mrf.mxu1 }
 0x326   :  { %v14925_v31 = vadd.f32 %v995_v51, %v14589_v8  ;;  %v10143_v51 = vld [vmem:[%s19705_s3 + $0x148] sm:$0xf] }
 0x328   :  { %1346 = vmatmul.bf16.vlgmr.msra.gmra.mxu1 %v10112_v48 }
 0x329   :  { %1960 = vmatpush.bf16.msra.mxu1 %v14469_v14 }
 0x32a   :  { %1821 = vmatmul.bf16.vlgmr.msrb.gmra.mxu2 %v10300_v52  ;;  %v13272_v52 = vld [vmem:[%s19705_s3 + $0x154] sm:$0xf0] }
 0x32b   :  { %2463 = vmatpush.bf16.msrb.mxu2 %v14469_v14  ;;  %2827 = vmatmul.bf16.vlgmr.msrb.gmra.mxu0 %v10660_v37 }
 0x32c   :  { %3469 = vmatpush.bf16.msrb.mxu0 %v14469_v14 }
 0x32d   :  { %1961 = vmatpush.bf16.msra.mxu1 %v14479_v55  ;;  %v997_v41 = vpop.f32.mrf.mxu1 }
 0x32e   :  { %v14937_v8 = vadd.f32 %v997_v41, %v14628_v50  ;;  %v10128_v50 = vor.u32 %v13268_v27, %v10127_v34 }
 0x32f   :  { %2464 = vmatpush.bf16.msrb.mxu2 %v14479_v55 }
 0x330   :  { %3470 = vmatpush.bf16.msrb.mxu0 %v14479_v55 }
 0x331   :  { %1962 = vmatpush.bf16.msra.mxu1 %v14487_v63 }
 0x333   :  { %2465 = vmatpush.bf16.msrb.mxu2 %v14487_v63 }
 0x334   :  { %3471 = vmatpush.bf16.msrb.mxu0 %v14487_v63 }
 0x335   :  { %1963 = vmatpush.bf16.msra.mxu1 %v14518_v25  ;;  %v1000_v4 = vpop.f32.mrf.mxu1 }
 0x336   :  { %v14954_v2 = vadd.f32 %v1000_v4, %v14641_v49  ;;  %v14988_v4 = vpop.f32.mrf.mxu2  ;;  %v10175_v49 = vld [vmem:[%s19705_s3 + $0x188] sm:$0xf] }
 0x337   :  { %2466 = vmatpush.bf16.msrb.mxu2 %v14518_v25 }
 0x338   :  { %3472 = vmatpush.bf16.msrb.mxu0 %v14518_v25  ;;  %1351 = vmatmul.bf16.gmra.mxu1 %v10128_v50 }
 0x339   :  { %1964 = vmatpush.bf16.msra.mxu1 %v14526_v56 }
 0x33b   :  { %2467 = vmatpush.bf16.msrb.mxu2 %v14526_v56 }
 0x33c   :  { %3473 = vmatpush.bf16.msrb.mxu0 %v14526_v56 }
 0x33d   :  { %1965 = vmatpush.bf16.msra.mxu1 %v14537_v36  ;;  %v1002_v35 = vpop.f32.mrf.mxu1 }
 0x33e   :  { %v14963_v48 = vadd.f32 %v1002_v35, %v14680_v58  ;;  %v10144_v58 = vor.u32 %v13272_v52, %v10143_v51  ;;  %v10159_v35 = vld [vmem:[%s19705_s3 + $0x168] sm:$0xf] }
 0x33f   :  { %2468 = vmatpush.bf16.msrb.mxu2 %v14537_v36 }
 0x340   :  { %3474 = vmatpush.bf16.msrb.mxu0 %v14537_v36 }
 0x341   :  { %1966 = vmatpush.bf16.msra.mxu1 %v14544_v45 }
 0x343   :  { %2469 = vmatpush.bf16.msrb.mxu2 %v14544_v45 }
 0x344   :  { %3475 = vmatpush.bf16.msrb.mxu0 %v14544_v45 }
 0x345   :  { %1967 = vmatpush.bf16.msra.mxu1 %v14569_v12  ;;  %v1005_v37 = vpop.f32.mrf.mxu1 }
 0x346   :  { %v14980_v41 = vadd.f32 %v1005_v37, %v14686_v30  ;;  %v13276_v30 = vld [vmem:[%s19705_s3 + $0x174] sm:$0xf0] }
 0x347   :  { %2470 = vmatpush.bf16.msrb.mxu2 %v14569_v12  ;;  %v10160_v51 = vor.u32 %v13276_v30, %v10159_v35  ;;  %v13280_v35 = vld [vmem:[%s19705_s3 + $0x194] sm:$0xf0] }
 0x348   :  { %3476 = vmatpush.bf16.msrb.mxu0 %v14569_v12  ;;  %1356 = vmatmul.bf16.gmra.mxu1 %v10144_v58  ;;  %v10176_v30 = vor.u32 %v13280_v35, %v10175_v49  ;;  %v10191_v49 = vld [vmem:[%s19705_s3 + $0x1a8] sm:$0xf] }
 0x34d   :  { %v1007_v34 = vpop.f32.mrf.mxu1 }
 0x34e   :  { %v14984_v27 = vadd.f32 %v1007_v34, %v14721_v20  ;;  %v14999_v20 = vpop.f32.mrf.mxu2 }
 0x355   :  { %v1010_v52 = vpop.f32.mrf.mxu1 }
 0x356   :  { %v14997_v58 = vadd.f32 %v1010_v52, %v14730_v28  ;;  %v15012_v28 = vpop.f32.mrf.mxu2 }
 0x358   :  { %1361 = vmatmul.bf16.gmra.mxu1 %v10160_v51 }
 0x35d   :  { %v1012_v37 = vpop.f32.mrf.mxu1 }
 0x35e   :  { %v15002_v34 = vadd.f32 %v1012_v37, %v14765_v38  ;;  %v920_v38 = vadd.f32 %v14471_v60, %v14683_v53  ;;  %v15019_v37 = vpop.f32.mrf.mxu2 }
 0x360   :  { %v969_v50 = vadd.f32 %v14797_v15, %v920_v38 }
 0x365   :  { %v1015_v51 = vpop.f32.mrf.mxu1 }
 0x366   :  { %v15015_v52 = vadd.f32 %v1015_v51, %v14772_v17  ;;  %v13284_v17 = vld [vmem:[%s19705_s3 + $0x1b4] sm:$0xf0]  ;;  %v15032_v53 = vpop.f32.mrf.mxu2 }
 0x367   :  { %v10192_v35 = vor.u32 %v13284_v17, %v10191_v49  ;;  %v13288_v17 = vld [vmem:[%s19705_s3 + $0x1d4] sm:$0xf0] }
 0x368   :  { %1366 = vmatmul.bf16.gmra.mxu1 %v10176_v30 }
 0x36d   :  { %v1017_v42 = vpop.f32.mrf.mxu1 }
 0x36e   :  { %v15022_v1 = vadd.f32 %v1017_v42, %v969_v50  ;;  %v983_v42 = vpop.f32.mrf.mxu3  ;;  %v925_v50 = vadd.f32 %v14539_v21, %v14727_v24  ;;  %v15042_v32 = vpop.f32.mrf.mxu2 }
 0x370   :  { %v974_v30 = vadd.f32 %v14840_v40, %v925_v50  ;;  %v930_v50 = vadd.f32 %v14594_v13, %v14767_v19 }
 0x375   :  { %v1020_v60 = vpop.f32.mrf.mxu1 }
 0x376   :  { %v15035_v15 = vadd.f32 %v1020_v60, %v14810_v6  ;;  %v10207_v6 = vld [vmem:[%s19705_s3 + $0x1c8] sm:$0xf]  ;;  %v1396_v60 = vpop.f32.mrf.mxu2 }
 0x377   :  { %v10208_v21 = vor.u32 %v13288_v17, %v10207_v6  ;;  %v10223_v6 = vld [vmem:[%s19705_s3 + $0x1e8] sm:$0xf] }
 0x378   :  { %1371 = vmatmul.bf16.gmra.mxu1 %v10192_v35  ;;  %v1298_v35 = vpop.f32.mrf.mxu3 }
 0x37d   :  { %v1022_v51 = vpop.f32.mrf.mxu1 }
 0x37e   :  { %v15040_v38 = vadd.f32 %v1022_v51, %v974_v30  ;;  %v979_v30 = vadd.f32 %v14885_v44, %v930_v50  ;;  %v1398_v17 = vpop.f32.mrf.mxu2 }
 0x380   :  { %v1300_v51 = vpop.f32.mrf.mxu3 }
 0x385   :  { %v1025_v24 = vpop.f32.mrf.mxu1 }
 0x386   :  { %v15053_v40 = vadd.f32 %v1025_v24, %v14865_v57  ;;  %v13292_v57 = vld [vmem:[%s19705_s3 + $0x1f4] sm:$0xf0] }
 0x388   :  { %1376 = vmatmul.bf16.gmra.mxu1 %v10208_v21  ;;  %v10224_v21 = vor.u32 %v13292_v57, %v10223_v6  ;;  %v1303_v44 = vpop.f32.mrf.mxu3 }
 0x38d   :  { %v1027_v49 = vpop.f32.mrf.mxu1 }
 0x38e   :  { %v15058_v22 = vadd.f32 %v1027_v49, %v979_v30  ;;  %v935_v49 = vadd.f32 %v14678_v61, %v14900_v10  ;;  %v1401_v30 = vpop.f32.mrf.mxu2  ;;  %v1299_v61 = vadd.f32 %v1298_v35, %v14688_v39 }
 0x390   :  { %v984_v24 = vadd.f32 %v983_v42, %v935_v49  ;;  %v1305_v36 = vpop.f32.mrf.mxu3  ;;  %v1301_v42 = vadd.f32 %v1300_v51, %v14723_v26  ;;  %v1304_v26 = vadd.f32 %v1303_v44, %v14744_v46  ;;  %v19838_v44 = vpack.c.bf16 %v14984_v27, %v14980_v41 }
 0x395   :  { %v1030_v13 = vpop.f32.mrf.mxu1 }
 0x396   :  { %v15069_v19 = vadd.f32 %v1030_v13, %v14898_v3  ;;  %v1403_v6 = vpop.f32.mrf.mxu2  ;;  %v19835_v3 = vpack.c.bf16 %v14937_v8, %v14925_v31 }
 0x398   :  { %1381 = vmatmul.bf16.gmra.mxu1 %v10224_v21  ;;  %v1308_v10 = vpop.f32.mrf.mxu3 }
 0x39d   :  { %v1032_v50 = vpop.f32.mrf.mxu1 }
 0x39e   :  { %v15073_v12 = vadd.f32 %v1032_v50, %v984_v24  ;;  %v1406_v50 = vpop.f32.mrf.mxu2 }
 0x3a0   :  { %v1042_v45 = vpack.c.bf16 %v15073_v12, %v15069_v19  ;;  %v1310_v8 = vpop.f32.mrf.mxu3 }
 0x3a5   :  { %v1347_v56 = vpop.f32.mrf.mxu1 }
 0x3a6   :  { %v1348_v57 = vadd.f32 %v1347_v56, %v1299_v61  ;;  %v19836_v56 = vpack.c.bf16 %v14963_v48, %v14954_v2  ;;  %v1408_v35 = vpop.f32.mrf.mxu2 }
 0x3a8   :  { %10257 = vmatmul.msk.bf16.vlgmr.msrb.gmra.mxu1 %vm1461_vm1, %v19835_v3  ;;  %v1397_v49 = vadd.f32 %v1396_v60, %v1348_v57  ;;  %v1306_v60 = vadd.f32 %v1305_v36, %v14769_v23  ;;  %v1313_v61 = vpop.f32.mrf.mxu3  ;;  %v19837_v23 = vld [vmem:[#allocation18_spill] sm:$0xff]  ;;  %v19840_v57 = vld [vmem:[#allocation35_spill] sm:$0xff] }
 0x3a9   :  { %2414 = vmatpush.bf16.msrb.mxu1 %v14188_v62 }
 0x3ad   :  { %2415 = vmatpush.bf16.msrb.mxu1 %v14196_v5  ;;  %v1349_v21 = vpop.f32.mrf.mxu1 }
 0x3ae   :  { %v1350_v13 = vadd.f32 %v1349_v21, %v1301_v42  ;;  %v1411_v46 = vpop.f32.mrf.mxu2  ;;  %v1309_v21 = vadd.f32 %v1308_v10, %v19840_v57  ;;  %v19844_v10 = vpack.c.bf16 %v15002_v34, %v14997_v58  ;;  %v19847_v58 = vpack.c.bf16 %v15022_v1, %v15015_v52 }
 0x3af   :  { %v19848_v1 = vpack.c.bf16 %v15040_v38, %v15035_v15  ;;  %v19849_v15 = vpack.c.bf16 %v15058_v22, %v15053_v40 }
 0x3b0   :  { %v1399_v24 = vadd.f32 %v1398_v17, %v1350_v13  ;;  %v19841_v13 = vld [vmem:[#allocation37_spill] sm:$0xff] }
 0x3b1   :  { %2416 = vmatpush.bf16.msrb.mxu1 %v14207_v18 }
 0x3b2   :  { %v1436_v31 = vpack.c.bf16 %v1399_v24, %v1397_v49  ;;  %v1311_v49 = vadd.f32 %v1310_v8, %v19841_v13 }
 0x3b4   :  { %10241 = vmatmul.msk.bf16.vlgmr.msra.gmra.mxu3 %vm1461_vm1, %v1436_v31  ;;  %v19842_v31 = vld [vmem:[#allocation3_spill] sm:$0xff] }
 0x3b5   :  { %2316 = vmatpush.bf16.msra.mxu3 %v13988_v0  ;;  %2417 = vmatpush.bf16.msrb.mxu1 %v14219_v29  ;;  %v1352_v39 = vpop.f32.mrf.mxu1 }
 0x3b6   :  { %v1353_v51 = vadd.f32 %v1352_v39, %v1304_v26  ;;  %v1413_v26 = vpop.f32.mrf.mxu2 }
 0x3b8   :  { %10258 = vmatmul.msk.bf16.gmra.mxu1 %vm1461_vm1, %v19836_v56  ;;  %v1402_v2 = vadd.f32 %v1401_v30, %v1353_v51  ;;  %v1315_v30 = vpop.f32.mrf.mxu3 }
 0x3b9   :  { %2317 = vmatpush.bf16.msra.mxu3 %v13996_v7  ;;  %2418 = vmatpush.bf16.msrb.mxu1 %v14135_v9 }
 0x3bd   :  { %2318 = vmatpush.bf16.msra.mxu3 %v14001_v11  ;;  %2419 = vmatpush.bf16.msrb.mxu1 %v14118_v59  ;;  %v1354_v17 = vpop.f32.mrf.mxu1 }
 0x3be   :  { %v1355_v3 = vadd.f32 %v1354_v17, %v1306_v60  ;;  %v19843_v17 = vld [vmem:[#allocation2_spill] sm:$0xff]  ;;  %v1416_v8 = vpop.f32.mrf.mxu2 }
 0x3c0   :  { %v1404_v48 = vadd.f32 %v1403_v6, %v1355_v3  ;;  %v19839_v6 = vld [vmem:[#allocation4_spill] sm:$0xff]  ;;  %v1318_v27 = vpop.f32.mrf.mxu3 }
 0x3c1   :  { %2319 = vmatpush.bf16.msra.mxu3 %v14005_v16  ;;  %2420 = vmatpush.bf16.msrb.mxu1 %v14100_v47  ;;  %v1319_v34 = vadd.f32 %v1318_v27, %v14902_v54 }
 0x3c2   :  { %v1437_v42 = vpack.c.bf16 %v1404_v48, %v1402_v2  ;;  %v19845_v2 = vld [vmem:[#allocation39_spill] sm:$0xff] }
 0x3c3   :  { %v1314_v48 = vadd.f32 %v1313_v61, %v19845_v2 }
 0x3c4   :  { %10242 = vmatmul.msk.bf16.gmra.mxu3 %vm1461_vm1, %v1437_v42  ;;  %v19846_v42 = vld [vmem:[#allocation41_spill] sm:$0xff] }
 0x3c5   :  { %2320 = vmatpush.bf16.msra.mxu3 %v13965_v43  ;;  %2421 = vmatpush.bf16.msrb.mxu1 %v19837_v23  ;;  %v1357_v36 = vpop.f32.mrf.mxu1 }
 0x3c6   :  { %v1358_v24 = vadd.f32 %v1357_v36, %v1309_v21  ;;  %v1316_v36 = vadd.f32 %v1315_v30, %v19846_v42 }
 0x3c8   :  { %10259 = vmatmul.msk.bf16.gmra.mxu1 %vm1461_vm1, %v19838_v44  ;;  %v1407_v60 = vadd.f32 %v1406_v50, %v1358_v24  ;;  %v1320_v50 = vpop.f32.mrf.mxu3  ;;  %v1418_v24 = vpop.f32.mrf.mxu2 }
 0x3c9   :  { %2321 = vmatpush.bf16.msra.mxu3 %v19839_v6  ;;  %v1321_v61 = vadd.f32 %v1320_v50, %v14927_v33 }
 0x3cd   :  { %2322 = vmatpush.bf16.msra.mxu3 %v19842_v31  ;;  %v1359_v39 = vpop.f32.mrf.mxu1 }
 0x3ce   :  { %v1360_v56 = vadd.f32 %v1359_v39, %v1311_v49 }
 0x3d0   :  { %v1409_v51 = vadd.f32 %v1408_v35, %v1360_v56  ;;  %v1323_v56 = vpop.f32.mrf.mxu3 }
 0x3d1   :  { %2323 = vmatpush.bf16.msra.mxu3 %v19843_v17  ;;  %v1324_v54 = vadd.f32 %v1323_v56, %v14988_v4 }
 0x3d2   :  { %v1438_v41 = vpack.c.bf16 %v1409_v51, %v1407_v60  ;;  %v1421_v51 = vpop.f32.mrf.mxu2 }
 0x3d4   :  { %10243 = vmatmul.msk.bf16.gmra.mxu3 %vm1461_vm1, %v1438_v41 }
 0x3d5   :  { %v1362_v3 = vpop.f32.mrf.mxu1 }
 0x3d6   :  { %v1363_v44 = vadd.f32 %v1362_v3, %v1314_v48 }
 0x3d8   :  { %10260 = vmatmul.msk.bf16.gmra.mxu1 %vm1461_vm1, %v19844_v10  ;;  %v1412_v21 = vadd.f32 %v1411_v46, %v1363_v44  ;;  %v1325_v3 = vpop.f32.mrf.mxu3 }
 0x3d9   :  { %v1326_v52 = vadd.f32 %v1325_v3, %v14999_v20  ;;  %v13296_v3 = vld [vmem:[%s19705_s3 + $0x20c] sm:$0xf] }
 0x3da   :  { %v1423_v48 = vpop.f32.mrf.mxu2 }
 0x3dd   :  { %v1364_v35 = vpop.f32.mrf.mxu1 }
 0x3de   :  { %v1365_v57 = vadd.f32 %v1364_v35, %v1316_v36 }
 0x3e0   :  { %v1414_v13 = vadd.f32 %v1413_v26, %v1365_v57  ;;  %v1328_v33 = vpop.f32.mrf.mxu3 }
 0x3e1   :  { %v1329_v4 = vadd.f32 %v1328_v33, %v15012_v28  ;;  %v10315_v28 = vld [vmem:[%s19705_s3 + $0x220] sm:$0xf] }
 0x3e2   :  { %v1439_v49 = vpack.c.bf16 %v1414_v13, %v1412_v21  ;;  %v1426_v50 = vpop.f32.mrf.mxu2 }
 0x3e4   :  { %10244 = vmatmul.msk.bf16.gmra.mxu3 %vm1461_vm1, %v1439_v49 }
 0x3e5   :  { %v1367_v39 = vpop.f32.mrf.mxu1 }
 0x3e6   :  { %v1368_v30 = vadd.f32 %v1367_v39, %v1319_v34 }
 0x3e8   :  { %10261 = vmatmul.msk.bf16.gmra.mxu1 %vm1461_vm1, %v19847_v58  ;;  %v1417_v26 = vadd.f32 %v1416_v8, %v1368_v30  ;;  %v1330_v57 = vpop.f32.mrf.mxu3 }
 0x3e9   :  { %v1331_v20 = vadd.f32 %v1330_v57, %v15019_v37  ;;  %v13301_v37 = vld [vmem:[%s19705_s3 + $0x22c] sm:$0xf0] }
 0x3ea   :  { %v1428_v38 = vpop.f32.mrf.mxu2 }
 0x3ed   :  { %v1369_v60 = vpop.f32.mrf.mxu1 }
 0x3ee   :  { %v1370_v46 = vadd.f32 %v1369_v60, %v1321_v61  ;;  %v10316_v60 = vor.u32 %v13301_v37, %v10315_v28  ;;  %v19856_v28 = vld [vmem:[#allocation11_spill] sm:$0xff] }
 0x3ef   :  { %v13304_v37 = vld [vmem:[%s19705_s3 + $0x24c] sm:$0xf] }
 0x3f0   :  { %v1419_v41 = vadd.f32 %v1418_v24, %v1370_v46  ;;  %v1333_v39 = vpop.f32.mrf.mxu3  ;;  %1826 = vmatmul.bf16.gmra.mxu2 %v10316_v60 }
 0x3f1   :  { %v1334_v40 = vadd.f32 %v1333_v39, %v15032_v53  ;;  %v19855_v39 = vld [vmem:[#allocation12_spill] sm:$0xff] }
 0x3f2   :  { %v1440_v10 = vpack.c.bf16 %v1419_v41, %v1417_v26  ;;  %v1431_v61 = vpop.f32.mrf.mxu2 }
 0x3f4   :  { %10245 = vmatmul.msk.bf16.gmra.mxu3 %vm1461_vm1, %v1440_v10  ;;  %v10309_v10 = vld [vmem:[%s19705_s3 + $0x218] sm:$0xf0] }
 0x3f5   :  { %v1372_v2 = vpop.f32.mrf.mxu1  ;;  %v10312_v53 = vor.u32 %v13296_v3, %v10309_v10  ;;  %v13303_v10 = vld [vmem:[%s19705_s3 + $0x244] sm:$0xf] }
 0x3f6   :  { %v1373_v27 = vadd.f32 %v1372_v2, %v1324_v54  ;;  %v13305_v54 = vld [vmem:[%s19705_s3 + $0x24c] sm:$0xf0] }
 0x3f8   :  { %10262 = vmatmul.msk.bf16.gmra.mxu1 %vm1461_vm1, %v19848_v1  ;;  %v1422_v36 = vadd.f32 %v1421_v51, %v1373_v27  ;;  %v1335_v22 = vpop.f32.mrf.mxu3  ;;  %v19850_v1 = vld [vmem:[#allocation14_spill] sm:$0xff] }
 0x3f9   :  { %v1336_v51 = vadd.f32 %v1335_v22, %v15042_v32 }
 0x3fa   :  { %v1433_v19 = vpop.f32.mrf.mxu2 }
 0x3fd   :  { %v1374_v42 = vpop.f32.mrf.mxu1 }
 0x3fe   :  { %v1375_v8 = vadd.f32 %v1374_v42, %v1326_v52  ;;  %v19851_v52 = vld [vmem:[#allocation15_spill] sm:$0xff]  ;;  %v13295_v42 = vld [vmem:[%s19705_s3 + $0x204] sm:$0xf] }
 0x400   :  { %v1424_v44 = vadd.f32 %v1423_v48, %v1375_v8  ;;  %v10331_v48 = vld [vmem:[%s19705_s3 + $0x240] sm:$0xf]  ;;  %v10301_v8 = vld [vmem:[%s19705_s3 + $0x210] sm:$0xf0] }
 0x401   :  { %v10332_v33 = vor.u32 %v13305_v54, %v10331_v48  ;;  %v13308_v54 = vld [vmem:[%s19705_s3 + $0x26c] sm:$0xf] }
 0x402   :  { %v1441_v35 = vpack.c.bf16 %v1424_v44, %v1422_v36  ;;  %v10304_v36 = vor.u32 %v13295_v42, %v10301_v8  ;;  %v19852_v44 = vld [vmem:[#allocation16_spill] sm:$0xff] }
 0x403   :  { %1831 = vmatmul.bf16.gmra.mxu2 %v10332_v33  ;;  %v10357_v33 = vld [vmem:[%s19705_s3 + $0x278] sm:$0xf0] }
 0x404   :  { %10246 = vmatmul.msk.bf16.gmra.mxu3 %vm1461_vm1, %v1441_v35  ;;  %v10325_v35 = vld [vmem:[%s19705_s3 + $0x238] sm:$0xf0] }
 0x405   :  { %v1377_v21 = vpop.f32.mrf.mxu1 }
 0x406   :  { %v1378_v13 = vadd.f32 %v1377_v21, %v1329_v4  ;;  %v19853_v21 = vld [vmem:[#allocation17_spill] sm:$0xff] }
 0x408   :  { %10263 = vmatmul.msk.bf16.gmra.mxu1 %vm1461_vm1, %v19849_v15  ;;  %v1427_v56 = vadd.f32 %v1426_v50, %v1378_v13  ;;  %v13300_v50 = vld [vmem:[%s19705_s3 + $0x22c] sm:$0xf]  ;;  %v19854_v13 = vld [vmem:[#allocation13_spill] sm:$0xff] }
 0x409   :  { %v10328_v57 = vor.u32 %v13300_v50, %v10325_v35  ;;  %v10379_v50 = vld [vmem:[%s19705_s3 + $0x2a0] sm:$0xf]  ;;  %v13317_v35 = vld [vmem:[%s19705_s3 + $0x2ac] sm:$0xf0] }
 0x40d   :  { %v1379_v49 = vpop.f32.mrf.mxu1 }
 0x40e   :  { %v1380_v24 = vadd.f32 %v1379_v49, %v1331_v20  ;;  %v10347_v20 = vld [vmem:[%s19705_s3 + $0x260] sm:$0xf]  ;;  %v13309_v49 = vld [vmem:[%s19705_s3 + $0x26c] sm:$0xf0] }
 0x410   :  { %v1429_v58 = vadd.f32 %v1428_v38, %v1380_v24  ;;  %v10348_v24 = vor.u32 %v13309_v49, %v10347_v20  ;;  %v10349_v20 = vld [vmem:[%s19705_s3 + $0x270] sm:$0xf0] }
 0x412   :  { %v1442_v34 = vpack.c.bf16 %v1429_v58, %v1427_v56  ;;  %v13299_v58 = vld [vmem:[%s19705_s3 + $0x224] sm:$0xf] }
 0x413   :  { %1836 = vmatmul.bf16.gmra.mxu2 %v10348_v24 }
 0x414   :  { %10247 = vmatmul.msk.bf16.gmra.mxu3 %vm1461_vm1, %v1442_v34  ;;  %v10317_v34 = vld [vmem:[%s19705_s3 + $0x230] sm:$0xf0] }
 0x415   :  { %v1382_v30 = vpop.f32.mrf.mxu1  ;;  %v10320_v22 = vor.u32 %v13299_v58, %v10317_v34  ;;  %v13312_v58 = vld [vmem:[%s19705_s3 + $0x28c] sm:$0xf]  ;;  %v10373_v34 = vld [vmem:[%s19705_s3 + $0x298] sm:$0xf0] }
 0x416   :  { %v1383_v46 = vadd.f32 %v1382_v30, %v1334_v40  ;;  %v10341_v40 = vld [vmem:[%s19705_s3 + $0x258] sm:$0xf0] }
 0x417   :  { %v10344_v60 = vor.u32 %v13304_v37, %v10341_v40 }
 0x418   :  { %10264 = vmatmul.msk.bf16.gmra.mxu1 %vm1461_vm1, %v1042_v45  ;;  %v1432_v45 = vadd.f32 %v1431_v61, %v1383_v46 }
 0x41d   :  { %v1384_v26 = vpop.f32.mrf.mxu1 }
 0x41e   :  { %v1385_v12 = vadd.f32 %v1384_v26, %v1336_v51  ;;  %v19857_v51 = vld [vmem:[#allocation10_spill] sm:$0xff] }
 0x420   :  { %v1434_v41 = vadd.f32 %v1433_v19, %v1385_v12  ;;  %v10363_v19 = vld [vmem:[%s19705_s3 + $0x280] sm:$0xf] }
 0x422   :  { %v1443_v2 = vpack.c.bf16 %v1434_v41, %v1432_v45  ;;  %v13313_v45 = vld [vmem:[%s19705_s3 + $0x28c] sm:$0xf0] }
 0x423   :  { %v10364_v41 = vor.u32 %v13313_v45, %v10363_v19  ;;  %v13311_v45 = vld [vmem:[%s19705_s3 + $0x284] sm:$0xf] }
 0x424   :  { %10248 = vmatmul.msk.bf16.gmra.mxu3 %vm1461_vm1, %v1443_v2  ;;  %v10333_v2 = vld [vmem:[%s19705_s3 + $0x250] sm:$0xf0] }
 0x425   :  { %v1580_v32 = vpop.f32.mrf.mxu1  ;;  %1841 = vmatmul.bf16.gmra.mxu2 %v10364_v41  ;;  %v10336_v48 = vor.u32 %v13303_v10, %v10333_v2  ;;  %v10365_v41 = vld [vmem:[%s19705_s3 + $0x290] sm:$0xf0] }
 0x426   :  { %v10368_v2 = vor.u32 %v13311_v45, %v10365_v41 }
 0x428   :  { %1968 = vmatmul.bf16.vlgmr.msra.gmra.mxu1 %v10312_v53 }
 0x429   :  { %2868 = vmatpush.bf16.msra.mxu1 %v19850_v1 }
 0x42d   :  { %2869 = vmatpush.bf16.msra.mxu1 %v19851_v52  ;;  %v1582_v27 = vpop.f32.mrf.mxu1 }
 0x431   :  { %2870 = vmatpush.bf16.msra.mxu1 %v19852_v44 }
 0x434   :  { %1870 = vmatmul.bf16.vlgmr.msrb.gmra.mxu3 %v10304_v36 }
 0x435   :  { %2871 = vmatpush.bf16.msra.mxu1 %v19853_v21  ;;  %v1585_v15 = vpop.f32.mrf.mxu1 }
 0x437   :  { %v1495_v4 = vpop.f32.mrf.mxu3 }
 0x438   :  { %v15183_v38 = vadd.f32 %v1580_v32, %v1495_v4  ;;  %1973 = vmatmul.bf16.gmra.mxu1 %v10328_v57  ;;  %v10380_v57 = vor.u32 %v13317_v35, %v10379_v50  ;;  %v13307_v4 = vld [vmem:[%s19705_s3 + $0x264] sm:$0xf]  ;;  %v13325_v50 = vld [vmem:[%s19705_s3 + $0x2ec] sm:$0xf0] }
 0x439   :  { %2872 = vmatpush.bf16.msra.mxu1 %v19854_v13 }
 0x43a   :  { %1846 = vmatmul.bf16.gmra.mxu2 %v10380_v57 }
 0x43d   :  { %2873 = vmatpush.bf16.msra.mxu1 %v19855_v39  ;;  %v1587_v56 = vpop.f32.mrf.mxu1 }
 0x43f   :  { %v1497_v61 = vpop.f32.mrf.mxu3 }
 0x440   :  { %v15199_v30 = vadd.f32 %v1582_v27, %v1497_v61  ;;  %v10360_v27 = vor.u32 %v13308_v54, %v10357_v33  ;;  %v10376_v61 = vor.u32 %v13312_v58, %v10373_v34  ;;  %v13320_v58 = vld [vmem:[%s19705_s3 + $0x2cc] sm:$0xf]  ;;  %v10405_v34 = vld [vmem:[%s19705_s3 + $0x2d8] sm:$0xf0] }
 0x441   :  { %2874 = vmatpush.bf16.msra.mxu1 %v19856_v28 }
 0x444   :  { %1875 = vmatmul.bf16.gmra.mxu3 %v10320_v22 }
 0x445   :  { %2875 = vmatpush.bf16.msra.mxu1 %v19857_v51  ;;  %v1590_v46 = vpop.f32.mrf.mxu1 }
 0x447   :  { %v1500_v26 = vpop.f32.mrf.mxu3 }
 0x448   :  { %v15209_v12 = vadd.f32 %v1585_v15, %v1500_v26  ;;  %1978 = vmatmul.bf16.gmra.mxu1 %v10344_v60  ;;  %v10395_v60 = vld [vmem:[%s19705_s3 + $0x2c0] sm:$0xf] }
 0x44d   :  { %v1592_v3 = vpop.f32.mrf.mxu1 }
 0x44f   :  { %v1502_v53 = vpop.f32.mrf.mxu3 }
 0x450   :  { %v15223_v32 = vadd.f32 %v1587_v56, %v1502_v53  ;;  %v10352_v56 = vor.u32 %v13307_v4, %v10349_v20  ;;  %v13316_v53 = vld [vmem:[%s19705_s3 + $0x2ac] sm:$0xf]  ;;  %v10381_v4 = vld [vmem:[%s19705_s3 + $0x2b0] sm:$0xf0] }
 0x454   :  { %1880 = vmatmul.bf16.gmra.mxu3 %v10336_v48  ;;  %v10389_v48 = vld [vmem:[%s19705_s3 + $0x2b8] sm:$0xf0] }
 0x455   :  { %v1595_v42 = vpop.f32.mrf.mxu1  ;;  %v10392_v54 = vor.u32 %v13316_v53, %v10389_v48  ;;  %v10421_v53 = vld [vmem:[%s19705_s3 + $0x2f8] sm:$0xf0]  ;;  %v13361_v48 = vld [vmem:[%s19706_s4 + $0x30] sm:$0xff] }
 0x457   :  { %v1505_v8 = vpop.f32.mrf.mxu3 }
 0x458   :  { %v15231_v36 = vadd.f32 %v1590_v46, %v1505_v8  ;;  %1983 = vmatmul.bf16.gmra.mxu1 %v10360_v27  ;;  %v13321_v46 = vld [vmem:[%s19705_s3 + $0x2cc] sm:$0xf0]  ;;  %v10411_v8 = vld [vmem:[%s19705_s3 + $0x2e0] sm:$0xf] }
 0x459   :  { %v10396_v26 = vor.u32 %v13321_v46, %v10395_v60  ;;  %v10412_v35 = vor.u32 %v13325_v50, %v10411_v8  ;;  %v1822_v50 = vpop.f32.mrf.mxu2 }
 0x45b   :  { %1851 = vmatmul.bf16.gmra.mxu2 %v10396_v26  ;;  %v13319_v26 = vld [vmem:[%s19705_s3 + $0x2c4] sm:$0xf] }
 0x45d   :  { %v1597_v15 = vpop.f32.mrf.mxu1 }
 0x45f   :  { %v1507_v49 = vpop.f32.mrf.mxu3 }
 0x460   :  { %v15245_v24 = vadd.f32 %v1592_v3, %v1507_v49 }
 0x464   :  { %1885 = vmatmul.bf16.gmra.mxu3 %v10352_v56 }
 0x465   :  { %v1600_v22 = vpop.f32.mrf.mxu1 }
 0x467   :  { %v1510_v37 = vpop.f32.mrf.mxu3 }
 0x468   :  { %v15253_v40 = vadd.f32 %v1595_v42, %v1510_v37  ;;  %1988 = vmatmul.bf16.gmra.mxu1 %v10376_v61  ;;  %v10408_v61 = vor.u32 %v13320_v58, %v10405_v34  ;;  %v10487_v58 = vld [vmem:[%s19705_s3 + $0x308] sm:$0xf]  ;;  %v13332_v34 = vld [vmem:[%s19705_s3 + $0x314] sm:$0xf0] }
 0x46b   :  { %1856 = vmatmul.bf16.gmra.mxu2 %v10412_v35 }
 0x46d   :  { %v1602_v19 = vpop.f32.mrf.mxu1 }
 0x46f   :  { %v1512_v3 = vpop.f32.mrf.mxu3 }
 0x470   :  { %v15267_v10 = vadd.f32 %v1597_v15, %v1512_v3  ;;  %v13315_v15 = vld [vmem:[%s19705_s3 + $0x2a4] sm:$0xf]  ;;  %v13362_v3 = vld [vmem:[%s19706_s4 + $0x38] sm:$0xff] }
 0x471   :  { %v10384_v56 = vor.u32 %v13315_v15, %v10381_v4  ;;  %2567 = vmatpush.bf16.msrb.mxu3 %v13362_v3  ;;  %v13323_v15 = vld [vmem:[%s19705_s3 + $0x2e4] sm:$0xf]  ;;  %v10413_v4 = vld [vmem:[%s19705_s3 + $0x2f0] sm:$0xf0]  ;;  %v13331_v3 = vld [vmem:[%s19705_s3 + $0x30c] sm:$0xf0] }
 0x474   :  { %1890 = vmatmul.bf16.gmra.mxu3 %v10368_v2  ;;  %v13324_v2 = vld [vmem:[%s19705_s3 + $0x2ec] sm:$0xf] }
 0x475   :  { %v1605_v33 = vpop.f32.mrf.mxu1  ;;  %2568 = vmatpush.bf16.msrb.mxu3 %v13361_v48 }
 0x477   :  { %v1515_v27 = vpop.f32.mrf.mxu3 }
 0x478   :  { %v15275_v42 = vadd.f32 %v1600_v22, %v1515_v27  ;;  %1993 = vmatmul.bf16.gmra.mxu1 %v10392_v54  ;;  %v10424_v54 = vor.u32 %v13324_v2, %v10421_v53 }
 0x47d   :  { %v15283_v57 = vpop.f32.mrf.mxu1 }
 0x47f   :  { %v1517_v20 = vpop.f32.mrf.mxu3 }
 0x480   :  { %v15291_v49 = vadd.f32 %v1602_v19, %v1517_v20  ;;  %v10397_v19 = vld [vmem:[%s19705_s3 + $0x2d0] sm:$0xf0] }
 0x481   :  { %v10400_v41 = vor.u32 %v13319_v26, %v10397_v19 }
 0x484   :  { %1895 = vmatmul.bf16.gmra.mxu3 %v10384_v56  ;;  %v10416_v56 = vor.u32 %v13323_v15, %v10413_v4 }
 0x485   :  { %v1610_v22 = vpop.f32.mrf.mxu1 }
 0x487   :  { %v1520_v37 = vpop.f32.mrf.mxu3 }
 0x488   :  { %v15299_v60 = vadd.f32 %v1605_v33, %v1520_v37  ;;  %1998 = vmatmul.bf16.gmra.mxu1 %v10408_v61  ;;  %v1824_v61 = vpop.f32.mrf.mxu2 }
 0x48d   :  { %v15301_v46 = vpop.f32.mrf.mxu1 }
 0x48f   :  { %v15309_v45 = vpop.f32.mrf.mxu3 }
 0x490   :  { %v1827_v53 = vpop.f32.mrf.mxu2 }
 0x494   :  { %1900 = vmatmul.bf16.gmra.mxu3 %v10400_v41  ;;  %v10479_v41 = vld [vmem:[%s19705_s3 + $0x300] sm:$0xf] }
 0x495   :  { %v1615_v33 = vpop.f32.mrf.mxu1 }
 0x497   :  { %v1525_v27 = vpop.f32.mrf.mxu3 }
 0x498   :  { %v15323_v8 = vadd.f32 %v1610_v22, %v1525_v27  ;;  %2003 = vmatmul.bf16.gmra.mxu1 %v10424_v54  ;;  %v10488_v22 = vor.u32 %v13332_v34, %v10487_v58  ;;  %v10480_v54 = vor.u32 %v13331_v3, %v10479_v41  ;;  %v13336_v27 = vld [vmem:[%s19705_s3 + $0x334] sm:$0xf0]  ;;  %v1829_v58 = vpop.f32.mrf.mxu2 }
 0x499   :  { %v19858_v41 = vld [vmem:[#allocation33_spill] sm:$0xff] }
 0x49d   :  { %v15325_v35 = vpop.f32.mrf.mxu1 }
 0x49f   :  { %v15333_v20 = vpop.f32.mrf.mxu3 }
 0x4a4   :  { %1905 = vmatmul.bf16.gmra.mxu3 %v10416_v56 }
 0x4a5   :  { %v1969_v37 = vpop.f32.mrf.mxu1 }
 0x4a7   :  { %v1530_v26 = vpop.f32.mrf.mxu3 }
 0x4a8   :  { %v15341_v19 = vadd.f32 %v1615_v33, %v1530_v26  ;;  %2422 = vmatmul.bf16.vlgmr.msrb.gmra.mxu1 %v10488_v22  ;;  %v10503_v33 = vld [vmem:[%s19705_s3 + $0x328] sm:$0xf] }
 0x4a9   :  { %3322 = vmatpush.bf16.msrb.mxu1 %v13988_v0  ;;  %v10504_v15 = vor.u32 %v13336_v27, %v10503_v33  ;;  %v10519_v33 = vld [vmem:[%s19705_s3 + $0x348] sm:$0xf]  ;;  %v1832_v27 = vpop.f32.mrf.mxu2 }
 0x4ad   :  { %3323 = vmatpush.bf16.msrb.mxu1 %v13996_v7  ;;  %v1971_v2 = vpop.f32.mrf.mxu1 }
 0x4af   :  { %v15351_v48 = vpop.f32.mrf.mxu3 }
 0x4b1   :  { %3324 = vmatpush.bf16.msrb.mxu1 %v14001_v11  ;;  %v1834_v11 = vpop.f32.mrf.mxu2 }
 0x4b4   :  { %2324 = vmatmul.bf16.vlgmr.msra.gmra.mxu3 %v10480_v54 }
 0x4b5   :  { %2966 = vmatpush.bf16.msra.mxu3 %v14469_v14  ;;  %3325 = vmatpush.bf16.msrb.mxu1 %v14005_v16  ;;  %v1974_v4 = vpop.f32.mrf.mxu1 }
 0x4b7   :  { %v1871_v56 = vpop.f32.mrf.mxu3 }
 0x4b8   :  { %2427 = vmatmul.bf16.gmra.mxu1 %v10504_v15  ;;  %v1872_v34 = vadd.f32 %v1871_v56, %v1822_v50  ;;  %v13340_v50 = vld [vmem:[%s19705_s3 + $0x354] sm:$0xf0]  ;;  %v19859_v15 = vld [vmem:[#allocation23_spill] sm:$0xff] }
 0x4b9   :  { %2967 = vmatpush.bf16.msra.mxu3 %v14479_v55  ;;  %3326 = vmatpush.bf16.msrb.mxu1 %v13965_v43  ;;  %v10520_v16 = vor.u32 %v13340_v50, %v10519_v33 }
 0x4ba   :  { %v1921_v3 = vadd.f32 %v19858_v41, %v1872_v34  ;;  %v19860_v34 = vld [vmem:[#allocation29_spill] sm:$0xff] }
 0x4bd   :  { %2968 = vmatpush.bf16.msra.mxu3 %v14487_v63  ;;  %3327 = vmatpush.bf16.msrb.mxu1 %v19839_v6  ;;  %v1976_v22 = vpop.f32.mrf.mxu1  ;;  %v1970_v6 = vadd.f32 %v1969_v37, %v1921_v3  ;;  %v19862_v37 = vld [vmem:[#allocation31_spill] sm:$0xff] }
 0x4bf   :  { %v1873_v26 = vpop.f32.mrf.mxu3 }
 0x4c0   :  { %v1874_v54 = vadd.f32 %v1873_v26, %v1824_v61 }
 0x4c1   :  { %2969 = vmatpush.bf16.msra.mxu3 %v14518_v25  ;;  %3328 = vmatpush.bf16.msrb.mxu1 %v19842_v31  ;;  %v19861_v31 = vld [vmem:[#allocation30_spill] sm:$0xff] }
 0x4c2   :  { %v1923_v56 = vadd.f32 %v19859_v15, %v1874_v54  ;;  %v19863_v54 = vld [vmem:[#allocation24_spill] sm:$0xff] }
 0x4c4   :  { %v1972_v43 = vadd.f32 %v1971_v2, %v1923_v56 }
 0x4c5   :  { %2970 = vmatpush.bf16.msra.mxu3 %v19860_v34  ;;  %3329 = vmatpush.bf16.msrb.mxu1 %v19843_v17  ;;  %v1979_v61 = vpop.f32.mrf.mxu1 }
 0x4c6   :  { %v2009_v26 = vpack.c.bf16 %v1972_v43, %v1970_v6  ;;  %v19864_v43 = vld [vmem:[#allocation32_spill] sm:$0xff]  ;;  %v13344_v6 = vld [vmem:[%s19705_s3 + $0x374] sm:$0xf0] }
 0x4c7   :  { %v1876_v41 = vpop.f32.mrf.mxu3 }
 0x4c8   :  { %10437 = vmatmul.msk.bf16.vlgmr.msra.gmra.mxu2 %vm1461_vm1, %v2009_v26  ;;  %2432 = vmatmul.bf16.gmra.mxu1 %v10520_v16  ;;  %v1877_v7 = vadd.f32 %v1876_v41, %v1827_v53  ;;  %v10535_v16 = vld [vmem:[%s19705_s3 + $0x368] sm:$0xf]  ;;  %v19865_v53 = vld [vmem:[#allocation34_spill] sm:$0xff] }
 0x4c9   :  { %2917 = vmatpush.bf16.msra.mxu2 %v14188_v62  ;;  %2971 = vmatpush.bf16.msra.mxu3 %v19861_v31  ;;  %v10536_v41 = vor.u32 %v13344_v6, %v10535_v16  ;;  %v13348_v16 = vld [vmem:[%s19705_s3 + $0x394] sm:$0xf0]  ;;  %v19867_v6 = vld [vmem:[#allocation38_spill] sm:$0xff] }
 0x4ca   :  { %v1926_v33 = vadd.f32 %v19863_v54, %v1877_v7  ;;  %v1837_v7 = vpop.f32.mrf.mxu2 }
 0x4cc   :  { %v1975_v56 = vadd.f32 %v1974_v4, %v1926_v33  ;;  %v10551_v33 = vld [vmem:[%s19705_s3 + $0x388] sm:$0xf] }
 0x4cd   :  { %2918 = vmatpush.bf16.msra.mxu2 %v14196_v5  ;;  %2972 = vmatpush.bf16.msra.mxu3 %v19862_v37  ;;  %v1981_v3 = vpop.f32.mrf.mxu1 }
 0x4cf   :  { %v1878_v2 = vpop.f32.mrf.mxu3 }
 0x4d0   :  { %v1879_v50 = vadd.f32 %v1878_v2, %v1829_v58 }
 0x4d1   :  { %2919 = vmatpush.bf16.msra.mxu2 %v14207_v18  ;;  %2973 = vmatpush.bf16.msra.mxu3 %v19864_v43 }
 0x4d2   :  { %v1928_v15 = vadd.f32 %v19865_v53, %v1879_v50  ;;  %v1839_v5 = vpop.f32.mrf.mxu2  ;;  %v19866_v50 = vld [vmem:[#allocation36_spill] sm:$0xff] }
 0x4d4   :  { %v1977_v26 = vadd.f32 %v1976_v22, %v1928_v15 }
 0x4d5   :  { %2920 = vmatpush.bf16.msra.mxu2 %v14219_v29  ;;  %v1984_v54 = vpop.f32.mrf.mxu1 }
 0x4d6   :  { %v2010_v58 = vpack.c.bf16 %v1977_v26, %v1975_v56  ;;  %v10552_v26 = vor.u32 %v13348_v16, %v10551_v33 }
 0x4d7   :  { %v1881_v2 = vpop.f32.mrf.mxu3 }
 0x4d8   :  { %10438 = vmatmul.msk.bf16.gmra.mxu2 %vm1461_vm1, %v2010_v58  ;;  %2437 = vmatmul.bf16.gmra.mxu1 %v10536_v41  ;;  %v1882_v17 = vadd.f32 %v1881_v2, %v1832_v27 }
 0x4d9   :  { %2921 = vmatpush.bf16.msra.mxu2 %v14135_v9 }
 0x4da   :  { %v1931_v4 = vadd.f32 %v19866_v50, %v1882_v17  ;;  %v19868_v50 = vld [vmem:[#allocation40_spill] sm:$0xff] }
 0x4dc   :  { %v1980_v15 = vadd.f32 %v1979_v61, %v1931_v4  ;;  %v10567_v61 = vld [vmem:[%s19705_s3 + $0x3a8] sm:$0xf]  ;;  %v19869_v4 = vld [vmem:[#allocation42_spill] sm:$0xff] }
 0x4dd   :  { %2922 = vmatpush.bf16.msra.mxu2 %v14118_v59  ;;  %v1986_v27 = vpop.f32.mrf.mxu1 }
 0x4df   :  { %v1883_v18 = vpop.f32.mrf.mxu3 }
 0x4e0   :  { %v1884_v22 = vadd.f32 %v1883_v18, %v1834_v11  ;;  %v1842_v18 = vpop.f32.mrf.mxu2 }
 0x4e1   :  { %2923 = vmatpush.bf16.msra.mxu2 %v14100_v47 }
 0x4e2   :  { %v1933_v53 = vadd.f32 %v19867_v6, %v1884_v22 }
 0x4e4   :  { %v1982_v56 = vadd.f32 %v1981_v3, %v1933_v53  ;;  %v13352_v3 = vld [vmem:[%s19705_s3 + $0x3b4] sm:$0xf0] }
 0x4e5   :  { %2924 = vmatpush.bf16.msra.mxu2 %v19837_v23  ;;  %v1989_v58 = vpop.f32.mrf.mxu1  ;;  %v10568_v53 = vor.u32 %v13352_v3, %v10567_v61 }
 0x4e6   :  { %v2011_v17 = vpack.c.bf16 %v1982_v56, %v1980_v15 }
 0x4e7   :  { %v1886_v11 = vpop.f32.mrf.mxu3 }
 0x4e8   :  { %10439 = vmatmul.msk.bf16.gmra.mxu2 %vm1461_vm1, %v2011_v17  ;;  %2442 = vmatmul.bf16.gmra.mxu1 %v10552_v26  ;;  %v1887_v41 = vadd.f32 %v1886_v11, %v1837_v7  ;;  %v1844_v33 = vpop.f32.mrf.mxu2  ;;  %v1945_v11 = vpop.f32.mrf.mxu0 }
 0x4ea   :  { %v1936_v47 = vadd.f32 %v19868_v50, %v1887_v41  ;;  %v19870_v41 = vld [vmem:[#allocation43_spill] sm:$0xff] }
 0x4ec   :  { %v1985_v16 = vadd.f32 %v1984_v54, %v1936_v47  ;;  %v10583_v47 = vld [vmem:[%s19705_s3 + $0x3c8] sm:$0xf]  ;;  %v19871_v54 = vld [vmem:[#allocation44_spill] sm:$0xff] }
 0x4ed   :  { %v1991_v56 = vpop.f32.mrf.mxu1 }
 0x4ef   :  { %v1888_v2 = vpop.f32.mrf.mxu3 }
 0x4f0   :  { %v1889_v59 = vadd.f32 %v1888_v2, %v1839_v5  ;;  %v1847_v26 = vpop.f32.mrf.mxu2 }
 0x4f2   :  { %v1938_v22 = vadd.f32 %v19869_v4, %v1889_v59  ;;  %v13356_v59 = vld [vmem:[%s19705_s3 + $0x3d4] sm:$0xf0] }
 0x4f4   :  { %v1987_v6 = vadd.f32 %v1986_v27, %v1938_v22 }
 0x4f5   :  { %v1994_v23 = vpop.f32.mrf.mxu1 }
 0x4f6   :  { %v2012_v7 = vpack.c.bf16 %v1987_v6, %v1985_v16 }
 0x4f7   :  { %v1891_v15 = vpop.f32.mrf.mxu3 }
 0x4f8   :  { %10440 = vmatmul.msk.bf16.gmra.mxu2 %vm1461_vm1, %v2012_v7  ;;  %2447 = vmatmul.bf16.gmra.mxu1 %v10568_v53  ;;  %v1892_v5 = vadd.f32 %v1891_v15, %v1842_v18  ;;  %v10584_v18 = vor.u32 %v13356_v59, %v10583_v47  ;;  %v1849_v22 = vpop.f32.mrf.mxu2 }
 0x4fa   :  { %v1941_v2 = vadd.f32 %v19870_v41, %v1892_v5  ;;  %v10599_v41 = vld [vmem:[%s19705_s3 + $0x3e8] sm:$0xf] }
 0x4fc   :  { %v1990_v61 = vadd.f32 %v1989_v58, %v1941_v2  ;;  %v13360_v58 = vld [vmem:[%s19705_s3 + $0x3f4] sm:$0xf0] }
 0x4fd   :  { %v1996_v6 = vpop.f32.mrf.mxu1  ;;  %v10600_v59 = vor.u32 %v13360_v58, %v10599_v41 }
 0x4ff   :  { %v1893_v17 = vpop.f32.mrf.mxu3 }
 0x500   :  { %v1894_v50 = vadd.f32 %v1893_v17, %v1844_v33  ;;  %v1947_v33 = vpop.f32.mrf.mxu0  ;;  %v1852_v17 = vpop.f32.mrf.mxu2 }
 0x502   :  { %v1943_v27 = vadd.f32 %v19871_v54, %v1894_v50 }
 0x504   :  { %v1992_v3 = vadd.f32 %v1991_v56, %v1943_v27 }
 0x505   :  { %v1999_v54 = vpop.f32.mrf.mxu1 }
 0x506   :  { %v2013_v4 = vpack.c.bf16 %v1992_v3, %v1990_v61 }
 0x507   :  { %v1896_v16 = vpop.f32.mrf.mxu3 }
 0x508   :  { %10441 = vmatmul.msk.bf16.gmra.mxu2 %vm1461_vm1, %v2013_v4  ;;  %2452 = vmatmul.bf16.gmra.mxu1 %v10584_v18  ;;  %v1897_v53 = vadd.f32 %v1896_v16, %v1847_v26  ;;  %v1950_v2 = vpop.f32.mrf.mxu0 }
 0x50a   :  { %v1946_v15 = vadd.f32 %v1945_v11, %v1897_v53  ;;  %v1854_v11 = vpop.f32.mrf.mxu2 }
 0x50c   :  { %v1995_v50 = vadd.f32 %v1994_v23, %v1946_v15  ;;  %v10661_v23 = vld [vmem:[%s19705_s3 + $0x410] sm:$0xf0] }
 0x50d   :  { %v2001_v18 = vpop.f32.mrf.mxu1 }
 0x50f   :  { %v1898_v7 = vpop.f32.mrf.mxu3 }
 0x510   :  { %v1899_v5 = vadd.f32 %v1898_v7, %v1849_v22  ;;  %v1952_v3 = vpop.f32.mrf.mxu0 }
 0x512   :  { %v1948_v56 = vadd.f32 %v1947_v33, %v1899_v5  ;;  %v13363_v33 = vld [vmem:[%s19705_s3 + $0x404] sm:$0xf]  ;;  %v1857_v5 = vpop.f32.mrf.mxu2 }
 0x513   :  { %v10664_v15 = vor.u32 %v13363_v33, %v10661_v23 }
 0x514   :  { %v1997_v47 = vadd.f32 %v1996_v6, %v1948_v56 }
 0x515   :  { %v2004_v56 = vpop.f32.mrf.mxu1 }
 0x516   :  { %v2014_v27 = vpack.c.bf16 %v1997_v47, %v1995_v50  ;;  %v10495_v50 = vld [vmem:[%s19705_s3 + $0x320] sm:$0xf]  ;;  %v13335_v47 = vld [vmem:[%s19705_s3 + $0x32c] sm:$0xf0] }
 0x517   :  { %v1901_v26 = vpop.f32.mrf.mxu3 }
 0x518   :  { %10442 = vmatmul.msk.bf16.gmra.mxu2 %vm1461_vm1, %v2014_v27  ;;  %2457 = vmatmul.bf16.gmra.mxu1 %v10600_v59  ;;  %v1902_v61 = vadd.f32 %v1901_v26, %v1852_v17  ;;  %v1955_v17 = vpop.f32.mrf.mxu0  ;;  %v10496_v59 = vor.u32 %v13335_v47, %v10495_v50 }
 0x51a   :  { %v1951_v22 = vadd.f32 %v1950_v2, %v1902_v61  ;;  %2329 = vmatmul.bf16.gmra.mxu3 %v10496_v59 }
 0x51c   :  { %v2000_v53 = vadd.f32 %v1999_v54, %v1951_v22  ;;  %v1859_v54 = vpop.f32.mrf.mxu2 }
 0x51d   :  { %v2006_v22 = vpop.f32.mrf.mxu1 }
 0x51f   :  { %v1903_v4 = vpop.f32.mrf.mxu3 }
 0x520   :  { %v1904_v16 = vadd.f32 %v1903_v4, %v1854_v11  ;;  %v1957_v61 = vpop.f32.mrf.mxu0 }
 0x522   :  { %v1953_v6 = vadd.f32 %v1952_v3, %v1904_v16  ;;  %v13367_v3 = vld [vmem:[%s19705_s3 + $0x424] sm:$0xf] }
 0x524   :  { %v2002_v7 = vadd.f32 %v2001_v18, %v1953_v6  ;;  %v10677_v18 = vld [vmem:[%s19705_s3 + $0x430] sm:$0xf0] }
 0x525   :  { %v10680_v23 = vor.u32 %v13367_v3, %v10677_v18  ;;  %v15475_v59 = vpop.f32.mrf.mxu1  ;;  %v10709_v3 = vld [vmem:[%s19705_s3 + $0x470] sm:$0xf0] }
 0x526   :  { %v2015_v41 = vpack.c.bf16 %v2002_v7, %v2000_v53  ;;  %v10511_v53 = vld [vmem:[%s19705_s3 + $0x340] sm:$0xf]  ;;  %v13339_v7 = vld [vmem:[%s19705_s3 + $0x34c] sm:$0xf0] }
 0x527   :  { %v1906_v58 = vpop.f32.mrf.mxu3 }
 0x528   :  { %10443 = vmatmul.msk.bf16.gmra.mxu2 %vm1461_vm1, %v2015_v41  ;;  %2876 = vmatmul.bf16.vlgmr.msra.gmra.mxu1 %v10664_v15  ;;  %v1907_v2 = vadd.f32 %v1906_v58, %v1857_v5  ;;  %v10512_v15 = vor.u32 %v13339_v7, %v10511_v53  ;;  %v13330_v5 = vld [vmem:[%s19705_s3 + $0x30c] sm:$0xf]  ;;  %v10489_v41 = vld [vmem:[%s19705_s3 + $0x318] sm:$0xf0]  ;;  %v10693_v58 = vld [vmem:[%s19705_s3 + $0x450] sm:$0xf0] }
 0x529   :  { %v10543_v53 = vld [vmem:[%s19705_s3 + $0x380] sm:$0xf] }
 0x52a   :  { %v1956_v26 = vadd.f32 %v1955_v17, %v1907_v2  ;;  %2334 = vmatmul.bf16.gmra.mxu3 %v10512_v15  ;;  %v13371_v17 = vld [vmem:[%s19705_s3 + $0x444] sm:$0xf]  ;;  %v13338_v15 = vld [vmem:[%s19705_s3 + $0x34c] sm:$0xf] }
 0x52b   :  { %v10696_v2 = vor.u32 %v13371_v17, %v10693_v58  ;;  %v10725_v17 = vld [vmem:[%s19705_s3 + $0x490] sm:$0xf0] }
 0x52c   :  { %v2005_v16 = vadd.f32 %v2004_v56, %v1956_v26  ;;  %v10492_v56 = vor.u32 %v13330_v5, %v10489_v41  ;;  %v13379_v41 = vld [vmem:[%s19705_s3 + $0x484] sm:$0xf] }
 0x52f   :  { %v1908_v27 = vpop.f32.mrf.mxu3 }
 0x530   :  { %v1909_v11 = vadd.f32 %v1908_v27, %v1859_v54  ;;  %v10527_v54 = vld [vmem:[%s19705_s3 + $0x360] sm:$0xf]  ;;  %v13343_v27 = vld [vmem:[%s19705_s3 + $0x36c] sm:$0xf0] }
 0x531   :  { %v10528_v26 = vor.u32 %v13343_v27, %v10527_v54 }
 0x532   :  { %v1958_v4 = vadd.f32 %v1957_v61, %v1909_v11  ;;  %v13334_v11 = vld [vmem:[%s19705_s3 + $0x32c] sm:$0xf]  ;;  %v13375_v61 = vld [vmem:[%s19705_s3 + $0x464] sm:$0xf] }
 0x534   :  { %v2007_v33 = vadd.f32 %v2006_v22, %v1958_v4 }
 0x536   :  { %v2016_v6 = vpack.c.bf16 %v2007_v33, %v2005_v16  ;;  %v10712_v16 = vor.u32 %v13375_v61, %v10709_v3  ;;  %v15501_v33 = vpop.f32.mrf.mxu1  ;;  %v13342_v61 = vld [vmem:[%s19705_s3 + $0x36c] sm:$0xf]  ;;  %v10537_v3 = vld [vmem:[%s19705_s3 + $0x378] sm:$0xf0] }
 0x538   :  { %10444 = vmatmul.msk.bf16.gmra.mxu2 %vm1461_vm1, %v2016_v6  ;;  %2881 = vmatmul.bf16.gmra.mxu1 %v10680_v23 }
 0x53a   :  { %2339 = vmatmul.bf16.gmra.mxu3 %v10528_v26 }
 0x53e   :  { %v15517_v5 = vpop.f32.mrf.mxu1 }
 0x546   :  { %v15533_v54 = vpop.f32.mrf.mxu1 }
 0x548   :  { %2471 = vmatmul.bf16.vlgmr.msrb.gmra.mxu2 %v10492_v56  ;;  %2886 = vmatmul.bf16.gmra.mxu1 %v10696_v2 }
 0x549   :  { %3371 = vmatpush.bf16.msrb.mxu2 %v19850_v1 }
 0x54b   :  { %v2067_v50 = vpop.f32.mrf.mxu2 }
 0x54c   :  { %v15473_v47 = vadd.f32 %v2067_v50, %v15183_v38  ;;  %v10505_v38 = vld [vmem:[%s19705_s3 + $0x338] sm:$0xf0]  ;;  %v10728_v50 = vor.u32 %v13379_v41, %v10725_v17  ;;  %v13355_v41 = vld [vmem:[%s19705_s3 + $0x3cc] sm:$0xf0] }
 0x54d   :  { %3372 = vmatpush.bf16.msrb.mxu2 %v19851_v52  ;;  %v10508_v22 = vor.u32 %v13334_v11, %v10505_v38  ;;  %v10559_v11 = vld [vmem:[%s19705_s3 + $0x3a0] sm:$0xf] }
 0x551   :  { %3373 = vmatpush.bf16.msrb.mxu2 %v19852_v44 }
 0x553   :  { %v2069_v18 = vpop.f32.mrf.mxu2 }
 0x554   :  { %v15498_v4 = vadd.f32 %v2069_v18, %v15199_v30  ;;  %v13347_v30 = vld [vmem:[%s19705_s3 + $0x38c] sm:$0xf0]  ;;  %v10741_v18 = vld [vmem:[%s19705_s3 + $0x4b0] sm:$0xf0] }
 0x555   :  { %3374 = vmatpush.bf16.msrb.mxu2 %v19853_v21  ;;  %v10544_v7 = vor.u32 %v13347_v30, %v10543_v53  ;;  %v15559_v30 = vpop.f32.mrf.mxu1 }
 0x557   :  { %2344 = vmatmul.bf16.gmra.mxu3 %v10544_v7 }
 0x558   :  { %2476 = vmatmul.bf16.gmra.mxu2 %v10508_v22  ;;  %2891 = vmatmul.bf16.gmra.mxu1 %v10712_v16 }
 0x559   :  { %3375 = vmatpush.bf16.msrb.mxu2 %v19854_v13 }
 0x55b   :  { %v2072_v23 = vpop.f32.mrf.mxu2 }
 0x55c   :  { %v15505_v6 = vadd.f32 %v2072_v23, %v15209_v12  ;;  %v10521_v12 = vld [vmem:[%s19705_s3 + $0x358] sm:$0xf0]  ;;  %v10540_v23 = vor.u32 %v13342_v61, %v10537_v3  ;;  %v13429_v3 = vld [vmem:[%s19706_s4 + $0x50] sm:$0xff] }
 0x55d   :  { %3376 = vmatpush.bf16.msrb.mxu2 %v19855_v39  ;;  %v10524_v2 = vor.u32 %v13338_v15, %v10521_v12  ;;  %v10575_v12 = vld [vmem:[%s19705_s3 + $0x3c0] sm:$0xf]  ;;  %v15570_v17 = vpop.f32.mrf.mxu1  ;;  %v13430_v61 = vld [vmem:[%s19706_s4 + $0x58] sm:$0xff] }
 0x55e   :  { %3573 = vmatpush.bf16.msra.mxu1 %v13430_v61  ;;  %v13354_v61 = vld [vmem:[%s19705_s3 + $0x3cc] sm:$0xf] }
 0x561   :  { %3377 = vmatpush.bf16.msrb.mxu2 %v19856_v28 }
 0x562   :  { %3574 = vmatpush.bf16.msra.mxu1 %v13429_v3  ;;  %v10585_v3 = vld [vmem:[%s19705_s3 + $0x3d8] sm:$0xf0] }
 0x563   :  { %v2074_v58 = vpop.f32.mrf.mxu2 }
 0x564   :  { %v15530_v56 = vadd.f32 %v2074_v58, %v15223_v32  ;;  %v13351_v32 = vld [vmem:[%s19705_s3 + $0x3ac] sm:$0xf0]  ;;  %v13346_v58 = vld [vmem:[%s19705_s3 + $0x38c] sm:$0xf] }
 0x565   :  { %3378 = vmatpush.bf16.msrb.mxu2 %v19857_v51  ;;  %v10560_v38 = vor.u32 %v13351_v32, %v10559_v11 }
 0x567   :  { %2349 = vmatmul.bf16.gmra.mxu3 %v10560_v38 }
 0x568   :  { %2481 = vmatmul.bf16.gmra.mxu2 %v10524_v2  ;;  %2896 = vmatmul.bf16.gmra.mxu1 %v10728_v50  ;;  %v13387_v2 = vld [vmem:[%s19705_s3 + $0x4c4] sm:$0xf]  ;;  %v10757_v50 = vld [vmem:[%s19705_s3 + $0x4d0] sm:$0xf0] }
 0x569   :  { %v10760_v38 = vor.u32 %v13387_v2, %v10757_v50 }
 0x56b   :  { %v2077_v27 = vpop.f32.mrf.mxu2 }
 0x56c   :  { %v15536_v26 = vadd.f32 %v2077_v27, %v15231_v36  ;;  %v13383_v36 = vld [vmem:[%s19705_s3 + $0x4a4] sm:$0xf] }
 0x56d   :  { %v10744_v53 = vor.u32 %v13383_v36, %v10741_v18  ;;  %v15593_v36 = vpop.f32.mrf.mxu1 }
 0x573   :  { %v2079_v22 = vpop.f32.mrf.mxu2 }
 0x574   :  { %v15557_v16 = vadd.f32 %v2079_v22, %v15245_v24  ;;  %v10576_v24 = vor.u32 %v13355_v41, %v10575_v12  ;;  %v10591_v22 = vld [vmem:[%s19705_s3 + $0x3e0] sm:$0xf]  ;;  %v10569_v12 = vld [vmem:[%s19705_s3 + $0x3b8] sm:$0xf0]  ;;  %v10773_v41 = vld [vmem:[%s19705_s3 + $0x4f0] sm:$0xf0] }
 0x577   :  { %2354 = vmatmul.bf16.gmra.mxu3 %v10576_v24  ;;  %v15616_v24 = vpop.f32.mrf.mxu1 }
 0x578   :  { %2486 = vmatmul.bf16.gmra.mxu2 %v10540_v23  ;;  %2901 = vmatmul.bf16.gmra.mxu1 %v10744_v53  ;;  %v13359_v23 = vld [vmem:[%s19705_s3 + $0x3ec] sm:$0xf0] }
 0x579   :  { %v10592_v53 = vor.u32 %v13359_v23, %v10591_v22 }
 0x57b   :  { %v2082_v7 = vpop.f32.mrf.mxu2 }
 0x57c   :  { %v15562_v15 = vadd.f32 %v2082_v7, %v15253_v40  ;;  %v10553_v40 = vld [vmem:[%s19705_s3 + $0x398] sm:$0xf0]  ;;  %v13350_v7 = vld [vmem:[%s19705_s3 + $0x3ac] sm:$0xf] }
 0x57d   :  { %v10556_v32 = vor.u32 %v13346_v58, %v10553_v40  ;;  %v10572_v2 = vor.u32 %v13350_v7, %v10569_v12  ;;  %v2374_v12 = vpop.f32.mrf.mxu0 }
 0x583   :  { %v2084_v27 = vpop.f32.mrf.mxu2 }
 0x584   :  { %v15585_v11 = vadd.f32 %v2084_v27, %v15267_v10 }
 0x587   :  { %2359 = vmatmul.bf16.gmra.mxu3 %v10592_v53  ;;  %v10588_v53 = vor.u32 %v13354_v61, %v10585_v3  ;;  %v1613_v61 = vadd.f32 %v15301_v46, %v15333_v20  ;;  %v10667_v46 = vld [vmem:[%s19705_s3 + $0x408] sm:$0xf]  ;;  %v13366_v20 = vld [vmem:[%s19705_s3 + $0x414] sm:$0xf0] }
 0x588   :  { %2491 = vmatmul.bf16.gmra.mxu2 %v10556_v32  ;;  %2906 = vmatmul.bf16.gmra.mxu1 %v10760_v38  ;;  %v15624_v38 = vpop.f32.mrf.mxu1 }
 0x58b   :  { %v2087_v18 = vpop.f32.mrf.mxu2 }
 0x58c   :  { %v15596_v10 = vadd.f32 %v2087_v18, %v15275_v42  ;;  %v13391_v42 = vld [vmem:[%s19705_s3 + $0x4e4] sm:$0xf]  ;;  %v13399_v18 = vld [vmem:[%s19705_s3 + $0x50c] sm:$0xf0] }
 0x58d   :  { %v10776_v50 = vor.u32 %v13391_v42, %v10773_v41  ;;  %v2325_v42 = vpop.f32.mrf.mxu3 }
 0x590   :  { %v15642_v41 = vpop.f32.mrf.mxu1 }
 0x593   :  { %v2089_v58 = vpop.f32.mrf.mxu2 }
 0x594   :  { %v15619_v40 = vadd.f32 %v2089_v58, %v15291_v49  ;;  %v10839_v49 = vld [vmem:[%s19705_s3 + $0x500] sm:$0xf] }
 0x595   :  { %v10840_v7 = vor.u32 %v13399_v18, %v10839_v49 }
 0x598   :  { %2496 = vmatmul.bf16.gmra.mxu2 %v10572_v2  ;;  %2911 = vmatmul.bf16.gmra.mxu1 %v10776_v50  ;;  %v13358_v50 = vld [vmem:[%s19705_s3 + $0x3ec] sm:$0xf] }
 0x59b   :  { %v2092_v27 = vpop.f32.mrf.mxu2 }
 0x59c   :  { %v15622_v32 = vadd.f32 %v2092_v27, %v15299_v60  ;;  %v1608_v60 = vadd.f32 %v15283_v57, %v15309_v45  ;;  %v2376_v57 = vpop.f32.mrf.mxu0  ;;  %v2327_v45 = vpop.f32.mrf.mxu3  ;;  %v10601_v27 = vld [vmem:[%s19705_s3 + $0x3f8] sm:$0xf0] }
 0x59d   :  { %v10604_v49 = vor.u32 %v13358_v50, %v10601_v27 }
 0x5a3   :  { %v2094_v22 = vpop.f32.mrf.mxu2 }
 0x5a4   :  { %v15640_v23 = vadd.f32 %v2094_v22, %v1608_v60  ;;  %v2379_v18 = vpop.f32.mrf.mxu0  ;;  %v2330_v60 = vpop.f32.mrf.mxu3 }
 0x5a8   :  { %2501 = vmatmul.bf16.gmra.mxu2 %v10588_v53  ;;  %3330 = vmatmul.bf16.vlgmr.msrb.gmra.mxu1 %v10840_v7  ;;  %v1618_v7 = vadd.f32 %v15325_v35, %v15351_v48  ;;  %v19873_v48 = vld [vmem:[#allocation8_spill] sm:$0xff] }
 0x5a9   :  { %3972 = vmatpush.bf16.msrb.mxu1 %v14469_v14 }
 0x5ab   :  { %v2097_v58 = vpop.f32.mrf.mxu2 }
 0x5ac   :  { %v15646_v2 = vadd.f32 %v2097_v58, %v15323_v8  ;;  %v2381_v58 = vpop.f32.mrf.mxu0  ;;  %v2332_v27 = vpop.f32.mrf.mxu3 }
 0x5ad   :  { %3973 = vmatpush.bf16.msrb.mxu1 %v14479_v55 }
 0x5b1   :  { %3974 = vmatpush.bf16.msrb.mxu1 %v14487_v63 }
 0x5b3   :  { %v2099_v3 = vpop.f32.mrf.mxu2 }
 0x5b4   :  { %v15658_v8 = vadd.f32 %v2099_v3, %v1613_v61  ;;  %v10668_v61 = vor.u32 %v13366_v20, %v10667_v46  ;;  %v10683_v46 = vld [vmem:[%s19705_s3 + $0x428] sm:$0xf]  ;;  %v13370_v20 = vld [vmem:[%s19705_s3 + $0x434] sm:$0xf0] }
 0x5b5   :  { %3975 = vmatpush.bf16.msrb.mxu1 %v14518_v25 }
 0x5b8   :  { %2506 = vmatmul.bf16.gmra.mxu2 %v10604_v49  ;;  %v2375_v49 = vadd.f32 %v2374_v12, %v2325_v42 }
 0x5b9   :  { %3976 = vmatpush.bf16.msrb.mxu1 %v19860_v34  ;;  %v2377_v34 = vadd.f32 %v2376_v57, %v2327_v45 }
 0x5ba   :  { %v2424_v35 = vadd.f32 %v15475_v59, %v2375_v49  ;;  %v19875_v49 = vld [vmem:[#allocation5_spill] sm:$0xff] }
 0x5bb   :  { %v2102_v22 = vpop.f32.mrf.mxu2 }
 0x5bc   :  { %v15663_v53 = vadd.f32 %v2102_v22, %v15341_v19  ;;  %v2384_v22 = vpop.f32.mrf.mxu0 }
 0x5bd   :  { %3977 = vmatpush.bf16.msrb.mxu1 %v19861_v31  ;;  %v2335_v31 = vpop.f32.mrf.mxu3 }
 0x5c1   :  { %3978 = vmatpush.bf16.msrb.mxu1 %v19862_v37  ;;  %v19872_v37 = vld [vmem:[#allocation7_spill] sm:$0xff] }
 0x5c3   :  { %v2104_v50 = vpop.f32.mrf.mxu2 }
 0x5c4   :  { %v15675_v19 = vadd.f32 %v2104_v50, %v1618_v7  ;;  %v2426_v7 = vadd.f32 %v15501_v33, %v2377_v34  ;;  %v2386_v59 = vpop.f32.mrf.mxu0  ;;  %v19877_v34 = vld [vmem:[#allocation4_spill] sm:$0xff]  ;;  %v2382_v33 = vadd.f32 %v2381_v58, %v2332_v27 }
 0x5c5   :  { %3979 = vmatpush.bf16.msrb.mxu1 %v19864_v43  ;;  %v19874_v43 = vld [vmem:[#allocation9_spill] sm:$0xff]  ;;  %v2337_v45 = vpop.f32.mrf.mxu3 }
 0x5c8   :  { %2925 = vmatmul.bf16.vlgmr.msra.gmra.mxu2 %v10668_v61  ;;  %v10684_v61 = vor.u32 %v13370_v20, %v10683_v46  ;;  %v19878_v46 = vld [vmem:[#allocation22_spill] sm:$0xff]  ;;  %v19879_v20 = vld [vmem:[#allocation3_spill] sm:$0xff] }
 0x5c9   :  { %3825 = vmatpush.bf16.msra.mxu2 %v13988_v0  ;;  %v19876_v0 = vld [vmem:[#allocation21_spill] sm:$0xff] }
 0x5cb   :  { %v2472_v3 = vpop.f32.mrf.mxu2 }
 0x5cc   :  { %v2473_v42 = vadd.f32 %v2472_v3, %v2424_v35  ;;  %v2389_v35 = vpop.f32.mrf.mxu0 }
 0x5cd   :  { %3826 = vmatpush.bf16.msra.mxu2 %v19872_v37  ;;  %v2380_v37 = vadd.f32 %v2379_v18, %v2330_v60  ;;  %v13374_v18 = vld [vmem:[%s19705_s3 + $0x454] sm:$0xf0]  ;;  %v2340_v60 = vpop.f32.mrf.mxu3 }
 0x5cf   :  { %v2429_v3 = vadd.f32 %v15517_v5, %v2380_v37  ;;  %v19880_v5 = vld [vmem:[#allocation2_spill] sm:$0xff] }
 0x5d1   :  { %3827 = vmatpush.bf16.msra.mxu2 %v19873_v48 }
 0x5d3   :  { %v2474_v12 = vpop.f32.mrf.mxu2 }
 0x5d4   :  { %v2475_v50 = vadd.f32 %v2474_v12, %v2426_v7  ;;  %v10699_v7 = vld [vmem:[%s19705_s3 + $0x448] sm:$0xf]  ;;  %v2431_v12 = vadd.f32 %v15533_v54, %v2382_v33  ;;  %v2387_v54 = vadd.f32 %v2386_v59, %v2337_v45  ;;  %v19883_v59 = vld [vmem:[#allocation18_spill] sm:$0xff] }
 0x5d5   :  { %3828 = vmatpush.bf16.msra.mxu2 %v19874_v43  ;;  %v10700_v37 = vor.u32 %v13374_v18, %v10699_v7  ;;  %v19882_v33 = vld [vmem:[#allocation19_spill] sm:$0xff]  ;;  %v13378_v7 = vld [vmem:[%s19705_s3 + $0x474] sm:$0xf0] }
 0x5d6   :  { %v2512_v57 = vpack.c.bf16 %v2475_v50, %v2473_v42  ;;  %v2436_v18 = vadd.f32 %v15570_v17, %v2387_v54  ;;  %v10731_v17 = vld [vmem:[%s19705_s3 + $0x488] sm:$0xf] }
 0x5d8   :  { %10617 = vmatmul.msk.bf16.vlgmr.msrb.gmra.mxu3 %vm1461_vm1, %v2512_v57  ;;  %2930 = vmatmul.bf16.gmra.mxu2 %v10684_v61  ;;  %v2391_v61 = vpop.f32.mrf.mxu0 }
 0x5d9   :  { %3420 = vmatpush.bf16.msrb.mxu3 %v14188_v62  ;;  %3829 = vmatpush.bf16.msra.mxu2 %v19875_v49 }
 0x5db   :  { %v2477_v48 = vpop.f32.mrf.mxu2 }
 0x5dc   :  { %v2478_v58 = vadd.f32 %v2477_v48, %v2429_v3  ;;  %v10715_v3 = vld [vmem:[%s19705_s3 + $0x468] sm:$0xf] }
 0x5dd   :  { %3421 = vmatpush.bf16.msrb.mxu3 %v19876_v0  ;;  %3830 = vmatpush.bf16.msra.mxu2 %v19877_v34  ;;  %v19881_v34 = vld [vmem:[#allocation20_spill] sm:$0xff] }
 0x5e1   :  { %3422 = vmatpush.bf16.msrb.mxu3 %v19878_v46  ;;  %3831 = vmatpush.bf16.msra.mxu2 %v19879_v20  ;;  %v2342_v20 = vpop.f32.mrf.mxu3  ;;  %v2385_v46 = vadd.f32 %v2384_v22, %v2335_v31  ;;  %v10716_v22 = vor.u32 %v13378_v7, %v10715_v3 }
 0x5e3   :  { %v2479_v42 = vpop.f32.mrf.mxu2  ;;  %v2434_v48 = vadd.f32 %v15559_v30, %v2385_v46 }
 0x5e4   :  { %v2480_v27 = vadd.f32 %v2479_v42, %v2431_v12 }
 0x5e5   :  { %3423 = vmatpush.bf16.msrb.mxu3 %v14219_v29  ;;  %3832 = vmatpush.bf16.msra.mxu2 %v19880_v5 }
 0x5e6   :  { %v2513_v50 = vpack.c.bf16 %v2480_v27, %v2478_v58  ;;  %v2394_v58 = vpop.f32.mrf.mxu0  ;;  %v2390_v27 = vadd.f32 %v2389_v35, %v2340_v60 }
 0x5e8   :  { %10618 = vmatmul.msk.bf16.gmra.mxu3 %vm1461_vm1, %v2513_v50  ;;  %2935 = vmatmul.bf16.gmra.mxu2 %v10700_v37  ;;  %v2392_v37 = vadd.f32 %v2391_v61, %v2342_v20 }
 0x5e9   :  { %3424 = vmatpush.bf16.msrb.mxu3 %v14135_v9  ;;  %v2345_v30 = vpop.f32.mrf.mxu3 }
 0x5ea   :  { %v2441_v54 = vadd.f32 %v15616_v24, %v2392_v37  ;;  %v2395_v61 = vadd.f32 %v2394_v58, %v2345_v30  ;;  %v10747_v24 = vld [vmem:[%s19705_s3 + $0x4a8] sm:$0xf] }
 0x5eb   :  { %v2482_v57 = vpop.f32.mrf.mxu2 }
 0x5ec   :  { %v2483_v42 = vadd.f32 %v2482_v57, %v2434_v48  ;;  %v13382_v57 = vld [vmem:[%s19705_s3 + $0x494] sm:$0xf0] }
 0x5ed   :  { %3425 = vmatpush.bf16.msrb.mxu3 %v19881_v34  ;;  %v2439_v34 = vadd.f32 %v15593_v36, %v2390_v27 }
 0x5ee   :  { %v2396_v50 = vpop.f32.mrf.mxu0 }
 0x5f1   :  { %3426 = vmatpush.bf16.msrb.mxu3 %v19882_v33  ;;  %v2347_v33 = vpop.f32.mrf.mxu3 }
 0x5f3   :  { %v2484_v12 = vpop.f32.mrf.mxu2 }
 0x5f4   :  { %v2485_v31 = vadd.f32 %v2484_v12, %v2436_v18  ;;  %v10732_v18 = vor.u32 %v13382_v57, %v10731_v17  ;;  %v2448_v12 = vpop.f32.mrf.mxu1 }
 0x5f5   :  { %3427 = vmatpush.bf16.msrb.mxu3 %v19883_v59 }
 0x5f6   :  { %v2514_v45 = vpack.c.bf16 %v2485_v31, %v2483_v42  ;;  %v2399_v20 = vpop.f32.mrf.mxu0  ;;  %v2397_v42 = vadd.f32 %v2396_v50, %v2347_v33  ;;  %v2444_v31 = vadd.f32 %v15624_v38, %v2395_v61 }
 0x5f8   :  { %10619 = vmatmul.msk.bf16.gmra.mxu3 %vm1461_vm1, %v2514_v45  ;;  %2940 = vmatmul.bf16.gmra.mxu2 %v10716_v22  ;;  %v2446_v22 = vadd.f32 %v15642_v41, %v2397_v42  ;;  %v10763_v41 = vld [vmem:[%s19705_s3 + $0x4c8] sm:$0xf] }
 0x5f9   :  { %v2350_v36 = vpop.f32.mrf.mxu3 }
 0x5fa   :  { %v2400_v50 = vadd.f32 %v2399_v20, %v2350_v36 }
 0x5fb   :  { %v2487_v46 = vpop.f32.mrf.mxu2 }
 0x5fc   :  { %v2488_v3 = vadd.f32 %v2487_v46, %v2439_v34  ;;  %v13386_v34 = vld [vmem:[%s19705_s3 + $0x4b4] sm:$0xf0]  ;;  %v2450_v33 = vpop.f32.mrf.mxu1 }
 0x5fd   :  { %v10748_v58 = vor.u32 %v13386_v34, %v10747_v24 }
 0x5fe   :  { %v2401_v45 = vpop.f32.mrf.mxu0 }
 0x601   :  { %v2352_v27 = vpop.f32.mrf.mxu3 }
 0x603   :  { %v2489_v48 = vpop.f32.mrf.mxu2 }
 0x604   :  { %v2490_v7 = vadd.f32 %v2489_v48, %v2441_v54  ;;  %v2402_v48 = vadd.f32 %v2401_v45, %v2352_v27 }
 0x606   :  { %v2515_v35 = vpack.c.bf16 %v2490_v7, %v2488_v3  ;;  %v2404_v57 = vpop.f32.mrf.mxu0  ;;  %v2449_v3 = vadd.f32 %v2448_v12, %v2400_v50  ;;  %v2453_v7 = vpop.f32.mrf.mxu1 }
 0x608   :  { %10620 = vmatmul.msk.bf16.gmra.mxu3 %vm1461_vm1, %v2515_v35  ;;  %2945 = vmatmul.bf16.gmra.mxu2 %v10732_v18  ;;  %v13390_v18 = vld [vmem:[%s19705_s3 + $0x4d4] sm:$0xf0]  ;;  %v2451_v35 = vadd.f32 %v2450_v33, %v2402_v48 }
 0x609   :  { %v2355_v54 = vpop.f32.mrf.mxu3 }
 0x60b   :  { %v2492_v60 = vpop.f32.mrf.mxu2 }
 0x60c   :  { %v2493_v37 = vadd.f32 %v2492_v60, %v2444_v31  ;;  %v10764_v31 = vor.u32 %v13390_v18, %v10763_v41 }
 0x60e   :  { %v2406_v20 = vpop.f32.mrf.mxu0  ;;  %v2455_v12 = vpop.f32.mrf.mxu1 }
 0x611   :  { %v2357_v36 = vpop.f32.mrf.mxu3 }
 0x612   :  { %v2407_v45 = vadd.f32 %v2406_v20, %v2357_v36  ;;  %v13369_v20 = vld [vmem:[%s19705_s3 + $0x42c] sm:$0xf0] }
 0x613   :  { %v2494_v46 = vpop.f32.mrf.mxu2 }
 0x614   :  { %v2495_v17 = vadd.f32 %v2494_v46, %v2446_v22  ;;  %v2405_v22 = vadd.f32 %v2404_v57, %v2355_v54 }
 0x616   :  { %v2516_v30 = vpack.c.bf16 %v2495_v17, %v2493_v37  ;;  %v2454_v46 = vadd.f32 %v2453_v7, %v2405_v22  ;;  %v2409_v27 = vpop.f32.mrf.mxu0  ;;  %v10779_v17 = vld [vmem:[%s19705_s3 + $0x4e8] sm:$0xf] }
 0x618   :  { %10621 = vmatmul.msk.bf16.gmra.mxu3 %vm1461_vm1, %v2516_v30  ;;  %2950 = vmatmul.bf16.gmra.mxu2 %v10748_v58  ;;  %v13394_v58 = vld [vmem:[%s19705_s3 + $0x4f4] sm:$0xf0]  ;;  %v2456_v30 = vadd.f32 %v2455_v12, %v2407_v45 }
 0x619   :  { %v2360_v37 = vpop.f32.mrf.mxu3  ;;  %v10780_v48 = vor.u32 %v13394_v58, %v10779_v17  ;;  %v10669_v17 = vld [vmem:[%s19705_s3 + $0x418] sm:$0xf0]  ;;  %v13401_v58 = vld [vmem:[%s19705_s3 + $0x524] sm:$0xf] }
 0x61a   :  { %v2410_v18 = vadd.f32 %v2409_v27, %v2360_v37  ;;  %v13364_v37 = vld [vmem:[%s19705_s3 + $0x40c] sm:$0xf] }
 0x61b   :  { %v2497_v38 = vpop.f32.mrf.mxu2 }
 0x61c   :  { %v2498_v61 = vadd.f32 %v2497_v38, %v2449_v3  ;;  %v2458_v3 = vpop.f32.mrf.mxu1 }
 0x61e   :  { %v2411_v57 = vpop.f32.mrf.mxu0 }
 0x621   :  { %v2362_v54 = vpop.f32.mrf.mxu3 }
 0x623   :  { %v2499_v60 = vpop.f32.mrf.mxu2 }
 0x624   :  { %v2500_v42 = vadd.f32 %v2499_v60, %v2451_v35  ;;  %v2412_v35 = vadd.f32 %v2411_v57, %v2362_v54  ;;  %v2460_v60 = vpop.f32.mrf.mxu1  ;;  %v10707_v54 = vld [vmem:[%s19705_s3 + $0x460] sm:$0xf] }
 0x626   :  { %v2517_v24 = vpack.c.bf16 %v2500_v42, %v2498_v61  ;;  %v2459_v61 = vadd.f32 %v2458_v3, %v2410_v18  ;;  %v13397_v42 = vld [vmem:[%s19705_s3 + $0x504] sm:$0xf]  ;;  %v2461_v36 = vadd.f32 %v2460_v60, %v2412_v35  ;;  %v13368_v18 = vld [vmem:[%s19705_s3 + $0x42c] sm:$0xf] }
 0x627   :  { %v13405_v60 = vld [vmem:[%s19705_s3 + $0x544] sm:$0xf] }
 0x628   :  { %10622 = vmatmul.msk.bf16.gmra.mxu3 %vm1461_vm1, %v2517_v24  ;;  %2955 = vmatmul.bf16.gmra.mxu2 %v10764_v31  ;;  %v10841_v31 = vld [vmem:[%s19705_s3 + $0x510] sm:$0xf0]  ;;  %v10675_v24 = vld [vmem:[%s19705_s3 + $0x420] sm:$0xf] }
 0x629   :  { %v10676_v12 = vor.u32 %v13369_v20, %v10675_v24 }
 0x62b   :  { %v2502_v34 = vpop.f32.mrf.mxu2  ;;  %2832 = vmatmul.bf16.gmra.mxu0 %v10676_v12 }
 0x62c   :  { %v2503_v38 = vadd.f32 %v2502_v34, %v2454_v46  ;;  %v10844_v46 = vor.u32 %v13397_v42, %v10841_v31 }
 0x633   :  { %v2504_v33 = vpop.f32.mrf.mxu2 }
 0x634   :  { %v2505_v50 = vadd.f32 %v2504_v33, %v2456_v30  ;;  %v10857_v30 = vld [vmem:[%s19705_s3 + $0x530] sm:$0xf0]  ;;  %v10691_v33 = vld [vmem:[%s19705_s3 + $0x440] sm:$0xf] }
 0x635   :  { %v10860_v3 = vor.u32 %v13401_v58, %v10857_v30 }
 0x636   :  { %v2518_v41 = vpack.c.bf16 %v2505_v50, %v2503_v38  ;;  %v13373_v38 = vld [vmem:[%s19705_s3 + $0x44c] sm:$0xf0] }
 0x637   :  { %v10692_v50 = vor.u32 %v13373_v38, %v10691_v33 }
 0x638   :  { %10623 = vmatmul.msk.bf16.gmra.mxu3 %vm1461_vm1, %v2518_v41  ;;  %2960 = vmatmul.bf16.gmra.mxu2 %v10780_v48  ;;  %v10672_v48 = vor.u32 %v13364_v37, %v10669_v17  ;;  %v10889_v37 = vld [vmem:[%s19705_s3 + $0x570] sm:$0xf0] }
 0x63b   :  { %v2507_v7 = vpop.f32.mrf.mxu2  ;;  %2837 = vmatmul.bf16.gmra.mxu0 %v10692_v50 }
 0x63c   :  { %v2508_v22 = vadd.f32 %v2507_v7, %v2459_v61  ;;  %v13377_v7 = vld [vmem:[%s19705_s3 + $0x46c] sm:$0xf0]  ;;  %v10873_v61 = vld [vmem:[%s19705_s3 + $0x550] sm:$0xf0] }
 0x63d   :  { %v10708_v35 = vor.u32 %v13377_v7, %v10707_v54  ;;  %v10876_v20 = vor.u32 %v13405_v60, %v10873_v61 }
 0x643   :  { %v2509_v34 = vpop.f32.mrf.mxu2 }
 0x644   :  { %v2510_v45 = vadd.f32 %v2509_v34, %v2461_v36 }
 0x646   :  { %v2519_v27 = vpack.c.bf16 %v2510_v45, %v2508_v22  ;;  %v13381_v22 = vld [vmem:[%s19705_s3 + $0x48c] sm:$0xf0]  ;;  %v13372_v45 = vld [vmem:[%s19705_s3 + $0x44c] sm:$0xf] }
 0x648   :  { %10624 = vmatmul.msk.bf16.gmra.mxu3 %vm1461_vm1, %v2519_v27  ;;  %3379 = vmatmul.bf16.vlgmr.msrb.gmra.mxu2 %v10844_v46  ;;  %v13409_v27 = vld [vmem:[%s19705_s3 + $0x564] sm:$0xf] }
 0x649   :  { %v10892_v33 = vor.u32 %v13409_v27, %v10889_v37 }
 0x64b   :  { %2842 = vmatmul.bf16.gmra.mxu0 %v10708_v35  ;;  %v15816_v34 = vpop.f32.mrf.mxu2  ;;  %v10905_v35 = vld [vmem:[%s19705_s3 + $0x590] sm:$0xf0] }
 0x653   :  { %v15842_v38 = vpop.f32.mrf.mxu2 }
 0x658   :  { %2974 = vmatmul.bf16.vlgmr.msra.gmra.mxu3 %v10672_v48  ;;  %3384 = vmatmul.bf16.gmra.mxu2 %v10860_v3  ;;  %v10739_v3 = vld [vmem:[%s19705_s3 + $0x4a0] sm:$0xf] }
 0x659   :  { %3874 = vmatpush.bf16.msra.mxu3 %v19850_v1 }
 0x65b   :  { %v2570_v41 = vpop.f32.mrf.mxu3  ;;  %v15856_v54 = vpop.f32.mrf.mxu2 }
 0x65c   :  { %v15786_v57 = vadd.f32 %v2570_v41, %v15473_v47  ;;  %v10685_v47 = vld [vmem:[%s19705_s3 + $0x438] sm:$0xf0]  ;;  %v13376_v41 = vld [vmem:[%s19705_s3 + $0x46c] sm:$0xf] }
 0x65d   :  { %3875 = vmatpush.bf16.msra.mxu3 %v19851_v52  ;;  %v10688_v24 = vor.u32 %v13368_v18, %v10685_v47  ;;  %v13413_v18 = vld [vmem:[%s19705_s3 + $0x584] sm:$0xf] }
 0x661   :  { %3876 = vmatpush.bf16.msra.mxu3 %v19852_v44 }
 0x663   :  { %v2572_v42 = vpop.f32.mrf.mxu3 }
 0x664   :  { %v15809_v31 = vadd.f32 %v2572_v42, %v15498_v4  ;;  %v10723_v4 = vld [vmem:[%s19705_s3 + $0x480] sm:$0xf]  ;;  %v10908_v42 = vor.u32 %v13413_v18, %v10905_v35  ;;  %v13421_v18 = vld [vmem:[%s19705_s3 + $0x5c4] sm:$0xf]  ;;  %v10937_v35 = vld [vmem:[%s19705_s3 + $0x5d0] sm:$0xf0] }
 0x665   :  { %3877 = vmatpush.bf16.msra.mxu3 %v19853_v21  ;;  %v10724_v46 = vor.u32 %v13381_v22, %v10723_v4  ;;  %v10755_v4 = vld [vmem:[%s19705_s3 + $0x4c0] sm:$0xf]  ;;  %v13380_v22 = vld [vmem:[%s19705_s3 + $0x48c] sm:$0xf] }
 0x667   :  { %2847 = vmatmul.bf16.gmra.mxu0 %v10724_v46  ;;  %v10733_v46 = vld [vmem:[%s19705_s3 + $0x498] sm:$0xf0] }
 0x668   :  { %2979 = vmatmul.bf16.gmra.mxu3 %v10688_v24  ;;  %3389 = vmatmul.bf16.gmra.mxu2 %v10876_v20  ;;  %v15870_v24 = vpop.f32.mrf.mxu2 }
 0x669   :  { %3878 = vmatpush.bf16.msra.mxu3 %v19854_v13 }
 0x66b   :  { %v2575_v36 = vpop.f32.mrf.mxu3 }
 0x66c   :  { %v15814_v12 = vadd.f32 %v2575_v36, %v15505_v6  ;;  %v10701_v6 = vld [vmem:[%s19705_s3 + $0x458] sm:$0xf0] }
 0x66d   :  { %3879 = vmatpush.bf16.msra.mxu3 %v19855_v39  ;;  %v10704_v30 = vor.u32 %v13372_v45, %v10701_v6  ;;  %v10921_v6 = vld [vmem:[%s19705_s3 + $0x5b0] sm:$0xf0] }
 0x671   :  { %3880 = vmatpush.bf16.msra.mxu3 %v19856_v28 }
 0x673   :  { %v2577_v17 = vpop.f32.mrf.mxu3 }
 0x674   :  { %v15839_v58 = vadd.f32 %v2577_v17, %v15530_v56  ;;  %v13385_v56 = vld [vmem:[%s19705_s3 + $0x4ac] sm:$0xf0]  ;;  %v10736_v17 = vor.u32 %v13380_v22, %v10733_v46  ;;  %v13388_v46 = vld [vmem:[%s19705_s3 + $0x4cc] sm:$0xf] }
 0x675   :  { %3881 = vmatpush.bf16.msra.mxu3 %v19857_v51  ;;  %v10740_v7 = vor.u32 %v13385_v56, %v10739_v3  ;;  %v10771_v56 = vld [vmem:[%s19705_s3 + $0x4e0] sm:$0xf] }
 0x677   :  { %2852 = vmatmul.bf16.gmra.mxu0 %v10740_v7  ;;  %v13384_v7 = vld [vmem:[%s19705_s3 + $0x4ac] sm:$0xf] }
 0x678   :  { %2984 = vmatmul.bf16.gmra.mxu3 %v10704_v30  ;;  %3394 = vmatmul.bf16.gmra.mxu2 %v10892_v33  ;;  %v15896_v33 = vpop.f32.mrf.mxu2 }
 0x67b   :  { %v2580_v50 = vpop.f32.mrf.mxu3 }
 0x67c   :  { %v15845_v48 = vadd.f32 %v2580_v50, %v15536_v26  ;;  %v10717_v26 = vld [vmem:[%s19705_s3 + $0x478] sm:$0xf0] }
 0x67d   :  { %v10720_v61 = vor.u32 %v13376_v41, %v10717_v26 }
 0x680   :  { %v15907_v41 = vpop.f32.mrf.mxu2 }
 0x683   :  { %v2582_v47 = vpop.f32.mrf.mxu3 }
 0x684   :  { %v15868_v60 = vadd.f32 %v2582_v47, %v15557_v16  ;;  %v13389_v16 = vld [vmem:[%s19705_s3 + $0x4cc] sm:$0xf0] }
 0x685   :  { %v10756_v45 = vor.u32 %v13389_v16, %v10755_v4  ;;  %v13464_v4 = vld [vmem:[%s19706_s4 + $0x68] sm:$0xff]  ;;  %v13463_v16 = vld [vmem:[%s19706_s4 + $0x60] sm:$0xff] }
 0x686   :  { %4076 = vmatpush.bf16.msrb.mxu2 %v13464_v4 }
 0x687   :  { %2857 = vmatmul.bf16.gmra.mxu0 %v10756_v45 }
 0x688   :  { %2989 = vmatmul.bf16.gmra.mxu3 %v10720_v61  ;;  %3399 = vmatmul.bf16.gmra.mxu2 %v10908_v42  ;;  %v15930_v22 = vpop.f32.mrf.mxu2 }
 0x68a   :  { %4077 = vmatpush.bf16.msrb.mxu2 %v13463_v16 }
 0x68b   :  { %v2585_v20 = vpop.f32.mrf.mxu3 }
 0x68c   :  { %v15873_v36 = vadd.f32 %v2585_v20, %v15562_v15  ;;  %v13417_v15 = vld [vmem:[%s19705_s3 + $0x5a4] sm:$0xf]  ;;  %v10940_v20 = vor.u32 %v13421_v18, %v10937_v35 }
 0x68d   :  { %v10924_v30 = vor.u32 %v13417_v15, %v10921_v6  ;;  %v10765_v15 = vld [vmem:[%s19705_s3 + $0x4d8] sm:$0xf0]  ;;  %v13425_v6 = vld [vmem:[%s19705_s3 + $0x5e4] sm:$0xf] }
 0x693   :  { %v2587_v27 = vpop.f32.mrf.mxu3 }
 0x694   :  { %v15894_v37 = vadd.f32 %v2587_v27, %v15585_v11  ;;  %v13393_v11 = vld [vmem:[%s19705_s3 + $0x4ec] sm:$0xf0]  ;;  %v10953_v27 = vld [vmem:[%s19705_s3 + $0x5f0] sm:$0xf0] }
 0x695   :  { %v10772_v26 = vor.u32 %v13393_v11, %v10771_v56  ;;  %v10956_v56 = vor.u32 %v13425_v6, %v10953_v27  ;;  %v2877_v11 = vpop.f32.mrf.mxu1 }
 0x697   :  { %2862 = vmatmul.bf16.gmra.mxu0 %v10772_v26 }
 0x698   :  { %2994 = vmatmul.bf16.gmra.mxu3 %v10736_v17  ;;  %3404 = vmatmul.bf16.gmra.mxu2 %v10924_v30  ;;  %v15947_v17 = vpop.f32.mrf.mxu2 }
 0x69b   :  { %v2590_v50 = vpop.f32.mrf.mxu3 }
 0x69c   :  { %v15899_v3 = vadd.f32 %v2590_v50, %v15596_v10  ;;  %v10749_v10 = vld [vmem:[%s19705_s3 + $0x4b8] sm:$0xf0]  ;;  %v10768_v50 = vor.u32 %v13388_v46, %v10765_v15 }
 0x69d   :  { %v10752_v42 = vor.u32 %v13384_v7, %v10749_v10  ;;  %v2828_v7 = vpop.f32.mrf.mxu0  ;;  %v2879_v35 = vpop.f32.mrf.mxu1 }
 0x6a0   :  { %v15955_v18 = vpop.f32.mrf.mxu2 }
 0x6a3   :  { %v2592_v47 = vpop.f32.mrf.mxu3 }
 0x6a4   :  { %v15922_v61 = vadd.f32 %v2592_v47, %v15619_v40 }
 0x6a5   :  { %v2830_v47 = vpop.f32.mrf.mxu0  ;;  %v2882_v6 = vpop.f32.mrf.mxu1 }
 0x6a8   :  { %2999 = vmatmul.bf16.gmra.mxu3 %v10752_v42  ;;  %3409 = vmatmul.bf16.gmra.mxu2 %v10940_v20  ;;  %v13392_v42 = vld [vmem:[%s19705_s3 + $0x4ec] sm:$0xf]  ;;  %v11019_v20 = vld [vmem:[%s19705_s3 + $0x600] sm:$0xf]  ;;  %v15972_v15 = vpop.f32.mrf.mxu2 }
 0x6ab   :  { %v2595_v45 = vpop.f32.mrf.mxu3 }
 0x6ac   :  { %v15933_v40 = vadd.f32 %v2595_v45, %v15622_v32 }
 0x6ad   :  { %v2833_v27 = vpop.f32.mrf.mxu0 }
 0x6b3   :  { %v2597_v32 = vpop.f32.mrf.mxu3 }
 0x6b4   :  { %v15950_v30 = vadd.f32 %v2597_v32, %v15640_v23  ;;  %v10781_v23 = vld [vmem:[%s19705_s3 + $0x4f8] sm:$0xf0] }
 0x6b5   :  { %v10784_v45 = vor.u32 %v13392_v42, %v10781_v23  ;;  %v2835_v23 = vpop.f32.mrf.mxu0 }
 0x6b8   :  { %3004 = vmatmul.bf16.gmra.mxu3 %v10768_v50  ;;  %3414 = vmatmul.bf16.gmra.mxu2 %v10956_v56  ;;  %v13400_v56 = vld [vmem:[%s19705_s3 + $0x514] sm:$0xf0] }
 0x6bb   :  { %v2600_v26 = vpop.f32.mrf.mxu3 }
 0x6bc   :  { %v15953_v10 = vadd.f32 %v2600_v26, %v15646_v2  ;;  %v13433_v2 = vld [vmem:[%s19705_s3 + $0x60c] sm:$0xf0]  ;;  %v2884_v26 = vpop.f32.mrf.mxu1 }
 0x6bd   :  { %v11020_v46 = vor.u32 %v13433_v2, %v11019_v20  ;;  %v19885_v2 = vld [vmem:[#allocation6_spill] sm:$0xff] }
 0x6c3   :  { %v2602_v4 = vpop.f32.mrf.mxu3 }
 0x6c4   :  { %v15970_v16 = vadd.f32 %v2602_v4, %v15658_v8  ;;  %v10847_v8 = vld [vmem:[%s19705_s3 + $0x508] sm:$0xf]  ;;  %v19886_v4 = vld [vmem:[#allocation29_spill] sm:$0xff] }
 0x6c8   :  { %3009 = vmatmul.bf16.gmra.mxu3 %v10784_v45  ;;  %3833 = vmatmul.bf16.vlgmr.msra.gmra.mxu2 %v11020_v46  ;;  %v2878_v46 = vadd.f32 %v2877_v11, %v2828_v7  ;;  %v13404_v11 = vld [vmem:[%s19705_s3 + $0x534] sm:$0xf0] }
 0x6c9   :  { %4475 = vmatpush.bf16.msra.mxu2 %v14469_v14  ;;  %v2838_v14 = vpop.f32.mrf.mxu0 }
 0x6cb   :  { %v2605_v32 = vpop.f32.mrf.mxu3 }
 0x6cc   :  { %v15976_v50 = vadd.f32 %v2605_v32, %v15663_v53  ;;  %v10848_v53 = vor.u32 %v13400_v56, %v10847_v8  ;;  %v2887_v32 = vpop.f32.mrf.mxu1  ;;  %v19890_v8 = vld [vmem:[#allocation31_spill] sm:$0xff] }
 0x6cd   :  { %4476 = vmatpush.bf16.msra.mxu2 %v14479_v55  ;;  %v19888_v55 = vld [vmem:[#allocation30_spill] sm:$0xff]  ;;  %v10863_v56 = vld [vmem:[%s19705_s3 + $0x528] sm:$0xf] }
 0x6ce   :  { %19884 = vst [vmem:[#allocation35_spill] sm:$0xff] %v15976_v50  ;;  %v2880_v50 = vadd.f32 %v2879_v35, %v2830_v47  ;;  %v10864_v35 = vor.u32 %v13404_v11, %v10863_v56  ;;  %v10879_v11 = vld [vmem:[%s19705_s3 + $0x548] sm:$0xf] }
 0x6d0   :  { %v2929_v7 = vadd.f32 %v15842_v38, %v2880_v50  ;;  %v2883_v38 = vadd.f32 %v2882_v6, %v2833_v27  ;;  %v19892_v50 = vld [vmem:[#allocation4_spill] sm:$0xff]  ;;  %v13408_v6 = vld [vmem:[%s19705_s3 + $0x554] sm:$0xf0] }
 0x6d1   :  { %4477 = vmatpush.bf16.msra.mxu2 %v14487_v63  ;;  %v19887_v63 = vld [vmem:[#allocation7_spill] sm:$0xff] }
 0x6d3   :  { %v2607_v42 = vpop.f32.mrf.mxu3 }
 0x6d4   :  { %v15987_v20 = vadd.f32 %v2607_v42, %v15675_v19  ;;  %v2927_v19 = vadd.f32 %v15816_v34, %v2878_v46  ;;  %v19889_v42 = vld [vmem:[#allocation8_spill] sm:$0xff]  ;;  %v2889_v46 = vpop.f32.mrf.mxu1 }
 0x6d5   :  { %4478 = vmatpush.bf16.msra.mxu2 %v14518_v25  ;;  %v19891_v34 = vld [vmem:[#allocation32_spill] sm:$0xff] }
 0x6d8   :  { %3428 = vmatmul.bf16.vlgmr.msrb.gmra.mxu3 %v10848_v53 }
 0x6d9   :  { %4328 = vmatpush.bf16.msrb.mxu3 %v19885_v2  ;;  %4479 = vmatpush.bf16.msra.mxu2 %v19886_v4 }
 0x6db   :  { %v2975_v45 = vpop.f32.mrf.mxu3 }
 0x6dc   :  { %v2892_v56 = vpop.f32.mrf.mxu1 }
 0x6dd   :  { %4329 = vmatpush.bf16.msrb.mxu3 %v19887_v63  ;;  %4480 = vmatpush.bf16.msra.mxu2 %v19888_v55  ;;  %v2976_v55 = vadd.f32 %v2975_v45, %v2927_v19  ;;  %v2885_v45 = vadd.f32 %v2884_v26, %v2835_v23  ;;  %v2932_v19 = vadd.f32 %v15856_v54, %v2883_v38 }
 0x6de   :  { %v10880_v54 = vor.u32 %v13408_v6, %v10879_v11  ;;  %v13412_v11 = vld [vmem:[%s19705_s3 + $0x574] sm:$0xf0] }
 0x6e1   :  { %4330 = vmatpush.bf16.msrb.mxu3 %v19889_v42  ;;  %4481 = vmatpush.bf16.msra.mxu2 %v19890_v8  ;;  %v2840_v8 = vpop.f32.mrf.mxu0 }
 0x6e3   :  { %v2977_v53 = vpop.f32.mrf.mxu3 }
 0x6e4   :  { %v2978_v63 = vadd.f32 %v2977_v53, %v2929_v7  ;;  %v2934_v7 = vadd.f32 %v15870_v24, %v2885_v45  ;;  %v2890_v24 = vadd.f32 %v2889_v46, %v2840_v8  ;;  %v19896_v45 = vld [vmem:[#allocation19_spill] sm:$0xff] }
 0x6e5   :  { %4331 = vmatpush.bf16.msrb.mxu3 %v19874_v43  ;;  %4482 = vmatpush.bf16.msra.mxu2 %v19891_v34 }
 0x6e6   :  { %v3015_v47 = vpack.c.bf16 %v2978_v63, %v2976_v55  ;;  %v19893_v55 = vld [vmem:[#allocation22_spill] sm:$0xff]  ;;  %v19894_v63 = vld [vmem:[#allocation3_spill] sm:$0xff]  ;;  %v2939_v6 = vadd.f32 %v15907_v41, %v2890_v24 }
 0x6e7   :  { %v10911_v41 = vld [vmem:[%s19705_s3 + $0x588] sm:$0xf] }
 0x6e8   :  { %10797 = vmatmul.msk.bf16.vlgmr.msra.gmra.mxu0 %vm1461_vm1, %v3015_v47  ;;  %3433 = vmatmul.bf16.gmra.mxu3 %v10864_v35  ;;  %v2894_v47 = vpop.f32.mrf.mxu1 }
 0x6e9   :  { %3923 = vmatpush.bf16.msra.mxu0 %v14188_v62  ;;  %4332 = vmatpush.bf16.msrb.mxu3 %v19875_v49  ;;  %v2843_v27 = vpop.f32.mrf.mxu0 }
 0x6eb   :  { %v2980_v42 = vpop.f32.mrf.mxu3 }
 0x6ec   :  { %v2981_v26 = vadd.f32 %v2980_v42, %v2932_v19  ;;  %v10895_v19 = vld [vmem:[%s19705_s3 + $0x568] sm:$0xf] }
 0x6ed   :  { %3924 = vmatpush.bf16.msra.mxu0 %v19876_v0  ;;  %4333 = vmatpush.bf16.msrb.mxu3 %v19892_v50  ;;  %v2888_v50 = vadd.f32 %v2887_v32, %v2838_v14  ;;  %v10896_v32 = vor.u32 %v13412_v11, %v10895_v19 }
 0x6ef   :  { %v2937_v42 = vadd.f32 %v15896_v33, %v2888_v50  ;;  %v2893_v50 = vadd.f32 %v2892_v56, %v2843_v27 }
 0x6f1   :  { %3925 = vmatpush.bf16.msra.mxu0 %v19893_v55  ;;  %4334 = vmatpush.bf16.msrb.mxu3 %v19894_v63  ;;  %v2845_v63 = vpop.f32.mrf.mxu0  ;;  %v19895_v55 = vld [vmem:[#allocation20_spill] sm:$0xff] }
 0x6f3   :  { %v2982_v53 = vpop.f32.mrf.mxu3 }
 0x6f4   :  { %v2983_v23 = vadd.f32 %v2982_v53, %v2934_v7 }
 0x6f5   :  { %3926 = vmatpush.bf16.msra.mxu0 %v14219_v29  ;;  %4335 = vmatpush.bf16.msrb.mxu3 %v19880_v5 }
 0x6f6   :  { %v3016_v35 = vpack.c.bf16 %v2983_v23, %v2981_v26  ;;  %v2897_v26 = vpop.f32.mrf.mxu1  ;;  %v2895_v23 = vadd.f32 %v2894_v47, %v2845_v63 }
 0x6f8   :  { %10798 = vmatmul.msk.bf16.gmra.mxu0 %vm1461_vm1, %v3016_v35  ;;  %3438 = vmatmul.bf16.gmra.mxu3 %v10880_v54  ;;  %v2944_v24 = vadd.f32 %v15947_v17, %v2895_v23  ;;  %v10927_v17 = vld [vmem:[%s19705_s3 + $0x5a8] sm:$0xf] }
 0x6f9   :  { %3927 = vmatpush.bf16.msra.mxu0 %v14135_v9  ;;  %v2848_v33 = vpop.f32.mrf.mxu0 }
 0x6fa   :  { %v2898_v47 = vadd.f32 %v2897_v26, %v2848_v33 }
 0x6fb   :  { %v2985_v38 = vpop.f32.mrf.mxu3 }
 0x6fc   :  { %v2986_v53 = vadd.f32 %v2985_v38, %v2937_v42  ;;  %v13416_v38 = vld [vmem:[%s19705_s3 + $0x594] sm:$0xf0] }
 0x6fd   :  { %3928 = vmatpush.bf16.msra.mxu0 %v19895_v55 }
 0x6fe   :  { %v2899_v54 = vpop.f32.mrf.mxu1 }
 0x701   :  { %3929 = vmatpush.bf16.msra.mxu0 %v19896_v45  ;;  %v2850_v35 = vpop.f32.mrf.mxu0  ;;  %v2942_v45 = vadd.f32 %v15930_v22, %v2893_v50 }
 0x703   :  { %v2987_v7 = vpop.f32.mrf.mxu3 }
 0x704   :  { %v2988_v14 = vadd.f32 %v2987_v7, %v2939_v6  ;;  %v10912_v6 = vor.u32 %v13416_v38, %v10911_v41  ;;  %v2951_v7 = vpop.f32.mrf.mxu2 }
 0x705   :  { %3930 = vmatpush.bf16.msra.mxu0 %v19883_v59 }
 0x706   :  { %v3017_v8 = vpack.c.bf16 %v2988_v14, %v2986_v53  ;;  %v2902_v63 = vpop.f32.mrf.mxu1  ;;  %v2900_v53 = vadd.f32 %v2899_v54, %v2850_v35  ;;  %v2947_v14 = vadd.f32 %v15955_v18, %v2898_v47 }
 0x708   :  { %10799 = vmatmul.msk.bf16.gmra.mxu0 %vm1461_vm1, %v3017_v8  ;;  %3443 = vmatmul.bf16.gmra.mxu3 %v10896_v32  ;;  %v2949_v32 = vadd.f32 %v15972_v15, %v2900_v53  ;;  %v10943_v15 = vld [vmem:[%s19705_s3 + $0x5c8] sm:$0xf] }
 0x709   :  { %v2853_v22 = vpop.f32.mrf.mxu0 }
 0x70a   :  { %v2903_v35 = vadd.f32 %v2902_v63, %v2853_v22 }
 0x70b   :  { %v2990_v46 = vpop.f32.mrf.mxu3 }
 0x70c   :  { %v2991_v19 = vadd.f32 %v2990_v46, %v2942_v45  ;;  %v13420_v45 = vld [vmem:[%s19705_s3 + $0x5b4] sm:$0xf0]  ;;  %v2953_v54 = vpop.f32.mrf.mxu2 }
 0x70d   :  { %v10928_v26 = vor.u32 %v13420_v45, %v10927_v17 }
 0x70e   :  { %v2904_v8 = vpop.f32.mrf.mxu1 }
 0x711   :  { %v2855_v50 = vpop.f32.mrf.mxu0 }
 0x713   :  { %v2992_v42 = vpop.f32.mrf.mxu3 }
 0x714   :  { %v2993_v11 = vadd.f32 %v2992_v42, %v2944_v24  ;;  %v2905_v42 = vadd.f32 %v2904_v8, %v2855_v50 }
 0x716   :  { %v3018_v56 = vpack.c.bf16 %v2993_v11, %v2991_v19  ;;  %v2907_v38 = vpop.f32.mrf.mxu1  ;;  %v2952_v19 = vadd.f32 %v2951_v7, %v2903_v35  ;;  %v2956_v11 = vpop.f32.mrf.mxu2 }
 0x718   :  { %10800 = vmatmul.msk.bf16.gmra.mxu0 %vm1461_vm1, %v3018_v56  ;;  %3448 = vmatmul.bf16.gmra.mxu3 %v10912_v6  ;;  %v13424_v6 = vld [vmem:[%s19705_s3 + $0x5d4] sm:$0xf0]  ;;  %v2954_v56 = vadd.f32 %v2953_v54, %v2905_v42 }
 0x719   :  { %v2858_v24 = vpop.f32.mrf.mxu0 }
 0x71b   :  { %v2995_v27 = vpop.f32.mrf.mxu3 }
 0x71c   :  { %v2996_v23 = vadd.f32 %v2995_v27, %v2947_v14  ;;  %v10944_v14 = vor.u32 %v13424_v6, %v10943_v15 }
 0x71e   :  { %v2909_v63 = vpop.f32.mrf.mxu1  ;;  %v2958_v7 = vpop.f32.mrf.mxu2 }
 0x721   :  { %v2860_v22 = vpop.f32.mrf.mxu0 }
 0x722   :  { %v2910_v8 = vadd.f32 %v2909_v63, %v2860_v22  ;;  %v13431_v63 = vld [vmem:[%s19705_s3 + $0x604] sm:$0xf]  ;;  %v11021_v22 = vld [vmem:[%s19705_s3 + $0x610] sm:$0xf0] }
 0x723   :  { %v2997_v46 = vpop.f32.mrf.mxu3 }
 0x724   :  { %v2998_v41 = vadd.f32 %v2997_v46, %v2949_v32  ;;  %v2908_v32 = vadd.f32 %v2907_v38, %v2858_v24  ;;  %v10855_v38 = vld [vmem:[%s19705_s3 + $0x520] sm:$0xf]  ;;  %v13403_v24 = vld [vmem:[%s19705_s3 + $0x52c] sm:$0xf0] }
 0x725   :  { %v10856_v6 = vor.u32 %v13403_v24, %v10855_v38  ;;  %v10887_v24 = vld [vmem:[%s19705_s3 + $0x560] sm:$0xf] }
 0x726   :  { %v3019_v33 = vpack.c.bf16 %v2998_v41, %v2996_v23  ;;  %v2957_v46 = vadd.f32 %v2956_v11, %v2908_v32  ;;  %v2912_v50 = vpop.f32.mrf.mxu1  ;;  %v10959_v41 = vld [vmem:[%s19705_s3 + $0x5e8] sm:$0xf] }
 0x727   :  { %3335 = vmatmul.bf16.gmra.mxu1 %v10856_v6 }
 0x728   :  { %10801 = vmatmul.msk.bf16.gmra.mxu0 %vm1461_vm1, %v3019_v33  ;;  %3453 = vmatmul.bf16.gmra.mxu3 %v10928_v26  ;;  %v13428_v26 = vld [vmem:[%s19705_s3 + $0x5f4] sm:$0xf0]  ;;  %v2959_v33 = vadd.f32 %v2958_v7, %v2910_v8 }
 0x729   :  { %v2863_v23 = vpop.f32.mrf.mxu0  ;;  %v10960_v42 = vor.u32 %v13428_v26, %v10959_v41 }
 0x72b   :  { %v3000_v18 = vpop.f32.mrf.mxu3 }
 0x72c   :  { %v3001_v47 = vadd.f32 %v3000_v18, %v2952_v19  ;;  %v2961_v19 = vpop.f32.mrf.mxu2 }
 0x72e   :  { %v2914_v11 = vpop.f32.mrf.mxu1 }
 0x733   :  { %v3002_v27 = vpop.f32.mrf.mxu3 }
 0x734   :  { %v3003_v53 = vadd.f32 %v3002_v27, %v2954_v56  ;;  %v2865_v56 = vpop.f32.mrf.mxu0 }
 0x736   :  { %v3020_v17 = vpack.c.bf16 %v3003_v53, %v3001_v47  ;;  %v2913_v47 = vadd.f32 %v2912_v50, %v2863_v23  ;;  %v2915_v53 = vadd.f32 %v2914_v11, %v2865_v56  ;;  %v10871_v50 = vld [vmem:[%s19705_s3 + $0x540] sm:$0xf]  ;;  %v13407_v23 = vld [vmem:[%s19705_s3 + $0x54c] sm:$0xf0] }
 0x737   :  { %v10872_v26 = vor.u32 %v13407_v23, %v10871_v50  ;;  %v13411_v11 = vld [vmem:[%s19705_s3 + $0x56c] sm:$0xf0]  ;;  %v10881_v50 = vld [vmem:[%s19705_s3 + $0x558] sm:$0xf0]  ;;  %v13443_v23 = vld [vmem:[%s19705_s3 + $0x664] sm:$0xf] }
 0x738   :  { %10802 = vmatmul.msk.bf16.gmra.mxu0 %vm1461_vm1, %v3020_v17  ;;  %3458 = vmatmul.bf16.gmra.mxu3 %v10944_v14  ;;  %v2963_v14 = vpop.f32.mrf.mxu2  ;;  %v2962_v17 = vadd.f32 %v2961_v19, %v2913_v47  ;;  %v10888_v6 = vor.u32 %v13411_v11, %v10887_v24  ;;  %v10865_v47 = vld [vmem:[%s19705_s3 + $0x538] sm:$0xf0] }
 0x739   :  { %v2964_v7 = vadd.f32 %v2963_v14, %v2915_v53  ;;  %3340 = vmatmul.bf16.gmra.mxu1 %v10872_v26  ;;  %v13439_v53 = vld [vmem:[%s19705_s3 + $0x644] sm:$0xf]  ;;  %v11053_v14 = vld [vmem:[%s19705_s3 + $0x650] sm:$0xf0] }
 0x73a   :  { %v11069_v26 = vld [vmem:[%s19705_s3 + $0x670] sm:$0xf0] }
 0x73b   :  { %v3005_v45 = vpop.f32.mrf.mxu3 }
 0x73c   :  { %v3006_v18 = vadd.f32 %v3005_v45, %v2957_v46  ;;  %v11024_v46 = vor.u32 %v13431_v63, %v11021_v22 }
 0x743   :  { %v3007_v54 = vpop.f32.mrf.mxu3 }
 0x744   :  { %v3008_v35 = vadd.f32 %v3007_v54, %v2959_v33  ;;  %v13398_v33 = vld [vmem:[%s19705_s3 + $0x50c] sm:$0xf]  ;;  %v10849_v54 = vld [vmem:[%s19705_s3 + $0x518] sm:$0xf0] }
 0x746   :  { %v3021_v15 = vpack.c.bf16 %v3008_v35, %v3006_v18  ;;  %v13435_v18 = vld [vmem:[%s19705_s3 + $0x624] sm:$0xf]  ;;  %v11037_v35 = vld [vmem:[%s19705_s3 + $0x630] sm:$0xf0] }
 0x747   :  { %v11040_v19 = vor.u32 %v13435_v18, %v11037_v35 }
 0x748   :  { %10803 = vmatmul.msk.bf16.gmra.mxu0 %vm1461_vm1, %v3021_v15  ;;  %3463 = vmatmul.bf16.gmra.mxu3 %v10960_v42  ;;  %v10852_v42 = vor.u32 %v13398_v33, %v10849_v54  ;;  %v11072_v33 = vor.u32 %v13443_v23, %v11069_v26  ;;  %v11101_v23 = vld [vmem:[%s19705_s3 + $0x6b0] sm:$0xf0] }
 0x749   :  { %3345 = vmatmul.bf16.gmra.mxu1 %v10888_v6 }
 0x74b   :  { %v3010_v27 = vpop.f32.mrf.mxu3 }
 0x74c   :  { %v3011_v32 = vadd.f32 %v3010_v27, %v2962_v17  ;;  %v13402_v27 = vld [vmem:[%s19705_s3 + $0x52c] sm:$0xf]  ;;  %v11056_v17 = vor.u32 %v13439_v53, %v11053_v14 }
 0x753   :  { %v3012_v45 = vpop.f32.mrf.mxu3 }
 0x754   :  { %v3013_v8 = vadd.f32 %v3012_v45, %v2964_v7  ;;  %v10903_v7 = vld [vmem:[%s19705_s3 + $0x580] sm:$0xf]  ;;  %v13415_v45 = vld [vmem:[%s19705_s3 + $0x58c] sm:$0xf0] }
 0x756   :  { %v3022_v41 = vpack.c.bf16 %v3013_v8, %v3011_v32  ;;  %v10904_v32 = vor.u32 %v13415_v45, %v10903_v7 }
 0x758   :  { %10804 = vmatmul.msk.bf16.gmra.mxu0 %vm1461_vm1, %v3022_v41  ;;  %3882 = vmatmul.bf16.vlgmr.msra.gmra.mxu3 %v11024_v46  ;;  %v13406_v41 = vld [vmem:[%s19705_s3 + $0x54c] sm:$0xf] }
 0x759   :  { %3350 = vmatmul.bf16.gmra.mxu1 %v10904_v32 }
 0x75b   :  { %v16138_v8 = vpop.f32.mrf.mxu3 }
 0x763   :  { %v16161_v35 = vpop.f32.mrf.mxu3 }
 0x765   :  { %v3073_v15 = vpop.f32.mrf.mxu0 }
 0x766   :  { %v16101_v38 = vadd.f32 %v3073_v15, %v15786_v57 }
 0x768   :  { %3477 = vmatmul.bf16.vlgmr.msrb.gmra.mxu0 %v10852_v42  ;;  %3887 = vmatmul.bf16.gmra.mxu3 %v11040_v19  ;;  %v10919_v42 = vld [vmem:[%s19705_s3 + $0x5a0] sm:$0xf]  ;;  %v13419_v19 = vld [vmem:[%s19705_s3 + $0x5ac] sm:$0xf0] }
 0x769   :  { %4377 = vmatpush.bf16.msrb.mxu0 %v19850_v1  ;;  %v10920_v15 = vor.u32 %v13419_v19, %v10919_v42  ;;  %v10951_v42 = vld [vmem:[%s19705_s3 + $0x5e0] sm:$0xf]  ;;  %v13427_v19 = vld [vmem:[%s19705_s3 + $0x5ec] sm:$0xf0] }
 0x76b   :  { %3355 = vmatmul.bf16.gmra.mxu1 %v10920_v15  ;;  %v16175_v6 = vpop.f32.mrf.mxu3  ;;  %v10952_v15 = vor.u32 %v13427_v19, %v10951_v42 }
 0x76d   :  { %4378 = vmatpush.bf16.msrb.mxu0 %v19851_v52  ;;  %v3075_v56 = vpop.f32.mrf.mxu0 }
 0x76e   :  { %v16112_v57 = vadd.f32 %v3075_v56, %v15809_v31  ;;  %v10868_v31 = vor.u32 %v13402_v27, %v10865_v47  ;;  %v10897_v56 = vld [vmem:[%s19705_s3 + $0x578] sm:$0xf0]  ;;  %v13447_v27 = vld [vmem:[%s19705_s3 + $0x684] sm:$0xf]  ;;  %v11085_v47 = vld [vmem:[%s19705_s3 + $0x690] sm:$0xf0] }
 0x76f   :  { %v11088_v53 = vor.u32 %v13447_v27, %v11085_v47  ;;  %v13418_v27 = vld [vmem:[%s19705_s3 + $0x5ac] sm:$0xf]  ;;  %v10929_v47 = vld [vmem:[%s19705_s3 + $0x5b8] sm:$0xf0] }
 0x771   :  { %4379 = vmatpush.bf16.msrb.mxu0 %v19852_v44 }
 0x773   :  { %v16195_v7 = vpop.f32.mrf.mxu3 }
 0x775   :  { %4380 = vmatpush.bf16.msrb.mxu0 %v19853_v21  ;;  %v3078_v63 = vpop.f32.mrf.mxu0 }
 0x776   :  { %v16129_v22 = vadd.f32 %v3078_v63, %v15814_v12  ;;  %v13423_v63 = vld [vmem:[%s19705_s3 + $0x5cc] sm:$0xf0] }
 0x778   :  { %3482 = vmatmul.bf16.gmra.mxu0 %v10868_v31  ;;  %3892 = vmatmul.bf16.gmra.mxu3 %v11056_v17  ;;  %v10935_v17 = vld [vmem:[%s19705_s3 + $0x5c0] sm:$0xf] }
 0x779   :  { %4381 = vmatpush.bf16.msrb.mxu0 %v19854_v13  ;;  %v10936_v45 = vor.u32 %v13423_v63, %v10935_v17 }
 0x77b   :  { %3360 = vmatmul.bf16.gmra.mxu1 %v10936_v45  ;;  %v13497_v45 = vld [vmem:[%s19706_s4 + $0x70] sm:$0xff] }
 0x77d   :  { %4382 = vmatpush.bf16.msrb.mxu0 %v19855_v39  ;;  %v3080_v12 = vpop.f32.mrf.mxu0 }
 0x77e   :  { %v16142_v46 = vadd.f32 %v3080_v12, %v15839_v58  ;;  %v10884_v58 = vor.u32 %v13406_v41, %v10881_v50  ;;  %v10913_v41 = vld [vmem:[%s19705_s3 + $0x598] sm:$0xf0]  ;;  %v13451_v50 = vld [vmem:[%s19705_s3 + $0x6a4] sm:$0xf] }
 0x781   :  { %4383 = vmatpush.bf16.msrb.mxu0 %v19856_v28 }
 0x785   :  { %4384 = vmatpush.bf16.msrb.mxu0 %v19857_v51  ;;  %v3083_v54 = vpop.f32.mrf.mxu0 }
 0x786   :  { %v16159_v18 = vadd.f32 %v3083_v54, %v15845_v48  ;;  %v13410_v48 = vld [vmem:[%s19705_s3 + $0x56c] sm:$0xf] }
 0x788   :  { %3487 = vmatmul.bf16.gmra.mxu0 %v10884_v58  ;;  %3897 = vmatmul.bf16.gmra.mxu3 %v11072_v33  ;;  %v11104_v58 = vor.u32 %v13451_v50, %v11101_v23  ;;  %v3331_v50 = vpop.f32.mrf.mxu1  ;;  %v3380_v23 = vpop.f32.mrf.mxu2 }
 0x78b   :  { %3365 = vmatmul.bf16.gmra.mxu1 %v10952_v15 }
 0x78d   :  { %v3085_v24 = vpop.f32.mrf.mxu0 }
 0x78e   :  { %v16170_v11 = vadd.f32 %v3085_v24, %v15868_v60  ;;  %v10900_v60 = vor.u32 %v13410_v48, %v10897_v56 }
 0x795   :  { %v3088_v14 = vpop.f32.mrf.mxu0 }
 0x796   :  { %v16187_v31 = vadd.f32 %v3088_v14, %v15873_v36  ;;  %v13414_v36 = vld [vmem:[%s19705_s3 + $0x58c] sm:$0xf] }
 0x797   :  { %v10916_v26 = vor.u32 %v13414_v36, %v10913_v41 }
 0x798   :  { %3492 = vmatmul.bf16.gmra.mxu0 %v10900_v60  ;;  %3902 = vmatmul.bf16.gmra.mxu3 %v11088_v53  ;;  %v11117_v60 = vld [vmem:[%s19705_s3 + $0x6d0] sm:$0xf0]  ;;  %v10932_v53 = vor.u32 %v13418_v27, %v10929_v47  ;;  %v3382_v27 = vpop.f32.mrf.mxu2 }
 0x79d   :  { %v3090_v32 = vpop.f32.mrf.mxu0 }
 0x79e   :  { %v16198_v12 = vadd.f32 %v3090_v32, %v15894_v37  ;;  %v16212_v37 = vpop.f32.mrf.mxu3 }
 0x7a5   :  { %v3093_v33 = vpop.f32.mrf.mxu0 }
 0x7a6   :  { %v16215_v54 = vadd.f32 %v3093_v33, %v15899_v3  ;;  %v16226_v56 = vpop.f32.mrf.mxu3  ;;  %v13498_v3 = vld [vmem:[%s19706_s4 + $0x78] sm:$0xff]  ;;  %v11133_v33 = vld [vmem:[%s19705_s3 + $0x6f0] sm:$0xf0] }
 0x7a7   :  { %4579 = vmatpush.bf16.msra.mxu3 %v13498_v3  ;;  %v3333_v3 = vpop.f32.mrf.mxu1 }
 0x7a8   :  { %3497 = vmatmul.bf16.gmra.mxu0 %v10916_v26  ;;  %3907 = vmatmul.bf16.gmra.mxu3 %v11104_v58  ;;  %v10945_v26 = vld [vmem:[%s19705_s3 + $0x5d8] sm:$0xf0]  ;;  %v13459_v58 = vld [vmem:[%s19705_s3 + $0x6e4] sm:$0xf] }
 0x7a9   :  { %v11136_v19 = vor.u32 %v13459_v58, %v11133_v33  ;;  %v19900_v58 = vld [vmem:[#allocation35_spill] sm:$0xff] }
 0x7ab   :  { %4580 = vmatpush.bf16.msra.mxu3 %v13497_v45 }
 0x7ad   :  { %v3095_v24 = vpop.f32.mrf.mxu0 }
 0x7ae   :  { %v16224_v48 = vadd.f32 %v3095_v24, %v15922_v61  ;;  %v13455_v61 = vld [vmem:[%s19705_s3 + $0x6c4] sm:$0xf]  ;;  %v16249_v32 = vpop.f32.mrf.mxu3 }
 0x7af   :  { %v11120_v14 = vor.u32 %v13455_v61, %v11117_v60  ;;  %v3336_v45 = vpop.f32.mrf.mxu1 }
 0x7b5   :  { %v3098_v17 = vpop.f32.mrf.mxu0 }
 0x7b6   :  { %v16244_v63 = vadd.f32 %v3098_v17, %v15933_v40  ;;  %v13422_v40 = vld [vmem:[%s19705_s3 + $0x5cc] sm:$0xf]  ;;  %v13467_v17 = vld [vmem:[%s19705_s3 + $0x70c] sm:$0xf0] }
 0x7b7   :  { %v10948_v42 = vor.u32 %v13422_v40, %v10945_v26 }
 0x7b8   :  { %3502 = vmatmul.bf16.gmra.mxu0 %v10932_v53  ;;  %3912 = vmatmul.bf16.gmra.mxu3 %v11120_v14  ;;  %v13426_v53 = vld [vmem:[%s19705_s3 + $0x5ec] sm:$0xf]  ;;  %v10961_v14 = vld [vmem:[%s19705_s3 + $0x5f8] sm:$0xf0] }
 0x7bd   :  { %v3100_v36 = vpop.f32.mrf.mxu0 }
 0x7be   :  { %v16252_v41 = vadd.f32 %v3100_v36, %v15950_v30  ;;  %v16266_v30 = vpop.f32.mrf.mxu3  ;;  %v3385_v36 = vpop.f32.mrf.mxu2 }
 0x7c0   :  { %19897 = vst [vmem:[#allocation37_spill] sm:$0xff] %v16252_v41 }
 0x7c5   :  { %v3103_v15 = vpop.f32.mrf.mxu0 }
 0x7c6   :  { %v16269_v24 = vadd.f32 %v3103_v15, %v15953_v10  ;;  %v16271_v47 = vpop.f32.mrf.mxu3  ;;  %v11199_v10 = vld [vmem:[%s19705_s3 + $0x700] sm:$0xf]  ;;  %v3338_v15 = vpop.f32.mrf.mxu1 }
 0x7c7   :  { %v11200_v40 = vor.u32 %v13467_v17, %v11199_v10  ;;  %v13434_v10 = vld [vmem:[%s19705_s3 + $0x614] sm:$0xf0] }
 0x7c8   :  { %19898 = vst [vmem:[#allocation39_spill] sm:$0xff] %v16269_v24  ;;  %3507 = vmatmul.bf16.gmra.mxu0 %v10948_v42  ;;  %3917 = vmatmul.bf16.gmra.mxu3 %v11136_v19  ;;  %v19901_v19 = vld [vmem:[#allocation25_spill] sm:$0xff]  ;;  %v3387_v24 = vpop.f32.mrf.mxu2 }
 0x7cd   :  { %v3105_v61 = vpop.f32.mrf.mxu0 }
 0x7ce   :  { %v16274_v60 = vadd.f32 %v3105_v61, %v15970_v16  ;;  %v10964_v16 = vor.u32 %v13426_v53, %v10961_v14  ;;  %v16291_v42 = vpop.f32.mrf.mxu3  ;;  %v19902_v61 = vld [vmem:[#allocation26_spill] sm:$0xff]  ;;  %v19904_v53 = vld [vmem:[#allocation27_spill] sm:$0xff] }
 0x7cf   :  { %v11027_v14 = vld [vmem:[%s19705_s3 + $0x608] sm:$0xf] }
 0x7d0   :  { %19899 = vst [vmem:[#allocation41_spill] sm:$0xff] %v16274_v60  ;;  %v11028_v17 = vor.u32 %v13434_v10, %v11027_v14 }
 0x7d5   :  { %v3108_v26 = vpop.f32.mrf.mxu0 }
 0x7d6   :  { %v16289_v33 = vadd.f32 %v3108_v26, %v19900_v58  ;;  %v3341_v26 = vpop.f32.mrf.mxu1  ;;  %v3390_v58 = vpop.f32.mrf.mxu2 }
 0x7d8   :  { %3512 = vmatmul.bf16.gmra.mxu0 %v10964_v16  ;;  %4336 = vmatmul.bf16.vlgmr.msrb.gmra.mxu3 %v11200_v40  ;;  %v3381_v40 = vadd.f32 %v3380_v23, %v3331_v50 }
 0x7d9   :  { %4978 = vmatpush.bf16.msrb.mxu3 %v19901_v19  ;;  %v19906_v19 = vld [vmem:[#allocation30_spill] sm:$0xff] }
 0x7dd   :  { %4979 = vmatpush.bf16.msrb.mxu3 %v19902_v61  ;;  %v3110_v60 = vpop.f32.mrf.mxu0  ;;  %v3383_v61 = vadd.f32 %v3382_v27, %v3333_v3  ;;  %v19908_v3 = vld [vmem:[#allocation31_spill] sm:$0xff] }
 0x7de   :  { %v16296_v41 = vadd.f32 %v3110_v60, %v15987_v20  ;;  %v3430_v20 = vadd.f32 %v16138_v8, %v3381_v40  ;;  %v3343_v23 = vpop.f32.mrf.mxu1  ;;  %v11043_v27 = vld [vmem:[%s19705_s3 + $0x628] sm:$0xf]  ;;  %v13438_v8 = vld [vmem:[%s19705_s3 + $0x634] sm:$0xf0] }
 0x7df   :  { %v3432_v60 = vadd.f32 %v16161_v35, %v3383_v61  ;;  %v3392_v35 = vpop.f32.mrf.mxu2  ;;  %v11044_v61 = vor.u32 %v13438_v8, %v11043_v27 }
 0x7e0   :  { %19903 = vst [vmem:[#allocation14_spill] sm:$0xff] %v16296_v41  ;;  %v19907_v41 = vld [vmem:[#allocation8_spill] sm:$0xff] }
 0x7e1   :  { %4980 = vmatpush.bf16.msrb.mxu3 %v19904_v53  ;;  %v19905_v53 = vld [vmem:[#allocation7_spill] sm:$0xff] }
 0x7e5   :  { %4981 = vmatpush.bf16.msrb.mxu3 %v14518_v25  ;;  %v3478_v16 = vpop.f32.mrf.mxu0 }
 0x7e6   :  { %v3479_v10 = vadd.f32 %v3478_v16, %v3430_v20  ;;  %v3388_v16 = vadd.f32 %v3387_v24, %v3338_v15  ;;  %v3346_v20 = vpop.f32.mrf.mxu1  ;;  %v19911_v24 = vld [vmem:[#allocation3_spill] sm:$0xff] }
 0x7e8   :  { %3931 = vmatmul.bf16.vlgmr.msra.gmra.mxu0 %v11028_v17  ;;  %v3386_v17 = vadd.f32 %v3385_v36, %v3336_v45  ;;  %v13442_v36 = vld [vmem:[%s19705_s3 + $0x654] sm:$0xf0] }
 0x7e9   :  { %4831 = vmatpush.bf16.msra.mxu0 %v19885_v2  ;;  %4982 = vmatpush.bf16.msrb.mxu3 %v19886_v4 }
 0x7ea   :  { %v3435_v40 = vadd.f32 %v16175_v6, %v3386_v17  ;;  %v11059_v6 = vld [vmem:[%s19705_s3 + $0x648] sm:$0xf]  ;;  %v3393_v17 = vadd.f32 %v3392_v35, %v3343_v23 }
 0x7ed   :  { %4832 = vmatpush.bf16.msra.mxu0 %v19905_v53  ;;  %4983 = vmatpush.bf16.msrb.mxu3 %v19906_v19  ;;  %v3480_v14 = vpop.f32.mrf.mxu0 }
 0x7ee   :  { %v3481_v25 = vadd.f32 %v3480_v14, %v3432_v60  ;;  %v19909_v60 = vld [vmem:[#allocation22_spill] sm:$0xff]  ;;  %v3395_v14 = vpop.f32.mrf.mxu2  ;;  %v3348_v15 = vpop.f32.mrf.mxu1 }
 0x7ef   :  { %v3396_v23 = vadd.f32 %v3395_v14, %v3346_v20 }
 0x7f0   :  { %v3518_v50 = vpack.c.bf16 %v3481_v25, %v3479_v10  ;;  %v3437_v10 = vadd.f32 %v16195_v7, %v3388_v16  ;;  %v11060_v7 = vor.u32 %v13442_v36, %v11059_v6 }
 0x7f1   :  { %4833 = vmatpush.bf16.msra.mxu0 %v19907_v41  ;;  %4984 = vmatpush.bf16.msrb.mxu3 %v19908_v3 }
 0x7f2   :  { %10977 = vmatmul.msk.bf16.vlgmr.msra.gmra.mxu1 %vm1461_vm1, %v3518_v50  ;;  %v19910_v50 = vld [vmem:[#allocation4_spill] sm:$0xff] }
 0x7f3   :  { %4426 = vmatpush.bf16.msra.mxu1 %v14188_v62 }
 0x7f5   :  { %4834 = vmatpush.bf16.msra.mxu0 %v19874_v43  ;;  %4985 = vmatpush.bf16.msrb.mxu3 %v19891_v34  ;;  %v3483_v25 = vpop.f32.mrf.mxu0 }
 0x7f6   :  { %v3484_v8 = vadd.f32 %v3483_v25, %v3435_v40  ;;  %v3391_v25 = vadd.f32 %v3390_v58, %v3341_v26  ;;  %v19912_v40 = vld [vmem:[#allocation19_spill] sm:$0xff]  ;;  %v3351_v6 = vpop.f32.mrf.mxu1 }
 0x7f7   :  { %4427 = vmatpush.bf16.msra.mxu1 %v19876_v0  ;;  %v11075_v26 = vld [vmem:[%s19705_s3 + $0x668] sm:$0xf] }
 0x7f8   :  { %3936 = vmatmul.bf16.gmra.mxu0 %v11044_v61  ;;  %v3440_v16 = vadd.f32 %v16212_v37, %v3391_v25  ;;  %v13446_v37 = vld [vmem:[%s19705_s3 + $0x674] sm:$0xf0]  ;;  %v3445_v25 = vadd.f32 %v16249_v32, %v3396_v23 }
 0x7f9   :  { %4835 = vmatpush.bf16.msra.mxu0 %v19875_v49  ;;  %v11076_v58 = vor.u32 %v13446_v37, %v11075_v26 }
 0x7fb   :  { %4428 = vmatpush.bf16.msra.mxu1 %v19909_v60 }
 0x7fd   :  { %4836 = vmatpush.bf16.msra.mxu0 %v19910_v50  ;;  %v3485_v27 = vpop.f32.mrf.mxu0 }
 0x7fe   :  { %v3486_v34 = vadd.f32 %v3485_v27, %v3437_v10  ;;  %v3442_v10 = vadd.f32 %v16226_v56, %v3393_v17 }
 0x7ff   :  { %4429 = vmatpush.bf16.msra.mxu1 %v14219_v29 }
 0x800   :  { %v3519_v45 = vpack.c.bf16 %v3486_v34, %v3484_v8  ;;  %v3397_v34 = vpop.f32.mrf.mxu2 }
 0x801   :  { %4837 = vmatpush.bf16.msra.mxu0 %v19911_v24  ;;  %v3398_v35 = vadd.f32 %v3397_v34, %v3348_v15 }
 0x802   :  { %10978 = vmatmul.msk.bf16.gmra.mxu1 %vm1461_vm1, %v3519_v45 }
 0x803   :  { %4430 = vmatpush.bf16.msra.mxu1 %v14135_v9  ;;  %v3447_v17 = vadd.f32 %v16266_v30, %v3398_v35  ;;  %v3454_v30 = vpop.f32.mrf.mxu3 }
 0x805   :  { %4838 = vmatpush.bf16.msra.mxu0 %v19880_v5  ;;  %v3488_v61 = vpop.f32.mrf.mxu0 }
 0x806   :  { %v3489_v8 = vadd.f32 %v3488_v61, %v3440_v16 }
 0x807   :  { %4431 = vmatpush.bf16.msra.mxu1 %v19895_v55 }
 0x808   :  { %3941 = vmatmul.bf16.gmra.mxu0 %v11060_v7  ;;  %v3400_v36 = vpop.f32.mrf.mxu2  ;;  %v3353_v7 = vpop.f32.mrf.mxu1 }
 0x809   :  { %v3401_v34 = vadd.f32 %v3400_v36, %v3351_v6  ;;  %v13454_v6 = vld [vmem:[%s19705_s3 + $0x6b4] sm:$0xf0] }
 0x80b   :  { %4432 = vmatpush.bf16.msra.mxu1 %v19912_v40  ;;  %v3450_v37 = vadd.f32 %v16271_v47, %v3401_v34 }
 0x80d   :  { %v3490_v27 = vpop.f32.mrf.mxu0 }
 0x80e   :  { %v3491_v45 = vadd.f32 %v3490_v27, %v3442_v10 }
 0x80f   :  { %4433 = vmatpush.bf16.msra.mxu1 %v19883_v59 }
 0x810   :  { %v3520_v5 = vpack.c.bf16 %v3491_v45, %v3489_v8  ;;  %v3402_v61 = vpop.f32.mrf.mxu2  ;;  %v11091_v45 = vld [vmem:[%s19705_s3 + $0x688] sm:$0xf]  ;;  %v3356_v20 = vpop.f32.mrf.mxu1 }
 0x811   :  { %v3403_v26 = vadd.f32 %v3402_v61, %v3353_v7 }
 0x812   :  { %10979 = vmatmul.msk.bf16.gmra.mxu1 %vm1461_vm1, %v3520_v5  ;;  %v13450_v5 = vld [vmem:[%s19705_s3 + $0x694] sm:$0xf0] }
 0x813   :  { %v11092_v15 = vor.u32 %v13450_v5, %v11091_v45 }
 0x815   :  { %v3493_v56 = vpop.f32.mrf.mxu0 }
 0x816   :  { %v3494_v10 = vadd.f32 %v3493_v56, %v3445_v25 }
 0x818   :  { %3946 = vmatmul.bf16.gmra.mxu0 %v11076_v58  ;;  %v3405_v14 = vpop.f32.mrf.mxu2  ;;  %v3452_v58 = vadd.f32 %v16291_v42, %v3403_v26  ;;  %v3358_v56 = vpop.f32.mrf.mxu1 }
 0x819   :  { %v3406_v42 = vadd.f32 %v3405_v14, %v3356_v20  ;;  %v13458_v20 = vld [vmem:[%s19705_s3 + $0x6d4] sm:$0xf0] }
 0x81b   :  { %v3455_v45 = vadd.f32 %v3454_v30, %v3406_v42 }
 0x81d   :  { %v3495_v16 = vpop.f32.mrf.mxu0 }
 0x81e   :  { %v3496_v27 = vadd.f32 %v3495_v16, %v3447_v17 }
 0x820   :  { %v3521_v8 = vpack.c.bf16 %v3496_v27, %v3494_v10  ;;  %v3407_v35 = vpop.f32.mrf.mxu2  ;;  %v3456_v10 = vpop.f32.mrf.mxu3  ;;  %v11107_v27 = vld [vmem:[%s19705_s3 + $0x6a8] sm:$0xf] }
 0x821   :  { %v11108_v47 = vor.u32 %v13454_v6, %v11107_v27  ;;  %v3361_v7 = vpop.f32.mrf.mxu1 }
 0x822   :  { %10980 = vmatmul.msk.bf16.gmra.mxu1 %vm1461_vm1, %v3521_v8  ;;  %v3408_v8 = vadd.f32 %v3407_v35, %v3358_v56 }
 0x825   :  { %v3498_v32 = vpop.f32.mrf.mxu0 }
 0x826   :  { %v3499_v25 = vadd.f32 %v3498_v32, %v3450_v37 }
 0x828   :  { %3951 = vmatmul.bf16.gmra.mxu0 %v11092_v15  ;;  %v3410_v61 = vpop.f32.mrf.mxu2  ;;  %v3459_v5 = vpop.f32.mrf.mxu3  ;;  %v3457_v15 = vadd.f32 %v3456_v10, %v3408_v8 }
 0x829   :  { %v3411_v35 = vadd.f32 %v3410_v61, %v3361_v7  ;;  %v11139_v7 = vld [vmem:[%s19705_s3 + $0x6e8] sm:$0xf]  ;;  %v13462_v61 = vld [vmem:[%s19705_s3 + $0x6f4] sm:$0xf0] }
 0x82d   :  { %v3500_v23 = vpop.f32.mrf.mxu0 }
 0x82e   :  { %v3501_v17 = vadd.f32 %v3500_v23, %v3452_v58  ;;  %v3363_v58 = vpop.f32.mrf.mxu1 }
 0x830   :  { %v3522_v16 = vpack.c.bf16 %v3501_v17, %v3499_v25  ;;  %v3412_v23 = vpop.f32.mrf.mxu2  ;;  %v11123_v25 = vld [vmem:[%s19705_s3 + $0x6c8] sm:$0xf]  ;;  %v3461_v30 = vpop.f32.mrf.mxu3 }
 0x831   :  { %v11124_v14 = vor.u32 %v13458_v20, %v11123_v25  ;;  %v3413_v17 = vadd.f32 %v3412_v23, %v3363_v58 }
 0x832   :  { %10981 = vmatmul.msk.bf16.gmra.mxu1 %vm1461_vm1, %v3522_v16  ;;  %v3460_v16 = vadd.f32 %v3459_v5, %v3411_v35 }
 0x833   :  { %v3462_v6 = vadd.f32 %v3461_v30, %v3413_v17 }
 0x835   :  { %v3503_v36 = vpop.f32.mrf.mxu0 }
 0x836   :  { %v3504_v34 = vadd.f32 %v3503_v36, %v3455_v45  ;;  %v3366_v10 = vpop.f32.mrf.mxu1 }
 0x838   :  { %3956 = vmatmul.bf16.gmra.mxu0 %v11108_v47  ;;  %v3415_v27 = vpop.f32.mrf.mxu2  ;;  %v3464_v8 = vpop.f32.mrf.mxu3 }
 0x839   :  { %v3416_v23 = vadd.f32 %v3415_v27, %v3366_v10  ;;  %v13465_v10 = vld [vmem:[%s19705_s3 + $0x704] sm:$0xf]  ;;  %v11201_v27 = vld [vmem:[%s19705_s3 + $0x710] sm:$0xf0] }
 0x83d   :  { %v3505_v32 = vpop.f32.mrf.mxu0 }
 0x83e   :  { %v3506_v26 = vadd.f32 %v3505_v32, %v3457_v15  ;;  %v11035_v15 = vld [vmem:[%s19705_s3 + $0x620] sm:$0xf]  ;;  %v13437_v32 = vld [vmem:[%s19705_s3 + $0x62c] sm:$0xf0] }
 0x83f   :  { %v11036_v5 = vor.u32 %v13437_v32, %v11035_v15 }
 0x840   :  { %v3523_v37 = vpack.c.bf16 %v3506_v26, %v3504_v34  ;;  %v3368_v34 = vpop.f32.mrf.mxu1  ;;  %v11140_v26 = vor.u32 %v13462_v61, %v11139_v7  ;;  %v3466_v20 = vpop.f32.mrf.mxu3  ;;  %v11067_v61 = vld [vmem:[%s19705_s3 + $0x660] sm:$0xf] }
 0x841   :  { %3838 = vmatmul.bf16.gmra.mxu2 %v11036_v5  ;;  %v13445_v5 = vld [vmem:[%s19705_s3 + $0x66c] sm:$0xf0] }
 0x842   :  { %10982 = vmatmul.msk.bf16.gmra.mxu1 %vm1461_vm1, %v3523_v37  ;;  %v3417_v37 = vpop.f32.mrf.mxu2 }
 0x843   :  { %v3418_v25 = vadd.f32 %v3417_v37, %v3368_v34  ;;  %v13469_v34 = vld [vmem:[%s19705_s3 + $0x724] sm:$0xf]  ;;  %v11068_v37 = vor.u32 %v13445_v5, %v11067_v61  ;;  %v11249_v5 = vld [vmem:[%s19705_s3 + $0x770] sm:$0xf0] }
 0x844   :  { %v13477_v61 = vld [vmem:[%s19705_s3 + $0x764] sm:$0xf] }
 0x845   :  { %v3508_v56 = vpop.f32.mrf.mxu0  ;;  %v3467_v30 = vadd.f32 %v3466_v20, %v3418_v25  ;;  %v13436_v25 = vld [vmem:[%s19705_s3 + $0x62c] sm:$0xf]  ;;  %v11045_v20 = vld [vmem:[%s19705_s3 + $0x638] sm:$0xf0] }
 0x846   :  { %v3509_v36 = vadd.f32 %v3508_v56, %v3460_v16 }
 0x848   :  { %3961 = vmatmul.bf16.gmra.mxu0 %v11124_v14  ;;  %v3465_v14 = vadd.f32 %v3464_v8, %v3416_v23  ;;  %v13432_v8 = vld [vmem:[%s19705_s3 + $0x60c] sm:$0xf] }
 0x84d   :  { %v3510_v47 = vpop.f32.mrf.mxu0 }
 0x84e   :  { %v3511_v42 = vadd.f32 %v3510_v47, %v3462_v6  ;;  %v11051_v6 = vld [vmem:[%s19705_s3 + $0x640] sm:$0xf]  ;;  %v13441_v47 = vld [vmem:[%s19705_s3 + $0x64c] sm:$0xf0] }
 0x850   :  { %v3524_v45 = vpack.c.bf16 %v3511_v42, %v3509_v36  ;;  %v11052_v36 = vor.u32 %v13441_v47, %v11051_v6  ;;  %v11204_v42 = vor.u32 %v13465_v10, %v11201_v27  ;;  %v13440_v27 = vld [vmem:[%s19705_s3 + $0x64c] sm:$0xf] }
 0x852   :  { %10983 = vmatmul.msk.bf16.gmra.mxu1 %vm1461_vm1, %v3524_v45  ;;  %3843 = vmatmul.bf16.gmra.mxu2 %v11052_v36  ;;  %v11029_v45 = vld [vmem:[%s19705_s3 + $0x618] sm:$0xf0] }
 0x853   :  { %v11032_v15 = vor.u32 %v13432_v8, %v11029_v45  ;;  %v11061_v36 = vld [vmem:[%s19705_s3 + $0x658] sm:$0xf0] }
 0x854   :  { %v11064_v8 = vor.u32 %v13440_v27, %v11061_v36  ;;  %v13448_v36 = vld [vmem:[%s19705_s3 + $0x68c] sm:$0xf] }
 0x855   :  { %v3513_v58 = vpop.f32.mrf.mxu0 }
 0x856   :  { %v3514_v35 = vadd.f32 %v3513_v58, %v3465_v14  ;;  %v11048_v14 = vor.u32 %v13436_v25, %v11045_v20  ;;  %v11077_v25 = vld [vmem:[%s19705_s3 + $0x678] sm:$0xf0] }
 0x858   :  { %3966 = vmatmul.bf16.gmra.mxu0 %v11140_v26  ;;  %v11217_v26 = vld [vmem:[%s19705_s3 + $0x730] sm:$0xf0] }
 0x85d   :  { %v3515_v56 = vpop.f32.mrf.mxu0 }
 0x85e   :  { %v3516_v17 = vadd.f32 %v3515_v56, %v3467_v30 }
 0x860   :  { %v3525_v16 = vpack.c.bf16 %v3516_v17, %v3514_v35  ;;  %v13449_v35 = vld [vmem:[%s19705_s3 + $0x68c] sm:$0xf0]  ;;  %v13473_v17 = vld [vmem:[%s19705_s3 + $0x744] sm:$0xf] }
 0x862   :  { %10984 = vmatmul.msk.bf16.gmra.mxu1 %vm1461_vm1, %v3525_v16  ;;  %3848 = vmatmul.bf16.gmra.mxu2 %v11068_v37  ;;  %v11233_v16 = vld [vmem:[%s19705_s3 + $0x750] sm:$0xf0] }
 0x868   :  { %4385 = vmatmul.bf16.vlgmr.msrb.gmra.mxu0 %v11204_v42  ;;  %v16465_v42 = vpop.f32.mrf.mxu0 }
 0x86f   :  { %v3576_v32 = vpop.f32.mrf.mxu1 }
 0x870   :  { %v16411_v7 = vadd.f32 %v3576_v32, %v16101_v38  ;;  %v11220_v38 = vor.u32 %v13469_v34, %v11217_v26  ;;  %v13453_v32 = vld [vmem:[%s19705_s3 + $0x6ac] sm:$0xf0]  ;;  %v16483_v26 = vpop.f32.mrf.mxu0 }
 0x872   :  { %3980 = vmatmul.bf16.vlgmr.msrb.gmra.mxu1 %v11032_v15  ;;  %v11099_v15 = vld [vmem:[%s19705_s3 + $0x6a0] sm:$0xf] }
 0x873   :  { %4880 = vmatpush.bf16.msrb.mxu1 %v19850_v1  ;;  %v11100_v34 = vor.u32 %v13453_v32, %v11099_v15 }
 0x877   :  { %4881 = vmatpush.bf16.msrb.mxu1 %v19851_v52  ;;  %v3578_v58 = vpop.f32.mrf.mxu1 }
 0x878   :  { %v16428_v23 = vadd.f32 %v3578_v58, %v16112_v57  ;;  %4390 = vmatmul.bf16.gmra.mxu0 %v11220_v38  ;;  %v11083_v57 = vld [vmem:[%s19705_s3 + $0x680] sm:$0xf]  ;;  %v13444_v58 = vld [vmem:[%s19705_s3 + $0x66c] sm:$0xf] }
 0x879   :  { %v11084_v6 = vor.u32 %v13449_v35, %v11083_v57  ;;  %v11080_v20 = vor.u32 %v13444_v58, %v11077_v25  ;;  %v16497_v57 = vpop.f32.mrf.mxu0  ;;  %v13457_v35 = vld [vmem:[%s19705_s3 + $0x6cc] sm:$0xf0] }
 0x87b   :  { %4882 = vmatpush.bf16.msrb.mxu1 %v19852_v44  ;;  %3853 = vmatmul.bf16.gmra.mxu2 %v11084_v6 }
 0x87f   :  { %4883 = vmatpush.bf16.msrb.mxu1 %v19853_v21  ;;  %v3581_v30 = vpop.f32.mrf.mxu1 }
 0x880   :  { %v16439_v56 = vadd.f32 %v3581_v30, %v16129_v22  ;;  %v11236_v22 = vor.u32 %v13473_v17, %v11233_v16  ;;  %v13481_v17 = vld [vmem:[%s19705_s3 + $0x784] sm:$0xf]  ;;  %v11265_v16 = vld [vmem:[%s19705_s3 + $0x790] sm:$0xf0] }
 0x881   :  { %v11268_v6 = vor.u32 %v13481_v17, %v11265_v16  ;;  %v16514_v27 = vpop.f32.mrf.mxu0 }
 0x882   :  { %3985 = vmatmul.bf16.gmra.mxu1 %v11048_v14 }
 0x883   :  { %4884 = vmatpush.bf16.msrb.mxu1 %v19854_v13 }
 0x887   :  { %4885 = vmatpush.bf16.msrb.mxu1 %v19855_v39  ;;  %v3583_v47 = vpop.f32.mrf.mxu1 }
 0x888   :  { %v16456_v10 = vadd.f32 %v3583_v47, %v16142_v46  ;;  %4395 = vmatmul.bf16.gmra.mxu0 %v11236_v22 }
 0x88b   :  { %4886 = vmatpush.bf16.msrb.mxu1 %v19856_v28  ;;  %3858 = vmatmul.bf16.gmra.mxu2 %v11100_v34  ;;  %v11281_v34 = vld [vmem:[%s19705_s3 + $0x7b0] sm:$0xf0] }
 0x88f   :  { %4887 = vmatpush.bf16.msrb.mxu1 %v19857_v51  ;;  %v3586_v45 = vpop.f32.mrf.mxu1 }
 0x890   :  { %v16469_v46 = vadd.f32 %v3586_v45, %v16159_v18  ;;  %v11252_v18 = vor.u32 %v13477_v61, %v11249_v5  ;;  %v13461_v61 = vld [vmem:[%s19705_s3 + $0x6ec] sm:$0xf0]  ;;  %v13485_v5 = vld [vmem:[%s19705_s3 + $0x7a4] sm:$0xf] }
 0x892   :  { %3990 = vmatmul.bf16.gmra.mxu1 %v11064_v8  ;;  %v11093_v8 = vld [vmem:[%s19705_s3 + $0x698] sm:$0xf0] }
 0x893   :  { %v11096_v45 = vor.u32 %v13448_v36, %v11093_v8  ;;  %v19917_v8 = vld [vmem:[#allocation37_spill] sm:$0xff] }
 0x897   :  { %v3588_v37 = vpop.f32.mrf.mxu1 }
 0x898   :  { %v16486_v38 = vadd.f32 %v3588_v37, %v16170_v11  ;;  %4400 = vmatmul.bf16.gmra.mxu0 %v11252_v18  ;;  %v11115_v11 = vld [vmem:[%s19705_s3 + $0x6c0] sm:$0xf]  ;;  %v16537_v37 = vpop.f32.mrf.mxu0 }
 0x89f   :  { %v3591_v14 = vpop.f32.mrf.mxu1 }
 0x8a0   :  { %v16495_v30 = vadd.f32 %v3591_v14, %v16187_v31  ;;  %v11116_v31 = vor.u32 %v13457_v35, %v11115_v11  ;;  %v11109_v14 = vld [vmem:[%s19705_s3 + $0x6b8] sm:$0xf0]  ;;  %v16548_v35 = vpop.f32.mrf.mxu0 }
 0x8a2   :  { %3995 = vmatmul.bf16.gmra.mxu1 %v11080_v20  ;;  %3863 = vmatmul.bf16.gmra.mxu2 %v11116_v31  ;;  %v13452_v20 = vld [vmem:[%s19705_s3 + $0x6ac] sm:$0xf]  ;;  %v11297_v31 = vld [vmem:[%s19705_s3 + $0x7d0] sm:$0xf0] }
 0x8a3   :  { %v11112_v11 = vor.u32 %v13452_v20, %v11109_v14  ;;  %v13493_v14 = vld [vmem:[%s19705_s3 + $0x7e4] sm:$0xf] }
 0x8a7   :  { %v3593_v22 = vpop.f32.mrf.mxu1 }
 0x8a8   :  { %v16512_v47 = vadd.f32 %v3593_v22, %v16198_v12  ;;  %4405 = vmatmul.bf16.gmra.mxu0 %v11268_v6  ;;  %v11131_v12 = vld [vmem:[%s19705_s3 + $0x6e0] sm:$0xf]  ;;  %v13532_v6 = vld [vmem:[%s19706_s4 + $0x88] sm:$0xff] }
 0x8a9   :  { %v11132_v18 = vor.u32 %v13461_v61, %v11131_v12  ;;  %5082 = vmatpush.bf16.msrb.mxu0 %v13532_v6  ;;  %v13531_v12 = vld [vmem:[%s19706_s4 + $0x80] sm:$0xff]  ;;  %v3834_v61 = vpop.f32.mrf.mxu2 }
 0x8aa   :  { %19913 = vst [vmem:[#allocation15_spill] sm:$0xff] %v16512_v47  ;;  %v19928_v47 = vld [vmem:[#allocation27_spill] sm:$0xff] }
 0x8ad   :  { %5083 = vmatpush.bf16.msrb.mxu0 %v13531_v12  ;;  %v13460_v12 = vld [vmem:[%s19705_s3 + $0x6ec] sm:$0xf] }
 0x8af   :  { %v3596_v15 = vpop.f32.mrf.mxu1 }
 0x8b0   :  { %v16523_v32 = vadd.f32 %v3596_v15, %v16215_v54  ;;  %v11284_v54 = vor.u32 %v13485_v5, %v11281_v34  ;;  %v3883_v15 = vpop.f32.mrf.mxu3  ;;  %v13456_v5 = vld [vmem:[%s19705_s3 + $0x6cc] sm:$0xf]  ;;  %v11125_v34 = vld [vmem:[%s19705_s3 + $0x6d8] sm:$0xf0] }
 0x8b2   :  { %19914 = vst [vmem:[#allocation16_spill] sm:$0xff] %v16523_v32  ;;  %4000 = vmatmul.bf16.gmra.mxu1 %v11096_v45  ;;  %3868 = vmatmul.bf16.gmra.mxu2 %v11132_v18  ;;  %v11128_v18 = vor.u32 %v13456_v5, %v11125_v34  ;;  %v11141_v5 = vld [vmem:[%s19705_s3 + $0x6f8] sm:$0xf0] }
 0x8b7   :  { %v3598_v58 = vpop.f32.mrf.mxu1 }
 0x8b8   :  { %v16540_v25 = vadd.f32 %v3598_v58, %v16224_v48  ;;  %4410 = vmatmul.bf16.gmra.mxu0 %v11284_v54  ;;  %v13489_v48 = vld [vmem:[%s19705_s3 + $0x7c4] sm:$0xf]  ;;  %v19919_v58 = vld [vmem:[#allocation39_spill] sm:$0xff] }
 0x8b9   :  { %v11300_v22 = vor.u32 %v13489_v48, %v11297_v31  ;;  %v3885_v48 = vpop.f32.mrf.mxu3  ;;  %v3836_v31 = vpop.f32.mrf.mxu2 }
 0x8ba   :  { %19915 = vst [vmem:[#allocation17_spill] sm:$0xff] %v16540_v25  ;;  %v3884_v25 = vadd.f32 %v3883_v15, %v3834_v61 }
 0x8bf   :  { %v3601_v17 = vpop.f32.mrf.mxu1 }
 0x8c0   :  { %v16551_v16 = vadd.f32 %v3601_v17, %v16244_v63  ;;  %v16565_v63 = vpop.f32.mrf.mxu0 }
 0x8c2   :  { %19916 = vst [vmem:[#allocation13_spill] sm:$0xff] %v16551_v16  ;;  %4005 = vmatmul.bf16.gmra.mxu1 %v11112_v11  ;;  %v11313_v11 = vld [vmem:[%s19705_s3 + $0x7f0] sm:$0xf0] }
 0x8c3   :  { %v11316_v6 = vor.u32 %v13493_v14, %v11313_v11  ;;  %v11379_v11 = vld [vmem:[%s19705_s3 + $0x800] sm:$0xf] }
 0x8c7   :  { %v3603_v36 = vpop.f32.mrf.mxu1 }
 0x8c8   :  { %v16563_v45 = vadd.f32 %v3603_v36, %v19917_v8  ;;  %4415 = vmatmul.bf16.gmra.mxu0 %v11300_v22  ;;  %v16585_v17 = vpop.f32.mrf.mxu0  ;;  %v19921_v36 = vld [vmem:[#allocation41_spill] sm:$0xff] }
 0x8ca   :  { %19918 = vst [vmem:[#allocation12_spill] sm:$0xff] %v16563_v45 }
 0x8cf   :  { %v3606_v54 = vpop.f32.mrf.mxu1 }
 0x8d0   :  { %v16577_v20 = vadd.f32 %v3606_v54, %v19919_v58  ;;  %v16596_v34 = vpop.f32.mrf.mxu0  ;;  %v3839_v54 = vpop.f32.mrf.mxu2  ;;  %v11144_v58 = vor.u32 %v13460_v12, %v11141_v5  ;;  %v19924_v12 = vld [vmem:[#allocation14_spill] sm:$0xff] }
 0x8d2   :  { %19920 = vst [vmem:[#allocation11_spill] sm:$0xff] %v16577_v20  ;;  %4010 = vmatmul.bf16.gmra.mxu1 %v11128_v18  ;;  %v3888_v18 = vpop.f32.mrf.mxu3 }
 0x8d7   :  { %v3608_v22 = vpop.f32.mrf.mxu1 }
 0x8d8   :  { %v16588_v8 = vadd.f32 %v3608_v22, %v19921_v36  ;;  %4420 = vmatmul.bf16.gmra.mxu0 %v11316_v6  ;;  %v13501_v6 = vld [vmem:[%s19705_s3 + $0x80c] sm:$0xf0]  ;;  %v16607_v36 = vpop.f32.mrf.mxu0  ;;  %v3841_v16 = vpop.f32.mrf.mxu2 }
 0x8d9   :  { %v11380_v22 = vor.u32 %v13501_v6, %v11379_v11  ;;  %v19927_v11 = vld [vmem:[#allocation26_spill] sm:$0xff] }
 0x8da   :  { %19922 = vst [vmem:[#allocation33_spill] sm:$0xff] %v16588_v8  ;;  %v3890_v8 = vpop.f32.mrf.mxu3 }
 0x8df   :  { %v3611_v20 = vpop.f32.mrf.mxu1 }
 0x8e0   :  { %v16599_v14 = vadd.f32 %v3611_v20, %v16289_v33  ;;  %v19926_v33 = vld [vmem:[#allocation25_spill] sm:$0xff]  ;;  %v11207_v20 = vld [vmem:[%s19705_s3 + $0x708] sm:$0xf] }
 0x8e2   :  { %19923 = vst [vmem:[#allocation23_spill] sm:$0xff] %v16599_v14  ;;  %4015 = vmatmul.bf16.gmra.mxu1 %v11144_v58  ;;  %v13468_v58 = vld [vmem:[%s19705_s3 + $0x714] sm:$0xf0]  ;;  %v3893_v32 = vpop.f32.mrf.mxu3 }
 0x8e3   :  { %v11208_v6 = vor.u32 %v13468_v58, %v11207_v20 }
 0x8e7   :  { %v3613_v45 = vpop.f32.mrf.mxu1 }
 0x8e8   :  { %v16610_v5 = vadd.f32 %v3613_v45, %v19924_v12  ;;  %4839 = vmatmul.bf16.vlgmr.msra.gmra.mxu0 %v11380_v22  ;;  %v3844_v45 = vpop.f32.mrf.mxu2  ;;  %v3886_v22 = vadd.f32 %v3885_v48, %v3836_v31  ;;  %v3933_v12 = vadd.f32 %v16465_v42, %v3884_v25  ;;  %v11223_v48 = vld [vmem:[%s19705_s3 + $0x728] sm:$0xf]  ;;  %v13472_v42 = vld [vmem:[%s19705_s3 + $0x734] sm:$0xf0] }
 0x8e9   :  { %5481 = vmatpush.bf16.msra.mxu0 %v19926_v33  ;;  %v11224_v25 = vor.u32 %v13472_v42, %v11223_v48  ;;  %v19931_v48 = vld [vmem:[#allocation2_spill] sm:$0xff] }
 0x8ea   :  { %19925 = vst [vmem:[#allocation24_spill] sm:$0xff] %v16610_v5  ;;  %v19929_v5 = vld [vmem:[#allocation28_spill] sm:$0xff]  ;;  %v3935_v33 = vadd.f32 %v16483_v26, %v3886_v22  ;;  %v3895_v61 = vpop.f32.mrf.mxu3 }
 0x8eb   :  { %v19930_v22 = vld [vmem:[#allocation32_spill] sm:$0xff] }
 0x8ed   :  { %5482 = vmatpush.bf16.msra.mxu0 %v19927_v11 }
 0x8ef   :  { %v3981_v14 = vpop.f32.mrf.mxu1 }
 0x8f0   :  { %v3982_v20 = vadd.f32 %v3981_v14, %v3933_v12  ;;  %v3846_v26 = vpop.f32.mrf.mxu2  ;;  %v3889_v14 = vadd.f32 %v3888_v18, %v3839_v54 }
 0x8f1   :  { %5483 = vmatpush.bf16.msra.mxu0 %v19928_v47 }
 0x8f2   :  { %4434 = vmatmul.bf16.vlgmr.msra.gmra.mxu1 %v11208_v6  ;;  %v3898_v6 = vpop.f32.mrf.mxu3 }
 0x8f3   :  { %5334 = vmatpush.bf16.msra.mxu1 %v19885_v2 }
 0x8f5   :  { %5484 = vmatpush.bf16.msra.mxu0 %v19929_v5 }
 0x8f7   :  { %5335 = vmatpush.bf16.msra.mxu1 %v19905_v53  ;;  %v3983_v11 = vpop.f32.mrf.mxu1 }
 0x8f8   :  { %v3984_v58 = vadd.f32 %v3983_v11, %v3935_v33  ;;  %v3891_v33 = vadd.f32 %v3890_v8, %v3841_v16  ;;  %v3938_v11 = vadd.f32 %v16497_v57, %v3889_v14  ;;  %v3849_v12 = vpop.f32.mrf.mxu2  ;;  %v11239_v57 = vld [vmem:[%s19705_s3 + $0x748] sm:$0xf]  ;;  %v13476_v8 = vld [vmem:[%s19705_s3 + $0x754] sm:$0xf0]  ;;  %v3896_v14 = vadd.f32 %v3895_v61, %v3846_v26 }
 0x8f9   :  { %5485 = vmatpush.bf16.msra.mxu0 %v19886_v4  ;;  %v3899_v61 = vadd.f32 %v3898_v6, %v3849_v12  ;;  %v13484_v6 = vld [vmem:[%s19705_s3 + $0x794] sm:$0xf0] }
 0x8fa   :  { %v4021_v15 = vpack.c.bf16 %v3984_v58, %v3982_v20  ;;  %v3940_v20 = vadd.f32 %v16514_v27, %v3891_v33  ;;  %v11240_v27 = vor.u32 %v13476_v8, %v11239_v57 }
 0x8fb   :  { %5336 = vmatpush.bf16.msra.mxu1 %v19907_v41 }
 0x8fc   :  { %11157 = vmatmul.msk.bf16.vlgmr.msrb.gmra.mxu2 %vm1461_vm1, %v4021_v15  ;;  %v3900_v15 = vpop.f32.mrf.mxu3 }
 0x8fd   :  { %4929 = vmatpush.bf16.msrb.mxu2 %v14188_v62  ;;  %5486 = vmatpush.bf16.msra.mxu0 %v19906_v19 }
 0x8ff   :  { %5337 = vmatpush.bf16.msra.mxu1 %v19874_v43  ;;  %v3986_v31 = vpop.f32.mrf.mxu1 }
 0x900   :  { %v3987_v54 = vadd.f32 %v3986_v31, %v3938_v11  ;;  %v3894_v31 = vadd.f32 %v3893_v32, %v3844_v45  ;;  %v3945_v11 = vadd.f32 %v16548_v35, %v3896_v14  ;;  %v11255_v32 = vld [vmem:[%s19705_s3 + $0x768] sm:$0xf] }
 0x901   :  { %4930 = vmatpush.bf16.msrb.mxu2 %v19876_v0  ;;  %5487 = vmatpush.bf16.msra.mxu0 %v19908_v3 }
 0x902   :  { %4439 = vmatmul.bf16.gmra.mxu1 %v11224_v25  ;;  %v3851_v25 = vpop.f32.mrf.mxu2  ;;  %v3943_v33 = vadd.f32 %v16537_v37, %v3894_v31  ;;  %v13480_v37 = vld [vmem:[%s19705_s3 + $0x774] sm:$0xf0] }
 0x903   :  { %5338 = vmatpush.bf16.msra.mxu1 %v19875_v49  ;;  %v11256_v45 = vor.u32 %v13480_v37, %v11255_v32  ;;  %v3901_v26 = vadd.f32 %v3900_v15, %v3851_v25 }
 0x905   :  { %4931 = vmatpush.bf16.msrb.mxu2 %v19909_v60  ;;  %5488 = vmatpush.bf16.msra.mxu0 %v19930_v22  ;;  %v3950_v31 = vadd.f32 %v16585_v17, %v3901_v26  ;;  %v3957_v17 = vpop.f32.mrf.mxu0 }
 0x907   :  { %5339 = vmatpush.bf16.msra.mxu1 %v19910_v50  ;;  %v3988_v18 = vpop.f32.mrf.mxu1 }
 0x908   :  { %v3989_v58 = vadd.f32 %v3988_v18, %v3940_v20 }
 0x909   :  { %4932 = vmatpush.bf16.msrb.mxu2 %v14219_v29 }
 0x90a   :  { %v4022_v16 = vpack.c.bf16 %v3989_v58, %v3987_v54  ;;  %v3903_v58 = vpop.f32.mrf.mxu3 }
 0x90b   :  { %5340 = vmatpush.bf16.msra.mxu1 %v19911_v24 }
 0x90c   :  { %11158 = vmatmul.msk.bf16.gmra.mxu2 %vm1461_vm1, %v4022_v16  ;;  %v3854_v16 = vpop.f32.mrf.mxu2 }
 0x90d   :  { %4933 = vmatpush.bf16.msrb.mxu2 %v14135_v9 }
 0x90f   :  { %5341 = vmatpush.bf16.msra.mxu1 %v19931_v48  ;;  %v3991_v42 = vpop.f32.mrf.mxu1 }
 0x910   :  { %v3992_v18 = vadd.f32 %v3991_v42, %v3943_v33  ;;  %v3948_v42 = vadd.f32 %v16565_v63, %v3899_v61 }
 0x911   :  { %4934 = vmatpush.bf16.msrb.mxu2 %v19895_v55 }
 0x912   :  { %4444 = vmatmul.bf16.gmra.mxu1 %v11240_v27  ;;  %v3905_v8 = vpop.f32.mrf.mxu3 }
 0x914   :  { %v3856_v27 = vpop.f32.mrf.mxu2 }
 0x915   :  { %4935 = vmatpush.bf16.msrb.mxu2 %v19912_v40 }
 0x917   :  { %v3993_v20 = vpop.f32.mrf.mxu1 }
 0x918   :  { %v3994_v54 = vadd.f32 %v3993_v20, %v3945_v11 }
 0x919   :  { %4936 = vmatpush.bf16.msrb.mxu2 %v19883_v59 }
 0x91a   :  { %v4023_v57 = vpack.c.bf16 %v3994_v54, %v3992_v18  ;;  %v11271_v18 = vld [vmem:[%s19705_s3 + $0x788] sm:$0xf]  ;;  %v3908_v12 = vpop.f32.mrf.mxu3  ;;  %v3904_v54 = vadd.f32 %v3903_v58, %v3854_v16  ;;  %v13488_v58 = vld [vmem:[%s19705_s3 + $0x7b4] sm:$0xf0] }
 0x91b   :  { %v11272_v25 = vor.u32 %v13484_v6, %v11271_v18 }
 0x91c   :  { %11159 = vmatmul.msk.bf16.gmra.mxu2 %vm1461_vm1, %v4023_v57  ;;  %v3859_v15 = vpop.f32.mrf.mxu2  ;;  %v3906_v57 = vadd.f32 %v3905_v8, %v3856_v27  ;;  %v3953_v32 = vadd.f32 %v16596_v34, %v3904_v54 }
 0x91e   :  { %v3955_v37 = vadd.f32 %v16607_v36, %v3906_v57  ;;  %v3909_v36 = vadd.f32 %v3908_v12, %v3859_v15  ;;  %v13492_v12 = vld [vmem:[%s19705_s3 + $0x7d4] sm:$0xf0] }
 0x91f   :  { %v3996_v35 = vpop.f32.mrf.mxu1 }
 0x920   :  { %v3997_v33 = vadd.f32 %v3996_v35, %v3948_v42 }
 0x922   :  { %4449 = vmatmul.bf16.gmra.mxu1 %v11256_v45  ;;  %v3910_v45 = vpop.f32.mrf.mxu3 }
 0x924   :  { %v3861_v61 = vpop.f32.mrf.mxu2 }
 0x927   :  { %v3998_v14 = vpop.f32.mrf.mxu1 }
 0x928   :  { %v3999_v11 = vadd.f32 %v3998_v14, %v3950_v31  ;;  %v3959_v14 = vpop.f32.mrf.mxu0 }
 0x92a   :  { %v4024_v20 = vpack.c.bf16 %v3999_v11, %v3997_v33  ;;  %v11287_v33 = vld [vmem:[%s19705_s3 + $0x7a8] sm:$0xf]  ;;  %v3913_v8 = vpop.f32.mrf.mxu3  ;;  %v3911_v11 = vadd.f32 %v3910_v45, %v3861_v61 }
 0x92b   :  { %v11288_v34 = vor.u32 %v13488_v58, %v11287_v33 }
 0x92c   :  { %11160 = vmatmul.msk.bf16.gmra.mxu2 %vm1461_vm1, %v4024_v20  ;;  %v3864_v27 = vpop.f32.mrf.mxu2  ;;  %v3958_v20 = vadd.f32 %v3957_v17, %v3909_v36  ;;  %v3960_v6 = vadd.f32 %v3959_v14, %v3911_v11 }
 0x92d   :  { %v3914_v61 = vadd.f32 %v3913_v8, %v3864_v27 }
 0x92f   :  { %v4001_v63 = vpop.f32.mrf.mxu1 }
 0x930   :  { %v4002_v26 = vadd.f32 %v4001_v63, %v3953_v32  ;;  %v3962_v18 = vpop.f32.mrf.mxu0 }
 0x932   :  { %4454 = vmatmul.bf16.gmra.mxu1 %v11272_v25  ;;  %v3915_v32 = vpop.f32.mrf.mxu3 }
 0x937   :  { %v4003_v35 = vpop.f32.mrf.mxu1 }
 0x938   :  { %v4004_v42 = vadd.f32 %v4003_v35, %v3955_v37  ;;  %v3866_v37 = vpop.f32.mrf.mxu2  ;;  %v11303_v35 = vld [vmem:[%s19705_s3 + $0x7c8] sm:$0xf]  ;;  %v3964_v17 = vpop.f32.mrf.mxu0 }
 0x939   :  { %v11304_v15 = vor.u32 %v13492_v12, %v11303_v35 }
 0x93a   :  { %v4025_v31 = vpack.c.bf16 %v4004_v42, %v4002_v26  ;;  %v3916_v26 = vadd.f32 %v3915_v32, %v3866_v37  ;;  %v3963_v42 = vadd.f32 %v3962_v18, %v3914_v61 }
 0x93c   :  { %11161 = vmatmul.msk.bf16.gmra.mxu2 %vm1461_vm1, %v4025_v31  ;;  %v3918_v31 = vpop.f32.mrf.mxu3  ;;  %v3965_v33 = vadd.f32 %v3964_v17, %v3916_v26 }
 0x93f   :  { %v4006_v16 = vpop.f32.mrf.mxu1 }
 0x940   :  { %v4007_v63 = vadd.f32 %v4006_v16, %v3958_v20  ;;  %v3869_v14 = vpop.f32.mrf.mxu2  ;;  %v3967_v36 = vpop.f32.mrf.mxu0  ;;  %v11319_v20 = vld [vmem:[%s19705_s3 + $0x7e8] sm:$0xf] }
 0x942   :  { %4459 = vmatmul.bf16.gmra.mxu1 %v11288_v34 }
 0x944   :  { %v3920_v8 = vpop.f32.mrf.mxu3 }
 0x947   :  { %v4008_v25 = vpop.f32.mrf.mxu1 }
 0x948   :  { %v4009_v54 = vadd.f32 %v4008_v25, %v3960_v6  ;;  %v13496_v6 = vld [vmem:[%s19705_s3 + $0x7f4] sm:$0xf0]  ;;  %v3871_v18 = vpop.f32.mrf.mxu2  ;;  %v3969_v35 = vpop.f32.mrf.mxu0 }
 0x949   :  { %v11320_v27 = vor.u32 %v13496_v6, %v11319_v20  ;;  %v3921_v37 = vadd.f32 %v3920_v8, %v3871_v18  ;;  %v13503_v20 = vld [vmem:[%s19705_s3 + $0x824] sm:$0xf]  ;;  %v11397_v6 = vld [vmem:[%s19705_s3 + $0x830] sm:$0xf0] }
 0x94a   :  { %v4026_v57 = vpack.c.bf16 %v4009_v54, %v4007_v63  ;;  %v3919_v63 = vadd.f32 %v3918_v31, %v3869_v14  ;;  %v11215_v54 = vld [vmem:[%s19705_s3 + $0x720] sm:$0xf]  ;;  %v11381_v31 = vld [vmem:[%s19705_s3 + $0x810] sm:$0xf0]  ;;  %v11400_v8 = vor.u32 %v13503_v20, %v11397_v6 }
 0x94c   :  { %11162 = vmatmul.msk.bf16.gmra.mxu2 %vm1461_vm1, %v4026_v57  ;;  %v13471_v57 = vld [vmem:[%s19705_s3 + $0x72c] sm:$0xf0]  ;;  %v3968_v12 = vadd.f32 %v3967_v36, %v3919_v63  ;;  %v11209_v36 = vld [vmem:[%s19705_s3 + $0x718] sm:$0xf0] }
 0x94d   :  { %v11216_v32 = vor.u32 %v13471_v57, %v11215_v54  ;;  %v13479_v63 = vld [vmem:[%s19705_s3 + $0x76c] sm:$0xf0]  ;;  %v11225_v57 = vld [vmem:[%s19705_s3 + $0x738] sm:$0xf0] }
 0x94f   :  { %v4011_v45 = vpop.f32.mrf.mxu1  ;;  %4341 = vmatmul.bf16.gmra.mxu3 %v11216_v32 }
 0x950   :  { %v4012_v34 = vadd.f32 %v4011_v45, %v3963_v42  ;;  %v13499_v42 = vld [vmem:[%s19705_s3 + $0x804] sm:$0xf] }
 0x951   :  { %v11384_v14 = vor.u32 %v13499_v42, %v11381_v31  ;;  %v11241_v31 = vld [vmem:[%s19705_s3 + $0x758] sm:$0xf0] }
 0x952   :  { %4464 = vmatmul.bf16.gmra.mxu1 %v11304_v15  ;;  %v3970_v15 = vadd.f32 %v3969_v35, %v3921_v37 }
 0x957   :  { %v4013_v58 = vpop.f32.mrf.mxu1 }
 0x958   :  { %v4014_v16 = vadd.f32 %v4013_v58, %v3965_v33  ;;  %v11231_v33 = vld [vmem:[%s19705_s3 + $0x740] sm:$0xf]  ;;  %v13475_v58 = vld [vmem:[%s19705_s3 + $0x74c] sm:$0xf0] }
 0x95a   :  { %v4027_v11 = vpack.c.bf16 %v4014_v16, %v4012_v34  ;;  %v11232_v34 = vor.u32 %v13475_v58, %v11231_v33  ;;  %v13466_v16 = vld [vmem:[%s19705_s3 + $0x70c] sm:$0xf] }
 0x95c   :  { %11163 = vmatmul.msk.bf16.gmra.mxu2 %vm1461_vm1, %v4027_v11  ;;  %v11212_v11 = vor.u32 %v13466_v16, %v11209_v36  ;;  %v13511_v16 = vld [vmem:[%s19705_s3 + $0x864] sm:$0xf]  ;;  %v11429_v36 = vld [vmem:[%s19705_s3 + $0x870] sm:$0xf0] }
 0x95f   :  { %v4016_v25 = vpop.f32.mrf.mxu1  ;;  %4346 = vmatmul.bf16.gmra.mxu3 %v11232_v34 }
 0x960   :  { %v4017_v45 = vadd.f32 %v4016_v25, %v3968_v12  ;;  %v11247_v25 = vld [vmem:[%s19705_s3 + $0x760] sm:$0xf]  ;;  %v13507_v12 = vld [vmem:[%s19705_s3 + $0x844] sm:$0xf] }
 0x961   :  { %v11248_v54 = vor.u32 %v13479_v63, %v11247_v25  ;;  %v13478_v63 = vld [vmem:[%s19705_s3 + $0x76c] sm:$0xf] }
 0x962   :  { %4469 = vmatmul.bf16.gmra.mxu1 %v11320_v27 }
 0x967   :  { %v4018_v17 = vpop.f32.mrf.mxu1 }
 0x968   :  { %v4019_v61 = vadd.f32 %v4018_v17, %v3970_v15  ;;  %v11413_v15 = vld [vmem:[%s19705_s3 + $0x850] sm:$0xf0] }
 0x969   :  { %v11416_v17 = vor.u32 %v13507_v12, %v11413_v15  ;;  %v11445_v12 = vld [vmem:[%s19705_s3 + $0x890] sm:$0xf0] }
 0x96a   :  { %v4028_v26 = vpack.c.bf16 %v4019_v61, %v4017_v45 }
 0x96c   :  { %11164 = vmatmul.msk.bf16.gmra.mxu2 %vm1461_vm1, %v4028_v26  ;;  %v13483_v26 = vld [vmem:[%s19705_s3 + $0x78c] sm:$0xf0] }
 0x96f   :  { %4351 = vmatmul.bf16.gmra.mxu3 %v11248_v54 }
 0x972   :  { %4888 = vmatmul.bf16.vlgmr.msrb.gmra.mxu1 %v11384_v14  ;;  %v16778_v14 = vpop.f32.mrf.mxu1 }
 0x97c   :  { %4483 = vmatmul.bf16.vlgmr.msra.gmra.mxu2 %v11212_v11  ;;  %v11432_v11 = vor.u32 %v13511_v16, %v11429_v36  ;;  %v13519_v36 = vld [vmem:[%s19705_s3 + $0x8a4] sm:$0xf] }
 0x97d   :  { %5383 = vmatpush.bf16.msra.mxu2 %v19850_v1 }
 0x97f   :  { %v4079_v27 = vpop.f32.mrf.mxu2 }
 0x980   :  { %v16734_v18 = vadd.f32 %v4079_v27, %v16411_v7  ;;  %v13470_v7 = vld [vmem:[%s19705_s3 + $0x72c] sm:$0xf]  ;;  %v13487_v27 = vld [vmem:[%s19705_s3 + $0x7ac] sm:$0xf0] }
 0x981   :  { %5384 = vmatpush.bf16.msra.mxu2 %v19851_v52  ;;  %v11228_v35 = vor.u32 %v13470_v7, %v11225_v57 }
 0x982   :  { %4893 = vmatmul.bf16.gmra.mxu1 %v11400_v8  ;;  %v16793_v8 = vpop.f32.mrf.mxu1 }
 0x985   :  { %5385 = vmatpush.bf16.msra.mxu2 %v19852_v44 }
 0x987   :  { %v4081_v32 = vpop.f32.mrf.mxu2 }
 0x988   :  { %v16751_v37 = vadd.f32 %v4081_v32, %v16428_v23  ;;  %v11263_v23 = vld [vmem:[%s19705_s3 + $0x780] sm:$0xf] }
 0x989   :  { %5386 = vmatpush.bf16.msra.mxu2 %v19853_v21  ;;  %v11264_v42 = vor.u32 %v13483_v26, %v11263_v23  ;;  %v13491_v23 = vld [vmem:[%s19705_s3 + $0x7cc] sm:$0xf0] }
 0x98a   :  { %v16810_v32 = vpop.f32.mrf.mxu1 }
 0x98b   :  { %4356 = vmatmul.bf16.gmra.mxu3 %v11264_v42 }
 0x98c   :  { %4488 = vmatmul.bf16.gmra.mxu2 %v11228_v35  ;;  %v13515_v35 = vld [vmem:[%s19705_s3 + $0x884] sm:$0xf] }
 0x98d   :  { %5387 = vmatpush.bf16.msra.mxu2 %v19854_v13  ;;  %v11448_v15 = vor.u32 %v13515_v35, %v11445_v12  ;;  %v13486_v35 = vld [vmem:[%s19705_s3 + $0x7ac] sm:$0xf]  ;;  %v11289_v12 = vld [vmem:[%s19705_s3 + $0x7b8] sm:$0xf0] }
 0x98f   :  { %v4084_v45 = vpop.f32.mrf.mxu2 }
 0x990   :  { %v16762_v61 = vadd.f32 %v4084_v45, %v16439_v56  ;;  %v13474_v56 = vld [vmem:[%s19705_s3 + $0x74c] sm:$0xf] }
 0x991   :  { %5388 = vmatpush.bf16.msra.mxu2 %v19855_v39  ;;  %v11244_v34 = vor.u32 %v13474_v56, %v11241_v31  ;;  %v13482_v56 = vld [vmem:[%s19705_s3 + $0x78c] sm:$0xf] }
 0x992   :  { %4898 = vmatmul.bf16.gmra.mxu1 %v11416_v17  ;;  %v16827_v42 = vpop.f32.mrf.mxu1 }
 0x995   :  { %5389 = vmatpush.bf16.msra.mxu2 %v19856_v28 }
 0x997   :  { %v4086_v33 = vpop.f32.mrf.mxu2 }
 0x998   :  { %v16781_v58 = vadd.f32 %v4086_v33, %v16456_v10  ;;  %v11279_v10 = vld [vmem:[%s19705_s3 + $0x7a0] sm:$0xf]  ;;  %v19934_v33 = vld [vmem:[#allocation15_spill] sm:$0xff] }
 0x999   :  { %5390 = vmatpush.bf16.msra.mxu2 %v19857_v51  ;;  %v11280_v25 = vor.u32 %v13487_v27, %v11279_v10 }
 0x99a   :  { %v16844_v10 = vpop.f32.mrf.mxu1 }
 0x99b   :  { %4361 = vmatmul.bf16.gmra.mxu3 %v11280_v25  ;;  %v19936_v25 = vld [vmem:[#allocation16_spill] sm:$0xff] }
 0x99c   :  { %4493 = vmatmul.bf16.gmra.mxu2 %v11244_v34 }
 0x99f   :  { %v4089_v20 = vpop.f32.mrf.mxu2 }
 0x9a0   :  { %v16791_v6 = vadd.f32 %v4089_v20, %v16469_v46  ;;  %v11257_v46 = vld [vmem:[%s19705_s3 + $0x778] sm:$0xf0] }
 0x9a1   :  { %v11260_v57 = vor.u32 %v13478_v63, %v11257_v46  ;;  %v11311_v46 = vld [vmem:[%s19705_s3 + $0x7e0] sm:$0xf] }
 0x9a2   :  { %4903 = vmatmul.bf16.gmra.mxu1 %v11432_v11  ;;  %v11461_v11 = vld [vmem:[%s19705_s3 + $0x8b0] sm:$0xf0] }
 0x9a3   :  { %v11464_v20 = vor.u32 %v13519_v36, %v11461_v11  ;;  %v19940_v36 = vld [vmem:[#allocation13_spill] sm:$0xff] }
 0x9a7   :  { %v4091_v54 = vpop.f32.mrf.mxu2 }
 0x9a8   :  { %v16808_v7 = vadd.f32 %v4091_v54, %v16486_v38  ;;  %v11295_v38 = vld [vmem:[%s19705_s3 + $0x7c0] sm:$0xf]  ;;  %v13495_v54 = vld [vmem:[%s19705_s3 + $0x7ec] sm:$0xf0] }
 0x9a9   :  { %v11296_v26 = vor.u32 %v13491_v23, %v11295_v38  ;;  %v11292_v23 = vor.u32 %v13486_v35, %v11289_v12 }
 0x9aa   :  { %19932 = vst [vmem:[#allocation34_spill] sm:$0xff] %v16808_v7 }
 0x9ab   :  { %4366 = vmatmul.bf16.gmra.mxu3 %v11296_v26  ;;  %v16864_v26 = vpop.f32.mrf.mxu1 }
 0x9ac   :  { %4498 = vmatmul.bf16.gmra.mxu2 %v11260_v57  ;;  %v11312_v57 = vor.u32 %v13495_v54, %v11311_v46  ;;  %v11305_v46 = vld [vmem:[%s19705_s3 + $0x7d8] sm:$0xf0] }
 0x9af   :  { %v4094_v17 = vpop.f32.mrf.mxu2 }
 0x9b0   :  { %v16819_v45 = vadd.f32 %v4094_v17, %v16495_v30  ;;  %v11273_v30 = vld [vmem:[%s19705_s3 + $0x798] sm:$0xf0] }
 0x9b1   :  { %v11276_v16 = vor.u32 %v13482_v56, %v11273_v30  ;;  %v19938_v17 = vld [vmem:[#allocation17_spill] sm:$0xff]  ;;  %v13523_v56 = vld [vmem:[%s19705_s3 + $0x8c4] sm:$0xf]  ;;  %v11477_v30 = vld [vmem:[%s19705_s3 + $0x8d0] sm:$0xf0] }
 0x9b2   :  { %19933 = vst [vmem:[#allocation36_spill] sm:$0xff] %v16819_v45  ;;  %4908 = vmatmul.bf16.gmra.mxu1 %v11448_v15 }
 0x9b7   :  { %v4096_v31 = vpop.f32.mrf.mxu2 }
 0x9b8   :  { %v16836_v34 = vadd.f32 %v4096_v31, %v19934_v33  ;;  %v13566_v31 = vld [vmem:[%s19706_s4 + $0x98] sm:$0xff]  ;;  %v11480_v33 = vor.u32 %v13523_v56, %v11477_v30  ;;  %v11493_v56 = vld [vmem:[%s19705_s3 + $0x8f0] sm:$0xf0] }
 0x9b9   :  { %5585 = vmatpush.bf16.msrb.mxu1 %v13566_v31 }
 0x9ba   :  { %19935 = vst [vmem:[#allocation38_spill] sm:$0xff] %v16836_v34 }
 0x9bb   :  { %4371 = vmatmul.bf16.gmra.mxu3 %v11312_v57  ;;  %v19942_v57 = vld [vmem:[#allocation12_spill] sm:$0xff] }
 0x9bc   :  { %4503 = vmatmul.bf16.gmra.mxu2 %v11276_v16 }
 0x9bf   :  { %v4099_v27 = vpop.f32.mrf.mxu2 }
 0x9c0   :  { %v16847_v63 = vadd.f32 %v4099_v27, %v19936_v25  ;;  %v16881_v27 = vpop.f32.mrf.mxu1  ;;  %v13490_v25 = vld [vmem:[%s19705_s3 + $0x7cc] sm:$0xf] }
 0x9c1   :  { %v11308_v12 = vor.u32 %v13490_v25, %v11305_v46  ;;  %v13494_v46 = vld [vmem:[%s19705_s3 + $0x7ec] sm:$0xf] }
 0x9c2   :  { %19937 = vst [vmem:[#allocation40_spill] sm:$0xff] %v16847_v63  ;;  %4913 = vmatmul.bf16.gmra.mxu1 %v11464_v20  ;;  %v13565_v20 = vld [vmem:[%s19706_s4 + $0x90] sm:$0xff]  ;;  %v19948_v63 = vld [vmem:[#allocation23_spill] sm:$0xff] }
 0x9c3   :  { %5586 = vmatpush.bf16.msrb.mxu1 %v13565_v20 }
 0x9c7   :  { %v4101_v15 = vpop.f32.mrf.mxu2 }
 0x9c8   :  { %v16862_v38 = vadd.f32 %v4101_v15, %v19938_v17  ;;  %v4386_v15 = vpop.f32.mrf.mxu0  ;;  %v4337_v17 = vpop.f32.mrf.mxu3 }
 0x9c9   :  { %v16898_v30 = vpop.f32.mrf.mxu1 }
 0x9ca   :  { %19939 = vst [vmem:[#allocation42_spill] sm:$0xff] %v16862_v38 }
 0x9cc   :  { %4508 = vmatmul.bf16.gmra.mxu2 %v11292_v23  ;;  %v13527_v23 = vld [vmem:[%s19705_s3 + $0x8e4] sm:$0xf] }
 0x9cd   :  { %v11496_v31 = vor.u32 %v13527_v23, %v11493_v56 }
 0x9cf   :  { %v4104_v16 = vpop.f32.mrf.mxu2 }
 0x9d0   :  { %v16876_v11 = vadd.f32 %v4104_v16, %v19940_v36  ;;  %v19944_v16 = vld [vmem:[#allocation11_spill] sm:$0xff]  ;;  %v4388_v20 = vpop.f32.mrf.mxu0  ;;  %v4339_v25 = vpop.f32.mrf.mxu3 }
 0x9d2   :  { %19941 = vst [vmem:[#allocation43_spill] sm:$0xff] %v16876_v11  ;;  %4918 = vmatmul.bf16.gmra.mxu1 %v11480_v33 }
 0x9d7   :  { %v4106_v54 = vpop.f32.mrf.mxu2 }
 0x9d8   :  { %v16890_v35 = vadd.f32 %v4106_v54, %v19942_v57  ;;  %v11321_v54 = vld [vmem:[%s19705_s3 + $0x7f8] sm:$0xf0]  ;;  %v16909_v57 = vpop.f32.mrf.mxu1 }
 0x9d9   :  { %v11324_v56 = vor.u32 %v13494_v46, %v11321_v54  ;;  %v11387_v46 = vld [vmem:[%s19705_s3 + $0x808] sm:$0xf]  ;;  %v13502_v54 = vld [vmem:[%s19705_s3 + $0x814] sm:$0xf0] }
 0x9da   :  { %19943 = vst [vmem:[#allocation44_spill] sm:$0xff] %v16890_v35  ;;  %v19946_v35 = vld [vmem:[#allocation33_spill] sm:$0xff] }
 0x9dc   :  { %4513 = vmatmul.bf16.gmra.mxu2 %v11308_v12 }
 0x9df   :  { %v4109_v33 = vpop.f32.mrf.mxu2 }
 0x9e0   :  { %v16901_v36 = vadd.f32 %v4109_v33, %v19944_v16  ;;  %v13535_v33 = vld [vmem:[%s19705_s3 + $0x90c] sm:$0xf0]  ;;  %v4391_v16 = vpop.f32.mrf.mxu0  ;;  %v16923_v45 = vpop.f32.mrf.mxu1 }
 0x9e2   :  { %19945 = vst [vmem:[#allocation9_spill] sm:$0xff] %v16901_v36  ;;  %4923 = vmatmul.bf16.gmra.mxu1 %v11496_v31  ;;  %v11559_v31 = vld [vmem:[%s19705_s3 + $0x900] sm:$0xf]  ;;  %v4342_v36 = vpop.f32.mrf.mxu3 }
 0x9e3   :  { %v11560_v11 = vor.u32 %v13535_v33, %v11559_v31 }
 0x9e7   :  { %v4111_v12 = vpop.f32.mrf.mxu2 }
 0x9e8   :  { %v16912_v23 = vadd.f32 %v4111_v12, %v19946_v35  ;;  %v19950_v35 = vld [vmem:[#allocation25_spill] sm:$0xff]  ;;  %v4393_v12 = vpop.f32.mrf.mxu0 }
 0x9ea   :  { %19947 = vst [vmem:[#allocation5_spill] sm:$0xff] %v16912_v23  ;;  %v4344_v33 = vpop.f32.mrf.mxu3 }
 0x9ec   :  { %4518 = vmatmul.bf16.gmra.mxu2 %v11324_v56  ;;  %v19951_v56 = vld [vmem:[#allocation26_spill] sm:$0xff] }
 0x9ef   :  { %v4114_v38 = vpop.f32.mrf.mxu2 }
 0x9f0   :  { %v16921_v34 = vadd.f32 %v4114_v38, %v19948_v63  ;;  %v19952_v63 = vld [vmem:[#allocation24_spill] sm:$0xff]  ;;  %v4396_v23 = vpop.f32.mrf.mxu0 }
 0x9f2   :  { %19949 = vst [vmem:[#allocation21_spill] sm:$0xff] %v16921_v34  ;;  %5342 = vmatmul.bf16.vlgmr.msra.gmra.mxu1 %v11560_v11  ;;  %v11388_v34 = vor.u32 %v13502_v54, %v11387_v46  ;;  %v4347_v7 = vpop.f32.mrf.mxu3  ;;  %v13506_v46 = vld [vmem:[%s19705_s3 + $0x834] sm:$0xf0] }
 0x9f3   :  { %5984 = vmatpush.bf16.msra.mxu1 %v19950_v35  ;;  %v4387_v35 = vadd.f32 %v4386_v15, %v4337_v17 }
 0x9f7   :  { %5985 = vmatpush.bf16.msra.mxu1 %v19951_v56  ;;  %v4116_v31 = vpop.f32.mrf.mxu2  ;;  %v4389_v56 = vadd.f32 %v4388_v20, %v4339_v25 }
 0x9f8   :  { %v16934_v38 = vadd.f32 %v4116_v31, %v19952_v63  ;;  %v4436_v31 = vadd.f32 %v16778_v14, %v4387_v35  ;;  %v4398_v35 = vpop.f32.mrf.mxu0 }
 0x9f9   :  { %v4438_v15 = vadd.f32 %v16793_v8, %v4389_v56  ;;  %v4392_v56 = vadd.f32 %v4391_v16, %v4342_v36  ;;  %v13510_v36 = vld [vmem:[%s19705_s3 + $0x854] sm:$0xf0] }
 0x9fa   :  { %v4349_v63 = vpop.f32.mrf.mxu3 }
 0x9fb   :  { %5986 = vmatpush.bf16.msra.mxu1 %v19928_v47 }
 0x9fc   :  { %4937 = vmatmul.bf16.vlgmr.msrb.gmra.mxu2 %v11388_v34  ;;  %v11403_v34 = vld [vmem:[%s19705_s3 + $0x828] sm:$0xf] }
 0x9fd   :  { %5837 = vmatpush.bf16.msrb.mxu2 %v19885_v2  ;;  %v11404_v54 = vor.u32 %v13506_v46, %v11403_v34  ;;  %v11419_v46 = vld [vmem:[%s19705_s3 + $0x848] sm:$0xf] }
 0x9ff   :  { %5987 = vmatpush.bf16.msra.mxu1 %v19929_v5  ;;  %v4484_v11 = vpop.f32.mrf.mxu2 }
 0xa00   :  { %v4485_v20 = vadd.f32 %v4484_v11, %v4436_v31  ;;  %v4394_v11 = vadd.f32 %v4393_v12, %v4344_v33  ;;  %v4441_v31 = vadd.f32 %v16810_v32, %v4392_v56  ;;  %v4401_v34 = vpop.f32.mrf.mxu0  ;;  %v11420_v32 = vor.u32 %v13510_v36, %v11419_v46 }
 0xa01   :  { %5838 = vmatpush.bf16.msrb.mxu2 %v19905_v53  ;;  %v4397_v56 = vadd.f32 %v4396_v23, %v4347_v7 }
 0xa02   :  { %v4352_v16 = vpop.f32.mrf.mxu3 }
 0xa03   :  { %5988 = vmatpush.bf16.msra.mxu1 %v19886_v4 }
 0xa05   :  { %5839 = vmatpush.bf16.msrb.mxu2 %v19907_v41 }
 0xa07   :  { %5989 = vmatpush.bf16.msra.mxu1 %v19906_v19  ;;  %v4486_v17 = vpop.f32.mrf.mxu2 }
 0xa08   :  { %v4487_v25 = vadd.f32 %v4486_v17, %v4438_v15  ;;  %v4443_v15 = vadd.f32 %v16827_v42, %v4394_v11  ;;  %v4399_v42 = vadd.f32 %v4398_v35, %v4349_v63  ;;  %v11435_v11 = vld [vmem:[%s19705_s3 + $0x868] sm:$0xf] }
 0xa09   :  { %5840 = vmatpush.bf16.msrb.mxu2 %v19874_v43 }
 0xa0a   :  { %v4524_v14 = vpack.c.bf16 %v4487_v25, %v4485_v20  ;;  %v4403_v25 = vpop.f32.mrf.mxu0  ;;  %v4448_v46 = vadd.f32 %v16864_v26, %v4399_v42  ;;  %v11451_v26 = vld [vmem:[%s19705_s3 + $0x888] sm:$0xf] }
 0xa0b   :  { %5990 = vmatpush.bf16.msra.mxu1 %v19908_v3 }
 0xa0c   :  { %11337 = vmatmul.msk.bf16.vlgmr.msra.gmra.mxu3 %vm1461_vm1, %v4524_v14  ;;  %4942 = vmatmul.bf16.gmra.mxu2 %v11404_v54  ;;  %v4354_v14 = vpop.f32.mrf.mxu3 }
 0xa0d   :  { %5432 = vmatpush.bf16.msra.mxu3 %v14188_v62  ;;  %5841 = vmatpush.bf16.msrb.mxu2 %v19875_v49 }
 0xa0f   :  { %5991 = vmatpush.bf16.msra.mxu1 %v19930_v22  ;;  %v4489_v8 = vpop.f32.mrf.mxu2 }
 0xa10   :  { %v4490_v12 = vadd.f32 %v4489_v8, %v4441_v31  ;;  %v4446_v8 = vadd.f32 %v16844_v10, %v4397_v56  ;;  %v13514_v31 = vld [vmem:[%s19705_s3 + $0x874] sm:$0xf0] }
 0xa11   :  { %5433 = vmatpush.bf16.msra.mxu3 %v19876_v0  ;;  %5842 = vmatpush.bf16.msrb.mxu2 %v19910_v50  ;;  %v11436_v23 = vor.u32 %v13514_v31, %v11435_v11 }
 0xa14   :  { %v4357_v10 = vpop.f32.mrf.mxu3 }
 0xa15   :  { %5434 = vmatpush.bf16.msra.mxu3 %v19909_v60  ;;  %5843 = vmatpush.bf16.msrb.mxu2 %v19911_v24 }
 0xa17   :  { %v4491_v17 = vpop.f32.mrf.mxu2 }
 0xa18   :  { %v4492_v33 = vadd.f32 %v4491_v17, %v4443_v15  ;;  %v4406_v17 = vpop.f32.mrf.mxu0 }
 0xa19   :  { %5435 = vmatpush.bf16.msra.mxu3 %v14219_v29  ;;  %5844 = vmatpush.bf16.msrb.mxu2 %v19931_v48 }
 0xa1a   :  { %v4525_v20 = vpack.c.bf16 %v4492_v33, %v4490_v12  ;;  %v4402_v12 = vadd.f32 %v4401_v34, %v4352_v16  ;;  %v4404_v33 = vadd.f32 %v4403_v25, %v4354_v14  ;;  %v4407_v14 = vadd.f32 %v4406_v17, %v4357_v10 }
 0xa1c   :  { %11338 = vmatmul.msk.bf16.gmra.mxu3 %vm1461_vm1, %v4525_v20  ;;  %4947 = vmatmul.bf16.gmra.mxu2 %v11420_v32  ;;  %v4359_v20 = vpop.f32.mrf.mxu3  ;;  %v4451_v56 = vadd.f32 %v16881_v27, %v4402_v12  ;;  %v4453_v42 = vadd.f32 %v16898_v30, %v4404_v33  ;;  %v11467_v30 = vld [vmem:[%s19705_s3 + $0x8a8] sm:$0xf] }
 0xa1d   :  { %5436 = vmatpush.bf16.msra.mxu3 %v14135_v9 }
 0xa1f   :  { %v4494_v54 = vpop.f32.mrf.mxu2 }
 0xa20   :  { %v4495_v15 = vadd.f32 %v4494_v54, %v4446_v8  ;;  %v4408_v32 = vpop.f32.mrf.mxu0  ;;  %v13518_v54 = vld [vmem:[%s19705_s3 + $0x894] sm:$0xf0] }
 0xa21   :  { %5437 = vmatpush.bf16.msra.mxu3 %v19895_v55 }
 0xa24   :  { %v4362_v27 = vpop.f32.mrf.mxu3 }
 0xa25   :  { %5438 = vmatpush.bf16.msra.mxu3 %v19912_v40 }
 0xa27   :  { %v4496_v36 = vpop.f32.mrf.mxu2 }
 0xa28   :  { %v4497_v7 = vadd.f32 %v4496_v36, %v4448_v46  ;;  %v11452_v46 = vor.u32 %v13518_v54, %v11451_v26  ;;  %v4411_v16 = vpop.f32.mrf.mxu0  ;;  %v4460_v36 = vpop.f32.mrf.mxu1 }
 0xa29   :  { %5439 = vmatpush.bf16.msra.mxu3 %v19883_v59 }
 0xa2a   :  { %v4526_v35 = vpack.c.bf16 %v4497_v7, %v4495_v15  ;;  %v4409_v15 = vadd.f32 %v4408_v32, %v4359_v20  ;;  %v4456_v7 = vadd.f32 %v16909_v57, %v4407_v14  ;;  %v4412_v20 = vadd.f32 %v4411_v16, %v4362_v27 }
 0xa2c   :  { %11339 = vmatmul.msk.bf16.gmra.mxu3 %vm1461_vm1, %v4526_v35  ;;  %4952 = vmatmul.bf16.gmra.mxu2 %v11436_v23  ;;  %v13522_v23 = vld [vmem:[%s19705_s3 + $0x8b4] sm:$0xf0]  ;;  %v4458_v35 = vadd.f32 %v16923_v45, %v4409_v15  ;;  %v4364_v33 = vpop.f32.mrf.mxu3  ;;  %v11483_v45 = vld [vmem:[%s19705_s3 + $0x8c8] sm:$0xf] }
 0xa2d   :  { %v11468_v17 = vor.u32 %v13522_v23, %v11467_v30 }
 0xa2f   :  { %v4499_v63 = vpop.f32.mrf.mxu2 }
 0xa30   :  { %v4500_v11 = vadd.f32 %v4499_v63, %v4451_v56  ;;  %v4413_v63 = vpop.f32.mrf.mxu0  ;;  %v4462_v32 = vpop.f32.mrf.mxu1 }
 0xa37   :  { %v4501_v8 = vpop.f32.mrf.mxu2 }
 0xa38   :  { %v4502_v31 = vadd.f32 %v4501_v8, %v4453_v42  ;;  %v4416_v54 = vpop.f32.mrf.mxu0  ;;  %v4367_v42 = vpop.f32.mrf.mxu3  ;;  %v4414_v8 = vadd.f32 %v4413_v63, %v4364_v33 }
 0xa3a   :  { %v4527_v34 = vpack.c.bf16 %v4502_v31, %v4500_v11  ;;  %v4461_v11 = vadd.f32 %v4460_v36, %v4412_v20  ;;  %v4465_v31 = vpop.f32.mrf.mxu1 }
 0xa3c   :  { %11340 = vmatmul.msk.bf16.gmra.mxu3 %vm1461_vm1, %v4527_v34  ;;  %4957 = vmatmul.bf16.gmra.mxu2 %v11452_v46  ;;  %v13526_v46 = vld [vmem:[%s19705_s3 + $0x8d4] sm:$0xf0]  ;;  %v4463_v34 = vadd.f32 %v4462_v32, %v4414_v8 }
 0xa3f   :  { %v4504_v25 = vpop.f32.mrf.mxu2 }
 0xa40   :  { %v4505_v56 = vadd.f32 %v4504_v25, %v4456_v7  ;;  %v11484_v7 = vor.u32 %v13526_v46, %v11483_v45  ;;  %v4418_v16 = vpop.f32.mrf.mxu0  ;;  %v4369_v27 = vpop.f32.mrf.mxu3 }
 0xa41   :  { %v4419_v63 = vadd.f32 %v4418_v16, %v4369_v27  ;;  %v13505_v16 = vld [vmem:[%s19705_s3 + $0x82c] sm:$0xf0] }
 0xa42   :  { %v4467_v36 = vpop.f32.mrf.mxu1 }
 0xa47   :  { %v4506_v12 = vpop.f32.mrf.mxu2 }
 0xa48   :  { %v4507_v26 = vadd.f32 %v4506_v12, %v4458_v35  ;;  %v4417_v35 = vadd.f32 %v4416_v54, %v4367_v42  ;;  %v4421_v33 = vpop.f32.mrf.mxu0 }
 0xa4a   :  { %v4528_v10 = vpack.c.bf16 %v4507_v26, %v4505_v56  ;;  %v4466_v12 = vadd.f32 %v4465_v31, %v4417_v35  ;;  %v4372_v56 = vpop.f32.mrf.mxu3  ;;  %v11499_v26 = vld [vmem:[%s19705_s3 + $0x8e8] sm:$0xf] }
 0xa4b   :  { %v4422_v46 = vadd.f32 %v4421_v33, %v4372_v56  ;;  %v13500_v56 = vld [vmem:[%s19705_s3 + $0x80c] sm:$0xf] }
 0xa4c   :  { %11341 = vmatmul.msk.bf16.gmra.mxu3 %vm1461_vm1, %v4528_v10  ;;  %4962 = vmatmul.bf16.gmra.mxu2 %v11468_v17  ;;  %v13530_v17 = vld [vmem:[%s19705_s3 + $0x8f4] sm:$0xf0]  ;;  %v4468_v10 = vadd.f32 %v4467_v36, %v4419_v63 }
 0xa4d   :  { %v11500_v8 = vor.u32 %v13530_v17, %v11499_v26  ;;  %v11389_v26 = vld [vmem:[%s19705_s3 + $0x818] sm:$0xf0]  ;;  %v13537_v17 = vld [vmem:[%s19705_s3 + $0x924] sm:$0xf] }
 0xa4f   :  { %v4509_v57 = vpop.f32.mrf.mxu2 }
 0xa50   :  { %v4510_v14 = vadd.f32 %v4509_v57, %v4461_v11  ;;  %v4470_v11 = vpop.f32.mrf.mxu1  ;;  %v4423_v54 = vpop.f32.mrf.mxu0 }
 0xa52   :  { %v4374_v42 = vpop.f32.mrf.mxu3 }
 0xa57   :  { %v4511_v25 = vpop.f32.mrf.mxu2 }
 0xa58   :  { %v4512_v15 = vadd.f32 %v4511_v25, %v4463_v34  ;;  %v4424_v34 = vadd.f32 %v4423_v54, %v4374_v42  ;;  %v4472_v25 = vpop.f32.mrf.mxu1  ;;  %v11427_v42 = vld [vmem:[%s19705_s3 + $0x860] sm:$0xf] }
 0xa5a   :  { %v4529_v30 = vpack.c.bf16 %v4512_v15, %v4510_v14  ;;  %v4471_v14 = vadd.f32 %v4470_v11, %v4422_v46  ;;  %v13533_v15 = vld [vmem:[%s19705_s3 + $0x904] sm:$0xf]  ;;  %v4473_v27 = vadd.f32 %v4472_v25, %v4424_v34  ;;  %v13504_v46 = vld [vmem:[%s19705_s3 + $0x82c] sm:$0xf] }
 0xa5b   :  { %v13541_v25 = vld [vmem:[%s19705_s3 + $0x944] sm:$0xf] }
 0xa5c   :  { %11342 = vmatmul.msk.bf16.gmra.mxu3 %vm1461_vm1, %v4529_v30  ;;  %4967 = vmatmul.bf16.gmra.mxu2 %v11484_v7  ;;  %v11561_v7 = vld [vmem:[%s19705_s3 + $0x910] sm:$0xf0]  ;;  %v11395_v30 = vld [vmem:[%s19705_s3 + $0x820] sm:$0xf] }
 0xa5d   :  { %v11396_v36 = vor.u32 %v13505_v16, %v11395_v30 }
 0xa5f   :  { %v4514_v23 = vpop.f32.mrf.mxu2  ;;  %4844 = vmatmul.bf16.gmra.mxu0 %v11396_v36 }
 0xa60   :  { %v4515_v57 = vadd.f32 %v4514_v23, %v4466_v12  ;;  %v11564_v12 = vor.u32 %v13533_v15, %v11561_v7 }
 0xa67   :  { %v4516_v32 = vpop.f32.mrf.mxu2 }
 0xa68   :  { %v4517_v20 = vadd.f32 %v4516_v32, %v4468_v10  ;;  %v11577_v10 = vld [vmem:[%s19705_s3 + $0x930] sm:$0xf0]  ;;  %v11411_v32 = vld [vmem:[%s19705_s3 + $0x840] sm:$0xf] }
 0xa69   :  { %v11580_v11 = vor.u32 %v13537_v17, %v11577_v10 }
 0xa6a   :  { %v4530_v45 = vpack.c.bf16 %v4517_v20, %v4515_v57  ;;  %v13509_v57 = vld [vmem:[%s19705_s3 + $0x84c] sm:$0xf0] }
 0xa6b   :  { %v11412_v20 = vor.u32 %v13509_v57, %v11411_v32 }
 0xa6c   :  { %11343 = vmatmul.msk.bf16.gmra.mxu3 %vm1461_vm1, %v4530_v45  ;;  %4972 = vmatmul.bf16.gmra.mxu2 %v11500_v8  ;;  %v11392_v8 = vor.u32 %v13500_v56, %v11389_v26  ;;  %v11609_v56 = vld [vmem:[%s19705_s3 + $0x970] sm:$0xf0] }
 0xa6f   :  { %v4519_v31 = vpop.f32.mrf.mxu2  ;;  %4849 = vmatmul.bf16.gmra.mxu0 %v11412_v20 }
 0xa70   :  { %v4520_v35 = vadd.f32 %v4519_v31, %v4471_v14  ;;  %v13513_v31 = vld [vmem:[%s19705_s3 + $0x86c] sm:$0xf0]  ;;  %v11593_v14 = vld [vmem:[%s19705_s3 + $0x950] sm:$0xf0] }
 0xa71   :  { %v11428_v34 = vor.u32 %v13513_v31, %v11427_v42  ;;  %v11596_v16 = vor.u32 %v13541_v25, %v11593_v14  ;;  %v19954_v25 = vld [vmem:[#allocation34_spill] sm:$0xff] }
 0xa77   :  { %v4521_v23 = vpop.f32.mrf.mxu2 }
 0xa78   :  { %v4522_v63 = vadd.f32 %v4521_v23, %v4473_v27 }
 0xa7a   :  { %v4531_v33 = vpack.c.bf16 %v4522_v63, %v4520_v35  ;;  %v13517_v35 = vld [vmem:[%s19705_s3 + $0x88c] sm:$0xf0]  ;;  %v13508_v63 = vld [vmem:[%s19705_s3 + $0x84c] sm:$0xf] }
 0xa7c   :  { %11344 = vmatmul.msk.bf16.gmra.mxu3 %vm1461_vm1, %v4531_v33  ;;  %5391 = vmatmul.bf16.vlgmr.msra.gmra.mxu2 %v11564_v12  ;;  %v13545_v33 = vld [vmem:[%s19705_s3 + $0x964] sm:$0xf] }
 0xa7d   :  { %v11612_v32 = vor.u32 %v13545_v33, %v11609_v56  ;;  %v11453_v56 = vld [vmem:[%s19705_s3 + $0x898] sm:$0xf0] }
 0xa7f   :  { %4854 = vmatmul.bf16.gmra.mxu0 %v11428_v34  ;;  %v17080_v23 = vpop.f32.mrf.mxu2  ;;  %v11625_v34 = vld [vmem:[%s19705_s3 + $0x990] sm:$0xf0] }
 0xa87   :  { %v17106_v57 = vpop.f32.mrf.mxu2 }
 0xa8c   :  { %4986 = vmatmul.bf16.vlgmr.msrb.gmra.mxu3 %v11392_v8  ;;  %5396 = vmatmul.bf16.gmra.mxu2 %v11580_v11  ;;  %v11459_v11 = vld [vmem:[%s19705_s3 + $0x8a0] sm:$0xf] }
 0xa8d   :  { %5886 = vmatpush.bf16.msrb.mxu3 %v19850_v1 }
 0xa8f   :  { %v4582_v45 = vpop.f32.mrf.mxu3  ;;  %v17120_v42 = vpop.f32.mrf.mxu2 }
 0xa90   :  { %v17050_v54 = vadd.f32 %v4582_v45, %v16734_v18  ;;  %v11405_v18 = vld [vmem:[%s19705_s3 + $0x838] sm:$0xf0]  ;;  %v13512_v45 = vld [vmem:[%s19705_s3 + $0x86c] sm:$0xf] }
 0xa91   :  { %5887 = vmatpush.bf16.msrb.mxu3 %v19851_v52  ;;  %v11408_v30 = vor.u32 %v13504_v46, %v11405_v18  ;;  %v13549_v46 = vld [vmem:[%s19705_s3 + $0x984] sm:$0xf] }
 0xa95   :  { %5888 = vmatpush.bf16.msrb.mxu3 %v19852_v44 }
 0xa97   :  { %v4584_v15 = vpop.f32.mrf.mxu3 }
 0xa98   :  { %v17073_v7 = vadd.f32 %v4584_v15, %v16751_v37  ;;  %v11443_v37 = vld [vmem:[%s19705_s3 + $0x880] sm:$0xf] }
 0xa99   :  { %5889 = vmatpush.bf16.msrb.mxu3 %v19853_v21  ;;  %v11444_v12 = vor.u32 %v13517_v35, %v11443_v37  ;;  %v19956_v37 = vld [vmem:[#allocation36_spill] sm:$0xff] }
 0xa9b   :  { %4859 = vmatmul.bf16.gmra.mxu0 %v11444_v12  ;;  %v13525_v12 = vld [vmem:[%s19705_s3 + $0x8cc] sm:$0xf0] }
 0xa9c   :  { %4991 = vmatmul.bf16.gmra.mxu3 %v11408_v30  ;;  %5401 = vmatmul.bf16.gmra.mxu2 %v11596_v16  ;;  %v11628_v30 = vor.u32 %v13549_v46, %v11625_v34  ;;  %v17134_v16 = vpop.f32.mrf.mxu2  ;;  %v19960_v46 = vld [vmem:[#allocation40_spill] sm:$0xff] }
 0xa9d   :  { %5890 = vmatpush.bf16.msrb.mxu3 %v19854_v13 }
 0xa9f   :  { %v4587_v27 = vpop.f32.mrf.mxu3 }
 0xaa0   :  { %v17078_v36 = vadd.f32 %v4587_v27, %v16762_v61  ;;  %v11421_v61 = vld [vmem:[%s19705_s3 + $0x858] sm:$0xf0] }
 0xaa1   :  { %5891 = vmatpush.bf16.msrb.mxu3 %v19855_v39  ;;  %v11424_v10 = vor.u32 %v13508_v63, %v11421_v61  ;;  %v11475_v63 = vld [vmem:[%s19705_s3 + $0x8c0] sm:$0xf]  ;;  %v13516_v61 = vld [vmem:[%s19705_s3 + $0x88c] sm:$0xf] }
 0xaa2   :  { %v11476_v33 = vor.u32 %v13525_v12, %v11475_v63  ;;  %v13557_v63 = vld [vmem:[%s19705_s3 + $0x9c4] sm:$0xf]  ;;  %v11657_v12 = vld [vmem:[%s19705_s3 + $0x9d0] sm:$0xf0] }
 0xaa5   :  { %5892 = vmatpush.bf16.msrb.mxu3 %v19856_v28 }
 0xaa7   :  { %v4589_v26 = vpop.f32.mrf.mxu3 }
 0xaa8   :  { %v17103_v17 = vadd.f32 %v4589_v26, %v16781_v58  ;;  %v13521_v58 = vld [vmem:[%s19705_s3 + $0x8ac] sm:$0xf0]  ;;  %v13553_v26 = vld [vmem:[%s19705_s3 + $0x9a4] sm:$0xf] }
 0xaa9   :  { %5893 = vmatpush.bf16.msrb.mxu3 %v19857_v51  ;;  %v11460_v31 = vor.u32 %v13521_v58, %v11459_v11  ;;  %v11456_v58 = vor.u32 %v13516_v61, %v11453_v56  ;;  %v19973_v51 = vld [vmem:[#allocation26_spill] sm:$0xff] }
 0xaab   :  { %4864 = vmatmul.bf16.gmra.mxu0 %v11460_v31  ;;  %v17160_v31 = vpop.f32.mrf.mxu2 }
 0xaac   :  { %4996 = vmatmul.bf16.gmra.mxu3 %v11424_v10  ;;  %5406 = vmatmul.bf16.gmra.mxu2 %v11612_v32  ;;  %v11641_v10 = vld [vmem:[%s19705_s3 + $0x9b0] sm:$0xf0] }
 0xaaf   :  { %v4592_v20 = vpop.f32.mrf.mxu3 }
 0xab0   :  { %v17109_v8 = vadd.f32 %v4592_v20, %v16791_v6  ;;  %v11437_v6 = vld [vmem:[%s19705_s3 + $0x878] sm:$0xf0]  ;;  %v19958_v20 = vld [vmem:[#allocation38_spill] sm:$0xff] }
 0xab1   :  { %v11440_v15 = vor.u32 %v13512_v45, %v11437_v6  ;;  %v11644_v45 = vor.u32 %v13553_v26, %v11641_v10  ;;  %v11660_v10 = vor.u32 %v13557_v63, %v11657_v12  ;;  %v19966_v12 = vld [vmem:[#allocation44_spill] sm:$0xff] }
 0xab2   :  { %19953 = vst [vmem:[#allocation18_spill] sm:$0xff] %v17109_v8 }
 0xab7   :  { %v4594_v18 = vpop.f32.mrf.mxu3 }
 0xab8   :  { %v17132_v14 = vadd.f32 %v4594_v18, %v19954_v25  ;;  %v11491_v18 = vld [vmem:[%s19705_s3 + $0x8e0] sm:$0xf]  ;;  %v13529_v25 = vld [vmem:[%s19705_s3 + $0x8ec] sm:$0xf0] }
 0xaba   :  { %19955 = vst [vmem:[#allocation6_spill] sm:$0xff] %v17132_v14  ;;  %v19972_v14 = vld [vmem:[#allocation21_spill] sm:$0xff] }
 0xabb   :  { %4869 = vmatmul.bf16.gmra.mxu0 %v11476_v33  ;;  %v19962_v33 = vld [vmem:[#allocation42_spill] sm:$0xff] }
 0xabc   :  { %5001 = vmatmul.bf16.gmra.mxu3 %v11440_v15  ;;  %5411 = vmatmul.bf16.gmra.mxu2 %v11628_v30  ;;  %v17171_v15 = vpop.f32.mrf.mxu2  ;;  %v13520_v30 = vld [vmem:[%s19705_s3 + $0x8ac] sm:$0xf] }
 0xabf   :  { %v4597_v27 = vpop.f32.mrf.mxu3 }
 0xac0   :  { %v17137_v35 = vadd.f32 %v4597_v27, %v19956_v37  ;;  %v11492_v27 = vor.u32 %v13529_v25, %v11491_v18  ;;  %v11469_v37 = vld [vmem:[%s19705_s3 + $0x8b8] sm:$0xf0]  ;;  %v13524_v18 = vld [vmem:[%s19705_s3 + $0x8cc] sm:$0xf] }
 0xac1   :  { %v11472_v26 = vor.u32 %v13520_v30, %v11469_v37  ;;  %v11485_v25 = vld [vmem:[%s19705_s3 + $0x8d8] sm:$0xf0]  ;;  %v13561_v30 = vld [vmem:[%s19705_s3 + $0x9e4] sm:$0xf] }
 0xac2   :  { %19957 = vst [vmem:[#allocation29_spill] sm:$0xff] %v17137_v35 }
 0xac7   :  { %v4599_v32 = vpop.f32.mrf.mxu3 }
 0xac8   :  { %v17158_v11 = vadd.f32 %v4599_v32, %v19958_v20  ;;  %v13600_v32 = vld [vmem:[%s19706_s4 + $0xa8] sm:$0xff]  ;;  %v13599_v20 = vld [vmem:[%s19706_s4 + $0xa0] sm:$0xff] }
 0xac9   :  { %6088 = vmatpush.bf16.msra.mxu2 %v13600_v32  ;;  %v4840_v32 = vpop.f32.mrf.mxu0 }
 0xaca   :  { %19959 = vst [vmem:[#allocation20_spill] sm:$0xff] %v17158_v11  ;;  %v13528_v11 = vld [vmem:[%s19705_s3 + $0x8ec] sm:$0xf] }
 0xacb   :  { %4874 = vmatmul.bf16.gmra.mxu0 %v11492_v27  ;;  %v11673_v27 = vld [vmem:[%s19705_s3 + $0x9f0] sm:$0xf0] }
 0xacc   :  { %5006 = vmatmul.bf16.gmra.mxu3 %v11456_v58  ;;  %5416 = vmatmul.bf16.gmra.mxu2 %v11644_v45  ;;  %v17194_v58 = vpop.f32.mrf.mxu2 }
 0xacd   :  { %6089 = vmatpush.bf16.msra.mxu2 %v13599_v20 }
 0xacf   :  { %v4602_v6 = vpop.f32.mrf.mxu3 }
 0xad0   :  { %v17163_v34 = vadd.f32 %v4602_v6, %v19960_v46  ;;  %v19964_v6 = vld [vmem:[#allocation43_spill] sm:$0xff] }
 0xad2   :  { %19961 = vst [vmem:[#allocation35_spill] sm:$0xff] %v17163_v34  ;;  %v4842_v34 = vpop.f32.mrf.mxu0 }
 0xad4   :  { %v17211_v37 = vpop.f32.mrf.mxu2 }
 0xad7   :  { %v4604_v61 = vpop.f32.mrf.mxu3 }
 0xad8   :  { %v17186_v56 = vadd.f32 %v4604_v61, %v19962_v33  ;;  %v11488_v33 = vor.u32 %v13524_v18, %v11485_v25  ;;  %v11501_v18 = vld [vmem:[%s19705_s3 + $0x8f8] sm:$0xf0]  ;;  %v11739_v25 = vld [vmem:[%s19705_s3 + $0xa00] sm:$0xf] }
 0xada   :  { %19963 = vst [vmem:[#allocation7_spill] sm:$0xff] %v17186_v56 }
 0xadc   :  { %5011 = vmatmul.bf16.gmra.mxu3 %v11472_v26  ;;  %5421 = vmatmul.bf16.gmra.mxu2 %v11660_v10  ;;  %v11676_v26 = vor.u32 %v13561_v30, %v11673_v27  ;;  %v4889_v10 = vpop.f32.mrf.mxu1  ;;  %v13569_v30 = vld [vmem:[%s19705_s3 + $0xa0c] sm:$0xf0] }
 0xadf   :  { %v4607_v45 = vpop.f32.mrf.mxu3 }
 0xae0   :  { %v17197_v46 = vadd.f32 %v4607_v45, %v19964_v6  ;;  %v19968_v45 = vld [vmem:[#allocation9_spill] sm:$0xff] }
 0xae2   :  { %19965 = vst [vmem:[#allocation30_spill] sm:$0xff] %v17197_v46  ;;  %v17219_v46 = vpop.f32.mrf.mxu2 }
 0xae4   :  { %v4891_v56 = vpop.f32.mrf.mxu1 }
 0xae7   :  { %v4609_v63 = vpop.f32.mrf.mxu3 }
 0xae8   :  { %v17214_v61 = vadd.f32 %v4609_v63, %v19966_v12  ;;  %v19970_v63 = vld [vmem:[#allocation5_spill] sm:$0xff] }
 0xaea   :  { %19967 = vst [vmem:[#allocation8_spill] sm:$0xff] %v17214_v61  ;;  %v4845_v61 = vpop.f32.mrf.mxu0 }
 0xaec   :  { %5016 = vmatmul.bf16.gmra.mxu3 %v11488_v33  ;;  %5426 = vmatmul.bf16.gmra.mxu2 %v11676_v26  ;;  %v11504_v33 = vor.u32 %v13528_v11, %v11501_v18  ;;  %v11740_v26 = vor.u32 %v13569_v30, %v11739_v25  ;;  %v11567_v11 = vld [vmem:[%s19705_s3 + $0x908] sm:$0xf]  ;;  %v13536_v18 = vld [vmem:[%s19705_s3 + $0x914] sm:$0xf0] }
 0xaef   :  { %v4612_v20 = vpop.f32.mrf.mxu3 }
 0xaf0   :  { %v17217_v6 = vadd.f32 %v4612_v20, %v19968_v45  ;;  %v17236_v20 = vpop.f32.mrf.mxu2  ;;  %v4894_v45 = vpop.f32.mrf.mxu1 }
 0xaf2   :  { %19969 = vst [vmem:[#allocation22_spill] sm:$0xff] %v17217_v6  ;;  %v19971_v6 = vld [vmem:[#allocation25_spill] sm:$0xff] }
 0xaf7   :  { %v4614_v27 = vpop.f32.mrf.mxu3 }
 0xaf8   :  { %v17234_v12 = vadd.f32 %v4614_v27, %v19970_v63  ;;  %v4896_v25 = vpop.f32.mrf.mxu1  ;;  %v4847_v27 = vpop.f32.mrf.mxu0 }
 0xafc   :  { %5021 = vmatmul.bf16.gmra.mxu3 %v11504_v33  ;;  %5845 = vmatmul.bf16.vlgmr.msrb.gmra.mxu2 %v11740_v26  ;;  %v4890_v33 = vadd.f32 %v4889_v10, %v4840_v32  ;;  %v13540_v10 = vld [vmem:[%s19705_s3 + $0x934] sm:$0xf0] }
 0xafd   :  { %6487 = vmatpush.bf16.msrb.mxu2 %v19971_v6 }
 0xaff   :  { %v4617_v35 = vpop.f32.mrf.mxu3 }
 0xb00   :  { %v17240_v8 = vadd.f32 %v4617_v35, %v19972_v14  ;;  %v11568_v14 = vor.u32 %v13536_v18, %v11567_v11  ;;  %v4899_v26 = vpop.f32.mrf.mxu1  ;;  %v11583_v11 = vld [vmem:[%s19705_s3 + $0x928] sm:$0xf] }
 0xb01   :  { %6488 = vmatpush.bf16.msrb.mxu2 %v19973_v51  ;;  %v4892_v51 = vadd.f32 %v4891_v56, %v4842_v34  ;;  %v11584_v34 = vor.u32 %v13540_v10, %v11583_v11  ;;  %v11599_v11 = vld [vmem:[%s19705_s3 + $0x948] sm:$0xf] }
 0xb03   :  { %v4941_v32 = vadd.f32 %v17106_v57, %v4892_v51  ;;  %v4895_v51 = vadd.f32 %v4894_v45, %v4845_v61  ;;  %v4897_v57 = vadd.f32 %v4896_v25, %v4847_v27  ;;  %v13544_v61 = vld [vmem:[%s19705_s3 + $0x954] sm:$0xf0] }
 0xb05   :  { %6489 = vmatpush.bf16.msrb.mxu2 %v19928_v47  ;;  %v4850_v47 = vpop.f32.mrf.mxu0  ;;  %v4946_v10 = vadd.f32 %v17134_v16, %v4897_v57  ;;  %v13548_v57 = vld [vmem:[%s19705_s3 + $0x974] sm:$0xf0] }
 0xb07   :  { %v4619_v30 = vpop.f32.mrf.mxu3 }
 0xb08   :  { %v17251_v63 = vadd.f32 %v4619_v30, %v16934_v38  ;;  %v4939_v38 = vadd.f32 %v17080_v23, %v4890_v33  ;;  %v4901_v56 = vpop.f32.mrf.mxu1 }
 0xb09   :  { %6490 = vmatpush.bf16.msrb.mxu2 %v19929_v5 }
 0xb0c   :  { %5440 = vmatmul.bf16.vlgmr.msra.gmra.mxu3 %v11568_v14 }
 0xb0d   :  { %6340 = vmatpush.bf16.msra.mxu3 %v19885_v2  ;;  %6491 = vmatpush.bf16.msrb.mxu2 %v19886_v4  ;;  %v4852_v33 = vpop.f32.mrf.mxu0 }
 0xb0e   :  { %v4902_v16 = vadd.f32 %v4901_v56, %v4852_v33 }
 0xb0f   :  { %v4987_v35 = vpop.f32.mrf.mxu3 }
 0xb10   :  { %v4988_v30 = vadd.f32 %v4987_v35, %v4939_v38  ;;  %v4944_v35 = vadd.f32 %v17120_v42, %v4895_v51  ;;  %v4904_v38 = vpop.f32.mrf.mxu1  ;;  %v11600_v42 = vor.u32 %v13544_v61, %v11599_v11  ;;  %v11615_v51 = vld [vmem:[%s19705_s3 + $0x968] sm:$0xf] }
 0xb11   :  { %6341 = vmatpush.bf16.msra.mxu3 %v19905_v53  ;;  %6492 = vmatpush.bf16.msrb.mxu2 %v19906_v19 }
 0xb15   :  { %6342 = vmatpush.bf16.msra.mxu3 %v19907_v41  ;;  %6493 = vmatpush.bf16.msrb.mxu2 %v19908_v3  ;;  %v4855_v45 = vpop.f32.mrf.mxu0 }
 0xb17   :  { %v4989_v18 = vpop.f32.mrf.mxu3 }
 0xb18   :  { %v4990_v14 = vadd.f32 %v4989_v18, %v4941_v32 }
 0xb19   :  { %6343 = vmatpush.bf16.msra.mxu3 %v19874_v43  ;;  %6494 = vmatpush.bf16.msrb.mxu2 %v19930_v22 }
 0xb1a   :  { %v5027_v23 = vpack.c.bf16 %v4990_v14, %v4988_v30  ;;  %v4906_v30 = vpop.f32.mrf.mxu1 }
 0xb1c   :  { %11517 = vmatmul.msk.bf16.vlgmr.msrb.gmra.mxu0 %vm1461_vm1, %v5027_v23  ;;  %5445 = vmatmul.bf16.gmra.mxu3 %v11584_v34  ;;  %v4900_v23 = vadd.f32 %v4899_v26, %v4850_v47  ;;  %v11616_v26 = vor.u32 %v13548_v57, %v11615_v51 }
 0xb1d   :  { %5935 = vmatpush.bf16.msrb.mxu0 %v14188_v62  ;;  %6344 = vmatpush.bf16.msra.mxu3 %v19875_v49  ;;  %v4857_v34 = vpop.f32.mrf.mxu0 }
 0xb1f   :  { %v4992_v3 = vpop.f32.mrf.mxu3 }
 0xb20   :  { %v4993_v25 = vadd.f32 %v4992_v3, %v4944_v35  ;;  %v4949_v3 = vadd.f32 %v17160_v31, %v4900_v23  ;;  %v4951_v35 = vadd.f32 %v17171_v15, %v4902_v16  ;;  %v11631_v15 = vld [vmem:[%s19705_s3 + $0x988] sm:$0xf] }
 0xb21   :  { %5936 = vmatpush.bf16.msrb.mxu0 %v19876_v0  ;;  %6345 = vmatpush.bf16.msra.mxu3 %v19910_v50 }
 0xb25   :  { %5937 = vmatpush.bf16.msrb.mxu0 %v19909_v60  ;;  %6346 = vmatpush.bf16.msra.mxu3 %v19911_v24  ;;  %v4860_v31 = vpop.f32.mrf.mxu0 }
 0xb27   :  { %v4994_v32 = vpop.f32.mrf.mxu3 }
 0xb28   :  { %v4995_v27 = vadd.f32 %v4994_v32, %v4946_v10  ;;  %v4909_v10 = vpop.f32.mrf.mxu1  ;;  %v4905_v32 = vadd.f32 %v4904_v38, %v4855_v45 }
 0xb29   :  { %5938 = vmatpush.bf16.msrb.mxu0 %v14219_v29  ;;  %6347 = vmatpush.bf16.msra.mxu3 %v19931_v48 }
 0xb2a   :  { %v5028_v18 = vpack.c.bf16 %v4995_v27, %v4993_v25  ;;  %v4907_v25 = vadd.f32 %v4906_v30, %v4857_v34  ;;  %v4910_v34 = vadd.f32 %v4909_v10, %v4860_v31 }
 0xb2c   :  { %11518 = vmatmul.msk.bf16.gmra.mxu0 %vm1461_vm1, %v5028_v18  ;;  %5450 = vmatmul.bf16.gmra.mxu3 %v11600_v42  ;;  %v4954_v18 = vadd.f32 %v17194_v58, %v4905_v32  ;;  %v4956_v23 = vadd.f32 %v17211_v37, %v4907_v25  ;;  %v11647_v37 = vld [vmem:[%s19705_s3 + $0x9a8] sm:$0xf] }
 0xb2d   :  { %5939 = vmatpush.bf16.msrb.mxu0 %v14135_v9  ;;  %v4862_v42 = vpop.f32.mrf.mxu0 }
 0xb2f   :  { %v4997_v14 = vpop.f32.mrf.mxu3 }
 0xb30   :  { %v4998_v61 = vadd.f32 %v4997_v14, %v4949_v3  ;;  %v4911_v27 = vpop.f32.mrf.mxu1  ;;  %v13552_v14 = vld [vmem:[%s19705_s3 + $0x994] sm:$0xf0] }
 0xb31   :  { %5940 = vmatpush.bf16.msrb.mxu0 %v19895_v55  ;;  %v11632_v57 = vor.u32 %v13552_v14, %v11631_v15 }
 0xb35   :  { %5941 = vmatpush.bf16.msrb.mxu0 %v19912_v40  ;;  %v4865_v58 = vpop.f32.mrf.mxu0 }
 0xb37   :  { %v4999_v11 = vpop.f32.mrf.mxu3 }
 0xb38   :  { %v5000_v47 = vadd.f32 %v4999_v11, %v4951_v35  ;;  %v4914_v45 = vpop.f32.mrf.mxu1  ;;  %v4963_v35 = vpop.f32.mrf.mxu2  ;;  %v4912_v11 = vadd.f32 %v4911_v27, %v4862_v42 }
 0xb39   :  { %5942 = vmatpush.bf16.msrb.mxu0 %v19883_v59  ;;  %v4915_v42 = vadd.f32 %v4914_v45, %v4865_v58 }
 0xb3a   :  { %v5029_v56 = vpack.c.bf16 %v5000_v47, %v4998_v61  ;;  %v4959_v61 = vadd.f32 %v17219_v46, %v4910_v34  ;;  %v13556_v47 = vld [vmem:[%s19705_s3 + $0x9b4] sm:$0xf0] }
 0xb3b   :  { %v11648_v10 = vor.u32 %v13556_v47, %v11647_v37 }
 0xb3c   :  { %11519 = vmatmul.msk.bf16.gmra.mxu0 %vm1461_vm1, %v5029_v56  ;;  %5455 = vmatmul.bf16.gmra.mxu3 %v11616_v26  ;;  %v4961_v26 = vadd.f32 %v17236_v20, %v4912_v11  ;;  %v11663_v20 = vld [vmem:[%s19705_s3 + $0x9c8] sm:$0xf] }
 0xb3d   :  { %v4867_v32 = vpop.f32.mrf.mxu0 }
 0xb3f   :  { %v5002_v33 = vpop.f32.mrf.mxu3 }
 0xb40   :  { %v5003_v3 = vadd.f32 %v5002_v33, %v4954_v18  ;;  %v4916_v56 = vpop.f32.mrf.mxu1  ;;  %v4965_v27 = vpop.f32.mrf.mxu2 }
 0xb45   :  { %v4870_v14 = vpop.f32.mrf.mxu0 }
 0xb47   :  { %v5004_v16 = vpop.f32.mrf.mxu3 }
 0xb48   :  { %v5005_v51 = vadd.f32 %v5004_v16, %v4956_v23  ;;  %v4919_v15 = vpop.f32.mrf.mxu1  ;;  %v4917_v23 = vadd.f32 %v4916_v56, %v4867_v32  ;;  %v4964_v16 = vadd.f32 %v4963_v35, %v4915_v42 }
 0xb49   :  { %v4920_v47 = vadd.f32 %v4919_v15, %v4870_v14  ;;  %v11575_v15 = vld [vmem:[%s19705_s3 + $0x920] sm:$0xf]  ;;  %v13539_v14 = vld [vmem:[%s19705_s3 + $0x92c] sm:$0xf0] }
 0xb4a   :  { %v5030_v38 = vpack.c.bf16 %v5005_v51, %v5003_v3  ;;  %v4968_v3 = vpop.f32.mrf.mxu2  ;;  %v13560_v51 = vld [vmem:[%s19705_s3 + $0x9d4] sm:$0xf0] }
 0xb4b   :  { %v11664_v11 = vor.u32 %v13560_v51, %v11663_v20  ;;  %v4969_v56 = vadd.f32 %v4968_v3, %v4920_v47  ;;  %v11576_v20 = vor.u32 %v13539_v14, %v11575_v15  ;;  %v11607_v15 = vld [vmem:[%s19705_s3 + $0x960] sm:$0xf]  ;;  %v13547_v14 = vld [vmem:[%s19705_s3 + $0x96c] sm:$0xf0] }
 0xb4c   :  { %11520 = vmatmul.msk.bf16.gmra.mxu0 %vm1461_vm1, %v5030_v38  ;;  %5460 = vmatmul.bf16.gmra.mxu3 %v11632_v57  ;;  %v4966_v57 = vadd.f32 %v4965_v27, %v4917_v23 }
 0xb4d   :  { %v4872_v58 = vpop.f32.mrf.mxu0  ;;  %5347 = vmatmul.bf16.gmra.mxu1 %v11576_v20 }
 0xb4f   :  { %v5007_v30 = vpop.f32.mrf.mxu3 }
 0xb50   :  { %v5008_v25 = vadd.f32 %v5007_v30, %v4959_v61  ;;  %v4921_v45 = vpop.f32.mrf.mxu1 }
 0xb52   :  { %v4970_v35 = vpop.f32.mrf.mxu2 }
 0xb55   :  { %v4875_v32 = vpop.f32.mrf.mxu0 }
 0xb57   :  { %v5009_v33 = vpop.f32.mrf.mxu3 }
 0xb58   :  { %v5010_v18 = vadd.f32 %v5009_v33, %v4961_v26  ;;  %v4922_v26 = vadd.f32 %v4921_v45, %v4872_v58  ;;  %v4924_v33 = vpop.f32.mrf.mxu1  ;;  %v11741_v45 = vld [vmem:[%s19705_s3 + $0xa10] sm:$0xf0] }
 0xb5a   :  { %v5031_v31 = vpack.c.bf16 %v5010_v18, %v5008_v25  ;;  %v11679_v25 = vld [vmem:[%s19705_s3 + $0x9e8] sm:$0xf]  ;;  %v13564_v18 = vld [vmem:[%s19705_s3 + $0x9f4] sm:$0xf0]  ;;  %v4973_v23 = vpop.f32.mrf.mxu2 }
 0xb5b   :  { %v11680_v42 = vor.u32 %v13564_v18, %v11679_v25  ;;  %v13534_v18 = vld [vmem:[%s19705_s3 + $0x90c] sm:$0xf] }
 0xb5c   :  { %11521 = vmatmul.msk.bf16.gmra.mxu0 %vm1461_vm1, %v5031_v31  ;;  %5465 = vmatmul.bf16.gmra.mxu3 %v11648_v10  ;;  %v4971_v10 = vadd.f32 %v4970_v35, %v4922_v26 }
 0xb5d   :  { %v4877_v51 = vpop.f32.mrf.mxu0 }
 0xb5f   :  { %v5012_v46 = vpop.f32.mrf.mxu3 }
 0xb60   :  { %v5013_v30 = vadd.f32 %v5012_v46, %v4964_v16  ;;  %v4926_v3 = vpop.f32.mrf.mxu1 }
 0xb67   :  { %v5014_v38 = vpop.f32.mrf.mxu3 }
 0xb68   :  { %v5015_v34 = vadd.f32 %v5014_v38, %v4966_v57  ;;  %v4925_v38 = vadd.f32 %v4924_v33, %v4875_v32  ;;  %v11591_v33 = vld [vmem:[%s19705_s3 + $0x940] sm:$0xf]  ;;  %v13543_v32 = vld [vmem:[%s19705_s3 + $0x94c] sm:$0xf0] }
 0xb69   :  { %v11592_v25 = vor.u32 %v13543_v32, %v11591_v33  ;;  %v13579_v33 = vld [vmem:[%s19705_s3 + $0xa64] sm:$0xf]  ;;  %v11789_v32 = vld [vmem:[%s19705_s3 + $0xa70] sm:$0xf0] }
 0xb6a   :  { %v5032_v61 = vpack.c.bf16 %v5015_v34, %v5013_v30  ;;  %v4927_v30 = vadd.f32 %v4926_v3, %v4877_v51  ;;  %v4975_v34 = vpop.f32.mrf.mxu2  ;;  %v11608_v3 = vor.u32 %v13547_v14, %v11607_v15  ;;  %v13538_v51 = vld [vmem:[%s19705_s3 + $0x92c] sm:$0xf] }
 0xb6b   :  { %5352 = vmatmul.bf16.gmra.mxu1 %v11592_v25  ;;  %v11792_v25 = vor.u32 %v13579_v33, %v11789_v32 }
 0xb6c   :  { %11522 = vmatmul.msk.bf16.gmra.mxu0 %vm1461_vm1, %v5032_v61  ;;  %5470 = vmatmul.bf16.gmra.mxu3 %v11664_v11  ;;  %v4974_v11 = vadd.f32 %v4973_v23, %v4925_v38  ;;  %v13567_v61 = vld [vmem:[%s19705_s3 + $0xa04] sm:$0xf]  ;;  %v4976_v58 = vadd.f32 %v4975_v34, %v4927_v30  ;;  %v11773_v30 = vld [vmem:[%s19705_s3 + $0xa50] sm:$0xf0] }
 0xb6d   :  { %v11744_v26 = vor.u32 %v13567_v61, %v11741_v45  ;;  %v13575_v38 = vld [vmem:[%s19705_s3 + $0xa44] sm:$0xf]  ;;  %v11623_v45 = vld [vmem:[%s19705_s3 + $0x980] sm:$0xf] }
 0xb6e   :  { %v11776_v34 = vor.u32 %v13575_v38, %v11773_v30  ;;  %v11617_v38 = vld [vmem:[%s19705_s3 + $0x978] sm:$0xf0]  ;;  %v13583_v30 = vld [vmem:[%s19705_s3 + $0xa84] sm:$0xf] }
 0xb6f   :  { %v5017_v37 = vpop.f32.mrf.mxu3 }
 0xb70   :  { %v5018_v27 = vadd.f32 %v5017_v37, %v4969_v56 }
 0xb77   :  { %v5019_v31 = vpop.f32.mrf.mxu3 }
 0xb78   :  { %v5020_v46 = vadd.f32 %v5019_v31, %v4971_v10  ;;  %v11569_v10 = vld [vmem:[%s19705_s3 + $0x918] sm:$0xf0]  ;;  %v13571_v31 = vld [vmem:[%s19705_s3 + $0xa24] sm:$0xf] }
 0xb7a   :  { %v5033_v16 = vpack.c.bf16 %v5020_v46, %v5018_v27  ;;  %v11757_v27 = vld [vmem:[%s19705_s3 + $0xa30] sm:$0xf0]  ;;  %v11572_v46 = vor.u32 %v13534_v18, %v11569_v10  ;;  %v19974_v18 = vld [vmem:[#allocation10_spill] sm:$0xff] }
 0xb7b   :  { %5357 = vmatmul.bf16.gmra.mxu1 %v11608_v3  ;;  %v19977_v3 = vld [vmem:[#allocation6_spill] sm:$0xff] }
 0xb7c   :  { %11523 = vmatmul.msk.bf16.gmra.mxu0 %vm1461_vm1, %v5033_v16  ;;  %5475 = vmatmul.bf16.gmra.mxu3 %v11680_v42  ;;  %v11760_v42 = vor.u32 %v13571_v31, %v11757_v27  ;;  %v19975_v31 = vld [vmem:[#allocation18_spill] sm:$0xff] }
 0xb7f   :  { %v5022_v57 = vpop.f32.mrf.mxu3 }
 0xb80   :  { %v5023_v37 = vadd.f32 %v5022_v57, %v4974_v11  ;;  %v11585_v57 = vld [vmem:[%s19705_s3 + $0x938] sm:$0xf0] }
 0xb87   :  { %v5024_v35 = vpop.f32.mrf.mxu3 }
 0xb88   :  { %v5025_v47 = vadd.f32 %v5024_v35, %v4976_v58  ;;  %v13551_v58 = vld [vmem:[%s19705_s3 + $0x98c] sm:$0xf0] }
 0xb89   :  { %v11624_v35 = vor.u32 %v13551_v58, %v11623_v45  ;;  %v19979_v58 = vld [vmem:[#allocation29_spill] sm:$0xff] }
 0xb8a   :  { %v5034_v56 = vpack.c.bf16 %v5025_v47, %v5023_v37 }
 0xb8b   :  { %5362 = vmatmul.bf16.gmra.mxu1 %v11624_v35 }
 0xb8c   :  { %11524 = vmatmul.msk.bf16.gmra.mxu0 %vm1461_vm1, %v5034_v56  ;;  %5894 = vmatmul.bf16.vlgmr.msrb.gmra.mxu3 %v11744_v26  ;;  %v13542_v26 = vld [vmem:[%s19705_s3 + $0x94c] sm:$0xf]  ;;  %v11601_v56 = vld [vmem:[%s19705_s3 + $0x958] sm:$0xf0] }
 0xb8f   :  { %v17402_v37 = vpop.f32.mrf.mxu3 }
 0xb99   :  { %v5085_v23 = vpop.f32.mrf.mxu0 }
 0xb9a   :  { %v17365_v16 = vadd.f32 %v5085_v23, %v17050_v54  ;;  %v13555_v23 = vld [vmem:[%s19705_s3 + $0x9ac] sm:$0xf0] }
 0xb9c   :  { %5489 = vmatmul.bf16.vlgmr.msra.gmra.mxu0 %v11572_v46  ;;  %5899 = vmatmul.bf16.gmra.mxu3 %v11760_v42  ;;  %v17425_v46 = vpop.f32.mrf.mxu3  ;;  %v11639_v42 = vld [vmem:[%s19705_s3 + $0x9a0] sm:$0xf] }
 0xb9d   :  { %6389 = vmatpush.bf16.msra.mxu0 %v19850_v1  ;;  %v11640_v15 = vor.u32 %v13555_v23, %v11639_v42  ;;  %v13587_v42 = vld [vmem:[%s19705_s3 + $0xaa4] sm:$0xf]  ;;  %v11821_v23 = vld [vmem:[%s19705_s3 + $0xab0] sm:$0xf0] }
 0xb9f   :  { %5367 = vmatmul.bf16.gmra.mxu1 %v11640_v15 }
 0xba1   :  { %6390 = vmatpush.bf16.msra.mxu0 %v19851_v52  ;;  %v5087_v20 = vpop.f32.mrf.mxu0 }
 0xba2   :  { %v17376_v54 = vadd.f32 %v5087_v20, %v17073_v7  ;;  %v11588_v7 = vor.u32 %v13538_v51, %v11585_v57  ;;  %v13546_v51 = vld [vmem:[%s19705_s3 + $0x96c] sm:$0xf] }
 0xba4   :  { %v17439_v57 = vpop.f32.mrf.mxu3 }
 0xba5   :  { %6391 = vmatpush.bf16.msra.mxu0 %v19852_v44 }
 0xba9   :  { %6392 = vmatpush.bf16.msra.mxu0 %v19853_v21  ;;  %v5090_v11 = vpop.f32.mrf.mxu0 }
 0xbaa   :  { %v17393_v61 = vadd.f32 %v5090_v11, %v17078_v36 }
 0xbac   :  { %5494 = vmatmul.bf16.gmra.mxu0 %v11588_v7  ;;  %5904 = vmatmul.bf16.gmra.mxu3 %v11776_v34  ;;  %v11805_v7 = vld [vmem:[%s19705_s3 + $0xa90] sm:$0xf0]  ;;  %v11620_v34 = vor.u32 %v13546_v51, %v11617_v38  ;;  %v19983_v38 = vld [vmem:[#allocation35_spill] sm:$0xff] }
 0xbad   :  { %6393 = vmatpush.bf16.msra.mxu0 %v19854_v13  ;;  %v11808_v11 = vor.u32 %v13583_v30, %v11805_v7  ;;  %v11671_v7 = vld [vmem:[%s19705_s3 + $0x9e0] sm:$0xf] }
 0xbb1   :  { %6394 = vmatpush.bf16.msra.mxu0 %v19855_v39  ;;  %v5092_v36 = vpop.f32.mrf.mxu0 }
 0xbb2   :  { %v17406_v47 = vadd.f32 %v5092_v36, %v17103_v17  ;;  %v11604_v17 = vor.u32 %v13542_v26, %v11601_v56  ;;  %v11655_v36 = vld [vmem:[%s19705_s3 + $0x9c0] sm:$0xf]  ;;  %v13559_v26 = vld [vmem:[%s19705_s3 + $0x9cc] sm:$0xf0]  ;;  %v17459_v56 = vpop.f32.mrf.mxu3 }
 0xbb3   :  { %v11656_v33 = vor.u32 %v13559_v26, %v11655_v36 }
 0xbb5   :  { %6395 = vmatpush.bf16.msra.mxu0 %v19856_v28  ;;  %5372 = vmatmul.bf16.gmra.mxu1 %v11656_v33  ;;  %v13634_v33 = vld [vmem:[%s19706_s4 + $0xb8] sm:$0xff] }
 0xbb6   :  { %6591 = vmatpush.bf16.msrb.mxu3 %v13634_v33  ;;  %v5392_v33 = vpop.f32.mrf.mxu2 }
 0xbb9   :  { %6396 = vmatpush.bf16.msra.mxu0 %v19974_v18  ;;  %v5095_v10 = vpop.f32.mrf.mxu0 }
 0xbba   :  { %v17423_v27 = vadd.f32 %v5095_v10, %v19975_v31  ;;  %v13550_v10 = vld [vmem:[%s19705_s3 + $0x98c] sm:$0xf]  ;;  %v11633_v31 = vld [vmem:[%s19705_s3 + $0x998] sm:$0xf0] }
 0xbbb   :  { %v11636_v15 = vor.u32 %v13550_v10, %v11633_v31  ;;  %v13591_v10 = vld [vmem:[%s19705_s3 + $0xac4] sm:$0xf]  ;;  %v11837_v31 = vld [vmem:[%s19705_s3 + $0xad0] sm:$0xf0] }
 0xbbc   :  { %19976 = vst [vmem:[#allocation4_spill] sm:$0xff] %v17423_v27  ;;  %5499 = vmatmul.bf16.gmra.mxu0 %v11604_v17  ;;  %5909 = vmatmul.bf16.gmra.mxu3 %v11792_v25  ;;  %v19981_v17 = vld [vmem:[#allocation20_spill] sm:$0xff] }
 0xbc1   :  { %v5097_v14 = vpop.f32.mrf.mxu0 }
 0xbc2   :  { %v17434_v20 = vadd.f32 %v5097_v14, %v19977_v3  ;;  %v11824_v14 = vor.u32 %v13587_v42, %v11821_v23  ;;  %v17476_v3 = vpop.f32.mrf.mxu3  ;;  %v11840_v23 = vor.u32 %v13591_v10, %v11837_v31  ;;  %v13595_v10 = vld [vmem:[%s19705_s3 + $0xae4] sm:$0xf]  ;;  %v11853_v31 = vld [vmem:[%s19705_s3 + $0xaf0] sm:$0xf0] }
 0xbc4   :  { %19978 = vst [vmem:[#allocation3_spill] sm:$0xff] %v17434_v20 }
 0xbc9   :  { %v5100_v45 = vpop.f32.mrf.mxu0 }
 0xbca   :  { %v17451_v35 = vadd.f32 %v5100_v45, %v19979_v58  ;;  %v19985_v58 = vld [vmem:[#allocation7_spill] sm:$0xff]  ;;  %v17490_v26 = vpop.f32.mrf.mxu3 }
 0xbcc   :  { %19980 = vst [vmem:[#allocation19_spill] sm:$0xff] %v17451_v35  ;;  %5504 = vmatmul.bf16.gmra.mxu0 %v11620_v34  ;;  %5914 = vmatmul.bf16.gmra.mxu3 %v11808_v11  ;;  %v13563_v34 = vld [vmem:[%s19705_s3 + $0x9ec] sm:$0xf0] }
 0xbcd   :  { %v11672_v11 = vor.u32 %v13563_v34, %v11671_v7 }
 0xbcf   :  { %5377 = vmatmul.bf16.gmra.mxu1 %v11672_v11  ;;  %v19989_v11 = vld [vmem:[#allocation8_spill] sm:$0xff] }
 0xbd1   :  { %v5102_v32 = vpop.f32.mrf.mxu0 }
 0xbd2   :  { %v17462_v25 = vadd.f32 %v5102_v32, %v19981_v17  ;;  %v13554_v32 = vld [vmem:[%s19705_s3 + $0x9ac] sm:$0xf]  ;;  %v11649_v17 = vld [vmem:[%s19705_s3 + $0x9b8] sm:$0xf0]  ;;  %v17513_v7 = vpop.f32.mrf.mxu3 }
 0xbd3   :  { %v11652_v42 = vor.u32 %v13554_v32, %v11649_v17  ;;  %v13558_v32 = vld [vmem:[%s19705_s3 + $0x9cc] sm:$0xf]  ;;  %v11665_v17 = vld [vmem:[%s19705_s3 + $0x9d8] sm:$0xf0] }
 0xbd4   :  { %19982 = vst [vmem:[#allocation37_spill] sm:$0xff] %v17462_v25  ;;  %v13562_v25 = vld [vmem:[%s19705_s3 + $0x9ec] sm:$0xf] }
 0xbd9   :  { %v5105_v51 = vpop.f32.mrf.mxu0 }
 0xbda   :  { %v17479_v30 = vadd.f32 %v5105_v51, %v19983_v38  ;;  %v13633_v38 = vld [vmem:[%s19706_s4 + $0xb0] sm:$0xff] }
 0xbdb   :  { %6592 = vmatpush.bf16.msrb.mxu3 %v13633_v38  ;;  %v19991_v38 = vld [vmem:[#allocation22_spill] sm:$0xff] }
 0xbdc   :  { %19984 = vst [vmem:[#allocation39_spill] sm:$0xff] %v17479_v30  ;;  %5509 = vmatmul.bf16.gmra.mxu0 %v11636_v15  ;;  %5919 = vmatmul.bf16.gmra.mxu3 %v11824_v14  ;;  %v19987_v14 = vld [vmem:[#allocation30_spill] sm:$0xff] }
 0xbe1   :  { %v5107_v45 = vpop.f32.mrf.mxu0 }
 0xbe2   :  { %v17488_v36 = vadd.f32 %v5107_v45, %v19985_v58  ;;  %v5343_v58 = vpop.f32.mrf.mxu1 }
 0xbe4   :  { %19986 = vst [vmem:[#allocation41_spill] sm:$0xff] %v17488_v36 }
 0xbe9   :  { %v5110_v15 = vpop.f32.mrf.mxu0 }
 0xbea   :  { %v17508_v51 = vadd.f32 %v5110_v15, %v19987_v14  ;;  %v11856_v15 = vor.u32 %v13595_v10, %v11853_v31  ;;  %v13603_v10 = vld [vmem:[%s19705_s3 + $0xb0c] sm:$0xf0] }
 0xbec   :  { %19988 = vst [vmem:[#allocation14_spill] sm:$0xff] %v17508_v51  ;;  %5514 = vmatmul.bf16.gmra.mxu0 %v11652_v42  ;;  %5924 = vmatmul.bf16.gmra.mxu3 %v11840_v23  ;;  %v17530_v42 = vpop.f32.mrf.mxu3  ;;  %v11668_v23 = vor.u32 %v13558_v32, %v11665_v17  ;;  %v11681_v32 = vld [vmem:[%s19705_s3 + $0x9f8] sm:$0xf0]  ;;  %v11919_v17 = vld [vmem:[%s19705_s3 + $0xb00] sm:$0xf] }
 0xbf1   :  { %v5112_v34 = vpop.f32.mrf.mxu0 }
 0xbf2   :  { %v17516_v45 = vadd.f32 %v5112_v34, %v19989_v11  ;;  %v5345_v11 = vpop.f32.mrf.mxu1 }
 0xbf4   :  { %19990 = vst [vmem:[#allocation32_spill] sm:$0xff] %v17516_v45  ;;  %v5394_v45 = vpop.f32.mrf.mxu2  ;;  %v17535_v51 = vpop.f32.mrf.mxu3 }
 0xbf9   :  { %v5115_v14 = vpop.f32.mrf.mxu0 }
 0xbfa   :  { %v17533_v34 = vadd.f32 %v5115_v14, %v19991_v38  ;;  %v5348_v31 = vpop.f32.mrf.mxu1 }
 0xbfc   :  { %19992 = vst [vmem:[#allocation2_spill] sm:$0xff] %v17533_v34  ;;  %5519 = vmatmul.bf16.gmra.mxu0 %v11668_v23  ;;  %5929 = vmatmul.bf16.gmra.mxu3 %v11856_v15  ;;  %v5397_v23 = vpop.f32.mrf.mxu2  ;;  %v17555_v38 = vpop.f32.mrf.mxu3  ;;  %v19994_v34 = vld [vmem:[#allocation26_spill] sm:$0xff] }
 0xc01   :  { %v5117_v36 = vpop.f32.mrf.mxu0 }
 0xc02   :  { %v17538_v30 = vadd.f32 %v5117_v36, %v17234_v12  ;;  %v11684_v12 = vor.u32 %v13562_v25, %v11681_v32  ;;  %v11920_v36 = vor.u32 %v13603_v10, %v11919_v17  ;;  %v19995_v25 = vld [vmem:[#allocation27_spill] sm:$0xff]  ;;  %v13570_v32 = vld [vmem:[%s19705_s3 + $0xa14] sm:$0xf0] }
 0xc04   :  { %19993 = vst [vmem:[#allocation15_spill] sm:$0xff] %v17538_v30  ;;  %v5350_v30 = vpop.f32.mrf.mxu1  ;;  %v5399_v20 = vpop.f32.mrf.mxu2 }
 0xc09   :  { %v5120_v15 = vpop.f32.mrf.mxu0 }
 0xc0a   :  { %v17553_v14 = vadd.f32 %v5120_v15, %v17240_v8  ;;  %v11747_v8 = vld [vmem:[%s19705_s3 + $0xa08] sm:$0xf] }
 0xc0b   :  { %v11748_v17 = vor.u32 %v13570_v32, %v11747_v8 }
 0xc0c   :  { %5524 = vmatmul.bf16.gmra.mxu0 %v11684_v12  ;;  %6348 = vmatmul.bf16.vlgmr.msra.gmra.mxu3 %v11920_v36  ;;  %v5393_v12 = vadd.f32 %v5392_v33, %v5343_v58  ;;  %v5353_v36 = vpop.f32.mrf.mxu1  ;;  %v5402_v15 = vpop.f32.mrf.mxu2 }
 0xc0d   :  { %6990 = vmatpush.bf16.msra.mxu3 %v19971_v6 }
 0xc11   :  { %6991 = vmatpush.bf16.msra.mxu3 %v19994_v34  ;;  %v5122_v35 = vpop.f32.mrf.mxu0  ;;  %v5395_v34 = vadd.f32 %v5394_v45, %v5345_v11  ;;  %v19996_v45 = vld [vmem:[#allocation31_spill] sm:$0xff] }
 0xc12   :  { %v17560_v27 = vadd.f32 %v5122_v35, %v17251_v63  ;;  %v5442_v63 = vadd.f32 %v17402_v37, %v5393_v12  ;;  %v11763_v11 = vld [vmem:[%s19705_s3 + $0xa28] sm:$0xf]  ;;  %v13574_v37 = vld [vmem:[%s19705_s3 + $0xa34] sm:$0xf0] }
 0xc13   :  { %v5444_v35 = vadd.f32 %v17425_v46, %v5395_v34  ;;  %v11764_v34 = vor.u32 %v13574_v37, %v11763_v11 }
 0xc14   :  { %v5355_v33 = vpop.f32.mrf.mxu1  ;;  %v5404_v46 = vpop.f32.mrf.mxu2 }
 0xc15   :  { %6992 = vmatpush.bf16.msra.mxu3 %v19995_v25 }
 0xc19   :  { %6993 = vmatpush.bf16.msra.mxu3 %v19929_v5  ;;  %v5490_v10 = vpop.f32.mrf.mxu0 }
 0xc1a   :  { %v5491_v32 = vadd.f32 %v5490_v10, %v5442_v63  ;;  %v5400_v10 = vadd.f32 %v5399_v20, %v5350_v30  ;;  %v11779_v20 = vld [vmem:[%s19705_s3 + $0xa48] sm:$0xf] }
 0xc1c   :  { %5943 = vmatmul.bf16.vlgmr.msrb.gmra.mxu0 %v11748_v17  ;;  %v5398_v17 = vadd.f32 %v5397_v23, %v5348_v31  ;;  %v5358_v63 = vpop.f32.mrf.mxu1 }
 0xc1d   :  { %6843 = vmatpush.bf16.msrb.mxu0 %v19885_v2  ;;  %6994 = vmatpush.bf16.msra.mxu3 %v19886_v4 }
 0xc1e   :  { %v5447_v12 = vadd.f32 %v17439_v57, %v5398_v17  ;;  %v13578_v57 = vld [vmem:[%s19705_s3 + $0xa54] sm:$0xf0] }
 0xc21   :  { %6844 = vmatpush.bf16.msrb.mxu0 %v19905_v53  ;;  %6995 = vmatpush.bf16.msra.mxu3 %v19906_v19  ;;  %v5492_v8 = vpop.f32.mrf.mxu0 }
 0xc22   :  { %v5493_v5 = vadd.f32 %v5492_v8, %v5444_v35  ;;  %v5407_v35 = vpop.f32.mrf.mxu2  ;;  %v5449_v8 = vadd.f32 %v17459_v56, %v5400_v10  ;;  %v11780_v56 = vor.u32 %v13578_v57, %v11779_v20 }
 0xc24   :  { %v5530_v58 = vpack.c.bf16 %v5493_v5, %v5491_v32  ;;  %v5360_v30 = vpop.f32.mrf.mxu1 }
 0xc25   :  { %6845 = vmatpush.bf16.msrb.mxu0 %v19907_v41  ;;  %6996 = vmatpush.bf16.msra.mxu3 %v19996_v45 }
 0xc26   :  { %11697 = vmatmul.msk.bf16.vlgmr.msrb.gmra.mxu1 %vm1461_vm1, %v5530_v58 }
 0xc27   :  { %6438 = vmatpush.bf16.msrb.mxu1 %v14188_v62 }
 0xc29   :  { %6846 = vmatpush.bf16.msrb.mxu0 %v19874_v43  ;;  %6997 = vmatpush.bf16.msra.mxu3 %v19930_v22  ;;  %v5495_v5 = vpop.f32.mrf.mxu0 }
 0xc2a   :  { %v5496_v58 = vadd.f32 %v5495_v5, %v5447_v12  ;;  %v5409_v37 = vpop.f32.mrf.mxu2  ;;  %v5405_v5 = vadd.f32 %v5404_v46, %v5355_v33  ;;  %v5408_v33 = vadd.f32 %v5407_v35, %v5358_v63  ;;  %v13586_v63 = vld [vmem:[%s19705_s3 + $0xa94] sm:$0xf0] }
 0xc2b   :  { %6439 = vmatpush.bf16.msrb.mxu1 %v19876_v0  ;;  %v5410_v46 = vadd.f32 %v5409_v37, %v5360_v30 }
 0xc2c   :  { %5948 = vmatmul.bf16.gmra.mxu0 %v11764_v34  ;;  %v5403_v34 = vadd.f32 %v5402_v15, %v5353_v36  ;;  %v5454_v10 = vadd.f32 %v17490_v26, %v5405_v5  ;;  %v11795_v36 = vld [vmem:[%s19705_s3 + $0xa68] sm:$0xf] }
 0xc2d   :  { %6847 = vmatpush.bf16.msrb.mxu0 %v19875_v49 }
 0xc2e   :  { %v5452_v17 = vadd.f32 %v17476_v3, %v5403_v34  ;;  %v13582_v3 = vld [vmem:[%s19705_s3 + $0xa74] sm:$0xf0] }
 0xc2f   :  { %6440 = vmatpush.bf16.msrb.mxu1 %v19909_v60  ;;  %v11796_v15 = vor.u32 %v13582_v3, %v11795_v36 }
 0xc31   :  { %6848 = vmatpush.bf16.msrb.mxu0 %v19910_v50  ;;  %v5497_v32 = vpop.f32.mrf.mxu0 }
 0xc32   :  { %v5498_v11 = vadd.f32 %v5497_v32, %v5449_v8 }
 0xc33   :  { %6441 = vmatpush.bf16.msrb.mxu1 %v14219_v29 }
 0xc34   :  { %v5531_v31 = vpack.c.bf16 %v5498_v11, %v5496_v58  ;;  %v5363_v58 = vpop.f32.mrf.mxu1  ;;  %v5412_v11 = vpop.f32.mrf.mxu2 }
 0xc35   :  { %6849 = vmatpush.bf16.msrb.mxu0 %v19911_v24 }
 0xc36   :  { %11698 = vmatmul.msk.bf16.gmra.mxu1 %vm1461_vm1, %v5531_v31 }
 0xc37   :  { %6442 = vmatpush.bf16.msrb.mxu1 %v14135_v9 }
 0xc39   :  { %6850 = vmatpush.bf16.msrb.mxu0 %v19931_v48  ;;  %v5500_v23 = vpop.f32.mrf.mxu0 }
 0xc3a   :  { %v5501_v8 = vadd.f32 %v5500_v23, %v5452_v17  ;;  %v5459_v23 = vadd.f32 %v17530_v42, %v5410_v46  ;;  %v5466_v42 = vpop.f32.mrf.mxu3 }
 0xc3b   :  { %6443 = vmatpush.bf16.msrb.mxu1 %v19895_v55 }
 0xc3c   :  { %5953 = vmatmul.bf16.gmra.mxu0 %v11780_v56  ;;  %v5365_v20 = vpop.f32.mrf.mxu1  ;;  %v5414_v57 = vpop.f32.mrf.mxu2  ;;  %v5457_v56 = vadd.f32 %v17513_v7, %v5408_v33 }
 0xc3f   :  { %6444 = vmatpush.bf16.msrb.mxu1 %v19912_v40 }
 0xc41   :  { %v5502_v12 = vpop.f32.mrf.mxu0 }
 0xc42   :  { %v5503_v32 = vadd.f32 %v5502_v12, %v5454_v10  ;;  %v11811_v12 = vld [vmem:[%s19705_s3 + $0xa88] sm:$0xf] }
 0xc43   :  { %6445 = vmatpush.bf16.msrb.mxu1 %v19883_v59  ;;  %v11812_v37 = vor.u32 %v13586_v63, %v11811_v12 }
 0xc44   :  { %v5532_v31 = vpack.c.bf16 %v5503_v32, %v5501_v8  ;;  %v5368_v35 = vpop.f32.mrf.mxu1  ;;  %v5417_v30 = vpop.f32.mrf.mxu2  ;;  %v5413_v8 = vadd.f32 %v5412_v11, %v5363_v58  ;;  %v5415_v32 = vadd.f32 %v5414_v57, %v5365_v20  ;;  %v13590_v58 = vld [vmem:[%s19705_s3 + $0xab4] sm:$0xf0] }
 0xc46   :  { %11699 = vmatmul.msk.bf16.gmra.mxu1 %vm1461_vm1, %v5532_v31  ;;  %v5462_v31 = vadd.f32 %v17535_v51, %v5413_v8  ;;  %v5464_v36 = vadd.f32 %v17555_v38, %v5415_v32  ;;  %v5418_v38 = vadd.f32 %v5417_v30, %v5368_v35  ;;  %v13594_v35 = vld [vmem:[%s19705_s3 + $0xad4] sm:$0xf0] }
 0xc49   :  { %v5505_v26 = vpop.f32.mrf.mxu0 }
 0xc4a   :  { %v5506_v5 = vadd.f32 %v5505_v26, %v5457_v56 }
 0xc4c   :  { %5958 = vmatmul.bf16.gmra.mxu0 %v11796_v15  ;;  %v5370_v3 = vpop.f32.mrf.mxu1  ;;  %v5419_v26 = vpop.f32.mrf.mxu2 }
 0xc51   :  { %v5507_v34 = vpop.f32.mrf.mxu0 }
 0xc52   :  { %v5508_v17 = vadd.f32 %v5507_v34, %v5459_v23  ;;  %v5468_v23 = vpop.f32.mrf.mxu3  ;;  %v11827_v34 = vld [vmem:[%s19705_s3 + $0xaa8] sm:$0xf] }
 0xc53   :  { %v11828_v51 = vor.u32 %v13590_v58, %v11827_v34 }
 0xc54   :  { %v5533_v10 = vpack.c.bf16 %v5508_v17, %v5506_v5  ;;  %v5373_v20 = vpop.f32.mrf.mxu1  ;;  %v5422_v57 = vpop.f32.mrf.mxu2  ;;  %v5420_v5 = vadd.f32 %v5419_v26, %v5370_v3  ;;  %v5467_v17 = vadd.f32 %v5466_v42, %v5418_v38 }
 0xc56   :  { %11700 = vmatmul.msk.bf16.gmra.mxu1 %vm1461_vm1, %v5533_v10  ;;  %v5469_v12 = vadd.f32 %v5468_v23, %v5420_v5  ;;  %v11755_v5 = vld [vmem:[%s19705_s3 + $0xa20] sm:$0xf] }
 0xc59   :  { %v5510_v7 = vpop.f32.mrf.mxu0 }
 0xc5a   :  { %v5511_v33 = vadd.f32 %v5510_v7, %v5462_v31  ;;  %v5471_v10 = vpop.f32.mrf.mxu3 }
 0xc5c   :  { %5963 = vmatmul.bf16.gmra.mxu0 %v11812_v37  ;;  %v5375_v32 = vpop.f32.mrf.mxu1  ;;  %v5424_v31 = vpop.f32.mrf.mxu2 }
 0xc5d   :  { %v5425_v26 = vadd.f32 %v5424_v31, %v5375_v32 }
 0xc61   :  { %v5512_v15 = vpop.f32.mrf.mxu0 }
 0xc62   :  { %v5513_v46 = vadd.f32 %v5512_v15, %v5464_v36  ;;  %v11843_v36 = vld [vmem:[%s19705_s3 + $0xac8] sm:$0xf]  ;;  %v5473_v42 = vpop.f32.mrf.mxu3  ;;  %v5423_v15 = vadd.f32 %v5422_v57, %v5373_v20  ;;  %v13598_v57 = vld [vmem:[%s19705_s3 + $0xaf4] sm:$0xf0] }
 0xc63   :  { %v11844_v30 = vor.u32 %v13594_v35, %v11843_v36  ;;  %v5474_v23 = vadd.f32 %v5473_v42, %v5425_v26  ;;  %v11859_v20 = vld [vmem:[%s19705_s3 + $0xae8] sm:$0xf]  ;;  %v11771_v26 = vld [vmem:[%s19705_s3 + $0xa40] sm:$0xf] }
 0xc64   :  { %v5534_v56 = vpack.c.bf16 %v5513_v46, %v5511_v33  ;;  %v5472_v33 = vadd.f32 %v5471_v10, %v5423_v15  ;;  %v5378_v46 = vpop.f32.mrf.mxu1 }
 0xc66   :  { %11701 = vmatmul.msk.bf16.gmra.mxu1 %vm1461_vm1, %v5534_v56  ;;  %v5427_v56 = vpop.f32.mrf.mxu2 }
 0xc69   :  { %v5515_v11 = vpop.f32.mrf.mxu0 }
 0xc6a   :  { %v5516_v37 = vadd.f32 %v5515_v11, %v5467_v17  ;;  %v5476_v11 = vpop.f32.mrf.mxu3  ;;  %v13573_v17 = vld [vmem:[%s19705_s3 + $0xa2c] sm:$0xf0] }
 0xc6b   :  { %v11756_v10 = vor.u32 %v13573_v17, %v11755_v5  ;;  %v11787_v17 = vld [vmem:[%s19705_s3 + $0xa60] sm:$0xf] }
 0xc6c   :  { %5968 = vmatmul.bf16.gmra.mxu0 %v11828_v51 }
 0xc6d   :  { %5850 = vmatmul.bf16.gmra.mxu2 %v11756_v10  ;;  %v11937_v10 = vld [vmem:[%s19705_s3 + $0xb30] sm:$0xf0] }
 0xc71   :  { %v5517_v63 = vpop.f32.mrf.mxu0 }
 0xc72   :  { %v5518_v7 = vadd.f32 %v5517_v63, %v5469_v12  ;;  %v5380_v12 = vpop.f32.mrf.mxu1  ;;  %v11860_v63 = vor.u32 %v13598_v57, %v11859_v20  ;;  %v5478_v31 = vpop.f32.mrf.mxu3  ;;  %v13581_v20 = vld [vmem:[%s19705_s3 + $0xa6c] sm:$0xf0]  ;;  %v13605_v57 = vld [vmem:[%s19705_s3 + $0xb24] sm:$0xf] }
 0xc74   :  { %v5535_v8 = vpack.c.bf16 %v5518_v7, %v5516_v37  ;;  %v5429_v37 = vpop.f32.mrf.mxu2 }
 0xc75   :  { %v5430_v32 = vadd.f32 %v5429_v37, %v5380_v12  ;;  %v11788_v12 = vor.u32 %v13581_v20, %v11787_v17  ;;  %v11969_v17 = vld [vmem:[%s19705_s3 + $0xb70] sm:$0xf0] }
 0xc76   :  { %11702 = vmatmul.msk.bf16.gmra.mxu1 %vm1461_vm1, %v5535_v8  ;;  %v5428_v8 = vadd.f32 %v5427_v56, %v5378_v46  ;;  %v13601_v46 = vld [vmem:[%s19705_s3 + $0xb04] sm:$0xf]  ;;  %v11921_v56 = vld [vmem:[%s19705_s3 + $0xb10] sm:$0xf0] }
 0xc77   :  { %v5479_v35 = vadd.f32 %v5478_v31, %v5430_v32 }
 0xc78   :  { %v5477_v36 = vadd.f32 %v5476_v11, %v5428_v8  ;;  %v11765_v8 = vld [vmem:[%s19705_s3 + $0xa38] sm:$0xf0] }
 0xc79   :  { %v5520_v3 = vpop.f32.mrf.mxu0 }
 0xc7a   :  { %v5521_v58 = vadd.f32 %v5520_v3, %v5472_v33  ;;  %v13577_v33 = vld [vmem:[%s19705_s3 + $0xa4c] sm:$0xf0] }
 0xc7c   :  { %5973 = vmatmul.bf16.gmra.mxu0 %v11844_v30 }
 0xc81   :  { %v5522_v34 = vpop.f32.mrf.mxu0 }
 0xc82   :  { %v5523_v51 = vadd.f32 %v5522_v34, %v5474_v23  ;;  %v11772_v23 = vor.u32 %v13577_v33, %v11771_v26  ;;  %v11924_v34 = vor.u32 %v13601_v46, %v11921_v56  ;;  %v13576_v33 = vld [vmem:[%s19705_s3 + $0xa4c] sm:$0xf]  ;;  %v11781_v46 = vld [vmem:[%s19705_s3 + $0xa58] sm:$0xf0] }
 0xc84   :  { %v5536_v38 = vpack.c.bf16 %v5523_v51, %v5521_v58  ;;  %5855 = vmatmul.bf16.gmra.mxu2 %v11772_v23  ;;  %v13568_v58 = vld [vmem:[%s19705_s3 + $0xa0c] sm:$0xf]  ;;  %v11749_v51 = vld [vmem:[%s19705_s3 + $0xa18] sm:$0xf0]  ;;  %v11784_v23 = vor.u32 %v13576_v33, %v11781_v46 }
 0xc85   :  { %v11752_v11 = vor.u32 %v13568_v58, %v11749_v51  ;;  %v19997_v58 = vld [vmem:[#allocation4_spill] sm:$0xff]  ;;  %v11819_v51 = vld [vmem:[%s19705_s3 + $0xaa0] sm:$0xf] }
 0xc86   :  { %11703 = vmatmul.msk.bf16.gmra.mxu1 %vm1461_vm1, %v5536_v38 }
 0xc89   :  { %v5525_v7 = vpop.f32.mrf.mxu0 }
 0xc8a   :  { %v5526_v42 = vadd.f32 %v5525_v7, %v5477_v36  ;;  %v13572_v7 = vld [vmem:[%s19705_s3 + $0xa2c] sm:$0xf] }
 0xc8b   :  { %v11768_v32 = vor.u32 %v13572_v7, %v11765_v8  ;;  %v13580_v7 = vld [vmem:[%s19705_s3 + $0xa6c] sm:$0xf]  ;;  %v11797_v8 = vld [vmem:[%s19705_s3 + $0xa78] sm:$0xf0] }
 0xc8c   :  { %5978 = vmatmul.bf16.gmra.mxu0 %v11860_v63 }
 0xc91   :  { %v5527_v30 = vpop.f32.mrf.mxu0 }
 0xc92   :  { %v5528_v3 = vadd.f32 %v5527_v30, %v5479_v35  ;;  %v13585_v35 = vld [vmem:[%s19705_s3 + $0xa8c] sm:$0xf0]  ;;  %v13609_v30 = vld [vmem:[%s19705_s3 + $0xb44] sm:$0xf] }
 0xc94   :  { %v5537_v15 = vpack.c.bf16 %v5528_v3, %v5526_v42  ;;  %5860 = vmatmul.bf16.gmra.mxu2 %v11788_v12  ;;  %v11953_v42 = vld [vmem:[%s19705_s3 + $0xb50] sm:$0xf0] }
 0xc96   :  { %11704 = vmatmul.msk.bf16.gmra.mxu1 %vm1461_vm1, %v5537_v15 }
 0xc99   :  { %v17729_v56 = vpop.f32.mrf.mxu0 }
 0xc9c   :  { %6397 = vmatmul.bf16.vlgmr.msra.gmra.mxu0 %v11924_v34 }
 0xca3   :  { %v5588_v38 = vpop.f32.mrf.mxu1 }
 0xca4   :  { %v17675_v5 = vadd.f32 %v5588_v38, %v17365_v16  ;;  %v11940_v16 = vor.u32 %v13605_v57, %v11937_v10  ;;  %v13613_v38 = vld [vmem:[%s19705_s3 + $0xb64] sm:$0xf]  ;;  %v17747_v10 = vpop.f32.mrf.mxu0 }
 0xca5   :  { %v11972_v57 = vor.u32 %v13613_v38, %v11969_v17  ;;  %v11813_v38 = vld [vmem:[%s19705_s3 + $0xa98] sm:$0xf0] }
 0xca6   :  { %5992 = vmatmul.bf16.vlgmr.msra.gmra.mxu1 %v11752_v11  ;;  %v13589_v11 = vld [vmem:[%s19705_s3 + $0xaac] sm:$0xf0] }
 0xca7   :  { %6892 = vmatpush.bf16.msra.mxu1 %v19850_v1  ;;  %v11820_v20 = vor.u32 %v13589_v11, %v11819_v51  ;;  %v13584_v11 = vld [vmem:[%s19705_s3 + $0xa8c] sm:$0xf] }
 0xca8   :  { %v11816_v17 = vor.u32 %v13584_v11, %v11813_v38  ;;  %v20008_v38 = vld [vmem:[#allocation14_spill] sm:$0xff] }
 0xcab   :  { %6893 = vmatpush.bf16.msra.mxu1 %v19851_v52  ;;  %v5590_v63 = vpop.f32.mrf.mxu1 }
 0xcac   :  { %v17692_v37 = vadd.f32 %v5590_v63, %v17376_v54  ;;  %6402 = vmatmul.bf16.gmra.mxu0 %v11940_v16  ;;  %v11803_v54 = vld [vmem:[%s19705_s3 + $0xa80] sm:$0xf]  ;;  %v19998_v16 = vld [vmem:[#allocation3_spill] sm:$0xff] }
 0xcad   :  { %v11804_v3 = vor.u32 %v13585_v35, %v11803_v54  ;;  %v20000_v54 = vld [vmem:[#allocation19_spill] sm:$0xff] }
 0xcaf   :  { %6894 = vmatpush.bf16.msra.mxu1 %v19852_v44  ;;  %5865 = vmatmul.bf16.gmra.mxu2 %v11804_v3  ;;  %v13593_v3 = vld [vmem:[%s19705_s3 + $0xacc] sm:$0xf0] }
 0xcb3   :  { %6895 = vmatpush.bf16.msra.mxu1 %v19853_v21  ;;  %v5593_v31 = vpop.f32.mrf.mxu1 }
 0xcb4   :  { %v17703_v36 = vadd.f32 %v5593_v31, %v17393_v61  ;;  %v11956_v61 = vor.u32 %v13609_v30, %v11953_v42  ;;  %v17761_v30 = vpop.f32.mrf.mxu0  ;;  %v11835_v42 = vld [vmem:[%s19705_s3 + $0xac0] sm:$0xf] }
 0xcb5   :  { %v11836_v33 = vor.u32 %v13593_v3, %v11835_v42 }
 0xcb6   :  { %5997 = vmatmul.bf16.gmra.mxu1 %v11768_v32  ;;  %v11800_v32 = vor.u32 %v13580_v7, %v11797_v8  ;;  %v13597_v7 = vld [vmem:[%s19705_s3 + $0xaec] sm:$0xf0]  ;;  %v13621_v8 = vld [vmem:[%s19705_s3 + $0xba4] sm:$0xf] }
 0xcb7   :  { %6896 = vmatpush.bf16.msra.mxu1 %v19854_v13 }
 0xcbb   :  { %6897 = vmatpush.bf16.msra.mxu1 %v19855_v39  ;;  %v5595_v15 = vpop.f32.mrf.mxu1 }
 0xcbc   :  { %v17720_v26 = vadd.f32 %v5595_v15, %v17406_v47  ;;  %6407 = vmatmul.bf16.gmra.mxu0 %v11956_v61  ;;  %v13617_v61 = vld [vmem:[%s19705_s3 + $0xb84] sm:$0xf]  ;;  %v11985_v15 = vld [vmem:[%s19705_s3 + $0xb90] sm:$0xf0]  ;;  %v17778_v51 = vpop.f32.mrf.mxu0 }
 0xcbd   :  { %v11988_v46 = vor.u32 %v13617_v61, %v11985_v15  ;;  %v20006_v61 = vld [vmem:[#allocation41_spill] sm:$0xff] }
 0xcbf   :  { %6898 = vmatpush.bf16.msra.mxu1 %v19856_v28  ;;  %5870 = vmatmul.bf16.gmra.mxu2 %v11820_v20 }
 0xcc3   :  { %6899 = vmatpush.bf16.msra.mxu1 %v19974_v18  ;;  %v5598_v34 = vpop.f32.mrf.mxu1 }
 0xcc4   :  { %v17733_v47 = vadd.f32 %v5598_v34, %v19997_v58  ;;  %v20002_v34 = vld [vmem:[#allocation37_spill] sm:$0xff]  ;;  %v17801_v42 = vpop.f32.mrf.mxu0 }
 0xcc6   :  { %6002 = vmatmul.bf16.gmra.mxu1 %v11784_v23 }
 0xccb   :  { %v5600_v12 = vpop.f32.mrf.mxu1 }
 0xccc   :  { %v17750_v63 = vadd.f32 %v5600_v12, %v19998_v16  ;;  %6412 = vmatmul.bf16.gmra.mxu0 %v11972_v57  ;;  %v20004_v57 = vld [vmem:[#allocation39_spill] sm:$0xff]  ;;  %v11851_v16 = vld [vmem:[%s19705_s3 + $0xae0] sm:$0xf] }
 0xcce   :  { %19999 = vst [vmem:[#allocation16_spill] sm:$0xff] %v17750_v63 }
 0xccf   :  { %5875 = vmatmul.bf16.gmra.mxu2 %v11836_v33  ;;  %v13588_v33 = vld [vmem:[%s19705_s3 + $0xaac] sm:$0xf] }
 0xcd3   :  { %v5603_v31 = vpop.f32.mrf.mxu1 }
 0xcd4   :  { %v17759_v35 = vadd.f32 %v5603_v31, %v20000_v54  ;;  %v11852_v31 = vor.u32 %v13597_v7, %v11851_v16  ;;  %v13668_v16 = vld [vmem:[%s19706_s4 + $0xc8] sm:$0xff] }
 0xcd5   :  { %7094 = vmatpush.bf16.msra.mxu0 %v13668_v16  ;;  %v13629_v16 = vld [vmem:[%s19705_s3 + $0xbe4] sm:$0xf] }
 0xcd6   :  { %20001 = vst [vmem:[#allocation17_spill] sm:$0xff] %v17759_v35  ;;  %6007 = vmatmul.bf16.gmra.mxu1 %v11800_v32  ;;  %v12001_v32 = vld [vmem:[%s19705_s3 + $0xbb0] sm:$0xf0] }
 0xcd7   :  { %v12004_v54 = vor.u32 %v13621_v8, %v12001_v32  ;;  %v20010_v32 = vld [vmem:[#allocation32_spill] sm:$0xff] }
 0xcdb   :  { %v5605_v23 = vpop.f32.mrf.mxu1 }
 0xcdc   :  { %v17776_v58 = vadd.f32 %v5605_v23, %v20002_v34  ;;  %6417 = vmatmul.bf16.gmra.mxu0 %v11988_v46  ;;  %v11829_v46 = vld [vmem:[%s19705_s3 + $0xab8] sm:$0xf0]  ;;  %v17812_v34 = vpop.f32.mrf.mxu0 }
 0xcdd   :  { %v11832_v23 = vor.u32 %v13588_v33, %v11829_v46  ;;  %v5846_v33 = vpop.f32.mrf.mxu2  ;;  %v13592_v46 = vld [vmem:[%s19705_s3 + $0xacc] sm:$0xf] }
 0xcde   :  { %20003 = vst [vmem:[#allocation13_spill] sm:$0xff] %v17776_v58 }
 0xcdf   :  { %5880 = vmatmul.bf16.gmra.mxu2 %v11852_v31 }
 0xce3   :  { %v5608_v20 = vpop.f32.mrf.mxu1 }
 0xce4   :  { %v17787_v12 = vadd.f32 %v5608_v20, %v20004_v57  ;;  %v13625_v20 = vld [vmem:[%s19705_s3 + $0xbc4] sm:$0xf]  ;;  %v12017_v57 = vld [vmem:[%s19705_s3 + $0xbd0] sm:$0xf0] }
 0xce5   :  { %v12020_v7 = vor.u32 %v13625_v20, %v12017_v57  ;;  %v20012_v20 = vld [vmem:[#allocation2_spill] sm:$0xff] }
 0xce6   :  { %20005 = vst [vmem:[#allocation12_spill] sm:$0xff] %v17787_v12  ;;  %6012 = vmatmul.bf16.gmra.mxu1 %v11816_v17 }
 0xceb   :  { %v5610_v3 = vpop.f32.mrf.mxu1 }
 0xcec   :  { %v17804_v15 = vadd.f32 %v5610_v3, %v20006_v61  ;;  %6422 = vmatmul.bf16.gmra.mxu0 %v12004_v54  ;;  %v17829_v54 = vpop.f32.mrf.mxu0  ;;  %v5895_v3 = vpop.f32.mrf.mxu3  ;;  %v13667_v61 = vld [vmem:[%s19706_s4 + $0xc0] sm:$0xff] }
 0xced   :  { %7095 = vmatpush.bf16.msra.mxu0 %v13667_v61  ;;  %v5848_v61 = vpop.f32.mrf.mxu2 }
 0xcee   :  { %20007 = vst [vmem:[#allocation11_spill] sm:$0xff] %v17804_v15 }
 0xcf3   :  { %v5613_v11 = vpop.f32.mrf.mxu1 }
 0xcf4   :  { %v17815_v17 = vadd.f32 %v5613_v11, %v20008_v38 }
 0xcf5   :  { %v5851_v15 = vpop.f32.mrf.mxu2 }
 0xcf6   :  { %20009 = vst [vmem:[#allocation33_spill] sm:$0xff] %v17815_v17  ;;  %6017 = vmatmul.bf16.gmra.mxu1 %v11832_v23  ;;  %v11845_v23 = vld [vmem:[%s19705_s3 + $0xad8] sm:$0xf0] }
 0xcf7   :  { %v11848_v11 = vor.u32 %v13592_v46, %v11845_v23  ;;  %v20014_v46 = vld [vmem:[#allocation15_spill] sm:$0xff] }
 0xcfb   :  { %v5615_v8 = vpop.f32.mrf.mxu1 }
 0xcfc   :  { %v17827_v31 = vadd.f32 %v5615_v8, %v20010_v32  ;;  %6427 = vmatmul.bf16.gmra.mxu0 %v12020_v7  ;;  %v12033_v7 = vld [vmem:[%s19705_s3 + $0xbf0] sm:$0xf0]  ;;  %v17849_v8 = vpop.f32.mrf.mxu0  ;;  %v5897_v32 = vpop.f32.mrf.mxu3 }
 0xcfd   :  { %v5853_v63 = vpop.f32.mrf.mxu2 }
 0xcfe   :  { %20011 = vst [vmem:[#allocation23_spill] sm:$0xff] %v17827_v31  ;;  %v12036_v31 = vor.u32 %v13629_v16, %v12033_v7 }
 0xd03   :  { %v5618_v38 = vpop.f32.mrf.mxu1 }
 0xd04   :  { %v17841_v57 = vadd.f32 %v5618_v38, %v20012_v20  ;;  %v13596_v38 = vld [vmem:[%s19705_s3 + $0xaec] sm:$0xf]  ;;  %v11861_v20 = vld [vmem:[%s19705_s3 + $0xaf8] sm:$0xf0] }
 0xd05   :  { %v11864_v12 = vor.u32 %v13596_v38, %v11861_v20 }
 0xd06   :  { %20013 = vst [vmem:[#allocation24_spill] sm:$0xff] %v17841_v57  ;;  %6022 = vmatmul.bf16.gmra.mxu1 %v11848_v11  ;;  %v17860_v57 = vpop.f32.mrf.mxu0  ;;  %v5900_v11 = vpop.f32.mrf.mxu3 }
 0xd0b   :  { %v5620_v17 = vpop.f32.mrf.mxu1 }
 0xd0c   :  { %v17852_v23 = vadd.f32 %v5620_v17, %v20014_v46  ;;  %6432 = vmatmul.bf16.gmra.mxu0 %v12036_v31  ;;  %v12099_v17 = vld [vmem:[%s19705_s3 + $0xc00] sm:$0xf]  ;;  %v13637_v31 = vld [vmem:[%s19705_s3 + $0xc0c] sm:$0xf0] }
 0xd0d   :  { %v12100_v7 = vor.u32 %v13637_v31, %v12099_v17  ;;  %v5896_v31 = vadd.f32 %v5895_v3, %v5846_v33 }
 0xd0e   :  { %20015 = vst [vmem:[#allocation34_spill] sm:$0xff] %v17852_v23  ;;  %v17871_v46 = vpop.f32.mrf.mxu0  ;;  %v5902_v23 = vpop.f32.mrf.mxu3 }
 0xd13   :  { %v5623_v58 = vpop.f32.mrf.mxu1 }
 0xd14   :  { %v17863_v16 = vadd.f32 %v5623_v58, %v17553_v14  ;;  %v11927_v14 = vld [vmem:[%s19705_s3 + $0xb08] sm:$0xf]  ;;  %v13604_v58 = vld [vmem:[%s19705_s3 + $0xb14] sm:$0xf0] }
 0xd15   :  { %v11928_v20 = vor.u32 %v13604_v58, %v11927_v14 }
 0xd16   :  { %20016 = vst [vmem:[#allocation36_spill] sm:$0xff] %v17863_v16  ;;  %6027 = vmatmul.bf16.gmra.mxu1 %v11864_v12  ;;  %v20018_v12 = vld [vmem:[#allocation26_spill] sm:$0xff]  ;;  %v5905_v16 = vpop.f32.mrf.mxu3 }
 0xd1b   :  { %v5625_v35 = vpop.f32.mrf.mxu1 }
 0xd1c   :  { %v17874_v38 = vadd.f32 %v5625_v35, %v17560_v27  ;;  %6851 = vmatmul.bf16.vlgmr.msrb.gmra.mxu0 %v12100_v7  ;;  %v5856_v27 = vpop.f32.mrf.mxu2  ;;  %v5898_v35 = vadd.f32 %v5897_v32, %v5848_v61  ;;  %v5945_v7 = vadd.f32 %v17729_v56, %v5896_v31  ;;  %v11943_v32 = vld [vmem:[%s19705_s3 + $0xb28] sm:$0xf]  ;;  %v13608_v56 = vld [vmem:[%s19705_s3 + $0xb34] sm:$0xf0] }
 0xd1d   :  { %7493 = vmatpush.bf16.msrb.mxu0 %v19971_v6 }
 0xd1e   :  { %20017 = vst [vmem:[#allocation38_spill] sm:$0xff] %v17874_v38  ;;  %v20019_v38 = vld [vmem:[#allocation28_spill] sm:$0xff]  ;;  %v5947_v6 = vadd.f32 %v17747_v10, %v5898_v35  ;;  %v5907_v33 = vpop.f32.mrf.mxu3 }
 0xd21   :  { %7494 = vmatpush.bf16.msrb.mxu0 %v20018_v12 }
 0xd23   :  { %v5993_v17 = vpop.f32.mrf.mxu1 }
 0xd24   :  { %v5994_v14 = vadd.f32 %v5993_v17, %v5945_v7  ;;  %v5858_v10 = vpop.f32.mrf.mxu2 }
 0xd25   :  { %7495 = vmatpush.bf16.msrb.mxu0 %v19995_v25 }
 0xd26   :  { %6446 = vmatmul.bf16.vlgmr.msrb.gmra.mxu1 %v11928_v20  ;;  %v5903_v20 = vadd.f32 %v5902_v23, %v5853_v63  ;;  %v5910_v31 = vpop.f32.mrf.mxu3  ;;  %v13612_v23 = vld [vmem:[%s19705_s3 + $0xb54] sm:$0xf0] }
 0xd27   :  { %7346 = vmatpush.bf16.msrb.mxu1 %v19885_v2 }
 0xd28   :  { %v5952_v7 = vadd.f32 %v17778_v51, %v5903_v20 }
 0xd29   :  { %7496 = vmatpush.bf16.msrb.mxu0 %v20019_v38 }
 0xd2b   :  { %7347 = vmatpush.bf16.msrb.mxu1 %v19905_v53  ;;  %v5995_v12 = vpop.f32.mrf.mxu1 }
 0xd2c   :  { %v5996_v58 = vadd.f32 %v5995_v12, %v5947_v6  ;;  %v11944_v6 = vor.u32 %v13608_v56, %v11943_v32  ;;  %v5901_v12 = vadd.f32 %v5900_v11, %v5851_v15  ;;  %v5861_v35 = vpop.f32.mrf.mxu2  ;;  %v5906_v56 = vadd.f32 %v5905_v16, %v5856_v27  ;;  %v11975_v16 = vld [vmem:[%s19705_s3 + $0xb68] sm:$0xf] }
 0xd2d   :  { %7497 = vmatpush.bf16.msrb.mxu0 %v19886_v4 }
 0xd2e   :  { %v6033_v3 = vpack.c.bf16 %v5996_v58, %v5994_v14  ;;  %v5950_v17 = vadd.f32 %v17761_v30, %v5901_v12  ;;  %v11959_v30 = vld [vmem:[%s19705_s3 + $0xb48] sm:$0xf]  ;;  %v5912_v58 = vpop.f32.mrf.mxu3 }
 0xd2f   :  { %7348 = vmatpush.bf16.msrb.mxu1 %v19907_v41  ;;  %v11960_v51 = vor.u32 %v13612_v23, %v11959_v30 }
 0xd30   :  { %11877 = vmatmul.msk.bf16.vlgmr.msra.gmra.mxu2 %vm1461_vm1, %v6033_v3 }
 0xd31   :  { %6941 = vmatpush.bf16.msra.mxu2 %v14188_v62  ;;  %7498 = vmatpush.bf16.msrb.mxu0 %v19906_v19 }
 0xd33   :  { %7349 = vmatpush.bf16.msrb.mxu1 %v19874_v43  ;;  %v5998_v61 = vpop.f32.mrf.mxu1 }
 0xd34   :  { %v5999_v11 = vadd.f32 %v5998_v61, %v5950_v17  ;;  %v5863_v32 = vpop.f32.mrf.mxu2  ;;  %v5955_v61 = vadd.f32 %v17801_v42, %v5906_v56  ;;  %v13616_v42 = vld [vmem:[%s19705_s3 + $0xb74] sm:$0xf0] }
 0xd35   :  { %6942 = vmatpush.bf16.msra.mxu2 %v19876_v0  ;;  %7499 = vmatpush.bf16.msrb.mxu0 %v19996_v45  ;;  %v11976_v27 = vor.u32 %v13616_v42, %v11975_v16 }
 0xd36   :  { %6451 = vmatmul.bf16.gmra.mxu1 %v11944_v6  ;;  %v5908_v6 = vadd.f32 %v5907_v33, %v5858_v10  ;;  %v5911_v33 = vadd.f32 %v5910_v31, %v5861_v35  ;;  %v5913_v10 = vadd.f32 %v5912_v58, %v5863_v32  ;;  %v13620_v31 = vld [vmem:[%s19705_s3 + $0xb94] sm:$0xf0] }
 0xd37   :  { %7350 = vmatpush.bf16.msrb.mxu1 %v19875_v49 }
 0xd38   :  { %v5957_v12 = vadd.f32 %v17812_v34, %v5908_v6  ;;  %v5960_v23 = vadd.f32 %v17829_v54, %v5911_v33 }
 0xd39   :  { %6943 = vmatpush.bf16.msra.mxu2 %v19909_v60  ;;  %7500 = vmatpush.bf16.msrb.mxu0 %v19930_v22 }
 0xd3b   :  { %7351 = vmatpush.bf16.msrb.mxu1 %v19910_v50  ;;  %v6000_v15 = vpop.f32.mrf.mxu1 }
 0xd3c   :  { %v6001_v14 = vadd.f32 %v6000_v15, %v5952_v7  ;;  %v5915_v15 = vpop.f32.mrf.mxu3 }
 0xd3d   :  { %6944 = vmatpush.bf16.msra.mxu2 %v14219_v29 }
 0xd3e   :  { %v6034_v63 = vpack.c.bf16 %v6001_v14, %v5999_v11  ;;  %v5866_v11 = vpop.f32.mrf.mxu2 }
 0xd3f   :  { %7352 = vmatpush.bf16.msrb.mxu1 %v19911_v24 }
 0xd40   :  { %11878 = vmatmul.msk.bf16.gmra.mxu2 %vm1461_vm1, %v6034_v63 }
 0xd41   :  { %6945 = vmatpush.bf16.msra.mxu2 %v14135_v9 }
 0xd43   :  { %7353 = vmatpush.bf16.msrb.mxu1 %v19931_v48  ;;  %v6003_v3 = vpop.f32.mrf.mxu1 }
 0xd44   :  { %v6004_v17 = vadd.f32 %v6003_v3, %v5955_v61  ;;  %v5917_v63 = vpop.f32.mrf.mxu3 }
 0xd45   :  { %6946 = vmatpush.bf16.msra.mxu2 %v19895_v55 }
 0xd46   :  { %6456 = vmatmul.bf16.gmra.mxu1 %v11960_v51  ;;  %v5868_v30 = vpop.f32.mrf.mxu2  ;;  %v5962_v51 = vadd.f32 %v17849_v8, %v5913_v10  ;;  %v5969_v8 = vpop.f32.mrf.mxu0 }
 0xd49   :  { %6947 = vmatpush.bf16.msra.mxu2 %v19912_v40 }
 0xd4b   :  { %v6005_v20 = vpop.f32.mrf.mxu1 }
 0xd4c   :  { %v6006_v7 = vadd.f32 %v6005_v20, %v5957_v12  ;;  %v11991_v12 = vld [vmem:[%s19705_s3 + $0xb88] sm:$0xf]  ;;  %v5920_v35 = vpop.f32.mrf.mxu3  ;;  %v5916_v20 = vadd.f32 %v5915_v15, %v5866_v11  ;;  %v13624_v15 = vld [vmem:[%s19705_s3 + $0xbb4] sm:$0xf0] }
 0xd4d   :  { %6948 = vmatpush.bf16.msra.mxu2 %v19883_v59  ;;  %v11992_v32 = vor.u32 %v13620_v31, %v11991_v12 }
 0xd4e   :  { %v6035_v14 = vpack.c.bf16 %v6006_v7, %v6004_v17  ;;  %v5871_v58 = vpop.f32.mrf.mxu2  ;;  %v5918_v17 = vadd.f32 %v5917_v63, %v5868_v30  ;;  %v5965_v7 = vadd.f32 %v17860_v57, %v5916_v20 }
 0xd50   :  { %11879 = vmatmul.msk.bf16.gmra.mxu2 %vm1461_vm1, %v6035_v14  ;;  %v5967_v14 = vadd.f32 %v17871_v46, %v5918_v17  ;;  %v5921_v46 = vadd.f32 %v5920_v35, %v5871_v58  ;;  %v13628_v35 = vld [vmem:[%s19705_s3 + $0xbd4] sm:$0xf0] }
 0xd53   :  { %v6008_v34 = vpop.f32.mrf.mxu1 }
 0xd54   :  { %v6009_v56 = vadd.f32 %v6008_v34, %v5960_v23  ;;  %v5922_v16 = vpop.f32.mrf.mxu3  ;;  %v5971_v23 = vpop.f32.mrf.mxu0 }
 0xd56   :  { %6461 = vmatmul.bf16.gmra.mxu1 %v11976_v27  ;;  %v5873_v27 = vpop.f32.mrf.mxu2 }
 0xd5b   :  { %v6010_v3 = vpop.f32.mrf.mxu1 }
 0xd5c   :  { %v6011_v6 = vadd.f32 %v6010_v3, %v5962_v51  ;;  %v12007_v51 = vld [vmem:[%s19705_s3 + $0xba8] sm:$0xf]  ;;  %v5925_v63 = vpop.f32.mrf.mxu3  ;;  %v5923_v3 = vadd.f32 %v5922_v16, %v5873_v27 }
 0xd5d   :  { %v12008_v57 = vor.u32 %v13624_v15, %v12007_v51 }
 0xd5e   :  { %v6036_v61 = vpack.c.bf16 %v6011_v6, %v6009_v56  ;;  %v5876_v30 = vpop.f32.mrf.mxu2  ;;  %v5970_v56 = vadd.f32 %v5969_v8, %v5921_v46  ;;  %v5974_v6 = vpop.f32.mrf.mxu0  ;;  %v12039_v46 = vld [vmem:[%s19705_s3 + $0xbe8] sm:$0xf] }
 0xd5f   :  { %v5926_v16 = vadd.f32 %v5925_v63, %v5876_v30 }
 0xd60   :  { %11880 = vmatmul.msk.bf16.gmra.mxu2 %vm1461_vm1, %v6036_v61  ;;  %v5972_v61 = vadd.f32 %v5971_v23, %v5923_v3  ;;  %v13632_v3 = vld [vmem:[%s19705_s3 + $0xbf4] sm:$0xf0] }
 0xd61   :  { %v5975_v27 = vadd.f32 %v5974_v6, %v5926_v16  ;;  %v12040_v30 = vor.u32 %v13632_v3, %v12039_v46  ;;  %v13635_v16 = vld [vmem:[%s19705_s3 + $0xc04] sm:$0xf] }
 0xd63   :  { %v6013_v54 = vpop.f32.mrf.mxu1 }
 0xd64   :  { %v6014_v34 = vadd.f32 %v6013_v54, %v5965_v7  ;;  %v5927_v20 = vpop.f32.mrf.mxu3  ;;  %v12023_v7 = vld [vmem:[%s19705_s3 + $0xbc8] sm:$0xf] }
 0xd65   :  { %v12024_v58 = vor.u32 %v13628_v35, %v12023_v7 }
 0xd66   :  { %6466 = vmatmul.bf16.gmra.mxu1 %v11992_v32  ;;  %v5878_v17 = vpop.f32.mrf.mxu2  ;;  %v5976_v8 = vpop.f32.mrf.mxu0 }
 0xd6b   :  { %v6015_v42 = vpop.f32.mrf.mxu1 }
 0xd6c   :  { %v6016_v33 = vadd.f32 %v6015_v42, %v5967_v14  ;;  %v5928_v42 = vadd.f32 %v5927_v20, %v5878_v17 }
 0xd6e   :  { %v6037_v10 = vpack.c.bf16 %v6016_v33, %v6014_v34  ;;  %v5930_v34 = vpop.f32.mrf.mxu3  ;;  %v5881_v33 = vpop.f32.mrf.mxu2 }
 0xd70   :  { %11881 = vmatmul.msk.bf16.gmra.mxu2 %vm1461_vm1, %v6037_v10  ;;  %v5977_v10 = vadd.f32 %v5976_v8, %v5928_v42  ;;  %v12101_v42 = vld [vmem:[%s19705_s3 + $0xc10] sm:$0xf0] }
 0xd73   :  { %v6018_v11 = vpop.f32.mrf.mxu1 }
 0xd74   :  { %v6019_v31 = vadd.f32 %v6018_v11, %v5970_v56 }
 0xd76   :  { %6471 = vmatmul.bf16.gmra.mxu1 %v12008_v57  ;;  %v5979_v57 = vpop.f32.mrf.mxu0  ;;  %v5932_v63 = vpop.f32.mrf.mxu3 }
 0xd77   :  { %v5883_v56 = vpop.f32.mrf.mxu2 }
 0xd7b   :  { %v6020_v12 = vpop.f32.mrf.mxu1 }
 0xd7c   :  { %v6021_v32 = vadd.f32 %v6020_v12, %v5972_v61  ;;  %v5931_v61 = vadd.f32 %v5930_v34, %v5881_v33  ;;  %v11935_v12 = vld [vmem:[%s19705_s3 + $0xb20] sm:$0xf]  ;;  %v13611_v33 = vld [vmem:[%s19705_s3 + $0xb4c] sm:$0xf0] }
 0xd7d   :  { %v11951_v34 = vld [vmem:[%s19705_s3 + $0xb40] sm:$0xf] }
 0xd7e   :  { %v6038_v54 = vpack.c.bf16 %v6021_v32, %v6019_v31  ;;  %v13607_v31 = vld [vmem:[%s19705_s3 + $0xb2c] sm:$0xf0]  ;;  %v5981_v20 = vpop.f32.mrf.mxu0  ;;  %v5980_v17 = vadd.f32 %v5979_v57, %v5931_v61  ;;  %v13639_v57 = vld [vmem:[%s19705_s3 + $0xc24] sm:$0xf]  ;;  %v11945_v61 = vld [vmem:[%s19705_s3 + $0xb38] sm:$0xf0] }
 0xd7f   :  { %v11936_v32 = vor.u32 %v13607_v31, %v11935_v12 }
 0xd80   :  { %11882 = vmatmul.msk.bf16.gmra.mxu2 %vm1461_vm1, %v6038_v54  ;;  %v5933_v54 = vadd.f32 %v5932_v63, %v5883_v56  ;;  %v13615_v56 = vld [vmem:[%s19705_s3 + $0xb6c] sm:$0xf0] }
 0xd81   :  { %6353 = vmatmul.bf16.gmra.mxu3 %v11936_v32 }
 0xd82   :  { %v5982_v7 = vadd.f32 %v5981_v20, %v5933_v54  ;;  %v13643_v54 = vld [vmem:[%s19705_s3 + $0xc44] sm:$0xf]  ;;  %v12133_v20 = vld [vmem:[%s19705_s3 + $0xc50] sm:$0xf0] }
 0xd83   :  { %v6023_v14 = vpop.f32.mrf.mxu1 }
 0xd84   :  { %v6024_v51 = vadd.f32 %v6023_v14, %v5975_v27  ;;  %v12104_v27 = vor.u32 %v13635_v16, %v12101_v42 }
 0xd86   :  { %6476 = vmatmul.bf16.gmra.mxu1 %v12024_v58 }
 0xd8b   :  { %v6025_v23 = vpop.f32.mrf.mxu1 }
 0xd8c   :  { %v6026_v15 = vadd.f32 %v6025_v23, %v5977_v10  ;;  %v11952_v10 = vor.u32 %v13611_v33, %v11951_v34  ;;  %v13602_v23 = vld [vmem:[%s19705_s3 + $0xb0c] sm:$0xf]  ;;  %v13647_v33 = vld [vmem:[%s19705_s3 + $0xc64] sm:$0xf] }
 0xd8e   :  { %v6039_v11 = vpack.c.bf16 %v6026_v15, %v6024_v51  ;;  %v11929_v51 = vld [vmem:[%s19705_s3 + $0xb18] sm:$0xf0] }
 0xd8f   :  { %v11932_v15 = vor.u32 %v13602_v23, %v11929_v51 }
 0xd90   :  { %11883 = vmatmul.msk.bf16.gmra.mxu2 %vm1461_vm1, %v6039_v11  ;;  %v12117_v11 = vld [vmem:[%s19705_s3 + $0xc30] sm:$0xf0] }
 0xd91   :  { %6358 = vmatmul.bf16.gmra.mxu3 %v11952_v10  ;;  %v12120_v46 = vor.u32 %v13639_v57, %v12117_v11  ;;  %v12149_v10 = vld [vmem:[%s19705_s3 + $0xc70] sm:$0xf0]  ;;  %v13623_v11 = vld [vmem:[%s19705_s3 + $0xbac] sm:$0xf0] }
 0xd92   :  { %v12152_v23 = vor.u32 %v13647_v33, %v12149_v10  ;;  %v20024_v33 = vld [vmem:[#allocation13_spill] sm:$0xff] }
 0xd93   :  { %v6028_v6 = vpop.f32.mrf.mxu1 }
 0xd94   :  { %v6029_v58 = vadd.f32 %v6028_v6, %v5980_v17  ;;  %v12136_v17 = vor.u32 %v13643_v54, %v12133_v20 }
 0xd96   :  { %6481 = vmatmul.bf16.gmra.mxu1 %v12040_v30  ;;  %v11967_v30 = vld [vmem:[%s19705_s3 + $0xb60] sm:$0xf] }
 0xd97   :  { %v11968_v6 = vor.u32 %v13615_v56, %v11967_v30  ;;  %v20020_v56 = vld [vmem:[#allocation16_spill] sm:$0xff] }
 0xd9b   :  { %v6030_v35 = vpop.f32.mrf.mxu1 }
 0xd9c   :  { %v6031_v8 = vadd.f32 %v6030_v35, %v5982_v7 }
 0xd9e   :  { %v6040_v14 = vpack.c.bf16 %v6031_v8, %v6029_v58  ;;  %v13619_v58 = vld [vmem:[%s19705_s3 + $0xb8c] sm:$0xf0] }
 0xda0   :  { %11884 = vmatmul.msk.bf16.gmra.mxu2 %vm1461_vm1, %v6040_v14  ;;  %v11961_v14 = vld [vmem:[%s19705_s3 + $0xb58] sm:$0xf0] }
 0xda1   :  { %6363 = vmatmul.bf16.gmra.mxu3 %v11968_v6 }
 0xda3   :  { %v18042_v16 = vpop.f32.mrf.mxu1 }
 0xda6   :  { %6900 = vmatmul.bf16.vlgmr.msra.gmra.mxu1 %v12104_v27 }
 0xdab   :  { %v18057_v57 = vpop.f32.mrf.mxu1 }
 0xdb0   :  { %6495 = vmatmul.bf16.vlgmr.msrb.gmra.mxu2 %v11932_v15 }
 0xdb1   :  { %7395 = vmatpush.bf16.msrb.mxu2 %v19850_v1 }
 0xdb3   :  { %v6091_v3 = vpop.f32.mrf.mxu2 }
 0xdb4   :  { %v17998_v63 = vadd.f32 %v6091_v3, %v17675_v5  ;;  %v13606_v5 = vld [vmem:[%s19705_s3 + $0xb2c] sm:$0xf] }
 0xdb5   :  { %7396 = vmatpush.bf16.msrb.mxu2 %v19851_v52  ;;  %v11948_v32 = vor.u32 %v13606_v5, %v11945_v61  ;;  %v13614_v3 = vld [vmem:[%s19705_s3 + $0xb6c] sm:$0xf]  ;;  %v18074_v61 = vpop.f32.mrf.mxu1 }
 0xdb6   :  { %6905 = vmatmul.bf16.gmra.mxu1 %v12120_v46 }
 0xdb9   :  { %7397 = vmatpush.bf16.msrb.mxu2 %v19852_v44 }
 0xdbb   :  { %v6093_v12 = vpop.f32.mrf.mxu2 }
 0xdbc   :  { %v18015_v31 = vadd.f32 %v6093_v12, %v17692_v37  ;;  %v11983_v37 = vld [vmem:[%s19705_s3 + $0xb80] sm:$0xf]  ;;  %v13651_v12 = vld [vmem:[%s19705_s3 + $0xc84] sm:$0xf] }
 0xdbd   :  { %7398 = vmatpush.bf16.msrb.mxu2 %v19853_v21  ;;  %v11984_v8 = vor.u32 %v13619_v58, %v11983_v37  ;;  %v12015_v37 = vld [vmem:[%s19705_s3 + $0xbc0] sm:$0xf]  ;;  %v13627_v58 = vld [vmem:[%s19705_s3 + $0xbcc] sm:$0xf0] }
 0xdbf   :  { %6368 = vmatmul.bf16.gmra.mxu3 %v11984_v8  ;;  %v12016_v8 = vor.u32 %v13627_v58, %v12015_v37 }
 0xdc0   :  { %6500 = vmatmul.bf16.gmra.mxu2 %v11948_v32  ;;  %v12165_v32 = vld [vmem:[%s19705_s3 + $0xc90] sm:$0xf0] }
 0xdc1   :  { %7399 = vmatpush.bf16.msrb.mxu2 %v19854_v13  ;;  %v12168_v54 = vor.u32 %v13651_v12, %v12165_v32  ;;  %v13622_v32 = vld [vmem:[%s19705_s3 + $0xbac] sm:$0xf] }
 0xdc3   :  { %v6096_v7 = vpop.f32.mrf.mxu2 }
 0xdc4   :  { %v18026_v35 = vadd.f32 %v6096_v7, %v17703_v36  ;;  %v13610_v36 = vld [vmem:[%s19705_s3 + $0xb4c] sm:$0xf] }
 0xdc5   :  { %7400 = vmatpush.bf16.msrb.mxu2 %v19855_v39  ;;  %v11964_v34 = vor.u32 %v13610_v36, %v11961_v14  ;;  %v18091_v36 = vpop.f32.mrf.mxu1  ;;  %v13618_v14 = vld [vmem:[%s19705_s3 + $0xb8c] sm:$0xf] }
 0xdc6   :  { %6910 = vmatmul.bf16.gmra.mxu1 %v12136_v17  ;;  %v20022_v17 = vld [vmem:[#allocation17_spill] sm:$0xff] }
 0xdc9   :  { %7401 = vmatpush.bf16.msrb.mxu2 %v19856_v28 }
 0xdcb   :  { %v6098_v42 = vpop.f32.mrf.mxu2 }
 0xdcc   :  { %v18045_v27 = vadd.f32 %v6098_v42, %v17720_v26  ;;  %v11999_v26 = vld [vmem:[%s19705_s3 + $0xba0] sm:$0xf]  ;;  %v11993_v42 = vld [vmem:[%s19705_s3 + $0xb98] sm:$0xf0] }
 0xdcd   :  { %7402 = vmatpush.bf16.msrb.mxu2 %v19974_v18  ;;  %v12000_v46 = vor.u32 %v13623_v11, %v11999_v26  ;;  %v12181_v26 = vld [vmem:[%s19705_s3 + $0xcb0] sm:$0xf0] }
 0xdcf   :  { %6373 = vmatmul.bf16.gmra.mxu3 %v12000_v46  ;;  %v18108_v46 = vpop.f32.mrf.mxu1 }
 0xdd0   :  { %6505 = vmatmul.bf16.gmra.mxu2 %v11964_v34 }
 0xdd3   :  { %v6101_v51 = vpop.f32.mrf.mxu2 }
 0xdd4   :  { %v18055_v15 = vadd.f32 %v6101_v51, %v17733_v47  ;;  %v11977_v47 = vld [vmem:[%s19705_s3 + $0xb78] sm:$0xf0]  ;;  %v13655_v51 = vld [vmem:[%s19705_s3 + $0xca4] sm:$0xf] }
 0xdd5   :  { %v11980_v5 = vor.u32 %v13614_v3, %v11977_v47  ;;  %v12184_v11 = vor.u32 %v13655_v51, %v12181_v26  ;;  %v20026_v47 = vld [vmem:[#allocation12_spill] sm:$0xff]  ;;  %v20030_v51 = vld [vmem:[#allocation33_spill] sm:$0xff] }
 0xdd6   :  { %6915 = vmatmul.bf16.gmra.mxu1 %v12152_v23  ;;  %v11996_v23 = vor.u32 %v13618_v14, %v11993_v42  ;;  %v13659_v14 = vld [vmem:[%s19705_s3 + $0xcc4] sm:$0xf]  ;;  %v12197_v42 = vld [vmem:[%s19705_s3 + $0xcd0] sm:$0xf0] }
 0xddb   :  { %v6103_v30 = vpop.f32.mrf.mxu2 }
 0xddc   :  { %v18072_v6 = vadd.f32 %v6103_v30, %v20020_v56  ;;  %v12031_v56 = vld [vmem:[%s19705_s3 + $0xbe0] sm:$0xf] }
 0xdde   :  { %20021 = vst [vmem:[#allocation40_spill] sm:$0xff] %v18072_v6 }
 0xddf   :  { %6378 = vmatmul.bf16.gmra.mxu3 %v12016_v8  ;;  %v18128_v8 = vpop.f32.mrf.mxu1 }
 0xde0   :  { %6510 = vmatmul.bf16.gmra.mxu2 %v11980_v5  ;;  %v13631_v5 = vld [vmem:[%s19705_s3 + $0xbec] sm:$0xf0] }
 0xde1   :  { %v12032_v12 = vor.u32 %v13631_v5, %v12031_v56  ;;  %v12025_v56 = vld [vmem:[%s19705_s3 + $0xbd8] sm:$0xf0] }
 0xde3   :  { %v6106_v20 = vpop.f32.mrf.mxu2 }
 0xde4   :  { %v18083_v7 = vadd.f32 %v6106_v20, %v20022_v17  ;;  %v20028_v17 = vld [vmem:[#allocation11_spill] sm:$0xff] }
 0xde6   :  { %20023 = vst [vmem:[#allocation42_spill] sm:$0xff] %v18083_v7  ;;  %6920 = vmatmul.bf16.gmra.mxu1 %v12168_v54  ;;  %v12009_v54 = vld [vmem:[%s19705_s3 + $0xbb8] sm:$0xf0] }
 0xde7   :  { %v12012_v58 = vor.u32 %v13622_v32, %v12009_v54 }
 0xdeb   :  { %v6108_v34 = vpop.f32.mrf.mxu2 }
 0xdec   :  { %v18100_v10 = vadd.f32 %v6108_v34, %v20024_v33  ;;  %v13702_v34 = vld [vmem:[%s19706_s4 + $0xd8] sm:$0xff]  ;;  %v12200_v33 = vor.u32 %v13659_v14, %v12197_v42  ;;  %v12213_v14 = vld [vmem:[%s19705_s3 + $0xcf0] sm:$0xf0] }
 0xded   :  { %7597 = vmatpush.bf16.msra.mxu1 %v13702_v34 }
 0xdee   :  { %20025 = vst [vmem:[#allocation43_spill] sm:$0xff] %v18100_v10 }
 0xdef   :  { %6383 = vmatmul.bf16.gmra.mxu3 %v12032_v12  ;;  %v20032_v12 = vld [vmem:[#allocation23_spill] sm:$0xff] }
 0xdf0   :  { %6515 = vmatmul.bf16.gmra.mxu2 %v11996_v23 }
 0xdf3   :  { %v6111_v3 = vpop.f32.mrf.mxu2 }
 0xdf4   :  { %v18111_v30 = vadd.f32 %v6111_v3, %v20026_v47  ;;  %v18145_v3 = vpop.f32.mrf.mxu1  ;;  %v13626_v47 = vld [vmem:[%s19705_s3 + $0xbcc] sm:$0xf] }
 0xdf5   :  { %v12028_v54 = vor.u32 %v13626_v47, %v12025_v56  ;;  %v13630_v56 = vld [vmem:[%s19705_s3 + $0xbec] sm:$0xf] }
 0xdf6   :  { %20027 = vst [vmem:[#allocation44_spill] sm:$0xff] %v18111_v30  ;;  %6925 = vmatmul.bf16.gmra.mxu1 %v12184_v11  ;;  %v13701_v11 = vld [vmem:[%s19706_s4 + $0xd0] sm:$0xff] }
 0xdf7   :  { %7598 = vmatpush.bf16.msra.mxu1 %v13701_v11  ;;  %v20038_v30 = vld [vmem:[#allocation36_spill] sm:$0xff] }
 0xdfb   :  { %v6113_v20 = vpop.f32.mrf.mxu2 }
 0xdfc   :  { %v18126_v37 = vadd.f32 %v6113_v20, %v20028_v17  ;;  %v6398_v20 = vpop.f32.mrf.mxu0  ;;  %v6349_v17 = vpop.f32.mrf.mxu3 }
 0xdfd   :  { %v18162_v42 = vpop.f32.mrf.mxu1 }
 0xdfe   :  { %20029 = vst [vmem:[#allocation9_spill] sm:$0xff] %v18126_v37 }
 0xe00   :  { %6520 = vmatmul.bf16.gmra.mxu2 %v12012_v58  ;;  %v13663_v58 = vld [vmem:[%s19705_s3 + $0xce4] sm:$0xf] }
 0xe01   :  { %v12216_v34 = vor.u32 %v13663_v58, %v12213_v14 }
 0xe03   :  { %v6116_v23 = vpop.f32.mrf.mxu2 }
 0xe04   :  { %v18140_v26 = vadd.f32 %v6116_v23, %v20030_v51  ;;  %v20034_v23 = vld [vmem:[#allocation24_spill] sm:$0xff]  ;;  %v6400_v11 = vpop.f32.mrf.mxu0  ;;  %v6351_v47 = vpop.f32.mrf.mxu3 }
 0xe06   :  { %20031 = vst [vmem:[#allocation5_spill] sm:$0xff] %v18140_v26  ;;  %6930 = vmatmul.bf16.gmra.mxu1 %v12200_v33 }
 0xe0b   :  { %v6118_v5 = vpop.f32.mrf.mxu2 }
 0xe0c   :  { %v18154_v32 = vadd.f32 %v6118_v5, %v20032_v12  ;;  %v12041_v5 = vld [vmem:[%s19705_s3 + $0xbf8] sm:$0xf0]  ;;  %v18173_v12 = vpop.f32.mrf.mxu1 }
 0xe0d   :  { %v12044_v14 = vor.u32 %v13630_v56, %v12041_v5  ;;  %v12107_v56 = vld [vmem:[%s19705_s3 + $0xc08] sm:$0xf]  ;;  %v13638_v5 = vld [vmem:[%s19705_s3 + $0xc14] sm:$0xf0] }
 0xe0e   :  { %20033 = vst [vmem:[#allocation21_spill] sm:$0xff] %v18154_v32  ;;  %v20036_v32 = vld [vmem:[#allocation34_spill] sm:$0xff] }
 0xe10   :  { %6525 = vmatmul.bf16.gmra.mxu2 %v12028_v54 }
 0xe13   :  { %v6121_v33 = vpop.f32.mrf.mxu2 }
 0xe14   :  { %v18165_v51 = vadd.f32 %v6121_v33, %v20034_v23  ;;  %v13671_v33 = vld [vmem:[%s19705_s3 + $0xd0c] sm:$0xf0]  ;;  %v6403_v23 = vpop.f32.mrf.mxu0  ;;  %v18187_v7 = vpop.f32.mrf.mxu1 }
 0xe16   :  { %20035 = vst [vmem:[#allocation10_spill] sm:$0xff] %v18165_v51  ;;  %6935 = vmatmul.bf16.gmra.mxu1 %v12216_v34  ;;  %v12279_v34 = vld [vmem:[%s19705_s3 + $0xd00] sm:$0xf]  ;;  %v6354_v51 = vpop.f32.mrf.mxu3 }
 0xe17   :  { %v12280_v26 = vor.u32 %v13671_v33, %v12279_v34 }
 0xe1b   :  { %v6123_v54 = vpop.f32.mrf.mxu2 }
 0xe1c   :  { %v18176_v58 = vadd.f32 %v6123_v54, %v20036_v32  ;;  %v20040_v32 = vld [vmem:[#allocation25_spill] sm:$0xff]  ;;  %v6405_v54 = vpop.f32.mrf.mxu0 }
 0xe1e   :  { %20037 = vst [vmem:[#allocation18_spill] sm:$0xff] %v18176_v58  ;;  %v6356_v33 = vpop.f32.mrf.mxu3  ;;  %v12108_v58 = vor.u32 %v13638_v5, %v12107_v56  ;;  %v13642_v56 = vld [vmem:[%s19705_s3 + $0xc34] sm:$0xf0] }
 0xe20   :  { %6530 = vmatmul.bf16.gmra.mxu2 %v12044_v14  ;;  %v20041_v14 = vld [vmem:[#allocation26_spill] sm:$0xff] }
 0xe23   :  { %v6126_v37 = vpop.f32.mrf.mxu2 }
 0xe24   :  { %v18185_v10 = vadd.f32 %v6126_v37, %v20038_v30  ;;  %v20042_v30 = vld [vmem:[#allocation38_spill] sm:$0xff] }
 0xe26   :  { %20039 = vst [vmem:[#allocation6_spill] sm:$0xff] %v18185_v10  ;;  %7354 = vmatmul.bf16.vlgmr.msrb.gmra.mxu1 %v12280_v26  ;;  %v6399_v10 = vadd.f32 %v6398_v20, %v6349_v17  ;;  %v6359_v6 = vpop.f32.mrf.mxu3 }
 0xe27   :  { %7996 = vmatpush.bf16.msrb.mxu1 %v20040_v32  ;;  %v6408_v32 = vpop.f32.mrf.mxu0 }
 0xe2b   :  { %7997 = vmatpush.bf16.msrb.mxu1 %v20041_v14  ;;  %v6128_v34 = vpop.f32.mrf.mxu2  ;;  %v6401_v14 = vadd.f32 %v6400_v11, %v6351_v47 }
 0xe2c   :  { %v18198_v37 = vadd.f32 %v6128_v34, %v20042_v30  ;;  %v6448_v34 = vadd.f32 %v18042_v16, %v6399_v10 }
 0xe2d   :  { %v6450_v20 = vadd.f32 %v18057_v57, %v6401_v14  ;;  %v6404_v14 = vadd.f32 %v6403_v23, %v6354_v51  ;;  %v13646_v51 = vld [vmem:[%s19705_s3 + $0xc54] sm:$0xf0] }
 0xe2e   :  { %20043 = vst [vmem:[#allocation29_spill] sm:$0xff] %v18198_v37  ;;  %v6361_v30 = vpop.f32.mrf.mxu3 }
 0xe2f   :  { %7998 = vmatpush.bf16.msrb.mxu1 %v19995_v25  ;;  %v6410_v10 = vpop.f32.mrf.mxu0 }
 0xe30   :  { %6949 = vmatmul.bf16.vlgmr.msra.gmra.mxu2 %v12108_v58  ;;  %v12123_v58 = vld [vmem:[%s19705_s3 + $0xc28] sm:$0xf] }
 0xe31   :  { %7849 = vmatpush.bf16.msra.mxu2 %v19885_v2  ;;  %v12124_v5 = vor.u32 %v13642_v56, %v12123_v58  ;;  %v12139_v56 = vld [vmem:[%s19705_s3 + $0xc48] sm:$0xf] }
 0xe33   :  { %7999 = vmatpush.bf16.msrb.mxu1 %v20019_v38  ;;  %v6496_v26 = vpop.f32.mrf.mxu2 }
 0xe34   :  { %v6497_v11 = vadd.f32 %v6496_v26, %v6448_v34  ;;  %v6406_v26 = vadd.f32 %v6405_v54, %v6356_v33  ;;  %v6453_v34 = vadd.f32 %v18074_v61, %v6404_v14  ;;  %v12140_v61 = vor.u32 %v13646_v51, %v12139_v56 }
 0xe35   :  { %7850 = vmatpush.bf16.msra.mxu2 %v19905_v53  ;;  %v6409_v14 = vadd.f32 %v6408_v32, %v6359_v6 }
 0xe36   :  { %v6364_v23 = vpop.f32.mrf.mxu3 }
 0xe37   :  { %8000 = vmatpush.bf16.msrb.mxu1 %v19886_v4  ;;  %v6413_v58 = vpop.f32.mrf.mxu0 }
 0xe39   :  { %7851 = vmatpush.bf16.msra.mxu2 %v19907_v41 }
 0xe3b   :  { %8001 = vmatpush.bf16.msrb.mxu1 %v19906_v19  ;;  %v6498_v17 = vpop.f32.mrf.mxu2 }
 0xe3c   :  { %v6499_v47 = vadd.f32 %v6498_v17, %v6450_v20  ;;  %v6455_v20 = vadd.f32 %v18091_v36, %v6406_v26  ;;  %v6411_v36 = vadd.f32 %v6410_v10, %v6361_v30  ;;  %v12155_v26 = vld [vmem:[%s19705_s3 + $0xc68] sm:$0xf] }
 0xe3d   :  { %7852 = vmatpush.bf16.msra.mxu2 %v19874_v43 }
 0xe3e   :  { %v6536_v16 = vpack.c.bf16 %v6499_v47, %v6497_v11  ;;  %v6460_v56 = vadd.f32 %v18128_v8, %v6411_v36  ;;  %v12171_v8 = vld [vmem:[%s19705_s3 + $0xc88] sm:$0xf] }
 0xe3f   :  { %8002 = vmatpush.bf16.msrb.mxu1 %v19996_v45  ;;  %v6415_v47 = vpop.f32.mrf.mxu0 }
 0xe40   :  { %12057 = vmatmul.msk.bf16.vlgmr.msrb.gmra.mxu3 %vm1461_vm1, %v6536_v16  ;;  %6954 = vmatmul.bf16.gmra.mxu2 %v12124_v5  ;;  %v6366_v16 = vpop.f32.mrf.mxu3 }
 0xe41   :  { %7444 = vmatpush.bf16.msrb.mxu3 %v14188_v62  ;;  %7853 = vmatpush.bf16.msra.mxu2 %v19875_v49 }
 0xe43   :  { %8003 = vmatpush.bf16.msrb.mxu1 %v19930_v22  ;;  %v6501_v57 = vpop.f32.mrf.mxu2 }
 0xe44   :  { %v6502_v54 = vadd.f32 %v6501_v57, %v6453_v34  ;;  %v6458_v57 = vadd.f32 %v18108_v46, %v6409_v14  ;;  %v13650_v34 = vld [vmem:[%s19705_s3 + $0xc74] sm:$0xf0] }
 0xe45   :  { %7445 = vmatpush.bf16.msrb.mxu3 %v19876_v0  ;;  %7854 = vmatpush.bf16.msra.mxu2 %v19910_v50  ;;  %v12156_v32 = vor.u32 %v13650_v34, %v12155_v26 }
 0xe48   :  { %v6369_v46 = vpop.f32.mrf.mxu3 }
 0xe49   :  { %7446 = vmatpush.bf16.msrb.mxu3 %v19909_v60  ;;  %7855 = vmatpush.bf16.msra.mxu2 %v19911_v24 }
 0xe4b   :  { %v6503_v17 = vpop.f32.mrf.mxu2 }
 0xe4c   :  { %v6504_v33 = vadd.f32 %v6503_v17, %v6455_v20  ;;  %v6418_v17 = vpop.f32.mrf.mxu0 }
 0xe4d   :  { %7447 = vmatpush.bf16.msrb.mxu3 %v14219_v29  ;;  %7856 = vmatpush.bf16.msra.mxu2 %v19931_v48 }
 0xe4e   :  { %v6537_v11 = vpack.c.bf16 %v6504_v33, %v6502_v54  ;;  %v6414_v54 = vadd.f32 %v6413_v58, %v6364_v23  ;;  %v6416_v33 = vadd.f32 %v6415_v47, %v6366_v16  ;;  %v6419_v16 = vadd.f32 %v6418_v17, %v6369_v46 }
 0xe50   :  { %12058 = vmatmul.msk.bf16.gmra.mxu3 %vm1461_vm1, %v6537_v11  ;;  %6959 = vmatmul.bf16.gmra.mxu2 %v12140_v61  ;;  %v6371_v11 = vpop.f32.mrf.mxu3  ;;  %v6463_v14 = vadd.f32 %v18145_v3, %v6414_v54  ;;  %v6465_v36 = vadd.f32 %v18162_v42, %v6416_v33  ;;  %v12187_v42 = vld [vmem:[%s19705_s3 + $0xca8] sm:$0xf] }
 0xe51   :  { %7448 = vmatpush.bf16.msrb.mxu3 %v14135_v9 }
 0xe53   :  { %v6506_v5 = vpop.f32.mrf.mxu2 }
 0xe54   :  { %v6507_v20 = vadd.f32 %v6506_v5, %v6458_v57  ;;  %v6420_v61 = vpop.f32.mrf.mxu0  ;;  %v13654_v5 = vld [vmem:[%s19705_s3 + $0xc94] sm:$0xf0] }
 0xe55   :  { %7449 = vmatpush.bf16.msrb.mxu3 %v19895_v55 }
 0xe58   :  { %v6374_v3 = vpop.f32.mrf.mxu3 }
 0xe59   :  { %7450 = vmatpush.bf16.msrb.mxu3 %v19912_v40 }
 0xe5b   :  { %v6508_v51 = vpop.f32.mrf.mxu2 }
 0xe5c   :  { %v6509_v6 = vadd.f32 %v6508_v51, %v6460_v56  ;;  %v12172_v56 = vor.u32 %v13654_v5, %v12171_v8  ;;  %v6423_v23 = vpop.f32.mrf.mxu0  ;;  %v6472_v51 = vpop.f32.mrf.mxu1 }
 0xe5d   :  { %7451 = vmatpush.bf16.msrb.mxu3 %v19883_v59 }
 0xe5e   :  { %v6538_v10 = vpack.c.bf16 %v6509_v6, %v6507_v20  ;;  %v6421_v20 = vadd.f32 %v6420_v61, %v6371_v11  ;;  %v6468_v6 = vadd.f32 %v18173_v12, %v6419_v16  ;;  %v6424_v11 = vadd.f32 %v6423_v23, %v6374_v3 }
 0xe60   :  { %12059 = vmatmul.msk.bf16.gmra.mxu3 %vm1461_vm1, %v6538_v10  ;;  %6964 = vmatmul.bf16.gmra.mxu2 %v12156_v32  ;;  %v13658_v32 = vld [vmem:[%s19705_s3 + $0xcb4] sm:$0xf0]  ;;  %v6470_v10 = vadd.f32 %v18187_v7, %v6421_v20  ;;  %v6376_v33 = vpop.f32.mrf.mxu3  ;;  %v12203_v7 = vld [vmem:[%s19705_s3 + $0xcc8] sm:$0xf] }
 0xe61   :  { %v12188_v17 = vor.u32 %v13658_v32, %v12187_v42 }
 0xe63   :  { %v6511_v30 = vpop.f32.mrf.mxu2 }
 0xe64   :  { %v6512_v26 = vadd.f32 %v6511_v30, %v6463_v14  ;;  %v6425_v30 = vpop.f32.mrf.mxu0  ;;  %v6474_v61 = vpop.f32.mrf.mxu1 }
 0xe6b   :  { %v6513_v57 = vpop.f32.mrf.mxu2 }
 0xe6c   :  { %v6514_v34 = vadd.f32 %v6513_v57, %v6465_v36  ;;  %v6428_v5 = vpop.f32.mrf.mxu0  ;;  %v6379_v36 = vpop.f32.mrf.mxu3  ;;  %v6426_v57 = vadd.f32 %v6425_v30, %v6376_v33 }
 0xe6e   :  { %v6539_v58 = vpack.c.bf16 %v6514_v34, %v6512_v26  ;;  %v6473_v26 = vadd.f32 %v6472_v51, %v6424_v11  ;;  %v6477_v34 = vpop.f32.mrf.mxu1 }
 0xe70   :  { %12060 = vmatmul.msk.bf16.gmra.mxu3 %vm1461_vm1, %v6539_v58  ;;  %6969 = vmatmul.bf16.gmra.mxu2 %v12172_v56  ;;  %v13662_v56 = vld [vmem:[%s19705_s3 + $0xcd4] sm:$0xf0]  ;;  %v6475_v58 = vadd.f32 %v6474_v61, %v6426_v57 }
 0xe73   :  { %v6516_v47 = vpop.f32.mrf.mxu2 }
 0xe74   :  { %v6517_v14 = vadd.f32 %v6516_v47, %v6468_v6  ;;  %v12204_v6 = vor.u32 %v13662_v56, %v12203_v7  ;;  %v6430_v23 = vpop.f32.mrf.mxu0  ;;  %v6381_v3 = vpop.f32.mrf.mxu3 }
 0xe75   :  { %v6431_v30 = vadd.f32 %v6430_v23, %v6381_v3  ;;  %v13641_v23 = vld [vmem:[%s19705_s3 + $0xc2c] sm:$0xf0] }
 0xe76   :  { %v6479_v51 = vpop.f32.mrf.mxu1 }
 0xe7b   :  { %v6518_v54 = vpop.f32.mrf.mxu2 }
 0xe7c   :  { %v6519_v8 = vadd.f32 %v6518_v54, %v6470_v10  ;;  %v6429_v10 = vadd.f32 %v6428_v5, %v6379_v36  ;;  %v6433_v33 = vpop.f32.mrf.mxu0 }
 0xe7e   :  { %v6540_v46 = vpack.c.bf16 %v6519_v8, %v6517_v14  ;;  %v6478_v54 = vadd.f32 %v6477_v34, %v6429_v10  ;;  %v6384_v14 = vpop.f32.mrf.mxu3  ;;  %v12219_v8 = vld [vmem:[%s19705_s3 + $0xce8] sm:$0xf] }
 0xe7f   :  { %v6434_v56 = vadd.f32 %v6433_v33, %v6384_v14  ;;  %v13636_v14 = vld [vmem:[%s19705_s3 + $0xc0c] sm:$0xf] }
 0xe80   :  { %12061 = vmatmul.msk.bf16.gmra.mxu3 %vm1461_vm1, %v6540_v46  ;;  %6974 = vmatmul.bf16.gmra.mxu2 %v12188_v17  ;;  %v13666_v17 = vld [vmem:[%s19705_s3 + $0xcf4] sm:$0xf0]  ;;  %v6480_v46 = vadd.f32 %v6479_v51, %v6431_v30 }
 0xe81   :  { %v12220_v57 = vor.u32 %v13666_v17, %v12219_v8  ;;  %v12109_v8 = vld [vmem:[%s19705_s3 + $0xc18] sm:$0xf0]  ;;  %v13673_v17 = vld [vmem:[%s19705_s3 + $0xd24] sm:$0xf] }
 0xe83   :  { %v6521_v12 = vpop.f32.mrf.mxu2 }
 0xe84   :  { %v6522_v16 = vadd.f32 %v6521_v12, %v6473_v26  ;;  %v6482_v26 = vpop.f32.mrf.mxu1  ;;  %v6435_v5 = vpop.f32.mrf.mxu0 }
 0xe86   :  { %v6386_v36 = vpop.f32.mrf.mxu3 }
 0xe8b   :  { %v6523_v47 = vpop.f32.mrf.mxu2 }
 0xe8c   :  { %v6524_v20 = vadd.f32 %v6523_v47, %v6475_v58  ;;  %v6436_v58 = vadd.f32 %v6435_v5, %v6386_v36  ;;  %v6484_v47 = vpop.f32.mrf.mxu1  ;;  %v12147_v36 = vld [vmem:[%s19705_s3 + $0xc60] sm:$0xf] }
 0xe8e   :  { %v6541_v42 = vpack.c.bf16 %v6524_v20, %v6522_v16  ;;  %v6483_v16 = vadd.f32 %v6482_v26, %v6434_v56  ;;  %v13669_v20 = vld [vmem:[%s19705_s3 + $0xd04] sm:$0xf]  ;;  %v6485_v3 = vadd.f32 %v6484_v47, %v6436_v58  ;;  %v13640_v56 = vld [vmem:[%s19705_s3 + $0xc2c] sm:$0xf] }
 0xe8f   :  { %v13677_v47 = vld [vmem:[%s19705_s3 + $0xd44] sm:$0xf] }
 0xe90   :  { %12062 = vmatmul.msk.bf16.gmra.mxu3 %vm1461_vm1, %v6541_v42  ;;  %6979 = vmatmul.bf16.gmra.mxu2 %v12204_v6  ;;  %v12281_v6 = vld [vmem:[%s19705_s3 + $0xd10] sm:$0xf0]  ;;  %v12115_v42 = vld [vmem:[%s19705_s3 + $0xc20] sm:$0xf] }
 0xe91   :  { %v12116_v51 = vor.u32 %v13641_v23, %v12115_v42 }
 0xe93   :  { %v6526_v32 = vpop.f32.mrf.mxu2  ;;  %6856 = vmatmul.bf16.gmra.mxu0 %v12116_v51 }
 0xe94   :  { %v6527_v12 = vadd.f32 %v6526_v32, %v6478_v54  ;;  %v12284_v54 = vor.u32 %v13669_v20, %v12281_v6 }
 0xe9b   :  { %v6528_v61 = vpop.f32.mrf.mxu2 }
 0xe9c   :  { %v6529_v11 = vadd.f32 %v6528_v61, %v6480_v46  ;;  %v12297_v46 = vld [vmem:[%s19705_s3 + $0xd30] sm:$0xf0]  ;;  %v12131_v61 = vld [vmem:[%s19705_s3 + $0xc40] sm:$0xf] }
 0xe9d   :  { %v12300_v26 = vor.u32 %v13673_v17, %v12297_v46 }
 0xe9e   :  { %v6542_v7 = vpack.c.bf16 %v6529_v11, %v6527_v12  ;;  %v13645_v12 = vld [vmem:[%s19705_s3 + $0xc4c] sm:$0xf0] }
 0xe9f   :  { %v12132_v11 = vor.u32 %v13645_v12, %v12131_v61 }
 0xea0   :  { %12063 = vmatmul.msk.bf16.gmra.mxu3 %vm1461_vm1, %v6542_v7  ;;  %6984 = vmatmul.bf16.gmra.mxu2 %v12220_v57  ;;  %v12112_v57 = vor.u32 %v13636_v14, %v12109_v8  ;;  %v12329_v14 = vld [vmem:[%s19705_s3 + $0xd70] sm:$0xf0] }
 0xea3   :  { %v6531_v34 = vpop.f32.mrf.mxu2  ;;  %6861 = vmatmul.bf16.gmra.mxu0 %v12132_v11 }
 0xea4   :  { %v6532_v10 = vadd.f32 %v6531_v34, %v6483_v16  ;;  %v13649_v34 = vld [vmem:[%s19705_s3 + $0xc6c] sm:$0xf0]  ;;  %v12313_v16 = vld [vmem:[%s19705_s3 + $0xd50] sm:$0xf0] }
 0xea5   :  { %v12148_v58 = vor.u32 %v13649_v34, %v12147_v36  ;;  %v12316_v23 = vor.u32 %v13677_v47, %v12313_v16  ;;  %v20044_v47 = vld [vmem:[#allocation40_spill] sm:$0xff] }
 0xeab   :  { %v6533_v32 = vpop.f32.mrf.mxu2 }
 0xeac   :  { %v6534_v30 = vadd.f32 %v6533_v32, %v6485_v3 }
 0xeae   :  { %v6543_v33 = vpack.c.bf16 %v6534_v30, %v6532_v10  ;;  %v13653_v10 = vld [vmem:[%s19705_s3 + $0xc8c] sm:$0xf0]  ;;  %v13644_v30 = vld [vmem:[%s19705_s3 + $0xc4c] sm:$0xf] }
 0xeb0   :  { %12064 = vmatmul.msk.bf16.gmra.mxu3 %vm1461_vm1, %v6543_v33  ;;  %7403 = vmatmul.bf16.vlgmr.msrb.gmra.mxu2 %v12284_v54  ;;  %v13681_v33 = vld [vmem:[%s19705_s3 + $0xd64] sm:$0xf] }
 0xeb1   :  { %v12332_v61 = vor.u32 %v13681_v33, %v12329_v14  ;;  %v12173_v14 = vld [vmem:[%s19705_s3 + $0xc98] sm:$0xf0] }
 0xeb3   :  { %6866 = vmatmul.bf16.gmra.mxu0 %v12148_v58  ;;  %v18344_v32 = vpop.f32.mrf.mxu2  ;;  %v12345_v58 = vld [vmem:[%s19705_s3 + $0xd90] sm:$0xf0] }
 0xebb   :  { %v18370_v12 = vpop.f32.mrf.mxu2 }
 0xec0   :  { %6998 = vmatmul.bf16.vlgmr.msra.gmra.mxu3 %v12112_v57  ;;  %7408 = vmatmul.bf16.gmra.mxu2 %v12300_v26  ;;  %v12179_v26 = vld [vmem:[%s19705_s3 + $0xca0] sm:$0xf] }
 0xec1   :  { %7898 = vmatpush.bf16.msra.mxu3 %v19850_v1 }
 0xec3   :  { %v6594_v7 = vpop.f32.mrf.mxu3  ;;  %v18384_v36 = vpop.f32.mrf.mxu2 }
 0xec4   :  { %v18314_v5 = vadd.f32 %v6594_v7, %v17998_v63  ;;  %v12125_v63 = vld [vmem:[%s19705_s3 + $0xc38] sm:$0xf0]  ;;  %v13648_v7 = vld [vmem:[%s19705_s3 + $0xc6c] sm:$0xf] }
 0xec5   :  { %7899 = vmatpush.bf16.msra.mxu3 %v19851_v52  ;;  %v12128_v42 = vor.u32 %v13640_v56, %v12125_v63  ;;  %v13685_v56 = vld [vmem:[%s19705_s3 + $0xd84] sm:$0xf] }
 0xec9   :  { %7900 = vmatpush.bf16.msra.mxu3 %v19852_v44 }
 0xecb   :  { %v6596_v20 = vpop.f32.mrf.mxu3 }
 0xecc   :  { %v18337_v6 = vadd.f32 %v6596_v20, %v18015_v31  ;;  %v12163_v31 = vld [vmem:[%s19705_s3 + $0xc80] sm:$0xf] }
 0xecd   :  { %7901 = vmatpush.bf16.msra.mxu3 %v19853_v21  ;;  %v12164_v54 = vor.u32 %v13653_v10, %v12163_v31  ;;  %v20045_v31 = vld [vmem:[#allocation42_spill] sm:$0xff] }
 0xecf   :  { %6871 = vmatmul.bf16.gmra.mxu0 %v12164_v54  ;;  %v13661_v54 = vld [vmem:[%s19705_s3 + $0xccc] sm:$0xf0] }
 0xed0   :  { %7003 = vmatmul.bf16.gmra.mxu3 %v12128_v42  ;;  %7413 = vmatmul.bf16.gmra.mxu2 %v12316_v23  ;;  %v12348_v42 = vor.u32 %v13685_v56, %v12345_v58  ;;  %v18398_v23 = vpop.f32.mrf.mxu2  ;;  %v20049_v56 = vld [vmem:[#allocation44_spill] sm:$0xff] }
 0xed1   :  { %7902 = vmatpush.bf16.msra.mxu3 %v19854_v13 }
 0xed3   :  { %v6599_v3 = vpop.f32.mrf.mxu3 }
 0xed4   :  { %v18342_v51 = vadd.f32 %v6599_v3, %v18026_v35  ;;  %v12141_v35 = vld [vmem:[%s19705_s3 + $0xc58] sm:$0xf0] }
 0xed5   :  { %7903 = vmatpush.bf16.msra.mxu3 %v19855_v39  ;;  %v12144_v46 = vor.u32 %v13644_v30, %v12141_v35  ;;  %v12195_v30 = vld [vmem:[%s19705_s3 + $0xcc0] sm:$0xf]  ;;  %v13652_v35 = vld [vmem:[%s19705_s3 + $0xc8c] sm:$0xf] }
 0xed6   :  { %v12196_v33 = vor.u32 %v13661_v54, %v12195_v30  ;;  %v13693_v30 = vld [vmem:[%s19705_s3 + $0xdc4] sm:$0xf]  ;;  %v12377_v54 = vld [vmem:[%s19705_s3 + $0xdd0] sm:$0xf0] }
 0xed9   :  { %7904 = vmatpush.bf16.msra.mxu3 %v19856_v28 }
 0xedb   :  { %v6601_v8 = vpop.f32.mrf.mxu3 }
 0xedc   :  { %v18367_v17 = vadd.f32 %v6601_v8, %v18045_v27  ;;  %v13657_v27 = vld [vmem:[%s19705_s3 + $0xcac] sm:$0xf0]  ;;  %v13689_v8 = vld [vmem:[%s19705_s3 + $0xda4] sm:$0xf] }
 0xedd   :  { %7905 = vmatpush.bf16.msra.mxu3 %v19974_v18  ;;  %v12180_v34 = vor.u32 %v13657_v27, %v12179_v26  ;;  %v12176_v27 = vor.u32 %v13652_v35, %v12173_v14 }
 0xedf   :  { %6876 = vmatmul.bf16.gmra.mxu0 %v12180_v34  ;;  %v18424_v34 = vpop.f32.mrf.mxu2 }
 0xee0   :  { %7008 = vmatmul.bf16.gmra.mxu3 %v12144_v46  ;;  %7418 = vmatmul.bf16.gmra.mxu2 %v12332_v61  ;;  %v12361_v46 = vld [vmem:[%s19705_s3 + $0xdb0] sm:$0xf0] }
 0xee3   :  { %v6604_v11 = vpop.f32.mrf.mxu3 }
 0xee4   :  { %v18373_v57 = vadd.f32 %v6604_v11, %v18055_v15  ;;  %v12157_v15 = vld [vmem:[%s19705_s3 + $0xc78] sm:$0xf0]  ;;  %v20047_v11 = vld [vmem:[#allocation43_spill] sm:$0xff] }
 0xee5   :  { %v12160_v20 = vor.u32 %v13648_v7, %v12157_v15  ;;  %v12364_v7 = vor.u32 %v13689_v8, %v12361_v46  ;;  %v12380_v46 = vor.u32 %v13693_v30, %v12377_v54 }
 0xeeb   :  { %v6606_v63 = vpop.f32.mrf.mxu3 }
 0xeec   :  { %v18396_v16 = vadd.f32 %v6606_v63, %v20044_v47  ;;  %v12211_v63 = vld [vmem:[%s19705_s3 + $0xce0] sm:$0xf]  ;;  %v13665_v47 = vld [vmem:[%s19705_s3 + $0xcec] sm:$0xf0] }
 0xeef   :  { %6881 = vmatmul.bf16.gmra.mxu0 %v12196_v33  ;;  %v20051_v33 = vld [vmem:[#allocation9_spill] sm:$0xff] }
 0xef0   :  { %7013 = vmatmul.bf16.gmra.mxu3 %v12160_v20  ;;  %7423 = vmatmul.bf16.gmra.mxu2 %v12348_v42  ;;  %v18435_v20 = vpop.f32.mrf.mxu2  ;;  %v13656_v42 = vld [vmem:[%s19705_s3 + $0xcac] sm:$0xf] }
 0xef3   :  { %v6609_v3 = vpop.f32.mrf.mxu3 }
 0xef4   :  { %v18401_v10 = vadd.f32 %v6609_v3, %v20045_v31  ;;  %v12212_v3 = vor.u32 %v13665_v47, %v12211_v63  ;;  %v12189_v31 = vld [vmem:[%s19705_s3 + $0xcb8] sm:$0xf0]  ;;  %v13660_v63 = vld [vmem:[%s19705_s3 + $0xccc] sm:$0xf] }
 0xef5   :  { %v12192_v8 = vor.u32 %v13656_v42, %v12189_v31  ;;  %v12205_v47 = vld [vmem:[%s19705_s3 + $0xcd8] sm:$0xf0]  ;;  %v13697_v42 = vld [vmem:[%s19705_s3 + $0xde4] sm:$0xf] }
 0xef6   :  { %20046 = vst [vmem:[#allocation20_spill] sm:$0xff] %v18401_v10  ;;  %v12208_v54 = vor.u32 %v13660_v63, %v12205_v47  ;;  %v12221_v63 = vld [vmem:[%s19705_s3 + $0xcf8] sm:$0xf0]  ;;  %v12459_v47 = vld [vmem:[%s19705_s3 + $0xe00] sm:$0xf] }
 0xef7   :  { %v20060_v10 = vld [vmem:[#allocation26_spill] sm:$0xff] }
 0xefb   :  { %v6611_v61 = vpop.f32.mrf.mxu3 }
 0xefc   :  { %v18422_v26 = vadd.f32 %v6611_v61, %v20047_v11  ;;  %v13736_v61 = vld [vmem:[%s19706_s4 + $0xe8] sm:$0xff]  ;;  %v13735_v11 = vld [vmem:[%s19706_s4 + $0xe0] sm:$0xff] }
 0xefd   :  { %8100 = vmatpush.bf16.msrb.mxu2 %v13736_v61  ;;  %v20056_v61 = vld [vmem:[#allocation10_spill] sm:$0xff] }
 0xefe   :  { %20048 = vst [vmem:[#allocation35_spill] sm:$0xff] %v18422_v26 }
 0xeff   :  { %6886 = vmatmul.bf16.gmra.mxu0 %v12212_v3  ;;  %v12393_v3 = vld [vmem:[%s19705_s3 + $0xdf0] sm:$0xf0] }
 0xf00   :  { %7018 = vmatmul.bf16.gmra.mxu3 %v12176_v27  ;;  %7428 = vmatmul.bf16.gmra.mxu2 %v12364_v7  ;;  %v18458_v27 = vpop.f32.mrf.mxu2 }
 0xf01   :  { %8101 = vmatpush.bf16.msrb.mxu2 %v13735_v11 }
 0xf03   :  { %v6614_v15 = vpop.f32.mrf.mxu3 }
 0xf04   :  { %v18427_v58 = vadd.f32 %v6614_v15, %v20049_v56  ;;  %v20053_v15 = vld [vmem:[#allocation5_spill] sm:$0xff] }
 0xf06   :  { %20050 = vst [vmem:[#allocation7_spill] sm:$0xff] %v18427_v58  ;;  %v20059_v58 = vld [vmem:[#allocation6_spill] sm:$0xff] }
 0xf08   :  { %v18475_v31 = vpop.f32.mrf.mxu2 }
 0xf0b   :  { %v6616_v35 = vpop.f32.mrf.mxu3 }
 0xf0c   :  { %v18450_v14 = vadd.f32 %v6616_v35, %v20051_v33  ;;  %v12396_v35 = vor.u32 %v13697_v42, %v12393_v3  ;;  %v6901_v33 = vpop.f32.mrf.mxu1  ;;  %v13705_v42 = vld [vmem:[%s19705_s3 + $0xe0c] sm:$0xf0] }
 0xf0e   :  { %20052 = vst [vmem:[#allocation30_spill] sm:$0xff] %v18450_v14  ;;  %v13664_v14 = vld [vmem:[%s19705_s3 + $0xcec] sm:$0xf] }
 0xf10   :  { %7023 = vmatmul.bf16.gmra.mxu3 %v12192_v8  ;;  %7433 = vmatmul.bf16.gmra.mxu2 %v12380_v46  ;;  %v6852_v8 = vpop.f32.mrf.mxu0 }
 0xf13   :  { %v6619_v7 = vpop.f32.mrf.mxu3 }
 0xf14   :  { %v18461_v56 = vadd.f32 %v6619_v7, %v20053_v15  ;;  %v18482_v7 = vpop.f32.mrf.mxu2  ;;  %v6903_v15 = vpop.f32.mrf.mxu1 }
 0xf16   :  { %20054 = vst [vmem:[#allocation8_spill] sm:$0xff] %v18461_v56 }
 0xf18   :  { %v6854_v37 = vpop.f32.mrf.mxu0 }
 0xf1b   :  { %v18477_v30 = vpop.f32.mrf.mxu3 }
 0xf1c   :  { %20055 = vst [vmem:[#allocation22_spill] sm:$0xff] %v18477_v30  ;;  %v20058_v30 = vld [vmem:[#allocation25_spill] sm:$0xff] }
 0xf20   :  { %7028 = vmatmul.bf16.gmra.mxu3 %v12208_v54  ;;  %7438 = vmatmul.bf16.gmra.mxu2 %v12396_v35  ;;  %v12224_v54 = vor.u32 %v13664_v14, %v12221_v63  ;;  %v12460_v35 = vor.u32 %v13705_v42, %v12459_v47  ;;  %v12287_v14 = vld [vmem:[%s19705_s3 + $0xd08] sm:$0xf]  ;;  %v13672_v63 = vld [vmem:[%s19705_s3 + $0xd14] sm:$0xf0] }
 0xf23   :  { %v6624_v46 = vpop.f32.mrf.mxu3 }
 0xf24   :  { %v18480_v11 = vadd.f32 %v6624_v46, %v20056_v61  ;;  %v18498_v46 = vpop.f32.mrf.mxu2  ;;  %v6906_v61 = vpop.f32.mrf.mxu1 }
 0xf26   :  { %20057 = vst [vmem:[#allocation27_spill] sm:$0xff] %v18480_v11  ;;  %v6857_v11 = vpop.f32.mrf.mxu0 }
 0xf2b   :  { %v18496_v3 = vpop.f32.mrf.mxu3 }
 0xf2c   :  { %v6908_v47 = vpop.f32.mrf.mxu1 }
 0xf30   :  { %7033 = vmatmul.bf16.gmra.mxu3 %v12224_v54  ;;  %7857 = vmatmul.bf16.vlgmr.msra.gmra.mxu2 %v12460_v35  ;;  %v12288_v54 = vor.u32 %v13672_v63, %v12287_v14  ;;  %v6904_v35 = vadd.f32 %v6903_v15, %v6854_v37 }
 0xf31   :  { %8499 = vmatpush.bf16.msra.mxu2 %v20058_v30  ;;  %v6859_v30 = vpop.f32.mrf.mxu0 }
 0xf32   :  { %v6909_v37 = vadd.f32 %v6908_v47, %v6859_v30 }
 0xf33   :  { %v6629_v56 = vpop.f32.mrf.mxu3 }
 0xf34   :  { %v18502_v26 = vadd.f32 %v6629_v56, %v20059_v58  ;;  %v6911_v58 = vpop.f32.mrf.mxu1 }
 0xf35   :  { %8500 = vmatpush.bf16.msra.mxu2 %v20060_v10  ;;  %v6902_v10 = vadd.f32 %v6901_v33, %v6852_v8 }
 0xf39   :  { %8501 = vmatpush.bf16.msra.mxu2 %v19995_v25  ;;  %v6862_v56 = vpop.f32.mrf.mxu0 }
 0xf3a   :  { %v6912_v63 = vadd.f32 %v6911_v58, %v6862_v56 }
 0xf3b   :  { %v18512_v42 = vpop.f32.mrf.mxu3 }
 0xf3c   :  { %20061 = vst [vmem:[#allocation31_spill] sm:$0xff] %v18512_v42  ;;  %v6951_v42 = vadd.f32 %v18344_v32, %v6902_v10  ;;  %v6913_v33 = vpop.f32.mrf.mxu1 }
 0xf3d   :  { %8502 = vmatpush.bf16.msra.mxu2 %v20019_v38  ;;  %v6953_v38 = vadd.f32 %v18370_v12, %v6904_v35  ;;  %v6958_v12 = vadd.f32 %v18398_v23, %v6909_v37  ;;  %v6961_v23 = vadd.f32 %v18424_v34, %v6912_v63 }
 0xf40   :  { %7452 = vmatmul.bf16.vlgmr.msrb.gmra.mxu3 %v12288_v54 }
 0xf41   :  { %8352 = vmatpush.bf16.msrb.mxu3 %v19885_v2  ;;  %8503 = vmatpush.bf16.msra.mxu2 %v19886_v4 }
 0xf43   :  { %v6999_v25 = vpop.f32.mrf.mxu3 }
 0xf44   :  { %v7000_v14 = vadd.f32 %v6999_v25, %v6951_v42  ;;  %v6916_v32 = vpop.f32.mrf.mxu1 }
 0xf45   :  { %8353 = vmatpush.bf16.msrb.mxu3 %v19905_v53  ;;  %8504 = vmatpush.bf16.msra.mxu2 %v19906_v19  ;;  %v6864_v19 = vpop.f32.mrf.mxu0 }
 0xf49   :  { %8354 = vmatpush.bf16.msrb.mxu3 %v19907_v41  ;;  %8505 = vmatpush.bf16.msra.mxu2 %v19996_v45  ;;  %v6907_v45 = vadd.f32 %v6906_v61, %v6857_v11 }
 0xf4b   :  { %v7001_v2 = vpop.f32.mrf.mxu3 }
 0xf4c   :  { %v7002_v4 = vadd.f32 %v7001_v2, %v6953_v38 }
 0xf4d   :  { %8355 = vmatpush.bf16.msrb.mxu3 %v19874_v43  ;;  %8506 = vmatpush.bf16.msra.mxu2 %v19930_v22  ;;  %v6956_v43 = vadd.f32 %v18384_v36, %v6907_v45  ;;  %v6867_v22 = vpop.f32.mrf.mxu0 }
 0xf4e   :  { %v7039_v53 = vpack.c.bf16 %v7002_v4, %v7000_v14  ;;  %v6917_v56 = vadd.f32 %v6916_v32, %v6867_v22 }
 0xf50   :  { %12237 = vmatmul.msk.bf16.vlgmr.msra.gmra.mxu0 %vm1461_vm1, %v7039_v53  ;;  %v6966_v34 = vadd.f32 %v18458_v27, %v6917_v56 }
 0xf51   :  { %7947 = vmatpush.bf16.msra.mxu0 %v14188_v62  ;;  %8356 = vmatpush.bf16.msrb.mxu3 %v19875_v49 }
 0xf53   :  { %v7004_v41 = vpop.f32.mrf.mxu3 }
 0xf54   :  { %v7005_v15 = vadd.f32 %v7004_v41, %v6956_v43  ;;  %v6975_v43 = vpop.f32.mrf.mxu2 }
 0xf55   :  { %7948 = vmatpush.bf16.msra.mxu0 %v19876_v0  ;;  %8357 = vmatpush.bf16.msrb.mxu3 %v19910_v50  ;;  %v6918_v50 = vpop.f32.mrf.mxu1  ;;  %v6869_v61 = vpop.f32.mrf.mxu0 }
 0xf56   :  { %v6919_v35 = vadd.f32 %v6918_v50, %v6869_v61 }
 0xf58   :  { %v6968_v14 = vadd.f32 %v18475_v31, %v6919_v35 }
 0xf59   :  { %7949 = vmatpush.bf16.msra.mxu0 %v19909_v60  ;;  %8358 = vmatpush.bf16.msrb.mxu3 %v19911_v24  ;;  %v6914_v24 = vadd.f32 %v6913_v33, %v6864_v19 }
 0xf5b   :  { %v7006_v8 = vpop.f32.mrf.mxu3  ;;  %v6963_v47 = vadd.f32 %v18435_v20, %v6914_v24 }
 0xf5c   :  { %v7007_v49 = vadd.f32 %v7006_v8, %v6958_v12  ;;  %v6977_v50 = vpop.f32.mrf.mxu2 }
 0xf5d   :  { %7950 = vmatpush.bf16.msra.mxu0 %v14219_v29  ;;  %8359 = vmatpush.bf16.msrb.mxu3 %v19931_v48  ;;  %v6921_v54 = vpop.f32.mrf.mxu1  ;;  %v6872_v25 = vpop.f32.mrf.mxu0 }
 0xf5e   :  { %v7040_v11 = vpack.c.bf16 %v7007_v49, %v7005_v15  ;;  %v6922_v37 = vadd.f32 %v6921_v54, %v6872_v25 }
 0xf60   :  { %12238 = vmatmul.msk.bf16.gmra.mxu0 %vm1461_vm1, %v7040_v11  ;;  %v6971_v32 = vadd.f32 %v18482_v7, %v6922_v37  ;;  %v13676_v37 = vld [vmem:[%s19705_s3 + $0xd34] sm:$0xf0] }
 0xf61   :  { %7951 = vmatpush.bf16.msra.mxu0 %v14135_v9 }
 0xf63   :  { %v7009_v36 = vpop.f32.mrf.mxu3 }
 0xf64   :  { %v7010_v48 = vadd.f32 %v7009_v36, %v6961_v23 }
 0xf65   :  { %7952 = vmatpush.bf16.msra.mxu0 %v19895_v55  ;;  %v6923_v38 = vpop.f32.mrf.mxu1  ;;  %v6874_v2 = vpop.f32.mrf.mxu0 }
 0xf66   :  { %v6924_v12 = vadd.f32 %v6923_v38, %v6874_v2 }
 0xf68   :  { %v6973_v22 = vadd.f32 %v18498_v46, %v6924_v12  ;;  %v12295_v12 = vld [vmem:[%s19705_s3 + $0xd20] sm:$0xf] }
 0xf69   :  { %7953 = vmatpush.bf16.msra.mxu0 %v19912_v40 }
 0xf6b   :  { %v7011_v42 = vpop.f32.mrf.mxu3 }
 0xf6c   :  { %v7012_v30 = vadd.f32 %v7011_v42, %v6963_v47  ;;  %v6980_v42 = vpop.f32.mrf.mxu2 }
 0xf6d   :  { %7954 = vmatpush.bf16.msra.mxu0 %v19883_v59  ;;  %v6926_v19 = vpop.f32.mrf.mxu1  ;;  %v6877_v41 = vpop.f32.mrf.mxu0 }
 0xf6e   :  { %v7041_v10 = vpack.c.bf16 %v7012_v30, %v7010_v48  ;;  %v6927_v61 = vadd.f32 %v6926_v19, %v6877_v41 }
 0xf70   :  { %12239 = vmatmul.msk.bf16.gmra.mxu0 %vm1461_vm1, %v7041_v10  ;;  %v6976_v47 = vadd.f32 %v6975_v43, %v6927_v61 }
 0xf73   :  { %v7014_v58 = vpop.f32.mrf.mxu3 }
 0xf74   :  { %v7015_v4 = vadd.f32 %v7014_v58, %v6966_v34  ;;  %v6982_v58 = vpop.f32.mrf.mxu2 }
 0xf75   :  { %v6928_v8 = vpop.f32.mrf.mxu1  ;;  %v6879_v15 = vpop.f32.mrf.mxu0 }
 0xf76   :  { %v6929_v23 = vadd.f32 %v6928_v8, %v6879_v15 }
 0xf78   :  { %v6978_v48 = vadd.f32 %v6977_v50, %v6929_v23 }
 0xf7b   :  { %v7016_v20 = vpop.f32.mrf.mxu3 }
 0xf7c   :  { %v7017_v53 = vadd.f32 %v7016_v20, %v6968_v14  ;;  %v6985_v19 = vpop.f32.mrf.mxu2 }
 0xf7d   :  { %v6931_v63 = vpop.f32.mrf.mxu1  ;;  %v6882_v24 = vpop.f32.mrf.mxu0 }
 0xf7e   :  { %v7042_v33 = vpack.c.bf16 %v7017_v53, %v7015_v4  ;;  %v6932_v35 = vadd.f32 %v6931_v63, %v6882_v24 }
 0xf80   :  { %12240 = vmatmul.msk.bf16.gmra.mxu0 %vm1461_vm1, %v7042_v33  ;;  %v6981_v2 = vadd.f32 %v6980_v42, %v6932_v35  ;;  %v13680_v42 = vld [vmem:[%s19705_s3 + $0xd54] sm:$0xf0]  ;;  %v12335_v35 = vld [vmem:[%s19705_s3 + $0xd68] sm:$0xf] }
 0xf83   :  { %v7019_v45 = vpop.f32.mrf.mxu3 }
 0xf84   :  { %v7020_v31 = vadd.f32 %v7019_v45, %v6971_v32  ;;  %v12303_v45 = vld [vmem:[%s19705_s3 + $0xd28] sm:$0xf]  ;;  %v13675_v32 = vld [vmem:[%s19705_s3 + $0xd2c] sm:$0xf0] }
 0xf85   :  { %v6933_v25 = vpop.f32.mrf.mxu1  ;;  %v6884_v10 = vpop.f32.mrf.mxu0  ;;  %v12304_v43 = vor.u32 %v13676_v37, %v12303_v45  ;;  %v12296_v8 = vor.u32 %v13675_v32, %v12295_v12  ;;  %v12343_v45 = vld [vmem:[%s19705_s3 + $0xd80] sm:$0xf]  ;;  %v13678_v12 = vld [vmem:[%s19705_s3 + $0xd4c] sm:$0xf]  ;;  %v12321_v32 = vld [vmem:[%s19705_s3 + $0xd58] sm:$0xf0] }
 0xf86   :  { %v6934_v38 = vadd.f32 %v6933_v25, %v6884_v10  ;;  %v12289_v25 = vld [vmem:[%s19705_s3 + $0xd18] sm:$0xf0] }
 0xf87   :  { %7457 = vmatmul.bf16.gmra.mxu3 %v12304_v43  ;;  %7359 = vmatmul.bf16.gmra.mxu1 %v12296_v8 }
 0xf88   :  { %v6983_v20 = vadd.f32 %v6982_v58, %v6934_v38  ;;  %v13684_v38 = vld [vmem:[%s19705_s3 + $0xd74] sm:$0xf0] }
 0xf8b   :  { %v7021_v27 = vpop.f32.mrf.mxu3 }
 0xf8c   :  { %v7022_v49 = vadd.f32 %v7021_v27, %v6973_v22 }
 0xf8d   :  { %v6936_v34 = vpop.f32.mrf.mxu1  ;;  %v6887_v14 = vpop.f32.mrf.mxu0 }
 0xf8e   :  { %v7043_v11 = vpack.c.bf16 %v7022_v49, %v7020_v31  ;;  %v6937_v31 = vadd.f32 %v6936_v34, %v6887_v14  ;;  %v12327_v34 = vld [vmem:[%s19705_s3 + $0xd60] sm:$0xf]  ;;  %v13683_v14 = vld [vmem:[%s19705_s3 + $0xd6c] sm:$0xf0] }
 0xf90   :  { %12241 = vmatmul.msk.bf16.gmra.mxu0 %vm1461_vm1, %v7043_v11  ;;  %v6987_v11 = vpop.f32.mrf.mxu2  ;;  %v6986_v50 = vadd.f32 %v6985_v19, %v6937_v31 }
 0xf93   :  { %v7024_v36 = vpop.f32.mrf.mxu3 }
 0xf94   :  { %v7025_v30 = vadd.f32 %v7024_v36, %v6976_v47  ;;  %v12319_v47 = vld [vmem:[%s19705_s3 + $0xd48] sm:$0xf] }
 0xf95   :  { %v6938_v22 = vpop.f32.mrf.mxu1  ;;  %v6889_v27 = vpop.f32.mrf.mxu0 }
 0xf96   :  { %v6939_v49 = vadd.f32 %v6938_v22, %v6889_v27  ;;  %v12359_v27 = vld [vmem:[%s19705_s3 + $0xda0] sm:$0xf] }
 0xf98   :  { %v6988_v36 = vadd.f32 %v6987_v11, %v6939_v49  ;;  %v13682_v49 = vld [vmem:[%s19705_s3 + $0xd6c] sm:$0xf]  ;;  %v12337_v11 = vld [vmem:[%s19705_s3 + $0xd78] sm:$0xf0] }
 0xf9b   :  { %v7026_v7 = vpop.f32.mrf.mxu3 }
 0xf9c   :  { %v7027_v46 = vadd.f32 %v7026_v7, %v6978_v48  ;;  %v12320_v48 = vor.u32 %v13680_v42, %v12319_v47  ;;  %v12311_v7 = vld [vmem:[%s19705_s3 + $0xd40] sm:$0xf]  ;;  %v13695_v42 = vld [vmem:[%s19705_s3 + $0xdcc] sm:$0xf0] }
 0xf9d   :  { %v12375_v47 = vld [vmem:[%s19705_s3 + $0xdc0] sm:$0xf] }
 0xf9e   :  { %v7044_v54 = vpack.c.bf16 %v7027_v46, %v7025_v30  ;;  %7462 = vmatmul.bf16.gmra.mxu3 %v12320_v48  ;;  %v13679_v30 = vld [vmem:[%s19705_s3 + $0xd4c] sm:$0xf0]  ;;  %v12376_v48 = vor.u32 %v13695_v42, %v12375_v47 }
 0xf9f   :  { %v12312_v46 = vor.u32 %v13679_v30, %v12311_v7  ;;  %v20063_v30 = vld [vmem:[#allocation35_spill] sm:$0xff] }
 0xfa0   :  { %12242 = vmatmul.msk.bf16.gmra.mxu0 %vm1461_vm1, %v7044_v54  ;;  %v13670_v54 = vld [vmem:[%s19705_s3 + $0xd0c] sm:$0xf] }
 0xfa1   :  { %7364 = vmatmul.bf16.gmra.mxu1 %v12312_v46  ;;  %v12292_v10 = vor.u32 %v13670_v54, %v12289_v25  ;;  %v13686_v54 = vld [vmem:[%s19705_s3 + $0xd8c] sm:$0xf]  ;;  %v12353_v25 = vld [vmem:[%s19705_s3 + $0xd98] sm:$0xf0] }
 0xfa3   :  { %v7029_v56 = vpop.f32.mrf.mxu3 }
 0xfa4   :  { %v7030_v53 = vadd.f32 %v7029_v56, %v6981_v2  ;;  %v12336_v2 = vor.u32 %v13684_v38, %v12335_v35  ;;  %v20064_v35 = vld [vmem:[#allocation7_spill] sm:$0xff] }
 0xfab   :  { %v7031_v4 = vpop.f32.mrf.mxu3 }
 0xfac   :  { %v7032_v33 = vadd.f32 %v7031_v4, %v6983_v20 }
 0xfae   :  { %v7045_v41 = vpack.c.bf16 %v7032_v33, %v7030_v53  ;;  %7467 = vmatmul.bf16.gmra.mxu3 %v12336_v2  ;;  %v13674_v53 = vld [vmem:[%s19705_s3 + $0xd2c] sm:$0xf]  ;;  %v12305_v33 = vld [vmem:[%s19705_s3 + $0xd38] sm:$0xf0]  ;;  %v12399_v2 = vld [vmem:[%s19705_s3 + $0xde8] sm:$0xf] }
 0xfb0   :  { %12243 = vmatmul.msk.bf16.gmra.mxu0 %vm1461_vm1, %v7045_v41 }
 0xfb3   :  { %v7034_v15 = vpop.f32.mrf.mxu3 }
 0xfb4   :  { %v7035_v63 = vadd.f32 %v7034_v15, %v6986_v50  ;;  %v12340_v50 = vor.u32 %v13682_v49, %v12337_v11  ;;  %v13698_v49 = vld [vmem:[%s19705_s3 + $0xdec] sm:$0xf]  ;;  %v12401_v11 = vld [vmem:[%s19705_s3 + $0xdf8] sm:$0xf0] }
 0xfbb   :  { %v7036_v61 = vpop.f32.mrf.mxu3 }
 0xfbc   :  { %v7037_v24 = vadd.f32 %v7036_v61, %v6988_v36  ;;  %v20062_v61 = vld [vmem:[#allocation20_spill] sm:$0xff] }
 0xfbe   :  { %v7046_v23 = vpack.c.bf16 %v7037_v24, %v7035_v63  ;;  %v12383_v24 = vld [vmem:[%s19705_s3 + $0xdc8] sm:$0xf] }
 0xfc0   :  { %12244 = vmatmul.msk.bf16.gmra.mxu0 %vm1461_vm1, %v7046_v23 }
 0xfcd   :  { %v7097_v58 = vpop.f32.mrf.mxu0 }
 0xfce   :  { %v18584_v56 = vadd.f32 %v7097_v58, %v18314_v5  ;;  %v12328_v5 = vor.u32 %v13683_v14, %v12327_v34  ;;  %v13700_v34 = vld [vmem:[%s19705_s3 + $0xdf4] sm:$0xf0] }
 0xfcf   :  { %v12400_v14 = vor.u32 %v13700_v34, %v12399_v2 }
 0xfd0   :  { %7501 = vmatmul.bf16.vlgmr.msrb.gmra.mxu0 %v12292_v10  ;;  %7369 = vmatmul.bf16.gmra.mxu1 %v12328_v5  ;;  %v12356_v10 = vor.u32 %v13686_v54, %v12353_v25  ;;  %v12391_v5 = vld [vmem:[%s19705_s3 + $0xde0] sm:$0xf] }
 0xfd1   :  { %8401 = vmatpush.bf16.msrb.mxu0 %v19850_v1  ;;  %v12308_v1 = vor.u32 %v13674_v53, %v12305_v33 }
 0xfd5   :  { %8402 = vmatpush.bf16.msrb.mxu0 %v19851_v52  ;;  %v7099_v20 = vpop.f32.mrf.mxu0 }
 0xfd6   :  { %v18601_v4 = vadd.f32 %v7099_v20, %v18337_v6  ;;  %v12351_v6 = vld [vmem:[%s19705_s3 + $0xd88] sm:$0xf]  ;;  %v13699_v20 = vld [vmem:[%s19705_s3 + $0xdec] sm:$0xf0] }
 0xfd7   :  { %v12392_v53 = vor.u32 %v13699_v20, %v12391_v5 }
 0xfd9   :  { %8403 = vmatpush.bf16.msrb.mxu0 %v19852_v44  ;;  %v13688_v44 = vld [vmem:[%s19705_s3 + $0xd94] sm:$0xf0] }
 0xfda   :  { %v12352_v41 = vor.u32 %v13688_v44, %v12351_v6 }
 0xfdc   :  { %7472 = vmatmul.bf16.gmra.mxu3 %v12352_v41  ;;  %v20065_v41 = vld [vmem:[#allocation8_spill] sm:$0xff] }
 0xfdd   :  { %8404 = vmatpush.bf16.msrb.mxu0 %v19853_v21  ;;  %v7102_v19 = vpop.f32.mrf.mxu0  ;;  %v13687_v21 = vld [vmem:[%s19705_s3 + $0xd8c] sm:$0xf0] }
 0xfde   :  { %v18612_v52 = vadd.f32 %v7102_v19, %v18342_v51  ;;  %v12344_v51 = vor.u32 %v13687_v21, %v12343_v45  ;;  %v12369_v19 = vld [vmem:[%s19705_s3 + $0xdb8] sm:$0xf0] }
 0xfe0   :  { %7506 = vmatmul.bf16.gmra.mxu0 %v12308_v1  ;;  %7374 = vmatmul.bf16.gmra.mxu1 %v12344_v51  ;;  %v13690_v1 = vld [vmem:[%s19705_s3 + $0xdac] sm:$0xf]  ;;  %v7404_v51 = vpop.f32.mrf.mxu2 }
 0xfe1   :  { %8405 = vmatpush.bf16.msrb.mxu0 %v19854_v13  ;;  %v12324_v13 = vor.u32 %v13678_v12, %v12321_v32  ;;  %v12372_v6 = vor.u32 %v13690_v1, %v12369_v19  ;;  %v13694_v12 = vld [vmem:[%s19705_s3 + $0xdcc] sm:$0xf]  ;;  %v12385_v32 = vld [vmem:[%s19705_s3 + $0xdd8] sm:$0xf0] }
 0xfe5   :  { %8406 = vmatpush.bf16.msrb.mxu0 %v19855_v39  ;;  %v7104_v37 = vpop.f32.mrf.mxu0 }
 0xfe6   :  { %v18629_v43 = vadd.f32 %v7104_v37, %v18367_v17  ;;  %v12367_v17 = vld [vmem:[%s19705_s3 + $0xda8] sm:$0xf]  ;;  %v7355_v37 = vpop.f32.mrf.mxu1 }
 0xfe7   :  { %v7405_v54 = vadd.f32 %v7404_v51, %v7355_v37 }
 0xfe9   :  { %8407 = vmatpush.bf16.msrb.mxu0 %v19856_v28  ;;  %v13692_v28 = vld [vmem:[%s19705_s3 + $0xdb4] sm:$0xf0] }
 0xfea   :  { %v12368_v8 = vor.u32 %v13692_v28, %v12367_v17  ;;  %v20066_v28 = vld [vmem:[#allocation27_spill] sm:$0xff] }
 0xfec   :  { %7477 = vmatmul.bf16.gmra.mxu3 %v12368_v8 }
 0xfed   :  { %8408 = vmatpush.bf16.msrb.mxu0 %v19974_v18  ;;  %v7107_v22 = vpop.f32.mrf.mxu0  ;;  %v13691_v18 = vld [vmem:[%s19705_s3 + $0xdac] sm:$0xf0] }
 0xfee   :  { %v18640_v39 = vadd.f32 %v7107_v22, %v18373_v57  ;;  %v12360_v57 = vor.u32 %v13691_v18, %v12359_v27  ;;  %v12388_v22 = vor.u32 %v13694_v12, %v12385_v32  ;;  %v7406_v27 = vpop.f32.mrf.mxu2  ;;  %v7357_v18 = vpop.f32.mrf.mxu1 }
 0xff0   :  { %7511 = vmatmul.bf16.gmra.mxu0 %v12324_v13  ;;  %7379 = vmatmul.bf16.gmra.mxu1 %v12360_v57  ;;  %v7453_v13 = vpop.f32.mrf.mxu3 }
 0xff5   :  { %v7109_v15 = vpop.f32.mrf.mxu0 }
 0xff6   :  { %v18655_v31 = vadd.f32 %v7109_v15, %v18396_v16  ;;  %v13696_v16 = vld [vmem:[%s19705_s3 + $0xdd4] sm:$0xf0] }
 0xff7   :  { %v12384_v23 = vor.u32 %v13696_v16, %v12383_v24 }
 0xff8   :  { %v7455_v15 = vpop.f32.mrf.mxu3 }
 0xffc   :  { %7482 = vmatmul.bf16.gmra.mxu3 %v12384_v23 }
 0xffd   :  { %v7112_v36 = vpop.f32.mrf.mxu0 }
 0xffe   :  { %v18664_v63 = vadd.f32 %v7112_v36, %v20062_v61  ;;  %v12404_v61 = vor.u32 %v13698_v49, %v12401_v11 }
0x1000   :  { %7516 = vmatmul.bf16.gmra.mxu0 %v12340_v50  ;;  %7384 = vmatmul.bf16.gmra.mxu1 %v12376_v48  ;;  %v7409_v50 = vpop.f32.mrf.mxu2 }
0x1004   :  { %v7360_v36 = vpop.f32.mrf.mxu1 }
0x1005   :  { %v7114_v7 = vpop.f32.mrf.mxu0 }
0x1006   :  { %v18679_v46 = vadd.f32 %v7114_v7, %v20063_v30 }
0x1008   :  { %v7411_v47 = vpop.f32.mrf.mxu2 }
0x100a   :  { %v7458_v23 = vpop.f32.mrf.mxu3 }
0x100c   :  { %7487 = vmatmul.bf16.gmra.mxu3 %v12400_v14  ;;  %v7362_v48 = vpop.f32.mrf.mxu1 }
0x100d   :  { %v7117_v58 = vpop.f32.mrf.mxu0 }
0x100e   :  { %v18688_v38 = vadd.f32 %v7117_v58, %v20064_v35  ;;  %v7407_v58 = vadd.f32 %v7406_v27, %v7357_v18  ;;  %v7454_v35 = vadd.f32 %v7453_v13, %v7405_v54 }
0x1010   :  { %7521 = vmatmul.bf16.gmra.mxu0 %v12356_v10  ;;  %7389 = vmatmul.bf16.gmra.mxu1 %v12392_v53  ;;  %v7414_v25 = vpop.f32.mrf.mxu2  ;;  %v7456_v34 = vadd.f32 %v7455_v15, %v7407_v58 }
0x1012   :  { %v7460_v7 = vpop.f32.mrf.mxu3 }
0x1015   :  { %v18702_v33 = vpop.f32.mrf.mxu0 }
0x1018   :  { %v7416_v53 = vpop.f32.mrf.mxu2 }
0x101d   :  { %v7122_v44 = vpop.f32.mrf.mxu0 }
0x101e   :  { %v18711_v45 = vadd.f32 %v7122_v44, %v20065_v41  ;;  %v7365_v10 = vpop.f32.mrf.mxu1  ;;  %v7410_v44 = vadd.f32 %v7409_v50, %v7360_v36  ;;  %v7412_v41 = vadd.f32 %v7411_v47, %v7362_v48 }
0x101f   :  { %v7415_v15 = vadd.f32 %v7414_v25, %v7365_v10 }
0x1020   :  { %7526 = vmatmul.bf16.gmra.mxu0 %v12372_v6  ;;  %v7459_v51 = vadd.f32 %v7458_v23, %v7410_v44  ;;  %v7419_v37 = vpop.f32.mrf.mxu2  ;;  %v7461_v32 = vadd.f32 %v7460_v7, %v7412_v41 }
0x1021   :  { %v7463_v2 = vpop.f32.mrf.mxu3 }
0x1022   :  { %v7464_v11 = vadd.f32 %v7463_v2, %v7415_v15 }
0x1025   :  { %v18713_v21 = vpop.f32.mrf.mxu0 }
0x1026   :  { %v7367_v1 = vpop.f32.mrf.mxu1 }
0x1029   :  { %v7465_v6 = vpop.f32.mrf.mxu3 }
0x102d   :  { %v7127_v17 = vpop.f32.mrf.mxu0 }
0x102e   :  { %v18722_v8 = vadd.f32 %v7127_v17, %v20066_v28 }
0x1030   :  { %7531 = vmatmul.bf16.gmra.mxu0 %v12388_v22 }
0x1031   :  { %v7468_v28 = vpop.f32.mrf.mxu3 }
0x1035   :  { %v18724_v57 = vpop.f32.mrf.mxu0 }
0x1039   :  { %v7470_v49 = vpop.f32.mrf.mxu3 }
0x103d   :  { %v7132_v24 = vpop.f32.mrf.mxu0 }
0x103e   :  { %v18733_v16 = vadd.f32 %v7132_v24, %v18502_v26 }
0x1040   :  { %7536 = vmatmul.bf16.gmra.mxu0 %v12404_v61 }
0x1045   :  { %v18735_v42 = vpop.f32.mrf.mxu0 }
0x104d   :  { %v7502_v30 = vpop.f32.mrf.mxu0  ;;  %v7370_v12 = vpop.f32.mrf.mxu1 }
0x104e   :  { %v7503_v5 = vadd.f32 %v7502_v30, %v7454_v35  ;;  %v7420_v7 = vadd.f32 %v7419_v37, %v7370_v12 }
0x1050   :  { %v7469_v25 = vadd.f32 %v7468_v28, %v7420_v7 }
0x1055   :  { %v7504_v14 = vpop.f32.mrf.mxu0  ;;  %v7372_v18 = vpop.f32.mrf.mxu1 }
0x1056   :  { %v7505_v20 = vadd.f32 %v7504_v14, %v7456_v34 }
0x1058   :  { %v7542_v26 = vpack.c.bf16 %v7505_v20, %v7503_v5 }
0x105a   :  { %12417 = vmatmul.msk.bf16.vlgmr.msra.gmra.mxu1 %vm1461_vm1, %v7542_v26 }
0x105b   :  { %8450 = vmatpush.bf16.msra.mxu1 %v14188_v62  ;;  %v7421_v62 = vpop.f32.mrf.mxu2 }
0x105d   :  { %v7507_v19 = vpop.f32.mrf.mxu0  ;;  %v7375_v23 = vpop.f32.mrf.mxu1 }
0x105e   :  { %v7508_v22 = vadd.f32 %v7507_v19, %v7459_v51 }
0x105f   :  { %8451 = vmatpush.bf16.msra.mxu1 %v19876_v0  ;;  %v7473_v47 = vpop.f32.mrf.mxu3 }
0x1063   :  { %8452 = vmatpush.bf16.msra.mxu1 %v19909_v60  ;;  %v7417_v60 = vadd.f32 %v7416_v53, %v7367_v1  ;;  %v7424_v24 = vpop.f32.mrf.mxu2 }
0x1064   :  { %v7425_v20 = vadd.f32 %v7424_v24, %v7375_v23  ;;  %v12467_v23 = vld [vmem:[%s19705_s3 + $0xe08] sm:$0xf] }
0x1065   :  { %v7509_v13 = vpop.f32.mrf.mxu0  ;;  %v7466_v50 = vadd.f32 %v7465_v6, %v7417_v60  ;;  %v7377_v54 = vpop.f32.mrf.mxu1 }
0x1066   :  { %v7510_v17 = vadd.f32 %v7509_v13, %v7461_v32  ;;  %v7474_v1 = vadd.f32 %v7473_v47, %v7425_v20  ;;  %v13707_v20 = vld [vmem:[%s19705_s3 + $0xe24] sm:$0xf] }
0x1067   :  { %8453 = vmatpush.bf16.msra.mxu1 %v14219_v29  ;;  %v7475_v58 = vpop.f32.mrf.mxu3 }
0x1068   :  { %v7543_v27 = vpack.c.bf16 %v7510_v17, %v7508_v22 }
0x106a   :  { %12418 = vmatmul.msk.bf16.gmra.mxu1 %vm1461_vm1, %v7543_v27 }
0x106b   :  { %8454 = vmatpush.bf16.msra.mxu1 %v14135_v9  ;;  %v7426_v30 = vpop.f32.mrf.mxu2 }
0x106c   :  { %v7427_v53 = vadd.f32 %v7426_v30, %v7377_v54 }
0x106d   :  { %v7512_v0 = vpop.f32.mrf.mxu0  ;;  %v7380_v14 = vpop.f32.mrf.mxu1 }
0x106e   :  { %v7513_v29 = vadd.f32 %v7512_v0, %v7464_v11  ;;  %v7476_v19 = vadd.f32 %v7475_v58, %v7427_v53  ;;  %v12477_v53 = vld [vmem:[%s19705_s3 + $0xe30] sm:$0xf0] }
0x106f   :  { %8455 = vmatpush.bf16.msra.mxu1 %v19895_v55  ;;  %v7422_v55 = vadd.f32 %v7421_v62, %v7372_v18  ;;  %v7478_v26 = vpop.f32.mrf.mxu3 }
0x1071   :  { %v7471_v10 = vadd.f32 %v7470_v49, %v7422_v55 }
0x1073   :  { %8456 = vmatpush.bf16.msra.mxu1 %v19912_v40 }
0x1075   :  { %v7514_v36 = vpop.f32.mrf.mxu0  ;;  %v7382_v41 = vpop.f32.mrf.mxu1 }
0x1076   :  { %v7515_v61 = vadd.f32 %v7514_v36, %v7466_v50  ;;  %v13703_v36 = vld [vmem:[%s19705_s3 + $0xe04] sm:$0xf] }
0x1077   :  { %8457 = vmatpush.bf16.msra.mxu1 %v19883_v59  ;;  %v7429_v59 = vpop.f32.mrf.mxu2  ;;  %v7480_v32 = vpop.f32.mrf.mxu3 }
0x1078   :  { %v7544_v9 = vpack.c.bf16 %v7515_v61, %v7513_v29  ;;  %v7430_v22 = vadd.f32 %v7429_v59, %v7380_v14  ;;  %v12461_v29 = vld [vmem:[%s19705_s3 + $0xe10] sm:$0xf0]  ;;  %v12475_v14 = vld [vmem:[%s19705_s3 + $0xe20] sm:$0xf] }
0x1079   :  { %v12464_v24 = vor.u32 %v13703_v36, %v12461_v29  ;;  %v12499_v36 = vld [vmem:[%s19705_s3 + $0xe48] sm:$0xf]  ;;  %v13714_v29 = vld [vmem:[%s19705_s3 + $0xe54] sm:$0xf0] }
0x107a   :  { %12419 = vmatmul.msk.bf16.gmra.mxu1 %vm1461_vm1, %v7544_v9  ;;  %v7479_v62 = vadd.f32 %v7478_v26, %v7430_v22  ;;  %v13706_v9 = vld [vmem:[%s19705_s3 + $0xe14] sm:$0xf0] }
0x107b   :  { %7906 = vmatmul.bf16.vlgmr.msra.gmra.mxu3 %v12464_v24  ;;  %v12468_v47 = vor.u32 %v13706_v9, %v12467_v23  ;;  %v13704_v24 = vld [vmem:[%s19705_s3 + $0xe0c] sm:$0xf]  ;;  %v12469_v23 = vld [vmem:[%s19705_s3 + $0xe18] sm:$0xf0] }
0x107c   :  { %v12472_v9 = vor.u32 %v13704_v24, %v12469_v23  ;;  %v12555_v24 = vld [vmem:[%s19705_s3 + $0xec0] sm:$0xf]  ;;  %v13729_v23 = vld [vmem:[%s19705_s3 + $0xecc] sm:$0xf0] }
0x107d   :  { %v7517_v48 = vpop.f32.mrf.mxu0  ;;  %v7385_v28 = vpop.f32.mrf.mxu1  ;;  %7955 = vmatmul.bf16.vlgmr.msra.gmra.mxu0 %v12468_v47 }
0x107e   :  { %v7518_v35 = vadd.f32 %v7517_v48, %v7469_v25 }
0x107f   :  { %v7431_v6 = vpop.f32.mrf.mxu2  ;;  %v7483_v0 = vpop.f32.mrf.mxu3 }
0x1080   :  { %v7432_v27 = vadd.f32 %v7431_v6, %v7382_v41 }
0x1082   :  { %v7481_v18 = vadd.f32 %v7480_v32, %v7432_v27 }
0x1085   :  { %v7519_v40 = vpop.f32.mrf.mxu0  ;;  %v7387_v61 = vpop.f32.mrf.mxu1 }
0x1086   :  { %v7520_v2 = vadd.f32 %v7519_v40, %v7471_v10 }
0x1087   :  { %v7434_v17 = vpop.f32.mrf.mxu2  ;;  %v7485_v48 = vpop.f32.mrf.mxu3 }
0x1088   :  { %v7545_v34 = vpack.c.bf16 %v7520_v2, %v7518_v35  ;;  %v7435_v55 = vadd.f32 %v7434_v17, %v7385_v28 }
0x108a   :  { %12420 = vmatmul.msk.bf16.gmra.mxu1 %vm1461_vm1, %v7545_v34  ;;  %v7484_v54 = vadd.f32 %v7483_v0, %v7435_v55  ;;  %v13717_v55 = vld [vmem:[%s19705_s3 + $0xe6c] sm:$0xf0] }
0x108d   :  { %v7522_v5 = vpop.f32.mrf.mxu0  ;;  %v7390_v10 = vpop.f32.mrf.mxu1 }
0x108e   :  { %v7523_v51 = vadd.f32 %v7522_v5, %v7474_v1  ;;  %v13709_v5 = vld [vmem:[%s19705_s3 + $0xe2c] sm:$0xf0]  ;;  %v12480_v1 = vor.u32 %v13707_v20, %v12477_v53  ;;  %v12523_v20 = vld [vmem:[%s19705_s3 + $0xe80] sm:$0xf]  ;;  %v13719_v53 = vld [vmem:[%s19705_s3 + $0xe84] sm:$0xf] }
0x108f   :  { %v7436_v50 = vpop.f32.mrf.mxu2  ;;  %v7488_v34 = vpop.f32.mrf.mxu3  ;;  %v12476_v26 = vor.u32 %v13709_v5, %v12475_v14 }
0x1090   :  { %v7437_v30 = vadd.f32 %v7436_v50, %v7387_v61  ;;  %7911 = vmatmul.bf16.gmra.mxu3 %v12480_v1  ;;  %v12500_v61 = vor.u32 %v13714_v29, %v12499_v36  ;;  %v12517_v36 = vld [vmem:[%s19705_s3 + $0xe78] sm:$0xf0] }
0x1091   :  { %7862 = vmatmul.bf16.gmra.mxu2 %v12476_v26  ;;  %v13721_v26 = vld [vmem:[%s19705_s3 + $0xe8c] sm:$0xf0] }
0x1092   :  { %v7486_v40 = vadd.f32 %v7485_v48, %v7437_v30  ;;  %v13715_v30 = vld [vmem:[%s19705_s3 + $0xe64] sm:$0xf]  ;;  %v12524_v1 = vor.u32 %v13721_v26, %v12523_v20  ;;  %v12573_v20 = vld [vmem:[%s19705_s3 + $0xef0] sm:$0xf0] }
0x1095   :  { %v7524_v44 = vpop.f32.mrf.mxu0  ;;  %v7392_v6 = vpop.f32.mrf.mxu1 }
0x1096   :  { %v7525_v37 = vadd.f32 %v7524_v44, %v7476_v19 }
0x1097   :  { %v7439_v25 = vpop.f32.mrf.mxu2  ;;  %v7490_v32 = vpop.f32.mrf.mxu3 }
0x1098   :  { %v7546_v12 = vpack.c.bf16 %v7525_v37, %v7523_v51  ;;  %v7440_v41 = vadd.f32 %v7439_v25, %v7390_v10  ;;  %v12483_v37 = vld [vmem:[%s19705_s3 + $0xe28] sm:$0xf]  ;;  %v12509_v25 = vld [vmem:[%s19705_s3 + $0xe70] sm:$0xf0] }
0x109a   :  { %12421 = vmatmul.msk.bf16.gmra.mxu1 %vm1461_vm1, %v7546_v12  ;;  %v13710_v12 = vld [vmem:[%s19705_s3 + $0xe34] sm:$0xf0]  ;;  %v7489_v22 = vadd.f32 %v7488_v34, %v7440_v41  ;;  %v13708_v34 = vld [vmem:[%s19705_s3 + $0xe2c] sm:$0xf]  ;;  %v12531_v41 = vld [vmem:[%s19705_s3 + $0xe88] sm:$0xf] }
0x109d   :  { %v7527_v13 = vpop.f32.mrf.mxu0 }
0x109e   :  { %v7528_v60 = vadd.f32 %v7527_v13, %v7479_v62  ;;  %v12484_v13 = vor.u32 %v13710_v12, %v12483_v37  ;;  %v13712_v12 = vld [vmem:[%s19705_s3 + $0xe4c] sm:$0xf] }
0x109f   :  { %v7441_v19 = vpop.f32.mrf.mxu2 }
0x10a0   :  { %v7442_v51 = vadd.f32 %v7441_v19, %v7392_v6  ;;  %7960 = vmatmul.bf16.gmra.mxu0 %v12484_v13  ;;  %v12525_v19 = vld [vmem:[%s19705_s3 + $0xe90] sm:$0xf0] }
0x10a2   :  { %v7491_v17 = vadd.f32 %v7490_v32, %v7442_v51  ;;  %v13722_v51 = vld [vmem:[%s19705_s3 + $0xe94] sm:$0xf0]  ;;  %v12501_v32 = vld [vmem:[%s19705_s3 + $0xe58] sm:$0xf0] }
0x10a3   :  { %v12532_v37 = vor.u32 %v13722_v51, %v12531_v41 }
0x10a5   :  { %v7529_v15 = vpop.f32.mrf.mxu0 }
0x10a6   :  { %v7530_v49 = vadd.f32 %v7529_v15, %v7481_v18  ;;  %v12491_v18 = vld [vmem:[%s19705_s3 + $0xe40] sm:$0xf]  ;;  %v13713_v15 = vld [vmem:[%s19705_s3 + $0xe4c] sm:$0xf0] }
0x10a8   :  { %v7547_v11 = vpack.c.bf16 %v7530_v49, %v7528_v60  ;;  %v13711_v60 = vld [vmem:[%s19705_s3 + $0xe44] sm:$0xf]  ;;  %v12492_v49 = vor.u32 %v13713_v15, %v12491_v18 }
0x10aa   :  { %12422 = vmatmul.msk.bf16.gmra.mxu1 %vm1461_vm1, %v7547_v11  ;;  %v12493_v11 = vld [vmem:[%s19705_s3 + $0xe50] sm:$0xf0]  ;;  %7867 = vmatmul.bf16.gmra.mxu2 %v12492_v49  ;;  %v13726_v49 = vld [vmem:[%s19705_s3 + $0xeb4] sm:$0xf0] }
0x10ab   :  { %v12496_v50 = vor.u32 %v13711_v60, %v12493_v11  ;;  %v12547_v60 = vld [vmem:[%s19705_s3 + $0xea8] sm:$0xf] }
0x10ac   :  { %v12548_v11 = vor.u32 %v13726_v49, %v12547_v60  ;;  %v13732_v49 = vld [vmem:[%s19705_s3 + $0xeec] sm:$0xf] }
0x10ad   :  { %v7532_v7 = vpop.f32.mrf.mxu0  ;;  %7916 = vmatmul.bf16.gmra.mxu3 %v12496_v50  ;;  %v13716_v50 = vld [vmem:[%s19705_s3 + $0xe6c] sm:$0xf] }
0x10ae   :  { %v7533_v35 = vadd.f32 %v7532_v7, %v7484_v54  ;;  %v12507_v7 = vld [vmem:[%s19705_s3 + $0xe60] sm:$0xf] }
0x10af   :  { %v12508_v54 = vor.u32 %v13717_v55, %v12507_v7  ;;  %v12557_v7 = vld [vmem:[%s19705_s3 + $0xed0] sm:$0xf0] }
0x10b0   :  { %7965 = vmatmul.bf16.gmra.mxu0 %v12500_v61 }
0x10b5   :  { %v7534_v58 = vpop.f32.mrf.mxu0 }
0x10b6   :  { %v7535_v2 = vadd.f32 %v7534_v58, %v7486_v40  ;;  %v12515_v58 = vld [vmem:[%s19705_s3 + $0xe68] sm:$0xf] }
0x10b8   :  { %v7548_v59 = vpack.c.bf16 %v7535_v2, %v7533_v35  ;;  %v13718_v35 = vld [vmem:[%s19705_s3 + $0xe74] sm:$0xf0] }
0x10b9   :  { %v12516_v2 = vor.u32 %v13718_v35, %v12515_v58  ;;  %v12533_v58 = vld [vmem:[%s19705_s3 + $0xe98] sm:$0xf0] }
0x10ba   :  { %12423 = vmatmul.msk.bf16.gmra.mxu1 %vm1461_vm1, %v7548_v59  ;;  %7872 = vmatmul.bf16.gmra.mxu2 %v12508_v54  ;;  %v12485_v59 = vld [vmem:[%s19705_s3 + $0xe38] sm:$0xf0]  ;;  %v12563_v54 = vld [vmem:[%s19705_s3 + $0xec8] sm:$0xf] }
0x10bd   :  { %v7537_v44 = vpop.f32.mrf.mxu0 }
0x10be   :  { %v7538_v27 = vadd.f32 %v7537_v44, %v7489_v22 }
0x10c0   :  { %7970 = vmatmul.bf16.gmra.mxu0 %v12516_v2 }
0x10c5   :  { %v7539_v28 = vpop.f32.mrf.mxu0 }
0x10c6   :  { %v7540_v62 = vadd.f32 %v7539_v28, %v7491_v17  ;;  %v12539_v17 = vld [vmem:[%s19705_s3 + $0xea0] sm:$0xf]  ;;  %v13725_v28 = vld [vmem:[%s19705_s3 + $0xeac] sm:$0xf0] }
0x10c8   :  { %v7549_v0 = vpack.c.bf16 %v7540_v62, %v7538_v27  ;;  %v13723_v27 = vld [vmem:[%s19705_s3 + $0xea4] sm:$0xf]  ;;  %v12540_v62 = vor.u32 %v13725_v28, %v12539_v17  ;;  %v12565_v17 = vld [vmem:[%s19705_s3 + $0xed8] sm:$0xf0] }
0x10ca   :  { %12424 = vmatmul.msk.bf16.gmra.mxu1 %vm1461_vm1, %v7549_v0  ;;  %7877 = vmatmul.bf16.gmra.mxu2 %v12524_v1  ;;  %v12541_v0 = vld [vmem:[%s19705_s3 + $0xeb0] sm:$0xf0]  ;;  %v13734_v1 = vld [vmem:[%s19705_s3 + $0xef4] sm:$0xf0] }
0x10d0   :  { %7975 = vmatmul.bf16.gmra.mxu0 %v12532_v37 }
0x10d7   :  { %v7600_v47 = vpop.f32.mrf.mxu1 }
0x10d8   :  { %v18808_v48 = vadd.f32 %v7600_v47, %v18584_v56  ;;  %v12512_v56 = vor.u32 %v13715_v30, %v12509_v25  ;;  %v12556_v47 = vor.u32 %v13729_v23, %v12555_v24  ;;  %v13730_v25 = vld [vmem:[%s19705_s3 + $0xed4] sm:$0xf0] }
0x10da   :  { %8004 = vmatmul.bf16.vlgmr.msrb.gmra.mxu1 %v12472_v9  ;;  %7921 = vmatmul.bf16.gmra.mxu3 %v12512_v56  ;;  %v13727_v9 = vld [vmem:[%s19705_s3 + $0xec4] sm:$0xf]  ;;  %v12564_v56 = vor.u32 %v13730_v25, %v12563_v54 }
0x10db   :  { %7882 = vmatmul.bf16.gmra.mxu2 %v12540_v62 }
0x10df   :  { %v7602_v10 = vpop.f32.mrf.mxu1 }
0x10e0   :  { %v18823_v40 = vadd.f32 %v7602_v10, %v18601_v4  ;;  %v12488_v4 = vor.u32 %v13708_v34, %v12485_v59  ;;  %7980 = vmatmul.bf16.gmra.mxu0 %v12548_v11  ;;  %v13720_v10 = vld [vmem:[%s19705_s3 + $0xe8c] sm:$0xf]  ;;  %v12571_v34 = vld [vmem:[%s19705_s3 + $0xee0] sm:$0xf]  ;;  %v13733_v59 = vld [vmem:[%s19705_s3 + $0xeec] sm:$0xf0] }
0x10e1   :  { %v12581_v11 = vld [vmem:[%s19705_s3 + $0xef8] sm:$0xf0] }
0x10e7   :  { %v7605_v14 = vpop.f32.mrf.mxu1 }
0x10e8   :  { %v18838_v5 = vadd.f32 %v7605_v14, %v18612_v52  ;;  %v12528_v52 = vor.u32 %v13719_v53, %v12525_v19  ;;  %v12572_v14 = vor.u32 %v13733_v59, %v12571_v34  ;;  %v12579_v53 = vld [vmem:[%s19705_s3 + $0xee8] sm:$0xf] }
0x10e9   :  { %v12580_v19 = vor.u32 %v13734_v1, %v12579_v53 }
0x10ea   :  { %8009 = vmatmul.bf16.gmra.mxu1 %v12488_v4  ;;  %7926 = vmatmul.bf16.gmra.mxu3 %v12528_v52  ;;  %v13731_v4 = vld [vmem:[%s19705_s3 + $0xee4] sm:$0xf]  ;;  %v13724_v52 = vld [vmem:[%s19705_s3 + $0xeac] sm:$0xf] }
0x10eb   :  { %7887 = vmatmul.bf16.gmra.mxu2 %v12556_v47 }
0x10ef   :  { %v7607_v6 = vpop.f32.mrf.mxu1 }
0x10f0   :  { %v18853_v44 = vadd.f32 %v7607_v6, %v18629_v43  ;;  %v12504_v43 = vor.u32 %v13712_v12, %v12501_v32  ;;  %7985 = vmatmul.bf16.gmra.mxu0 %v12564_v56  ;;  %v12549_v6 = vld [vmem:[%s19705_s3 + $0xeb8] sm:$0xf0]  ;;  %v7858_v32 = vpop.f32.mrf.mxu2 }
0x10f1   :  { %v12552_v41 = vor.u32 %v13724_v52, %v12549_v6 }
0x10f7   :  { %v7610_v13 = vpop.f32.mrf.mxu1 }
0x10f8   :  { %v18868_v22 = vadd.f32 %v7610_v13, %v18640_v39  ;;  %v12544_v39 = vor.u32 %v13723_v27, %v12541_v0  ;;  %v13728_v13 = vld [vmem:[%s19705_s3 + $0xecc] sm:$0xf] }
0x10f9   :  { %v12568_v27 = vor.u32 %v13728_v13, %v12565_v17 }
0x10fa   :  { %8014 = vmatmul.bf16.gmra.mxu1 %v12504_v43  ;;  %7931 = vmatmul.bf16.gmra.mxu3 %v12544_v39  ;;  %v7956_v28 = vpop.f32.mrf.mxu0 }
0x10fb   :  { %7892 = vmatmul.bf16.gmra.mxu2 %v12572_v14 }
0x10fe   :  { %v7907_v43 = vpop.f32.mrf.mxu3 }
0x10ff   :  { %v7612_v18 = vpop.f32.mrf.mxu1 }
0x1100   :  { %v18883_v15 = vadd.f32 %v7612_v18, %v18655_v31  ;;  %v12520_v31 = vor.u32 %v13716_v50, %v12517_v36  ;;  %7990 = vmatmul.bf16.gmra.mxu0 %v12580_v19 }
0x1102   :  { %v7958_v60 = vpop.f32.mrf.mxu0 }
0x1106   :  { %v7909_v39 = vpop.f32.mrf.mxu3 }
0x1107   :  { %v7615_v29 = vpop.f32.mrf.mxu1 }
0x1108   :  { %v18898_v61 = vadd.f32 %v7615_v29, %v18664_v63  ;;  %v12560_v63 = vor.u32 %v13727_v9, %v12557_v7 }
0x110a   :  { %8019 = vmatmul.bf16.gmra.mxu1 %v12520_v31  ;;  %7936 = vmatmul.bf16.gmra.mxu3 %v12560_v63  ;;  %v12584_v31 = vor.u32 %v13732_v49, %v12581_v11 }
0x110f   :  { %v7617_v55 = vpop.f32.mrf.mxu1 }
0x1110   :  { %v18913_v30 = vadd.f32 %v7617_v55, %v18679_v46  ;;  %v12536_v46 = vor.u32 %v13720_v10, %v12533_v58  ;;  %v7908_v55 = vadd.f32 %v7907_v43, %v7858_v32 }
0x1112   :  { %v7957_v10 = vadd.f32 %v7956_v28, %v7908_v55 }
0x1113   :  { %v7912_v36 = vpop.f32.mrf.mxu3 }
0x1117   :  { %v7620_v35 = vpop.f32.mrf.mxu1 }
0x1118   :  { %v18928_v2 = vadd.f32 %v7620_v35, %v18688_v38  ;;  %v12576_v38 = vor.u32 %v13731_v4, %v12573_v20 }
0x111a   :  { %8024 = vmatmul.bf16.gmra.mxu1 %v12536_v46  ;;  %7941 = vmatmul.bf16.gmra.mxu3 %v12576_v38 }
0x111b   :  { %v7914_v47 = vpop.f32.mrf.mxu3 }
0x111d   :  { %v7961_v24 = vpop.f32.mrf.mxu0 }
0x111f   :  { %v18942_v26 = vpop.f32.mrf.mxu1 }
0x1125   :  { %v7963_v7 = vpop.f32.mrf.mxu0 }
0x1127   :  { %v7625_v51 = vpop.f32.mrf.mxu1 }
0x1128   :  { %v18957_v37 = vadd.f32 %v7625_v51, %v18711_v45  ;;  %v7860_v45 = vpop.f32.mrf.mxu2 }
0x1129   :  { %v7910_v56 = vadd.f32 %v7909_v39, %v7860_v45 }
0x112a   :  { %8029 = vmatmul.bf16.gmra.mxu1 %v12552_v41 }
0x112b   :  { %v7959_v46 = vadd.f32 %v7958_v60, %v7910_v56 }
0x112d   :  { %v7966_v58 = vpop.f32.mrf.mxu0 }
0x112f   :  { %v18959_v12 = vpop.f32.mrf.mxu1 }
0x1130   :  { %v7863_v50 = vpop.f32.mrf.mxu2  ;;  %v7917_v25 = vpop.f32.mrf.mxu3 }
0x1131   :  { %v7913_v53 = vadd.f32 %v7912_v36, %v7863_v50 }
0x1133   :  { %v7962_v19 = vadd.f32 %v7961_v24, %v7913_v53 }
0x1135   :  { %v7968_v38 = vpop.f32.mrf.mxu0 }
0x1137   :  { %v7630_v62 = vpop.f32.mrf.mxu1 }
0x1138   :  { %v18968_v0 = vadd.f32 %v7630_v62, %v18722_v8  ;;  %v7865_v23 = vpop.f32.mrf.mxu2  ;;  %v7919_v14 = vpop.f32.mrf.mxu3 }
0x1139   :  { %v7915_v1 = vadd.f32 %v7914_v47, %v7865_v23 }
0x113a   :  { %8034 = vmatmul.bf16.gmra.mxu1 %v12568_v27 }
0x113b   :  { %v7964_v41 = vadd.f32 %v7963_v7, %v7915_v1 }
0x113d   :  { %v7971_v13 = vpop.f32.mrf.mxu0 }
0x113f   :  { %v18970_v18 = vpop.f32.mrf.mxu1 }
0x1140   :  { %v7868_v54 = vpop.f32.mrf.mxu2 }
0x1141   :  { %v7918_v45 = vadd.f32 %v7917_v25, %v7868_v54 }
0x1143   :  { %v7967_v49 = vadd.f32 %v7966_v58, %v7918_v45 }
0x1145   :  { %v7973_v60 = vpop.f32.mrf.mxu0 }
0x1147   :  { %v7635_v29 = vpop.f32.mrf.mxu1 }
0x1148   :  { %v18979_v8 = vadd.f32 %v7635_v29, %v18733_v16  ;;  %v7870_v4 = vpop.f32.mrf.mxu2 }
0x1149   :  { %v7920_v39 = vadd.f32 %v7919_v14, %v7870_v4 }
0x114a   :  { %8039 = vmatmul.bf16.gmra.mxu1 %v12584_v31 }
0x114b   :  { %v7969_v11 = vadd.f32 %v7968_v38, %v7920_v39 }
0x114d   :  { %v7976_v47 = vpop.f32.mrf.mxu0 }
0x114f   :  { %v18981_v9 = vpop.f32.mrf.mxu1 }
0x1150   :  { %v7873_v52 = vpop.f32.mrf.mxu2 }
0x1157   :  { %v8005_v63 = vpop.f32.mrf.mxu1 }
0x1158   :  { %v8006_v34 = vadd.f32 %v8005_v63, %v7957_v10  ;;  %v7875_v28 = vpop.f32.mrf.mxu2 }
0x115d   :  { %v7922_v6 = vpop.f32.mrf.mxu3 }
0x115e   :  { %v7923_v63 = vadd.f32 %v7922_v6, %v7873_v52 }
0x115f   :  { %v8007_v35 = vpop.f32.mrf.mxu1 }
0x1160   :  { %v8008_v59 = vadd.f32 %v8007_v35, %v7959_v46  ;;  %v7878_v29 = vpop.f32.mrf.mxu2  ;;  %v7972_v46 = vadd.f32 %v7971_v13, %v7923_v63  ;;  %v7978_v35 = vpop.f32.mrf.mxu0 }
0x1162   :  { %v8045_v16 = vpack.c.bf16 %v8008_v59, %v8006_v34 }
0x1164   :  { %12597 = vmatmul.msk.bf16.vlgmr.msrb.gmra.mxu2 %vm1461_vm1, %v8045_v16 }
0x1165   :  { %v7924_v62 = vpop.f32.mrf.mxu3 }
0x1166   :  { %v7925_v55 = vadd.f32 %v7924_v62, %v7875_v28 }
0x1167   :  { %v8010_v20 = vpop.f32.mrf.mxu1 }
0x1168   :  { %v8011_v32 = vadd.f32 %v8010_v20, %v7962_v19  ;;  %v7880_v56 = vpop.f32.mrf.mxu2  ;;  %v7974_v54 = vadd.f32 %v7973_v60, %v7925_v55  ;;  %v7981_v38 = vpop.f32.mrf.mxu0  ;;  %v12641_v55 = vld [vmem:[%s19705_s3 + $0xf10] sm:$0xf0] }
0x116d   :  { %v7927_v24 = vpop.f32.mrf.mxu3 }
0x116e   :  { %v7928_v20 = vadd.f32 %v7927_v24, %v7878_v29 }
0x116f   :  { %v8012_v51 = vpop.f32.mrf.mxu1 }
0x1170   :  { %v8013_v43 = vadd.f32 %v8012_v51, %v7964_v41  ;;  %v7883_v16 = vpop.f32.mrf.mxu2  ;;  %v7977_v1 = vadd.f32 %v7976_v47, %v7928_v20  ;;  %v7983_v13 = vpop.f32.mrf.mxu0  ;;  %v13739_v47 = vld [vmem:[%s19705_s3 + $0xf0c] sm:$0xf0] }
0x1172   :  { %v8046_v17 = vpack.c.bf16 %v8013_v43, %v8011_v32 }
0x1174   :  { %12598 = vmatmul.msk.bf16.gmra.mxu2 %vm1461_vm1, %v8046_v17 }
0x1175   :  { %v7929_v10 = vpop.f32.mrf.mxu3 }
0x1176   :  { %v7930_v53 = vadd.f32 %v7929_v10, %v7880_v56  ;;  %v12647_v56 = vld [vmem:[%s19705_s3 + $0xf08] sm:$0xf]  ;;  %v13740_v10 = vld [vmem:[%s19705_s3 + $0xf14] sm:$0xf0] }
0x1177   :  { %v8015_v27 = vpop.f32.mrf.mxu1 }
0x1178   :  { %v8016_v36 = vadd.f32 %v8015_v27, %v7967_v49  ;;  %v7979_v19 = vadd.f32 %v7978_v35, %v7930_v53  ;;  %v7885_v52 = vpop.f32.mrf.mxu2  ;;  %v7986_v60 = vpop.f32.mrf.mxu0 }
0x117d   :  { %v7932_v4 = vpop.f32.mrf.mxu3 }
0x117e   :  { %v7933_v28 = vadd.f32 %v7932_v4, %v7883_v16 }
0x117f   :  { %v8017_v50 = vpop.f32.mrf.mxu1 }
0x1180   :  { %v8018_v31 = vadd.f32 %v8017_v50, %v7969_v11  ;;  %v7888_v27 = vpop.f32.mrf.mxu2  ;;  %v7982_v39 = vadd.f32 %v7981_v38, %v7933_v28  ;;  %v12657_v28 = vld [vmem:[%s19705_s3 + $0xf30] sm:$0xf0] }
0x1182   :  { %v8047_v23 = vpack.c.bf16 %v8018_v31, %v8016_v36 }
0x1184   :  { %12599 = vmatmul.msk.bf16.gmra.mxu2 %vm1461_vm1, %v8047_v23  ;;  %v12639_v23 = vld [vmem:[%s19705_s3 + $0xf00] sm:$0xf] }
0x1185   :  { %v7934_v41 = vpop.f32.mrf.mxu3  ;;  %v12640_v63 = vor.u32 %v13739_v47, %v12639_v23  ;;  %v12671_v23 = vld [vmem:[%s19705_s3 + $0xf40] sm:$0xf]  ;;  %v13747_v47 = vld [vmem:[%s19705_s3 + $0xf4c] sm:$0xf0] }
0x1186   :  { %v7935_v45 = vadd.f32 %v7934_v41, %v7885_v52 }
0x1187   :  { %v8020_v7 = vpop.f32.mrf.mxu1  ;;  %8360 = vmatmul.bf16.vlgmr.msrb.gmra.mxu3 %v12640_v63  ;;  %v12672_v63 = vor.u32 %v13747_v47, %v12671_v23  ;;  %v13759_v23 = vld [vmem:[%s19705_s3 + $0xfac] sm:$0xf0]  ;;  %v13757_v47 = vld [vmem:[%s19705_s3 + $0xfa4] sm:$0xf] }
0x1188   :  { %v8021_v58 = vadd.f32 %v8020_v7, %v7972_v46  ;;  %v7984_v49 = vadd.f32 %v7983_v13, %v7935_v45  ;;  %v7890_v29 = vpop.f32.mrf.mxu2  ;;  %v13737_v7 = vld [vmem:[%s19705_s3 + $0xf04] sm:$0xf] }
0x1189   :  { %v12644_v46 = vor.u32 %v13737_v7, %v12641_v55  ;;  %v13741_v13 = vld [vmem:[%s19705_s3 + $0xf24] sm:$0xf]  ;;  %v12673_v55 = vld [vmem:[%s19705_s3 + $0xf50] sm:$0xf0] }
0x118a   :  { %v13745_v7 = vld [vmem:[%s19705_s3 + $0xf44] sm:$0xf] }
0x118b   :  { %8409 = vmatmul.bf16.vlgmr.msrb.gmra.mxu0 %v12644_v46  ;;  %v12649_v46 = vld [vmem:[%s19705_s3 + $0xf18] sm:$0xf0] }
0x118d   :  { %v7937_v62 = vpop.f32.mrf.mxu3 }
0x118f   :  { %v8022_v25 = vpop.f32.mrf.mxu1 }
0x1190   :  { %v8023_v34 = vadd.f32 %v8022_v25, %v7974_v54  ;;  %v12648_v54 = vor.u32 %v13740_v10, %v12647_v56  ;;  %v7988_v25 = vpop.f32.mrf.mxu0  ;;  %v7893_v16 = vpop.f32.mrf.mxu2  ;;  %v12676_v56 = vor.u32 %v13745_v7, %v12673_v55  ;;  %v13738_v10 = vld [vmem:[%s19705_s3 + $0xf0c] sm:$0xf] }
0x1192   :  { %v8048_v59 = vpack.c.bf16 %v8023_v34, %v8021_v58  ;;  %v7938_v58 = vadd.f32 %v7937_v62, %v7888_v27  ;;  %8458 = vmatmul.bf16.vlgmr.msra.gmra.mxu1 %v12648_v54  ;;  %v12660_v62 = vor.u32 %v13741_v13, %v12657_v28  ;;  %v12652_v54 = vor.u32 %v13738_v10, %v12649_v46  ;;  %v13753_v28 = vld [vmem:[%s19705_s3 + $0xf84] sm:$0xf] }
0x1194   :  { %12600 = vmatmul.msk.bf16.gmra.mxu2 %vm1461_vm1, %v8048_v59  ;;  %v7987_v59 = vadd.f32 %v7986_v60, %v7938_v58 }
0x1195   :  { %v7939_v24 = vpop.f32.mrf.mxu3 }
0x1196   :  { %v7940_v34 = vadd.f32 %v7939_v24, %v7890_v29 }
0x1197   :  { %v8025_v14 = vpop.f32.mrf.mxu1 }
0x1198   :  { %v8026_v51 = vadd.f32 %v8025_v14, %v7977_v1  ;;  %v7989_v14 = vadd.f32 %v7988_v25, %v7940_v34  ;;  %v7991_v1 = vpop.f32.mrf.mxu0  ;;  %v7895_v52 = vpop.f32.mrf.mxu2  ;;  %v12679_v25 = vld [vmem:[%s19705_s3 + $0xf48] sm:$0xf] }
0x119b   :  { %8414 = vmatmul.bf16.gmra.mxu0 %v12660_v62  ;;  %v12705_v62 = vld [vmem:[%s19705_s3 + $0xf90] sm:$0xf0] }
0x119d   :  { %v7942_v4 = vpop.f32.mrf.mxu3 }
0x119f   :  { %v8027_v6 = vpop.f32.mrf.mxu1 }
0x11a0   :  { %v8028_v32 = vadd.f32 %v8027_v6, %v7979_v19  ;;  %v7993_v45 = vpop.f32.mrf.mxu0 }
0x11a2   :  { %v8049_v43 = vpack.c.bf16 %v8028_v32, %v8026_v51  ;;  %v7943_v51 = vadd.f32 %v7942_v4, %v7893_v16  ;;  %v12655_v32 = vld [vmem:[%s19705_s3 + $0xf20] sm:$0xf]  ;;  %v13751_v4 = vld [vmem:[%s19705_s3 + $0xf6c] sm:$0xf0] }
0x11a3   :  { %v12687_v16 = vld [vmem:[%s19705_s3 + $0xf60] sm:$0xf] }
0x11a4   :  { %12601 = vmatmul.msk.bf16.gmra.mxu2 %vm1461_vm1, %v8049_v43  ;;  %v13743_v43 = vld [vmem:[%s19705_s3 + $0xf2c] sm:$0xf0] }
0x11a5   :  { %v7944_v6 = vpop.f32.mrf.mxu3 }
0x11a6   :  { %v7945_v27 = vadd.f32 %v7944_v6, %v7895_v52 }
0x11a7   :  { %v8030_v17 = vpop.f32.mrf.mxu1 }
0x11a8   :  { %v8031_v50 = vadd.f32 %v8030_v17, %v7982_v39  ;;  %v12656_v17 = vor.u32 %v13743_v43, %v12655_v32  ;;  %v7992_v39 = vadd.f32 %v7991_v1, %v7943_v51  ;;  %v7994_v60 = vadd.f32 %v7993_v45, %v7945_v27  ;;  %v12665_v1 = vld [vmem:[%s19705_s3 + $0xf38] sm:$0xf0]  ;;  %v13752_v51 = vld [vmem:[%s19705_s3 + $0xf74] sm:$0xf0] }
0x11a9   :  { %v12708_v45 = vor.u32 %v13753_v28, %v12705_v62  ;;  %v13765_v28 = vld [vmem:[%s19705_s3 + $0xfe4] sm:$0xf]  ;;  %v12753_v62 = vld [vmem:[%s19705_s3 + $0xff0] sm:$0xf0] }
0x11aa   :  { %8365 = vmatmul.bf16.gmra.mxu3 %v12656_v17  ;;  %v13755_v17 = vld [vmem:[%s19705_s3 + $0xf8c] sm:$0xf0] }
0x11ab   :  { %8419 = vmatmul.bf16.gmra.mxu0 %v12676_v56  ;;  %v12697_v56 = vld [vmem:[%s19705_s3 + $0xf78] sm:$0xf0] }
0x11af   :  { %v8032_v11 = vpop.f32.mrf.mxu1 }
0x11b0   :  { %v8033_v36 = vadd.f32 %v8032_v11, %v7984_v49 }
0x11b2   :  { %v8050_v31 = vpack.c.bf16 %v8033_v36, %v8031_v50  ;;  %v12663_v36 = vld [vmem:[%s19705_s3 + $0xf28] sm:$0xf] }
0x11b4   :  { %12602 = vmatmul.msk.bf16.gmra.mxu2 %vm1461_vm1, %v8050_v31  ;;  %v13744_v31 = vld [vmem:[%s19705_s3 + $0xf34] sm:$0xf0] }
0x11b5   :  { %v12664_v29 = vor.u32 %v13744_v31, %v12663_v36  ;;  %v13756_v36 = vld [vmem:[%s19705_s3 + $0xf94] sm:$0xf0] }
0x11b7   :  { %v8035_v35 = vpop.f32.mrf.mxu1  ;;  %8463 = vmatmul.bf16.gmra.mxu1 %v12664_v29 }
0x11b8   :  { %v8036_v38 = vadd.f32 %v8035_v35, %v7987_v59  ;;  %v13748_v35 = vld [vmem:[%s19705_s3 + $0xf54] sm:$0xf0] }
0x11b9   :  { %v12680_v58 = vor.u32 %v13748_v35, %v12679_v25  ;;  %v12727_v25 = vld [vmem:[%s19705_s3 + $0xfa8] sm:$0xf]  ;;  %v13760_v35 = vld [vmem:[%s19705_s3 + $0xfb4] sm:$0xf0] }
0x11ba   :  { %8370 = vmatmul.bf16.gmra.mxu3 %v12672_v63  ;;  %v12721_v63 = vld [vmem:[%s19705_s3 + $0xfb0] sm:$0xf0] }
0x11bb   :  { %v12724_v55 = vor.u32 %v13757_v47, %v12721_v63  ;;  %v12745_v47 = vld [vmem:[%s19705_s3 + $0xfd8] sm:$0xf0] }
0x11bf   :  { %v8037_v20 = vpop.f32.mrf.mxu1 }
0x11c0   :  { %v8038_v53 = vadd.f32 %v8037_v20, %v7989_v14  ;;  %v13749_v14 = vld [vmem:[%s19705_s3 + $0xf64] sm:$0xf]  ;;  %v12688_v20 = vor.u32 %v13751_v4, %v12687_v16  ;;  %v13763_v4 = vld [vmem:[%s19705_s3 + $0xfcc] sm:$0xf0] }
0x11c2   :  { %v8051_v19 = vpack.c.bf16 %v8038_v53, %v8036_v38  ;;  %v12689_v38 = vld [vmem:[%s19705_s3 + $0xf70] sm:$0xf0] }
0x11c3   :  { %v12692_v53 = vor.u32 %v13749_v14, %v12689_v38  ;;  %v13761_v14 = vld [vmem:[%s19705_s3 + $0xfc4] sm:$0xf]  ;;  %v12737_v38 = vld [vmem:[%s19705_s3 + $0xfd0] sm:$0xf0] }
0x11c4   :  { %12603 = vmatmul.msk.bf16.gmra.mxu2 %vm1461_vm1, %v8051_v19 }
0x11c5   :  { %8424 = vmatmul.bf16.gmra.mxu0 %v12692_v53  ;;  %v12740_v53 = vor.u32 %v13761_v14, %v12737_v38  ;;  %v13769_v14 = vld [vmem:[%s19706_s4 + $0xf0] sm:$0xff] }
0x11c7   :  { %v8040_v41 = vpop.f32.mrf.mxu1  ;;  %8468 = vmatmul.bf16.gmra.mxu1 %v12680_v58  ;;  %v12728_v58 = vor.u32 %v13760_v35, %v12727_v25  ;;  %v13766_v35 = vld [vmem:[%s19705_s3 + $0xfec] sm:$0xf] }
0x11c8   :  { %v8041_v11 = vadd.f32 %v8040_v41, %v7992_v39  ;;  %v12695_v41 = vld [vmem:[%s19705_s3 + $0xf68] sm:$0xf]  ;;  %v12681_v39 = vld [vmem:[%s19705_s3 + $0xf58] sm:$0xf0] }
0x11c9   :  { %v12696_v32 = vor.u32 %v13752_v51, %v12695_v41  ;;  %v12743_v41 = vld [vmem:[%s19705_s3 + $0xfc8] sm:$0xf]  ;;  %v13764_v51 = vld [vmem:[%s19705_s3 + $0xfd4] sm:$0xf0] }
0x11ca   :  { %8375 = vmatmul.bf16.gmra.mxu3 %v12688_v20 }
0x11cf   :  { %v8042_v49 = vpop.f32.mrf.mxu1 }
0x11d0   :  { %v8043_v50 = vadd.f32 %v8042_v49, %v7994_v60 }
0x11d2   :  { %v8052_v24 = vpack.c.bf16 %v8043_v50, %v8041_v11  ;;  %v12711_v50 = vld [vmem:[%s19705_s3 + $0xf88] sm:$0xf] }
0x11d3   :  { %v12712_v31 = vor.u32 %v13756_v36, %v12711_v50  ;;  %v13768_v50 = vld [vmem:[%s19705_s3 + $0xff4] sm:$0xf0] }
0x11d4   :  { %12604 = vmatmul.msk.bf16.gmra.mxu2 %vm1461_vm1, %v8052_v24 }
0x11d5   :  { %8429 = vmatmul.bf16.gmra.mxu0 %v12708_v45  ;;  %v12756_v45 = vor.u32 %v13765_v28, %v12753_v62 }
0x11d7   :  { %8473 = vmatmul.bf16.gmra.mxu1 %v12696_v32  ;;  %v12744_v32 = vor.u32 %v13764_v51, %v12743_v41 }
0x11e4   :  { %8507 = vmatmul.bf16.vlgmr.msra.gmra.mxu2 %v12652_v54 }
0x11e5   :  { %8434 = vmatmul.bf16.gmra.mxu0 %v12724_v55 }
0x11e7   :  { %v8103_v34 = vpop.f32.mrf.mxu2  ;;  %8478 = vmatmul.bf16.gmra.mxu1 %v12712_v31  ;;  %v13770_v31 = vld [vmem:[%s19706_s4 + $0xf8] sm:$0xff] }
0x11e8   :  { %v19052_v59 = vadd.f32 %v8103_v34, %v18808_v48  ;;  %v13742_v48 = vld [vmem:[%s19705_s3 + $0xf2c] sm:$0xf]  ;;  %8603 = vmatpush.bf16.msra.mxu3 %v13770_v31 }
0x11e9   :  { %v12668_v6 = vor.u32 %v13742_v48, %v12665_v1  ;;  %v12713_v48 = vld [vmem:[%s19705_s3 + $0xf98] sm:$0xf0] }
0x11ec   :  { %8604 = vmatpush.bf16.msra.mxu3 %v13769_v14 }
0x11ef   :  { %v8105_v19 = vpop.f32.mrf.mxu2 }
0x11f0   :  { %v19073_v52 = vadd.f32 %v8105_v19, %v18823_v40  ;;  %v12703_v40 = vld [vmem:[%s19705_s3 + $0xf80] sm:$0xf] }
0x11f1   :  { %v12704_v27 = vor.u32 %v13755_v17, %v12703_v40  ;;  %v13767_v17 = vld [vmem:[%s19705_s3 + $0xfec] sm:$0xf0] }
0x11f3   :  { %8380 = vmatmul.bf16.gmra.mxu3 %v12704_v27 }
0x11f4   :  { %8512 = vmatmul.bf16.gmra.mxu2 %v12668_v6 }
0x11f5   :  { %8439 = vmatmul.bf16.gmra.mxu0 %v12740_v53 }
0x11f7   :  { %v8108_v43 = vpop.f32.mrf.mxu2  ;;  %8483 = vmatmul.bf16.gmra.mxu1 %v12728_v58  ;;  %v12761_v58 = vld [vmem:[%s19705_s3 + $0xff8] sm:$0xf0] }
0x11f8   :  { %v19082_v13 = vadd.f32 %v8108_v43, %v18838_v5  ;;  %v13746_v5 = vld [vmem:[%s19705_s3 + $0xf4c] sm:$0xf] }
0x11f9   :  { %v12684_v11 = vor.u32 %v13746_v5, %v12681_v39  ;;  %v12729_v5 = vld [vmem:[%s19705_s3 + $0xfb8] sm:$0xf0] }
0x11ff   :  { %v8110_v60 = vpop.f32.mrf.mxu2 }
0x1200   :  { %v19103_v49 = vadd.f32 %v8110_v60, %v18853_v44  ;;  %v12719_v44 = vld [vmem:[%s19705_s3 + $0xfa0] sm:$0xf] }
0x1201   :  { %v12720_v7 = vor.u32 %v13759_v23, %v12719_v44  ;;  %v13762_v23 = vld [vmem:[%s19705_s3 + $0xfcc] sm:$0xf] }
0x1202   :  { %v12748_v63 = vor.u32 %v13762_v23, %v12745_v47 }
0x1203   :  { %8385 = vmatmul.bf16.gmra.mxu3 %v12720_v7 }
0x1204   :  { %8517 = vmatmul.bf16.gmra.mxu2 %v12684_v11  ;;  %v12759_v11 = vld [vmem:[%s19705_s3 + $0xfe8] sm:$0xf] }
0x1205   :  { %8444 = vmatmul.bf16.gmra.mxu0 %v12756_v45  ;;  %v12760_v36 = vor.u32 %v13768_v50, %v12759_v11 }
0x1207   :  { %v8113_v29 = vpop.f32.mrf.mxu2  ;;  %8488 = vmatmul.bf16.gmra.mxu1 %v12744_v32 }
0x1208   :  { %v19112_v24 = vadd.f32 %v8113_v29, %v18868_v22  ;;  %v13750_v22 = vld [vmem:[%s19705_s3 + $0xf6c] sm:$0xf]  ;;  %v8410_v55 = vpop.f32.mrf.mxu0 }
0x1209   :  { %v12700_v54 = vor.u32 %v13750_v22, %v12697_v56 }
0x120a   :  { %v8361_v22 = vpop.f32.mrf.mxu3 }
0x120b   :  { %v8411_v32 = vadd.f32 %v8410_v55, %v8361_v22 }
0x120f   :  { %v8115_v10 = vpop.f32.mrf.mxu2  ;;  %v8459_v56 = vpop.f32.mrf.mxu1 }
0x1210   :  { %v19133_v46 = vadd.f32 %v8115_v10, %v18883_v15  ;;  %v12735_v15 = vld [vmem:[%s19705_s3 + $0xfc0] sm:$0xf]  ;;  %v8460_v28 = vadd.f32 %v8459_v56, %v8411_v32 }
0x1211   :  { %v12736_v20 = vor.u32 %v13763_v4, %v12735_v15  ;;  %v12764_v4 = vor.u32 %v13766_v35, %v12761_v58 }
0x1212   :  { %v8363_v25 = vpop.f32.mrf.mxu3 }
0x1213   :  { %8390 = vmatmul.bf16.gmra.mxu3 %v12736_v20 }
0x1214   :  { %8522 = vmatmul.bf16.gmra.mxu2 %v12700_v54 }
0x1217   :  { %v8118_v34 = vpop.f32.mrf.mxu2  ;;  %8493 = vmatmul.bf16.gmra.mxu1 %v12760_v36  ;;  %v8461_v15 = vpop.f32.mrf.mxu1 }
0x1218   :  { %v19142_v16 = vadd.f32 %v8118_v34, %v18898_v61  ;;  %v13754_v61 = vld [vmem:[%s19705_s3 + $0xf8c] sm:$0xf] }
0x1219   :  { %v12716_v6 = vor.u32 %v13754_v61, %v12713_v48 }
0x121f   :  { %v8120_v1 = vpop.f32.mrf.mxu2 }
0x1220   :  { %v19163_v19 = vadd.f32 %v8120_v1, %v18913_v30  ;;  %v12751_v30 = vld [vmem:[%s19705_s3 + $0xfe0] sm:$0xf] }
0x1221   :  { %v12752_v27 = vor.u32 %v13767_v17, %v12751_v30 }
0x1223   :  { %8395 = vmatmul.bf16.gmra.mxu3 %v12752_v27 }
0x1224   :  { %8527 = vmatmul.bf16.gmra.mxu2 %v12716_v6 }
0x1227   :  { %v8123_v43 = vpop.f32.mrf.mxu2 }
0x1228   :  { %v19172_v40 = vadd.f32 %v8123_v43, %v18928_v2  ;;  %v13758_v2 = vld [vmem:[%s19705_s3 + $0xfac] sm:$0xf] }
0x1229   :  { %v12732_v60 = vor.u32 %v13758_v2, %v12729_v5 }
0x122d   :  { %v8366_v20 = vpop.f32.mrf.mxu3 }
0x122f   :  { %v19192_v39 = vpop.f32.mrf.mxu2 }
0x1234   :  { %8532 = vmatmul.bf16.gmra.mxu2 %v12732_v60  ;;  %v8464_v61 = vpop.f32.mrf.mxu1 }
0x1235   :  { %v8368_v6 = vpop.f32.mrf.mxu3 }
0x1237   :  { %v8128_v29 = vpop.f32.mrf.mxu2 }
0x1238   :  { %v19204_v44 = vadd.f32 %v8128_v29, %v18957_v37  ;;  %v8412_v37 = vpop.f32.mrf.mxu0 }
0x1239   :  { %v8413_v17 = vadd.f32 %v8412_v37, %v8363_v25 }
0x123b   :  { %v8462_v62 = vadd.f32 %v8461_v15, %v8413_v17 }
0x123c   :  { %v8466_v41 = vpop.f32.mrf.mxu1 }
0x123d   :  { %v8371_v30 = vpop.f32.mrf.mxu3 }
0x123f   :  { %v19212_v7 = vpop.f32.mrf.mxu2 }
0x1244   :  { %8537 = vmatmul.bf16.gmra.mxu2 %v12748_v63  ;;  %v8469_v27 = vpop.f32.mrf.mxu1 }
0x1245   :  { %v8373_v11 = vpop.f32.mrf.mxu3 }
0x1247   :  { %v8133_v10 = vpop.f32.mrf.mxu2 }
0x1248   :  { %v19215_v54 = vadd.f32 %v8133_v10, %v18968_v0  ;;  %v8415_v0 = vpop.f32.mrf.mxu0 }
0x1249   :  { %v8416_v31 = vadd.f32 %v8415_v0, %v8366_v20 }
0x124b   :  { %v8465_v23 = vadd.f32 %v8464_v61, %v8416_v31 }
0x124c   :  { %v8471_v36 = vpop.f32.mrf.mxu1 }
0x124d   :  { %v8376_v63 = vpop.f32.mrf.mxu3 }
0x124f   :  { %v19223_v34 = vpop.f32.mrf.mxu2 }
0x1250   :  { %v8417_v48 = vpop.f32.mrf.mxu0 }
0x1251   :  { %v8418_v29 = vadd.f32 %v8417_v48, %v8368_v6 }
0x1253   :  { %v8467_v55 = vadd.f32 %v8466_v41, %v8418_v29 }
0x1254   :  { %8542 = vmatmul.bf16.gmra.mxu2 %v12764_v4  ;;  %v8474_v37 = vpop.f32.mrf.mxu1 }
0x1255   :  { %v8378_v15 = vpop.f32.mrf.mxu3 }
0x1257   :  { %v8138_v38 = vpop.f32.mrf.mxu2 }
0x1258   :  { %v19229_v53 = vadd.f32 %v8138_v38, %v18979_v8  ;;  %v8420_v43 = vpop.f32.mrf.mxu0 }
0x1259   :  { %v8421_v4 = vadd.f32 %v8420_v43, %v8371_v30 }
0x125c   :  { %v8476_v38 = vpop.f32.mrf.mxu1 }
0x125f   :  { %v19231_v1 = vpop.f32.mrf.mxu2 }
0x1260   :  { %v8422_v8 = vpop.f32.mrf.mxu0 }
0x1261   :  { %v8423_v14 = vadd.f32 %v8422_v8, %v8373_v11 }
0x1263   :  { %v8472_v0 = vadd.f32 %v8471_v36, %v8423_v14 }
0x1264   :  { %v8479_v17 = vpop.f32.mrf.mxu1 }
0x1267   :  { %v8508_v51 = vpop.f32.mrf.mxu2 }
0x1268   :  { %v8509_v2 = vadd.f32 %v8508_v51, %v8460_v28  ;;  %v8425_v47 = vpop.f32.mrf.mxu0  ;;  %v8470_v51 = vadd.f32 %v8469_v27, %v8421_v4 }
0x126c   :  { %v8481_v8 = vpop.f32.mrf.mxu1 }
0x126f   :  { %v8510_v45 = vpop.f32.mrf.mxu2 }
0x1270   :  { %v8511_v5 = vadd.f32 %v8510_v45, %v8462_v62  ;;  %v8427_v35 = vpop.f32.mrf.mxu0  ;;  %v8426_v62 = vadd.f32 %v8425_v47, %v8376_v63 }
0x1271   :  { %v8428_v45 = vadd.f32 %v8427_v35, %v8378_v15 }
0x1272   :  { %v8548_v60 = vpack.c.bf16 %v8511_v5, %v8509_v2 }
0x1273   :  { %v8477_v43 = vadd.f32 %v8476_v38, %v8428_v45 }
0x1274   :  { %12777 = vmatmul.msk.bf16.vlgmr.msra.gmra.mxu3 %vm1461_vm1, %v8548_v60  ;;  %v8475_v60 = vadd.f32 %v8474_v37, %v8426_v62 }
0x1276   :  { %v8381_v41 = vpop.f32.mrf.mxu3 }
0x1277   :  { %v8513_v50 = vpop.f32.mrf.mxu2 }
0x1278   :  { %v8514_v56 = vadd.f32 %v8513_v50, %v8465_v23  ;;  %v8430_v6 = vpop.f32.mrf.mxu0 }
0x1279   :  { %v8431_v23 = vadd.f32 %v8430_v6, %v8381_v41 }
0x127e   :  { %v8383_v5 = vpop.f32.mrf.mxu3 }
0x127f   :  { %v8515_v22 = vpop.f32.mrf.mxu2 }
0x1280   :  { %v8516_v10 = vadd.f32 %v8515_v22, %v8467_v55  ;;  %v8432_v2 = vpop.f32.mrf.mxu0  ;;  %v8484_v55 = vpop.f32.mrf.mxu1 }
0x1281   :  { %v8433_v22 = vadd.f32 %v8432_v2, %v8383_v5 }
0x1282   :  { %v8549_v25 = vpack.c.bf16 %v8516_v10, %v8514_v56  ;;  %v8480_v56 = vadd.f32 %v8479_v17, %v8431_v23 }
0x1283   :  { %v8482_v47 = vadd.f32 %v8481_v8, %v8433_v22 }
0x1284   :  { %12778 = vmatmul.msk.bf16.gmra.mxu3 %vm1461_vm1, %v8549_v25 }
0x1286   :  { %v8386_v31 = vpop.f32.mrf.mxu3 }
0x1287   :  { %v8518_v58 = vpop.f32.mrf.mxu2 }
0x1288   :  { %v8519_v61 = vadd.f32 %v8518_v58, %v8470_v51  ;;  %v8435_v36 = vpop.f32.mrf.mxu0  ;;  %v8486_v15 = vpop.f32.mrf.mxu1 }
0x1289   :  { %v8436_v14 = vadd.f32 %v8435_v36, %v8386_v31 }
0x128e   :  { %v8388_v25 = vpop.f32.mrf.mxu3 }
0x128f   :  { %v8520_v20 = vpop.f32.mrf.mxu2 }
0x1290   :  { %v8521_v48 = vadd.f32 %v8520_v20, %v8472_v0  ;;  %v8437_v63 = vpop.f32.mrf.mxu0  ;;  %v8485_v20 = vadd.f32 %v8484_v55, %v8436_v14 }
0x1291   :  { %v8438_v0 = vadd.f32 %v8437_v63, %v8388_v25 }
0x1292   :  { %v8550_v32 = vpack.c.bf16 %v8521_v48, %v8519_v61  ;;  %v8489_v61 = vpop.f32.mrf.mxu1 }
0x1293   :  { %v8487_v48 = vadd.f32 %v8486_v15, %v8438_v0 }
0x1294   :  { %12779 = vmatmul.msk.bf16.gmra.mxu3 %vm1461_vm1, %v8550_v32 }
0x1296   :  { %v8391_v51 = vpop.f32.mrf.mxu3 }
0x1297   :  { %v8523_v28 = vpop.f32.mrf.mxu2 }
0x1298   :  { %v8524_v27 = vadd.f32 %v8523_v28, %v8475_v60  ;;  %v8440_v38 = vpop.f32.mrf.mxu0 }
0x1299   :  { %v8441_v5 = vadd.f32 %v8440_v38, %v8391_v51  ;;  %v19245_v38 = vld [vmem:[%s19707_s5] ss:$0 sm:$0xff] }
0x129a   :  { %v8491_v45 = vpop.f32.mrf.mxu1 }
0x129e   :  { %v8393_v62 = vpop.f32.mrf.mxu3 }
0x129f   :  { %v8525_v30 = vpop.f32.mrf.mxu2 }
0x12a0   :  { %v8526_v11 = vadd.f32 %v8525_v30, %v8477_v43  ;;  %v8442_v28 = vpop.f32.mrf.mxu0  ;;  %v8490_v43 = vadd.f32 %v8489_v61, %v8441_v5 }
0x12a1   :  { %v8443_v60 = vadd.f32 %v8442_v28, %v8393_v62 }
0x12a2   :  { %v8551_v50 = vpack.c.bf16 %v8526_v11, %v8524_v27  ;;  %v8494_v31 = vpop.f32.mrf.mxu1 }
0x12a3   :  { %v8492_v27 = vadd.f32 %v8491_v45, %v8443_v60 }
0x12a4   :  { %12780 = vmatmul.msk.bf16.gmra.mxu3 %vm1461_vm1, %v8551_v50 }
0x12a6   :  { %v8396_v8 = vpop.f32.mrf.mxu3 }
0x12a7   :  { %v8528_v29 = vpop.f32.mrf.mxu2 }
0x12a8   :  { %v8529_v37 = vadd.f32 %v8528_v29, %v8480_v56  ;;  %v8445_v30 = vpop.f32.mrf.mxu0 }
0x12a9   :  { %v8446_v56 = vadd.f32 %v8445_v30, %v8396_v8 }
0x12aa   :  { %v8496_v63 = vpop.f32.mrf.mxu1 }
0x12ae   :  { %v8398_v55 = vpop.f32.mrf.mxu3 }
0x12af   :  { %v8530_v10 = vpop.f32.mrf.mxu2 }
0x12b0   :  { %v8531_v35 = vadd.f32 %v8530_v10, %v8482_v47  ;;  %v8447_v23 = vpop.f32.mrf.mxu0  ;;  %v8495_v10 = vadd.f32 %v8494_v31, %v8446_v56 }
0x12b1   :  { %v8448_v47 = vadd.f32 %v8447_v23, %v8398_v55 }
0x12b2   :  { %v8552_v58 = vpack.c.bf16 %v8531_v35, %v8529_v37 }
0x12b3   :  { %v8497_v25 = vadd.f32 %v8496_v63, %v8448_v47 }
0x12b4   :  { %12781 = vmatmul.msk.bf16.gmra.mxu3 %vm1461_vm1, %v8552_v58 }
0x12b7   :  { %v8533_v4 = vpop.f32.mrf.mxu2 }
0x12b8   :  { %v8534_v41 = vadd.f32 %v8533_v4, %v8485_v20 }
0x12bf   :  { %v8535_v6 = vpop.f32.mrf.mxu2 }
0x12c0   :  { %v8536_v32 = vadd.f32 %v8535_v6, %v8487_v48 }
0x12c2   :  { %v8553_v17 = vpack.c.bf16 %v8536_v32, %v8534_v41 }
0x12c4   :  { %12782 = vmatmul.msk.bf16.gmra.mxu3 %vm1461_vm1, %v8553_v17 }
0x12c7   :  { %v8538_v2 = vpop.f32.mrf.mxu2 }
0x12c8   :  { %v8539_v50 = vadd.f32 %v8538_v2, %v8490_v43 }
0x12cf   :  { %v8540_v11 = vpop.f32.mrf.mxu2 }
0x12d0   :  { %v8541_v36 = vadd.f32 %v8540_v11, %v8492_v27 }
0x12d2   :  { %v8554_v29 = vpack.c.bf16 %v8541_v36, %v8539_v50 }
0x12d4   :  { %12783 = vmatmul.msk.bf16.gmra.mxu3 %vm1461_vm1, %v8554_v29 }
0x12d7   :  { %v8543_v22 = vpop.f32.mrf.mxu2 }
0x12d8   :  { %v8544_v35 = vadd.f32 %v8543_v22, %v8495_v10  ;;  %v20067_v10 = vld [vmem:[#allocation30_spill] sm:$0xff] }
0x12df   :  { %v8545_v37 = vpop.f32.mrf.mxu2 }
0x12e0   :  { %v8546_v58 = vadd.f32 %v8545_v37, %v8497_v25  ;;  %v7146_v25 = vadd.f32 %v18702_v33, %v20067_v10  ;;  %v13780_v10 = vld [vmem:[%s19708_s7 + $0x48] sm:$0xff] }
0x12e2   :  { %v8555_v15 = vpack.c.bf16 %v8546_v58, %v8544_v35  ;;  %v7649_v37 = vadd.f32 %v18942_v26, %v7146_v25  ;;  %v13779_v25 = vld [vmem:[%s19708_s7 + $0x40] sm:$0xff] }
0x12e4   :  { %12784 = vmatmul.msk.bf16.gmra.mxu3 %vm1461_vm1, %v8555_v15 }
0x12f7   :  { %v8606_v4 = vpop.f32.mrf.mxu3 }
0x12f8   :  { %v8646_v14 = vadd.f32 %v8606_v4, %v19052_v59 }
0x12fa   :  { %v8666_v0 = vadd.f32 %v19245_v38, %v8646_v14 }
0x12fc   :  { %v8682_v48 = vmax.f32 %v8666_v0, 0.0 }
0x12ff   :  { %v8608_v51 = vpop.f32.mrf.mxu3 }
0x1300   :  { %v8647_v20 = vadd.f32 %v8608_v51, %v19073_v52 }
0x1302   :  { %v8667_v61 = vadd.f32 %v19245_v38, %v8647_v20  ;;  %v20068_v20 = vld [vmem:[#allocation21_spill] sm:$0xff] }
0x1304   :  { %v8683_v6 = vmax.f32 %v8667_v61, 0.0 }
0x1306   :  { %v19250_v41 = vpack.c.bf16 %v8683_v6, %v8682_v48 }
0x1307   :  { %v8611_v32 = vpop.f32.mrf.mxu3 }
0x1308   :  { %v8648_v17 = vadd.f32 %v8611_v32, %v19082_v13 }
0x130a   :  { %v8668_v28 = vadd.f32 %v19245_v38, %v8648_v17 }
0x130c   :  { %v8684_v2 = vmax.f32 %v8668_v28, 0.0 }
0x130f   :  { %v8613_v59 = vpop.f32.mrf.mxu3 }
0x1310   :  { %v8649_v62 = vadd.f32 %v8613_v59, %v19103_v49 }
0x1312   :  { %v8669_v45 = vadd.f32 %v19245_v38, %v8649_v62 }
0x1314   :  { %v8685_v5 = vmax.f32 %v8669_v45, 0.0 }
0x1316   :  { %v19256_v60 = vpack.c.bf16 %v8685_v5, %v8684_v2  ;;  %v20070_v5 = vld [vmem:[#allocation18_spill] sm:$0xff] }
0x1317   :  { %v8616_v52 = vpop.f32.mrf.mxu3 }
0x1318   :  { %v8650_v43 = vadd.f32 %v8616_v52, %v19112_v24 }
0x131a   :  { %v8670_v8 = vadd.f32 %v19245_v38, %v8650_v43 }
0x131c   :  { %v8686_v11 = vmax.f32 %v8670_v8, 0.0 }
0x131f   :  { %v8618_v30 = vpop.f32.mrf.mxu3 }
0x1320   :  { %v8651_v27 = vadd.f32 %v8618_v30, %v19133_v46 }
0x1322   :  { %v8671_v13 = vadd.f32 %v19245_v38, %v8651_v27 }
0x1324   :  { %v8687_v50 = vmax.f32 %v8671_v13, 0.0 }
0x1326   :  { %v19262_v36 = vpack.c.bf16 %v8687_v50, %v8686_v11 }
0x1327   :  { %v8621_v49 = vpop.f32.mrf.mxu3 }
0x1328   :  { %v8652_v31 = vadd.f32 %v8621_v49, %v19142_v16  ;;  %v8152_v16 = vadd.f32 %v19192_v39, %v7649_v37  ;;  %v12854_v37 = vld [vmem:[%s19709_s6 + $0xc] sm:$0xf] }
0x132a   :  { %v8672_v23 = vadd.f32 %v19245_v38, %v8652_v31  ;;  %v20072_v31 = vld [vmem:[#allocation31_spill] sm:$0xff] }
0x132c   :  { %v8688_v22 = vmax.f32 %v8672_v23, 0.0 }
0x132f   :  { %v8623_v29 = vpop.f32.mrf.mxu3 }
0x1330   :  { %v8653_v55 = vadd.f32 %v8623_v29, %v19163_v19 }
0x1332   :  { %v8673_v24 = vadd.f32 %v19245_v38, %v8653_v55 }
0x1334   :  { %v8689_v56 = vmax.f32 %v8673_v24, 0.0 }
0x1336   :  { %v19268_v47 = vpack.c.bf16 %v8689_v56, %v8688_v22 }
0x1337   :  { %v8626_v46 = vpop.f32.mrf.mxu3 }
0x1338   :  { %v8654_v63 = vadd.f32 %v8626_v46, %v19172_v40  ;;  %v20069_v40 = vld [vmem:[#allocation22_spill] sm:$0xff] }
0x1339   :  { %v6645_v61 = vadd.f32 %v20069_v40, %v20068_v20  ;;  %v13771_v20 = vld [vmem:[%s19708_s7] sm:$0xff]  ;;  %v13786_v40 = vld [vmem:[%s19708_s7 + $0x78] sm:$0xff] }
0x133a   :  { %v8674_v58 = vadd.f32 %v19245_v38, %v8654_v63 }
0x133b   :  { %v7148_v33 = vadd.f32 %v18713_v21, %v6645_v61  ;;  %v6647_v21 = vadd.f32 %v18496_v3, %v20070_v5  ;;  %v20071_v3 = vld [vmem:[#allocation29_spill] sm:$0xff]  ;;  %v13785_v61 = vld [vmem:[%s19708_s7 + $0x70] sm:$0xff] }
0x133c   :  { %v8690_v4 = vmax.f32 %v8674_v58, 0.0  ;;  %v13805_v58 = vld [vmem:[%s19708_s7 + $0x110] sm:$0xff]  ;;  %v13798_v5 = vld [vmem:[%s19708_s7 + $0xd8] sm:$0xff] }
0x133d   :  { %v7651_v26 = vadd.f32 %v18959_v12, %v7148_v33  ;;  %v7150_v12 = vadd.f32 %v18724_v57, %v6647_v21  ;;  %v6649_v57 = vadd.f32 %v20072_v31, %v20071_v3  ;;  %v13784_v33 = vld [vmem:[%s19708_s7 + $0x68] sm:$0xff] }
0x133e   :  { %v13800_v31 = vld [vmem:[%s19708_s7 + $0xe8] sm:$0xff] }
0x133f   :  { %v8628_v35 = vpop.f32.mrf.mxu3  ;;  %v8154_v48 = vadd.f32 %v19212_v7, %v7651_v26  ;;  %v13778_v26 = vld [vmem:[%s19708_s7 + $0x38] sm:$0xff] }
0x1340   :  { %v8655_v19 = vadd.f32 %v8628_v35, %v8152_v16  ;;  %v13806_v16 = vld [vmem:[%s19708_s7 + $0x118] sm:$0xff] }
0x1341   :  { %v12932_v35 = vld [vmem:[%s19709_s6 + $0x18] sm:$0xf] }
0x1342   :  { %v8675_v15 = vadd.f32 %v19245_v38, %v8655_v19  ;;  %v13804_v19 = vld [vmem:[%s19708_s7 + $0x108] sm:$0xff] }
0x1344   :  { %v8691_v14 = vmax.f32 %v8675_v15, 0.0  ;;  %v13803_v15 = vld [vmem:[%s19708_s7 + $0x100] sm:$0xff] }
0x1346   :  { %v19277_v51 = vpack.c.bf16 %v8691_v14, %v8690_v4  ;;  %v13774_v4 = vld [vmem:[%s19708_s7 + $0x18] sm:$0xff]  ;;  %v13773_v14 = vld [vmem:[%s19708_s7 + $0x10] sm:$0xff] }
0x1347   :  { %v8631_v0 = vpop.f32.mrf.mxu3  ;;  %8826 = vmatpush.bf16.msrb.mxu2 %v13774_v4 }
0x1348   :  { %v8656_v39 = vadd.f32 %v8631_v0, %v19204_v44  ;;  %v7653_v44 = vadd.f32 %v18970_v18, %v7150_v12  ;;  %v7152_v18 = vadd.f32 %v18735_v42, %v6649_v57  ;;  %v13782_v42 = vld [vmem:[%s19708_s7 + $0x58] sm:$0xff]  ;;  %v13772_v0 = vld [vmem:[%s19708_s7 + $0x8] sm:$0xff]  ;;  %v13799_v57 = vld [vmem:[%s19708_s7 + $0xe0] sm:$0xff] }
0x134a   :  { %v8676_v32 = vadd.f32 %v19245_v38, %v8656_v39  ;;  %v8156_v52 = vadd.f32 %v19223_v34, %v7653_v44  ;;  %v13777_v39 = vld [vmem:[%s19708_s7 + $0x30] sm:$0xff] }
0x134b   :  { %8827 = vmatpush.bf16.msrb.mxu2 %v13773_v14 }
0x134c   :  { %v8692_v28 = vmax.f32 %v8676_v32, 0.0  ;;  %v13775_v32 = vld [vmem:[%s19708_s7 + $0x20] sm:$0xff] }
0x134f   :  { %v8633_v6 = vpop.f32.mrf.mxu3  ;;  %8828 = vmatpush.bf16.msrb.mxu2 %v13772_v0 }
0x1350   :  { %v8657_v17 = vadd.f32 %v8633_v6, %v8154_v48  ;;  %v13783_v48 = vld [vmem:[%s19708_s7 + $0x60] sm:$0xff]  ;;  %v13776_v6 = vld [vmem:[%s19708_s7 + $0x28] sm:$0xff] }
0x1352   :  { %v8677_v59 = vadd.f32 %v19245_v38, %v8657_v17 }
0x1353   :  { %8829 = vmatpush.bf16.msrb.mxu2 %v13771_v20 }
0x1354   :  { %v8693_v62 = vmax.f32 %v8677_v59, 0.0 }
0x1356   :  { %v19287_v45 = vpack.c.bf16 %v8693_v62, %v8692_v28 }
0x1357   :  { %v8636_v2 = vpop.f32.mrf.mxu3  ;;  %8957 = vmatpush.bf16.msra.mxu2 %v13786_v40 }
0x1358   :  { %v8658_v7 = vadd.f32 %v8636_v2, %v19215_v54  ;;  %v7655_v54 = vadd.f32 %v18981_v9, %v7152_v18  ;;  %v8706_v9 = vld [vmem:[%s19709_s6] sm:$0xf]  ;;  %v12906_v18 = vld [vmem:[%s19709_s6 + $0x14] sm:$0xf] }
0x135a   :  { %v8678_v30 = vadd.f32 %v19245_v38, %v8658_v7  ;;  %v8158_v29 = vadd.f32 %v19231_v1, %v7655_v54  ;;  %v12828_v1 = vld [vmem:[%s19709_s6 + $0x8] sm:$0xf]  ;;  %v13797_v7 = vld [vmem:[%s19708_s7 + $0xd0] sm:$0xff] }
0x135b   :  { %8958 = vmatpush.bf16.msra.mxu2 %v13785_v61 }
0x135c   :  { %v8694_v13 = vmax.f32 %v8678_v30, 0.0  ;;  %v13795_v30 = vld [vmem:[%s19708_s7 + $0xc0] sm:$0xff] }
0x135f   :  { %v8638_v43 = vpop.f32.mrf.mxu3  ;;  %8959 = vmatpush.bf16.msra.mxu2 %v13784_v33 }
0x1360   :  { %v8659_v8 = vadd.f32 %v8638_v43, %v8156_v52  ;;  %v13796_v52 = vld [vmem:[%s19708_s7 + $0xc8] sm:$0xff] }
0x1362   :  { %v8679_v27 = vadd.f32 %v19245_v38, %v8659_v8  ;;  %v12880_v8 = vld [vmem:[%s19709_s6 + $0x10] sm:$0xf] }
0x1363   :  { %8960 = vmatpush.bf16.msra.mxu2 %v13783_v48 }
0x1364   :  { %v8695_v11 = vmax.f32 %v8679_v27, 0.0 }
0x1366   :  { %v19297_v50 = vpack.c.bf16 %v8695_v11, %v8694_v13  ;;  %v13802_v11 = vld [vmem:[%s19708_s7 + $0xf8] sm:$0xff] }
0x1367   :  { %v8641_v49 = vpop.f32.mrf.mxu3 }
0x1368   :  { %v8660_v34 = vadd.f32 %v8641_v49, %v19229_v53  ;;  %v12785_v53 = vld [vmem:[%s19709_s6 + $0x4] sm:$0xf]  ;;  %v13801_v49 = vld [vmem:[%s19708_s7 + $0xf0] sm:$0xff] }
0x136a   :  { %v8680_v55 = vadd.f32 %v19245_v38, %v8660_v34  ;;  %v13814_v34 = vld [vmem:[%s19708_s7 + $0x158] sm:$0xff] }
0x136c   :  { %v8696_v56 = vmax.f32 %v8680_v55, 0.0  ;;  %v13812_v55 = vld [vmem:[%s19708_s7 + $0x148] sm:$0xff] }
0x136f   :  { %v8643_v23 = vpop.f32.mrf.mxu3 }
0x1370   :  { %v8661_v24 = vadd.f32 %v8643_v23, %v8158_v29  ;;  %v13813_v23 = vld [vmem:[%s19708_s7 + $0x150] sm:$0xff] }
0x1372   :  { %v8681_v22 = vadd.f32 %v19245_v38, %v8661_v24  ;;  %v13781_v38 = vld [vmem:[%s19708_s7 + $0x50] sm:$0xff] }
0x1374   :  { %v8697_v46 = vmax.f32 %v8681_v22, 0.0  ;;  %v13811_v22 = vld [vmem:[%s19708_s7 + $0x140] sm:$0xff] }
0x1376   :  { %v19307_v63 = vpack.c.bf16 %v8697_v46, %v8696_v56  ;;  %v12984_v56 = vld [vmem:[%s19709_s6 + $0x20] sm:$0xf]  ;;  %v13790_v46 = vld [vmem:[%s19708_s7 + $0x98] sm:$0xff] }
0x1378   :  { %8707 = vmatpush.bf16.msra.mxu0 %v19307_v63  ;;  %8731 = vmatpush.bf16.msrb.mxu1 %v19307_v63 }
0x1379   :  { %8837 = vmatpush.bf16.msrb.mxu3 %v19307_v63 }
0x137c   :  { %8708 = vmatpush.bf16.msra.mxu0 %v19297_v50  ;;  %8732 = vmatpush.bf16.msrb.mxu1 %v19297_v50 }
0x137d   :  { %8838 = vmatpush.bf16.msrb.mxu3 %v19297_v50 }
0x1380   :  { %8709 = vmatpush.bf16.msra.mxu0 %v19287_v45  ;;  %8733 = vmatpush.bf16.msrb.mxu1 %v19287_v45 }
0x1381   :  { %8839 = vmatpush.bf16.msrb.mxu3 %v19287_v45 }
0x1384   :  { %8710 = vmatpush.bf16.msra.mxu0 %v19277_v51  ;;  %8734 = vmatpush.bf16.msrb.mxu1 %v19277_v51 }
0x1385   :  { %8840 = vmatpush.bf16.msrb.mxu3 %v19277_v51 }
0x1388   :  { %8711 = vmatpush.bf16.msra.mxu0 %v19268_v47  ;;  %8735 = vmatpush.bf16.msrb.mxu1 %v19268_v47 }
0x1389   :  { %8841 = vmatpush.bf16.msrb.mxu3 %v19268_v47 }
0x138c   :  { %8712 = vmatpush.bf16.msra.mxu0 %v19262_v36  ;;  %8736 = vmatpush.bf16.msrb.mxu1 %v19262_v36 }
0x138d   :  { %8842 = vmatpush.bf16.msrb.mxu3 %v19262_v36 }
0x1390   :  { %8713 = vmatpush.bf16.msra.mxu0 %v19256_v60  ;;  %8737 = vmatpush.bf16.msrb.mxu1 %v19256_v60 }
0x1391   :  { %8843 = vmatpush.bf16.msrb.mxu3 %v19256_v60 }
0x1394   :  { %8714 = vmatpush.bf16.msra.mxu0 %v19250_v41  ;;  %8738 = vmatpush.bf16.msrb.mxu1 %v19250_v41 }
0x1395   :  { %8844 = vmatpush.bf16.msrb.mxu3 %v19250_v41 }
0x1397   :  { %8715 = vmatmul.bf16.vlgmr.msra.gmra.mxu0 %v8706_v9  ;;  %8739 = vmatmul.bf16.vlgmr.msrb.gmra.mxu1 %v12785_v53  ;;  %v13788_v9 = vld [vmem:[%s19708_s7 + $0x88] sm:$0xff]  ;;  %v13787_v53 = vld [vmem:[%s19708_s7 + $0x80] sm:$0xff] }
0x1398   :  { %8903 = vmatpush.bf16.msra.mxu1 %v19307_v63  ;;  %8845 = vmatmul.bf16.vlgmr.msrb.gmra.mxu3 %v12828_v1  ;;  %v13794_v1 = vld [vmem:[%s19708_s7 + $0xb8] sm:$0xff] }
0x1399   :  { %8891 = vmatpush.bf16.msra.mxu3 %v13782_v42  ;;  %8786 = vmatpush.bf16.msrb.mxu0 %v13778_v26  ;;  %v13789_v42 = vld [vmem:[%s19708_s7 + $0x90] sm:$0xff] }
0x139c   :  { %8904 = vmatpush.bf16.msra.mxu1 %v19297_v50 }
0x139d   :  { %8892 = vmatpush.bf16.msra.mxu3 %v13781_v38  ;;  %8787 = vmatpush.bf16.msrb.mxu0 %v13777_v39  ;;  %v13793_v38 = vld [vmem:[%s19708_s7 + $0xb0] sm:$0xff] }
0x13a0   :  { %8905 = vmatpush.bf16.msra.mxu1 %v19287_v45 }
0x13a1   :  { %8893 = vmatpush.bf16.msra.mxu3 %v13780_v10  ;;  %8788 = vmatpush.bf16.msrb.mxu0 %v13776_v6  ;;  %v13792_v10 = vld [vmem:[%s19708_s7 + $0xa8] sm:$0xff]  ;;  %v13810_v6 = vld [vmem:[%s19708_s7 + $0x138] sm:$0xff] }
0x13a4   :  { %8906 = vmatpush.bf16.msra.mxu1 %v19277_v51 }
0x13a5   :  { %8894 = vmatpush.bf16.msra.mxu3 %v13779_v25  ;;  %8789 = vmatpush.bf16.msrb.mxu0 %v13775_v32  ;;  %v13791_v25 = vld [vmem:[%s19708_s7 + $0xa0] sm:$0xff] }
0x13a8   :  { %8907 = vmatpush.bf16.msra.mxu1 %v19268_v47 }
0x13a9   :  { %8969 = vmatpush.bf16.msrb.mxu3 %v19307_v63  ;;  %9023 = vmatpush.bf16.msra.mxu0 %v13790_v46 }
0x13ac   :  { %8908 = vmatpush.bf16.msra.mxu1 %v19262_v36 }
0x13ad   :  { %8970 = vmatpush.bf16.msrb.mxu3 %v19297_v50  ;;  %9024 = vmatpush.bf16.msra.mxu0 %v13789_v42 }
0x13b0   :  { %8909 = vmatpush.bf16.msra.mxu1 %v19256_v60 }
0x13b1   :  { %8971 = vmatpush.bf16.msrb.mxu3 %v19287_v45  ;;  %9025 = vmatpush.bf16.msra.mxu0 %v13788_v9 }
0x13b4   :  { %8910 = vmatpush.bf16.msra.mxu1 %v19250_v41 }
0x13b5   :  { %8972 = vmatpush.bf16.msrb.mxu3 %v19277_v51  ;;  %9026 = vmatpush.bf16.msra.mxu0 %v13787_v53  ;;  %v13088_v53 = vld [vmem:[%s19709_s6 + $0x30] sm:$0xf] }
0x13b7   :  { %8911 = vmatmul.bf16.vlgmr.msra.gmra.mxu1 %v12854_v37 }
0x13b8   :  { %9101 = vmatpush.bf16.msrb.mxu1 %v19307_v63 }
0x13b9   :  { %8973 = vmatpush.bf16.msrb.mxu3 %v19268_v47 }
0x13bc   :  { %9102 = vmatpush.bf16.msrb.mxu1 %v19297_v50 }
0x13bd   :  { %8974 = vmatpush.bf16.msrb.mxu3 %v19262_v36 }
0x13c0   :  { %9103 = vmatpush.bf16.msrb.mxu1 %v19287_v45 }
0x13c1   :  { %8975 = vmatpush.bf16.msrb.mxu3 %v19256_v60 }
0x13c4   :  { %9104 = vmatpush.bf16.msrb.mxu1 %v19277_v51 }
0x13c5   :  { %8976 = vmatpush.bf16.msrb.mxu3 %v19250_v41 }
0x13c8   :  { %9105 = vmatpush.bf16.msrb.mxu1 %v19268_v47 }
0x13cc   :  { %9106 = vmatpush.bf16.msrb.mxu1 %v19262_v36 }
0x13d0   :  { %9107 = vmatpush.bf16.msrb.mxu1 %v19256_v60 }
0x13d4   :  { %9108 = vmatpush.bf16.msrb.mxu1 %v19250_v41 }
0x13d7   :  { %9109 = vmatmul.bf16.vlgmr.msrb.gmra.mxu1 %v12932_v35 }
0x13d8   :  { %9287 = vmatpush.bf16.msra.mxu1 %v13806_v16 }
0x13dc   :  { %9288 = vmatpush.bf16.msra.mxu1 %v13805_v58 }
0x13e0   :  { %9289 = vmatpush.bf16.msra.mxu1 %v13804_v19 }
0x13e4   :  { %9290 = vmatpush.bf16.msra.mxu1 %v13803_v15 }
0x13e8   :  { %9365 = vmatpush.bf16.msrb.mxu1 %v19307_v63 }
0x13ec   :  { %9366 = vmatpush.bf16.msrb.mxu1 %v19297_v50 }
0x13f0   :  { %9367 = vmatpush.bf16.msrb.mxu1 %v19287_v45 }
0x13f4   :  { %9368 = vmatpush.bf16.msrb.mxu1 %v19277_v51 }
0x13f8   :  { %9369 = vmatpush.bf16.msrb.mxu1 %v19268_v47 }
0x13fc   :  { %9370 = vmatpush.bf16.msrb.mxu1 %v19262_v36 }
0x1400   :  { %9371 = vmatpush.bf16.msrb.mxu1 %v19256_v60 }
0x1404   :  { %9372 = vmatpush.bf16.msrb.mxu1 %v19250_v41 }
0x1414   :  { %v8716_v17 = vpop.f32.mrf.mxu0  ;;  %v8740_v59 = vpop.f32.mrf.mxu1 }
0x1415   :  { %v8720_v28 = vpack.c.bf16 %v8716_v17, %v8716_v17  ;;  %v8744_v62 = vpack.c.bf16 %v8740_v59, %v8740_v59  ;;  %v13809_v17 = vld [vmem:[%s19708_s7 + $0x130] sm:$0xff] }
0x1417   :  { %12827 = vmatmul.msk.bf16.vlgmr.msrb.gmra.mxu2 %vm8778_vm2, %v8720_v28  ;;  %12810 = vmatmul.msk.bf16.vlgmr.msrb.gmra.mxu0 %vm8778_vm2, %v8744_v62  ;;  %v13808_v28 = vld [vmem:[%s19708_s7 + $0x128] sm:$0xff]  ;;  %v12958_v62 = vld [vmem:[%s19709_s6 + $0x1c] sm:$0xf] }
0x1418   :  { %9035 = vmatpush.bf16.msrb.mxu2 %v19307_v63  ;;  %9089 = vmatpush.bf16.msrb.mxu0 %v13794_v1 }
0x141b   :  { %v8846_v2 = vpop.f32.mrf.mxu3 }
0x141c   :  { %v8850_v21 = vpack.c.bf16 %v8846_v2, %v8846_v2  ;;  %9036 = vmatpush.bf16.msrb.mxu2 %v19297_v50  ;;  %v8742_v12 = vpop.f32.mrf.mxu1  ;;  %v8718_v44 = vpop.f32.mrf.mxu0  ;;  %9090 = vmatpush.bf16.msrb.mxu0 %v13793_v38  ;;  %v13807_v2 = vld [vmem:[%s19708_s7 + $0x120] sm:$0xff] }
0x141d   :  { %v13822_v12 = vld [vmem:[%s19708_s7 + $0x198] sm:$0xff] }
0x141e   :  { %12853 = vmatmul.msk.bf16.vlgmr.msra.gmra.mxu3 %vm8778_vm2, %v8850_v21 }
0x141f   :  { %9155 = vmatpush.bf16.msra.mxu3 %v13798_v5 }
0x1420   :  { %9037 = vmatpush.bf16.msrb.mxu2 %v19287_v45  ;;  %9091 = vmatpush.bf16.msrb.mxu0 %v13792_v10 }
0x1423   :  { %9156 = vmatpush.bf16.msra.mxu3 %v13797_v7  ;;  %v8848_v43 = vpop.f32.mrf.mxu3  ;;  %v13821_v7 = vld [vmem:[%s19708_s7 + $0x190] sm:$0xff] }
0x1424   :  { %9038 = vmatpush.bf16.msrb.mxu2 %v19277_v51  ;;  %9092 = vmatpush.bf16.msrb.mxu0 %v13791_v25 }
0x1427   :  { %9157 = vmatpush.bf16.msra.mxu3 %v13796_v52  ;;  %v13820_v52 = vld [vmem:[%s19708_s7 + $0x188] sm:$0xff] }
0x1428   :  { %9039 = vmatpush.bf16.msrb.mxu2 %v19268_v47 }
0x142b   :  { %9158 = vmatpush.bf16.msra.mxu3 %v13795_v30  ;;  %v13819_v30 = vld [vmem:[%s19708_s7 + $0x180] sm:$0xff] }
0x142c   :  { %9040 = vmatpush.bf16.msrb.mxu2 %v19262_v36 }
0x142e   :  { %8977 = vmatmul.bf16.vlgmr.msrb.gmra.mxu3 %v12880_v8  ;;  %v13036_v8 = vld [vmem:[%s19709_s6 + $0x28] sm:$0xf] }
0x142f   :  { %9233 = vmatpush.bf16.msrb.mxu3 %v19307_v63 }
0x1430   :  { %9041 = vmatpush.bf16.msrb.mxu2 %v19256_v60 }
0x1433   :  { %9234 = vmatpush.bf16.msrb.mxu3 %v19297_v50 }
0x1434   :  { %v8912_v27 = vpop.f32.mrf.mxu1  ;;  %9042 = vmatpush.bf16.msrb.mxu2 %v19250_v41 }
0x1435   :  { %v8916_v13 = vpack.c.bf16 %v8912_v27, %v8912_v27 }
0x1437   :  { %12879 = vmatmul.msk.bf16.vlgmr.msra.gmra.mxu2 %vm8778_vm2, %v8916_v13  ;;  %9235 = vmatpush.bf16.msrb.mxu3 %v19287_v45 }
0x1438   :  { %9221 = vmatpush.bf16.msra.mxu2 %v13802_v11 }
0x143b   :  { %9236 = vmatpush.bf16.msrb.mxu3 %v19277_v51 }
0x143c   :  { %v8914_v3 = vpop.f32.mrf.mxu1  ;;  %9222 = vmatpush.bf16.msra.mxu2 %v13801_v49 }
0x143f   :  { %9237 = vmatpush.bf16.msrb.mxu3 %v19268_v47 }
0x1440   :  { %9223 = vmatpush.bf16.msra.mxu2 %v13800_v31 }
0x1443   :  { %9238 = vmatpush.bf16.msrb.mxu3 %v19262_v36 }
0x1444   :  { %9224 = vmatpush.bf16.msra.mxu2 %v13799_v57 }
0x1447   :  { %9043 = vmatmul.bf16.vlgmr.msrb.gmra.mxu2 %v12906_v18  ;;  %9239 = vmatpush.bf16.msrb.mxu3 %v19256_v60  ;;  %v13818_v18 = vld [vmem:[%s19708_s7 + $0x178] sm:$0xff] }
0x1448   :  { %9299 = vmatpush.bf16.msrb.mxu2 %v19307_v63 }
0x144b   :  { %9240 = vmatpush.bf16.msrb.mxu3 %v19250_v41 }
0x144c   :  { %9300 = vmatpush.bf16.msrb.mxu2 %v19297_v50 }
0x1450   :  { %9301 = vmatpush.bf16.msrb.mxu2 %v19287_v45 }
0x1454   :  { %v9110_v54 = vpop.f32.mrf.mxu1  ;;  %9302 = vmatpush.bf16.msrb.mxu2 %v19277_v51 }
0x1455   :  { %v9114_v29 = vpack.c.bf16 %v9110_v54, %v9110_v54 }
0x1457   :  { %12957 = vmatmul.msk.bf16.vlgmr.msra.gmra.mxu3 %vm8778_vm2, %v9114_v29  ;;  %v13816_v29 = vld [vmem:[%s19708_s7 + $0x168] sm:$0xff] }
0x1458   :  { %9419 = vmatpush.bf16.msra.mxu3 %v13814_v34  ;;  %9303 = vmatpush.bf16.msrb.mxu2 %v19268_v47  ;;  %v13817_v34 = vld [vmem:[%s19708_s7 + $0x170] sm:$0xff] }
0x145c   :  { %9420 = vmatpush.bf16.msra.mxu3 %v13813_v23  ;;  %v9112_v24 = vpop.f32.mrf.mxu1  ;;  %9304 = vmatpush.bf16.msrb.mxu2 %v19262_v36 }
0x145d   :  { %v13010_v24 = vld [vmem:[%s19709_s6 + $0x24] sm:$0xf] }
0x1460   :  { %9421 = vmatpush.bf16.msra.mxu3 %v13812_v55  ;;  %9305 = vmatpush.bf16.msrb.mxu2 %v19256_v60  ;;  %v13815_v55 = vld [vmem:[%s19708_s7 + $0x160] sm:$0xff] }
0x1464   :  { %9422 = vmatpush.bf16.msra.mxu3 %v13811_v22  ;;  %9306 = vmatpush.bf16.msrb.mxu2 %v19250_v41 }
0x1467   :  { %9241 = vmatmul.bf16.vlgmr.msrb.gmra.mxu3 %v12984_v56 }
0x1468   :  { %9497 = vmatpush.bf16.msrb.mxu3 %v19307_v63 }
0x146c   :  { %9498 = vmatpush.bf16.msrb.mxu3 %v19297_v50 }
0x1470   :  { %9499 = vmatpush.bf16.msrb.mxu3 %v19287_v45 }
0x1474   :  { %9500 = vmatpush.bf16.msrb.mxu3 %v19277_v51 }
0x1478   :  { %9501 = vmatpush.bf16.msrb.mxu3 %v19268_v47 }
0x147c   :  { %9502 = vmatpush.bf16.msrb.mxu3 %v19262_v36 }
0x1480   :  { %9503 = vmatpush.bf16.msrb.mxu3 %v19256_v60 }
0x1484   :  { %9504 = vmatpush.bf16.msrb.mxu3 %v19250_v41 }
0x1494   :  { %v8791_v37 = vpop.f32.mrf.mxu0 }
0x149a   :  { %v8831_v16 = vpop.f32.mrf.mxu2 }
0x149b   :  { %v8832_v35 = vadd.f32 %v8831_v16, %v8791_v37  ;;  %v13826_v16 = vld [vmem:[%s19708_s7 + $0x1b8] sm:$0xff] }
0x149c   :  { %v8793_v58 = vpop.f32.mrf.mxu0 }
0x149d   :  { %v13825_v58 = vld [vmem:[%s19708_s7 + $0x1b0] sm:$0xff] }
0x14a1   :  { %v8896_v19 = vpop.f32.mrf.mxu3 }
0x14a2   :  { %v8833_v15 = vpop.f32.mrf.mxu2  ;;  %v8900_v4 = vadd.f32 %v8896_v19, %v8832_v35  ;;  %v13824_v19 = vld [vmem:[%s19708_s7 + $0x1a8] sm:$0xff] }
0x14a9   :  { %v8898_v14 = vpop.f32.mrf.mxu3 }
0x14aa   :  { %v13062_v14 = vld [vmem:[%s19709_s6 + $0x2c] sm:$0xf] }
0x14b1   :  { %v8978_v0 = vpop.f32.mrf.mxu3 }
0x14b2   :  { %v8982_v20 = vpack.c.bf16 %v8978_v0, %v8978_v0 }
0x14b4   :  { %12905 = vmatmul.msk.bf16.vlgmr.msra.gmra.mxu0 %vm8778_vm2, %v8982_v20 }
0x14b5   :  { %9167 = vmatpush.bf16.msra.mxu0 %v19307_v63 }
0x14b9   :  { %9168 = vmatpush.bf16.msra.mxu0 %v19297_v50  ;;  %v8980_v61 = vpop.f32.mrf.mxu3 }
0x14ba   :  { %v8962_v40 = vpop.f32.mrf.mxu2 }
0x14bb   :  { %v8966_v33 = vadd.f32 %v8962_v40, %v8900_v4  ;;  %v13823_v4 = vld [vmem:[%s19708_s7 + $0x1a0] sm:$0xff] }
0x14bd   :  { %9169 = vmatpush.bf16.msra.mxu0 %v19287_v45 }
0x14c1   :  { %9170 = vmatpush.bf16.msra.mxu0 %v19277_v51 }
0x14c2   :  { %v8964_v26 = vpop.f32.mrf.mxu2 }
0x14c5   :  { %9171 = vmatpush.bf16.msra.mxu0 %v19268_v47 }
0x14c9   :  { %9172 = vmatpush.bf16.msra.mxu0 %v19262_v36 }
0x14ca   :  { %v9044_v39 = vpop.f32.mrf.mxu2 }
0x14cb   :  { %v9048_v48 = vpack.c.bf16 %v9044_v39, %v9044_v39  ;;  %v13114_v39 = vld [vmem:[%s19709_s6 + $0x34] sm:$0xf] }
0x14cd   :  { %12931 = vmatmul.msk.bf16.vlgmr.msrb.gmra.mxu0 %vm8778_vm2, %v9048_v48 }
0x14ce   :  { %9173 = vmatpush.bf16.msra.mxu0 %v19256_v60 }
0x14d2   :  { %v9046_v32 = vpop.f32.mrf.mxu2  ;;  %9174 = vmatpush.bf16.msra.mxu0 %v19250_v41 }
0x14d3   :  { %v13829_v32 = vld [vmem:[%s19708_s7 + $0x1d0] sm:$0xff] }
0x14d6   :  { %9353 = vmatpush.bf16.msrb.mxu0 %v13810_v6  ;;  %v13830_v6 = vld [vmem:[%s19708_s7 + $0x1d8] sm:$0xff] }
0x14da   :  { %v19562_v59 = vpop.f32.mrf.mxu3  ;;  %9354 = vmatpush.bf16.msrb.mxu0 %v13809_v17 }
0x14dd   :  { %9175 = vmatmul.bf16.vlgmr.msra.gmra.mxu0 %v12958_v62 }
0x14de   :  { %9355 = vmatpush.bf16.msrb.mxu0 %v13808_v28  ;;  %v13827_v28 = vld [vmem:[%s19708_s7 + $0x1c0] sm:$0xff] }
0x14e2   :  { %v9162_v5 = vpop.f32.mrf.mxu3  ;;  %9356 = vmatpush.bf16.msrb.mxu0 %v13807_v2 }
0x14e6   :  { %9431 = vmatpush.bf16.msra.mxu0 %v19307_v63 }
0x14ea   :  { %9432 = vmatpush.bf16.msra.mxu0 %v19297_v50  ;;  %v9242_v21 = vpop.f32.mrf.mxu3 }
0x14eb   :  { %v9246_v44 = vpack.c.bf16 %v9242_v21, %v9242_v21 }
0x14ed   :  { %13009 = vmatmul.msk.bf16.vlgmr.msra.gmra.mxu1 %vm8778_vm2, %v9246_v44 }
0x14ee   :  { %9433 = vmatpush.bf16.msra.mxu0 %v19287_v45  ;;  %9551 = vmatpush.bf16.msra.mxu1 %v13822_v12 }
0x14f2   :  { %9434 = vmatpush.bf16.msra.mxu0 %v19277_v51  ;;  %9552 = vmatpush.bf16.msra.mxu1 %v13821_v7  ;;  %v9244_v43 = vpop.f32.mrf.mxu3 }
0x14f6   :  { %9435 = vmatpush.bf16.msra.mxu0 %v19268_v47  ;;  %9553 = vmatpush.bf16.msra.mxu1 %v13820_v52 }
0x14fa   :  { %9436 = vmatpush.bf16.msra.mxu0 %v19262_v36  ;;  %9554 = vmatpush.bf16.msra.mxu1 %v13819_v30 }
0x14fd   :  { %9373 = vmatmul.bf16.vlgmr.msrb.gmra.mxu1 %v13036_v8  ;;  %v13166_v8 = vld [vmem:[%s19709_s6 + $0x3c] sm:$0xf] }
0x14fe   :  { %9437 = vmatpush.bf16.msra.mxu0 %v19256_v60  ;;  %9629 = vmatpush.bf16.msrb.mxu1 %v19307_v63 }
0x1502   :  { %9438 = vmatpush.bf16.msra.mxu0 %v19250_v41  ;;  %9630 = vmatpush.bf16.msrb.mxu1 %v19297_v50 }
0x1506   :  { %9631 = vmatpush.bf16.msrb.mxu1 %v19287_v45 }
0x150a   :  { %9632 = vmatpush.bf16.msrb.mxu1 %v19277_v51 }
0x150e   :  { %9633 = vmatpush.bf16.msrb.mxu1 %v19268_v47 }
0x1512   :  { %9634 = vmatpush.bf16.msrb.mxu1 %v19262_v36 }
0x1516   :  { %9635 = vmatpush.bf16.msrb.mxu1 %v19256_v60 }
0x151a   :  { %9636 = vmatpush.bf16.msrb.mxu1 %v19250_v41 }
0x1531   :  { %v9028_v27 = vpop.f32.mrf.mxu0 }
0x1532   :  { %v9032_v13 = vadd.f32 %v9028_v27, %v8966_v33  ;;  %v13834_v27 = vld [vmem:[%s19708_s7 + $0x1f8] sm:$0xff] }
0x1539   :  { %v9030_v11 = vpop.f32.mrf.mxu0 }
0x153a   :  { %v13833_v11 = vld [vmem:[%s19708_s7 + $0x1f0] sm:$0xff] }
0x154a   :  { %v9094_v49 = vpop.f32.mrf.mxu0 }
0x154b   :  { %v9098_v3 = vadd.f32 %v9094_v49, %v9032_v13  ;;  %v13832_v49 = vld [vmem:[%s19708_s7 + $0x1e8] sm:$0xff] }
0x154d   :  { %v9164_v1 = vadd.f32 %v19562_v59, %v9098_v3  ;;  %v13828_v59 = vld [vmem:[%s19708_s7 + $0x1c8] sm:$0xff] }
0x1552   :  { %v9096_v31 = vpop.f32.mrf.mxu0 }
0x1553   :  { %v13831_v31 = vld [vmem:[%s19708_s7 + $0x1e0] sm:$0xff] }
0x155a   :  { %v9176_v57 = vpop.f32.mrf.mxu0 }
0x155b   :  { %v9180_v54 = vpack.c.bf16 %v9176_v57, %v9176_v57 }
0x155d   :  { %12983 = vmatmul.msk.bf16.vlgmr.msra.gmra.mxu2 %vm8778_vm2, %v9180_v54 }
0x155e   :  { %9485 = vmatpush.bf16.msra.mxu2 %v13818_v18 }
0x1562   :  { %9486 = vmatpush.bf16.msra.mxu2 %v13817_v34  ;;  %v9178_v23 = vpop.f32.mrf.mxu0 }
0x1566   :  { %9487 = vmatpush.bf16.msra.mxu2 %v13816_v29 }
0x156a   :  { %9488 = vmatpush.bf16.msra.mxu2 %v13815_v55  ;;  %v9292_v22 = vpop.f32.mrf.mxu1 }
0x156d   :  { %9307 = vmatmul.bf16.vlgmr.msrb.gmra.mxu2 %v13010_v24  ;;  %v13837_v24 = vld [vmem:[%s19710_s8] ss:$0 sm:$0xff] }
0x156e   :  { %9563 = vmatpush.bf16.msrb.mxu2 %v19307_v63 }
0x1572   :  { %9564 = vmatpush.bf16.msrb.mxu2 %v19297_v50  ;;  %v9294_v56 = vpop.f32.mrf.mxu1 }
0x1576   :  { %9565 = vmatpush.bf16.msrb.mxu2 %v19287_v45 }
0x157a   :  { %9566 = vmatpush.bf16.msrb.mxu2 %v19277_v51  ;;  %v9374_v46 = vpop.f32.mrf.mxu1 }
0x157b   :  { %v9378_v42 = vpack.c.bf16 %v9374_v46, %v9374_v46 }
0x157d   :  { %13061 = vmatmul.msk.bf16.vlgmr.msra.gmra.mxu3 %vm8778_vm2, %v9378_v42 }
0x157e   :  { %9567 = vmatpush.bf16.msrb.mxu2 %v19268_v47  ;;  %9683 = vmatpush.bf16.msra.mxu3 %v13830_v6 }
0x1582   :  { %9568 = vmatpush.bf16.msrb.mxu2 %v19262_v36  ;;  %v9376_v9 = vpop.f32.mrf.mxu1  ;;  %9684 = vmatpush.bf16.msra.mxu3 %v13829_v32 }
0x1586   :  { %9569 = vmatpush.bf16.msrb.mxu2 %v19256_v60  ;;  %9685 = vmatpush.bf16.msra.mxu3 %v13828_v59 }
0x158a   :  { %9570 = vmatpush.bf16.msrb.mxu2 %v19250_v41  ;;  %9686 = vmatpush.bf16.msra.mxu3 %v13827_v28 }
0x158d   :  { %9505 = vmatmul.bf16.vlgmr.msrb.gmra.mxu3 %v13088_v53 }
0x15e0   :  { %v9226_v38 = vpop.f32.mrf.mxu2 }
0x15e1   :  { %v9230_v10 = vadd.f32 %v9226_v38, %v9164_v1 }
0x15e8   :  { %v9228_v25 = vpop.f32.mrf.mxu2 }
0x15f0   :  { %v9308_v37 = vpop.f32.mrf.mxu2 }
0x15f1   :  { %v9312_v35 = vpack.c.bf16 %v9308_v37, %v9308_v37 }
0x15f3   :  { %13035 = vmatmul.msk.bf16.vlgmr.msrb.gmra.mxu0 %vm8778_vm2, %v9312_v35 }
0x15f4   :  { %9617 = vmatpush.bf16.msrb.mxu0 %v13826_v16 }
0x15f8   :  { %9618 = vmatpush.bf16.msrb.mxu0 %v13825_v58  ;;  %v9310_v15 = vpop.f32.mrf.mxu2 }
0x15fc   :  { %9619 = vmatpush.bf16.msrb.mxu0 %v13824_v19 }
0x1600   :  { %9620 = vmatpush.bf16.msrb.mxu0 %v13823_v4  ;;  %v9424_v0 = vpop.f32.mrf.mxu3 }
0x1603   :  { %9439 = vmatmul.bf16.vlgmr.msra.gmra.mxu0 %v13062_v14 }
0x1604   :  { %9695 = vmatpush.bf16.msra.mxu0 %v19307_v63 }
0x1608   :  { %9696 = vmatpush.bf16.msra.mxu0 %v19297_v50  ;;  %v9426_v20 = vpop.f32.mrf.mxu3  ;;  %v9296_v50 = vadd.f32 %v9292_v22, %v9230_v10 }
0x160c   :  { %9697 = vmatpush.bf16.msra.mxu0 %v19287_v45 }
0x1610   :  { %9698 = vmatpush.bf16.msra.mxu0 %v19277_v51  ;;  %v9506_v40 = vpop.f32.mrf.mxu3 }
0x1611   :  { %v9510_v61 = vpack.c.bf16 %v9506_v40, %v9506_v40 }
0x1613   :  { %13113 = vmatmul.msk.bf16.vlgmr.msra.gmra.mxu1 %vm8778_vm2, %v9510_v61 }
0x1614   :  { %9699 = vmatpush.bf16.msra.mxu0 %v19268_v47  ;;  %v13140_v47 = vld [vmem:[%s19709_s6 + $0x38] sm:$0xf] }
0x1618   :  { %9700 = vmatpush.bf16.msra.mxu0 %v19262_v36  ;;  %v9508_v63 = vpop.f32.mrf.mxu3 }
0x161c   :  { %9701 = vmatpush.bf16.msra.mxu0 %v19256_v60 }
0x1620   :  { %9702 = vmatpush.bf16.msra.mxu0 %v19250_v41 }
0x1623   :  { %9637 = vmatmul.bf16.vlgmr.msrb.gmra.mxu1 %v13140_v47 }
0x1670   :  { %v9358_v33 = vpop.f32.mrf.mxu0 }
0x1671   :  { %v9362_v45 = vadd.f32 %v9358_v33, %v9296_v50 }
0x1673   :  { %v9428_v26 = vadd.f32 %v9424_v0, %v9362_v45 }
0x1678   :  { %v9360_v36 = vpop.f32.mrf.mxu0 }
0x1680   :  { %v9440_v60 = vpop.f32.mrf.mxu0 }
0x1681   :  { %v9444_v51 = vpack.c.bf16 %v9440_v60, %v9440_v60 }
0x1683   :  { %13087 = vmatmul.msk.bf16.vlgmr.msra.gmra.mxu2 %vm8778_vm2, %v9444_v51 }
0x1684   :  { %9749 = vmatpush.bf16.msra.mxu2 %v13834_v27 }
0x1688   :  { %v9442_v41 = vpop.f32.mrf.mxu0  ;;  %9750 = vmatpush.bf16.msra.mxu2 %v13833_v11 }
0x168c   :  { %9751 = vmatpush.bf16.msra.mxu2 %v13832_v49 }
0x1690   :  { %v9556_v48 = vpop.f32.mrf.mxu1  ;;  %9752 = vmatpush.bf16.msra.mxu2 %v13831_v31 }
0x1693   :  { %9571 = vmatmul.bf16.vlgmr.msrb.gmra.mxu2 %v13114_v39 }
0x1698   :  { %v9558_v17 = vpop.f32.mrf.mxu1 }
0x16a0   :  { %v9638_v62 = vpop.f32.mrf.mxu1 }
0x16a1   :  { %v9642_v2 = vpack.c.bf16 %v9638_v62, %v9638_v62 }
0x16a3   :  { %13165 = vmatmul.msk.bf16.vlgmr.msra.gmra.mxu3 %vm8778_vm2, %v9642_v2 }
0x16a8   :  { %v9640_v5 = vpop.f32.mrf.mxu1 }
0x1706   :  { %v9490_v21 = vpop.f32.mrf.mxu2 }
0x1707   :  { %v9494_v12 = vadd.f32 %v9490_v21, %v9428_v26 }
0x1709   :  { %v9560_v44 = vadd.f32 %v9556_v48, %v9494_v12 }
0x170e   :  { %v9492_v7 = vpop.f32.mrf.mxu2 }
0x1716   :  { %v9572_v52 = vpop.f32.mrf.mxu2 }
0x1717   :  { %v9576_v43 = vpack.c.bf16 %v9572_v52, %v9572_v52 }
0x1719   :  { %13139 = vmatmul.msk.bf16.vlgmr.msrb.gmra.mxu0 %vm8778_vm2, %v9576_v43 }
0x171e   :  { %v9574_v30 = vpop.f32.mrf.mxu2 }
0x1726   :  { %v9688_v13 = vpop.f32.mrf.mxu3 }
0x1729   :  { %9703 = vmatmul.bf16.vlgmr.msra.gmra.mxu0 %v13166_v8 }
0x172e   :  { %v9690_v3 = vpop.f32.mrf.mxu3 }
0x1796   :  { %v9622_v57 = vpop.f32.mrf.mxu0 }
0x1797   :  { %v9626_v18 = vadd.f32 %v9622_v57, %v9560_v44 }
0x1799   :  { %v9692_v54 = vadd.f32 %v9688_v13, %v9626_v18 }
0x179e   :  { %v9624_v34 = vpop.f32.mrf.mxu0 }
0x17a6   :  { %v9704_v29 = vpop.f32.mrf.mxu0 }
0x17a7   :  { %v9708_v23 = vpack.c.bf16 %v9704_v29, %v9704_v29 }
0x17a9   :  { %13191 = vmatmul.msk.bf16.vlgmr.msra.gmra.mxu2 %vm8778_vm2, %v9708_v23 }
0x17ae   :  { %v9706_v55 = vpop.f32.mrf.mxu0 }
0x182c   :  { %v9754_v22 = vpop.f32.mrf.mxu2 }
0x182d   :  { %v9758_v56 = vadd.f32 %v9754_v22, %v9692_v54 }
0x182f   :  { %v9763_v46 = vadd.f32 %v13837_v24, %v9758_v56 }
0x1831   :  { %9764 = vst [vmem:[%s19711_s9] sm:$0xff] %v9763_v46 }
0x1834   :  { %v9756_v42 = vpop.f32.mrf.mxu2 }

</bundles_post_ra>
